<compile_context>
chip_gen: v6e
topology: v6e:2x2x1
jax: 0.10.0
libtpu: 0.0.40
codegen_flags: <defaults>
</compile_context>

<pallas_src>
import jax
import jax.numpy as jnp
from jax import lax
from jax.experimental import pallas as pl
from jax.experimental.pallas import tpu as pltpu


LEAKY_SLOPE = 0.2
BN_EPS = 1e-5


# ------------------------------------------------------------------ kernels

def _conv_leaky_kernel(x_ref, w_ref, b_ref, o_ref):
    """One M-tile of X @ W + b followed by LeakyReLU(0.2).

    X / W arrive in bf16; accumulation and the epilogue run in f32.
    """
    y = jnp.dot(x_ref[...], w_ref[...], preferred_element_type=jnp.float32)
    y = y + b_ref[...]                                     # (1, C) broadcast
    o_ref[...] = jnp.where(y > 0, y, LEAKY_SLOPE * y).astype(o_ref.dtype)


def _conv_bn_leaky_kernel(x_ref, w_ref, b_ref, g_ref, be_ref, o_ref, acc_ref):
    """Fused conv-as-matmul + bias + training-mode BatchNorm + LeakyReLU.

    Grid axis 0 runs over K tiles ("arbitrary"); partial products accumulate
    into an f32 VMEM scratch.  The whole (M, C) result stays in VMEM, so BN
    statistics (single pass: sum and sum-of-squares) and the scale / shift /
    LeakyReLU epilogue are applied before the single HBM store.
    """
    k = pl.program_id(0)

    @pl.when(k == 0)
    def _():
        acc_ref[...] = jnp.zeros_like(acc_ref)

    acc_ref[...] += jnp.dot(x_ref[...], w_ref[...],
                            preferred_element_type=jnp.float32)

    @pl.when(k == pl.num_programs(0) - 1)
    def _():
        m = acc_ref.shape[0]
        y = acc_ref[...] + b_ref[...]                       # (M, C), f32
        s1 = jnp.sum(y, axis=0, keepdims=True)              # (1, C)
        s2 = jnp.sum(y * y, axis=0, keepdims=True)          # (1, C)
        mean = s1 * (1.0 / m)
        var = s2 * (1.0 / m) - mean * mean                  # biased (train mode)
        yn = (y - mean) * lax.rsqrt(var + BN_EPS) * g_ref[...] + be_ref[...]
        o_ref[...] = jnp.where(yn > 0, yn, LEAKY_SLOPE * yn).astype(o_ref.dtype)


# ------------------------------------------------------------------ wrappers

def conv_leaky(x_mat, w_mat, bias, *, tm=256):
    """Conv-as-matmul + bias + LeakyReLU, tiled over M (parallel grid)."""
    M, K = x_mat.shape
    _, C = w_mat.shape
    m_pad = pl.cdiv(M, tm) * tm
    if m_pad != M:
        x_mat = jnp.pad(x_mat, ((0, m_pad - M), (0, 0)))
    out = pl.pallas_call(
        _conv_leaky_kernel,
        out_shape=jax.ShapeDtypeStruct((m_pad, C), jnp.bfloat16),
        grid=(m_pad // tm,),
        in_specs=[
            pl.BlockSpec((tm, K), lambda i: (i, 0)),
            pl.BlockSpec((K, C), lambda i: (0, 0)),
            pl.BlockSpec((1, C), lambda i: (0, 0)),
        ],
        out_specs=pl.BlockSpec((tm, C), lambda i: (i, 0)),
        compiler_params=pltpu.CompilerParams(
            dimension_semantics=("parallel",)),
    )(x_mat.astype(jnp.bfloat16),
      w_mat.astype(jnp.bfloat16),
      bias.reshape(1, C).astype(jnp.float32))
    return out[:M]


def conv_bn_leaky(x_mat, w_mat, bias, gamma, beta, *, tk=512):
    """Fused conv + bias + BatchNorm(train) + LeakyReLU, K-tiled accumulation."""
    M, K = x_mat.shape
    _, C = w_mat.shape
    if K % tk != 0:
        tk = K
    return pl.pallas_call(
        _conv_bn_leaky_kernel,
        out_shape=jax.ShapeDtypeStruct((M, C), jnp.bfloat16),
        grid=(K // tk,),
        in_specs=[
            pl.BlockSpec((M, tk), lambda k: (0, k)),
            pl.BlockSpec((tk, C), lambda k: (k, 0)),
            pl.BlockSpec((1, C), lambda k: (0, 0)),
            pl.BlockSpec((1, C), lambda k: (0, 0)),
            pl.BlockSpec((1, C), lambda k: (0, 0)),
        ],
        out_specs=pl.BlockSpec((M, C), lambda k: (0, 0)),
        scratch_shapes=[pltpu.VMEM((M, C), jnp.float32)],
        compiler_params=pltpu.CompilerParams(
            dimension_semantics=("arbitrary",)),
    )(x_mat.astype(jnp.bfloat16),
      w_mat.astype(jnp.bfloat16),
      bias.reshape(1, C).astype(jnp.float32),
      gamma.reshape(1, C).astype(jnp.float32),
      beta.reshape(1, C).astype(jnp.float32))


# ------------------------------------------------------------------ glue

def im2col(x_nhwc, k, stride, pad):
    """Extract conv patches. Returns (M, K*K*Cin) with (kh, kw, cin) ordering."""
    N, H, W, C = x_nhwc.shape
    xp = jnp.pad(x_nhwc, ((0, 0), (pad, pad), (pad, pad), (0, 0)))
    OH = (H + 2 * pad - k) // stride + 1
    OW = (W + 2 * pad - k) // stride + 1
    patches = []
    for i in range(k):
        for j in range(k):
            patches.append(xp[:, i:i + stride * OH:stride,
                               j:j + stride * OW:stride, :])      # (N,OH,OW,C)
    pk = jnp.stack(patches, axis=-2)                              # (N,OH,OW,k*k,C)
    return pk.reshape(N * OH * OW, k * k * C), (N, OH, OW)


def w_to_mat(w):
    """PyTorch conv weight (Cout, Cin, KH, KW) -> (KH*KW*Cin, Cout)."""
    cout = w.shape[0]
    return jnp.transpose(w, (2, 3, 1, 0)).reshape(-1, cout)


def d_forward(x_nchw, p):
    x = jnp.transpose(x_nchw, (0, 2, 3, 1)).astype(jnp.bfloat16)   # NHWC

    # Conv(3->64, 4, 2, 1) + LeakyReLU(0.2).  Cout padded 64 -> 128 so the
    # Pallas store is lane-dense; extra channels are sliced off afterwards.
    w1 = jnp.pad(w_to_mat(p["w1"]), ((0, 0), (0, 64)))
    b1 = jnp.pad(p["b1"], (0, 64))
    x_mat, (N, OH, OW) = im2col(x, 4, 2, 1)
    y = conv_leaky(x_mat, w1, b1)
    x = y.reshape(N, OH, OW, 128)[..., :64]

    # Conv(64->128) + BatchNorm2d(128) + LeakyReLU  (fused, single kernel)
    x_mat, (N, OH, OW) = im2col(x, 4, 2, 1)
    y = conv_bn_leaky(x_mat, w_to_mat(p["w2"]), p["b2"], p["g2"], p["be2"])
    x = y.reshape(N, OH, OW, -1)

    # Conv(128->256) + BatchNorm2d(256) + LeakyReLU  (fused)
    x_mat, (N, OH, OW) = im2col(x, 4, 2, 1)
    y = conv_bn_leaky(x_mat, w_to_mat(p["w3"]), p["b3"], p["g3"], p["be3"])
    x = y.reshape(N, OH, OW, -1)

    # Conv(256->512) + BatchNorm1d(512) + LeakyReLU  (fused)
    # TODO(synk): PyTorch BatchNorm1d(512) would raise on a 4-D (N,512,4,4)
    # tensor; implemented here as the equivalent per-channel batch-norm over
    # (N, H, W) so the forward pass is well-defined.
    x_mat, (N, OH, OW) = im2col(x, 4, 2, 1)
    y = conv_bn_leaky(x_mat, w_to_mat(p["w4"]), p["b4"], p["g4"], p["be4"])

    # Conv(512->1, 4, 1, 0) + Sigmoid, then .view(-1).
    # Rows of y are (n, oh, ow)-major, so reshaping gives per-sample
    # (oh, ow, c) flattening, matching w_to_mat's (kh, kw, cin) ordering.
    x_flat = y.reshape(N, OH * OW * 512)
    logits = jnp.dot(x_flat, w_to_mat(p["w5"]).astype(jnp.bfloat16),
                     preferred_element_type=jnp.float32) + p["b5"]
    return jax.nn.sigmoid(logits).reshape(-1)                      # (N,)


# ------------------------------------------------------------------ params

def init_params(key):
    ks = jax.random.split(key, 10)
    def conv(kw, kb, cout, cin, k):
        w = 0.02 * jax.random.normal(kw, (cout, cin, k, k), jnp.float32)
        b = 0.02 * jax.random.normal(kb, (cout,), jnp.float32)
        return w, b
    p = {}
    p["w1"], p["b1"] = conv(ks[0], ks[1], 64, 3, 4)
    p["w2"], p["b2"] = conv(ks[2], ks[3], 128, 64, 4)
    p["w3"], p["b3"] = conv(ks[4], ks[5], 256, 128, 4)
    p["w4"], p["b4"] = conv(ks[6], ks[7], 512, 256, 4)
    p["w5"], p["b5"] = conv(ks[8], ks[9], 1, 512, 4)
    for c, name in ((128, "2"), (256, "3"), (512, "4")):
        p["g" + name] = jnp.ones((c,), jnp.float32)
        p["be" + name] = jnp.zeros((c,), jnp.float32)
    return p


if __name__ == "__main__":
    key = jax.random.PRNGKey(0)
    k_param, k_x = jax.random.split(key)
    params = init_params(k_param)

    # DCGAN discriminator expects 64x64 RGB images (required so the final
    # 4x4/stride-1/pad-0 conv reduces the 4x4 feature map to 1x1).
    x = jax.random.normal(k_x, (2, 3, 64, 64), dtype=jnp.float32)

    out = jax.jit(d_forward)(x, params)
    out = jax.block_until_ready(out)

    assert out.shape == (2,)
    assert bool(jnp.all(jnp.isfinite(out)))
    assert bool(jnp.all((out >= 0.0) & (out <= 1.0)))
    print("KERNEL_OK")
</pallas_src>

<mosaic_0001>
module attributes {stable_mosaic.version = 11 : i64} {
  func.func @_conv_leaky_kernel(%arg0: i32, %arg1: memref<256x48xbf16, #tpu.memory_space<vmem>>, %arg2: memref<48x128xbf16, #tpu.memory_space<vmem>>, %arg3: memref<1x128xf32, #tpu.memory_space<vmem>>, %arg4: memref<256x128xbf16, #tpu.memory_space<vmem>>) attributes {dimension_semantics = [#tpu.dimension_semantics<parallel>], iteration_bounds = array<i64: 8>, scalar_prefetch = 0 : i64, scratch_operands = 0 : i64, tpu.core_type = #tpu.core_type<tc>, window_params = [{transform_indices = @transform_0, window_bounds = array<i64: 256, 48>}, {pipeline_mode = #tpu.pipeline_mode<synchronous>, transform_indices = @transform_1, window_bounds = array<i64: 48, 128>}, {pipeline_mode = #tpu.pipeline_mode<synchronous>, transform_indices = @transform_2, window_bounds = array<i64: 1, 128>}, {transform_indices = @transform_3, window_bounds = array<i64: 256, 128>}]} {
    %c0 = arith.constant 0 : index
    %c0_0 = arith.constant 0 : index
    %0 = vector.load %arg1[%c0, %c0_0] : memref<256x48xbf16, #tpu.memory_space<vmem>>, vector<256x48xbf16>
    %c0_1 = arith.constant 0 : index
    %c0_2 = arith.constant 0 : index
    %1 = vector.load %arg2[%c0_1, %c0_2] : memref<48x128xbf16, #tpu.memory_space<vmem>>, vector<48x128xbf16>
    %cst = arith.constant dense<0.000000e+00> : vector<256x128xf32>
    %2 = tpu.matmul %0, %1, %cst {dimension_numbers = #tpu.dot_dimension_numbers<[1], [0], [0], [1], [0, 0, 1, 1], [], []>} : vector<256x48xbf16>, vector<48x128xbf16>, vector<256x128xf32> -> vector<256x128xf32>
    %c0_3 = arith.constant 0 : index
    %c0_4 = arith.constant 0 : index
    %3 = vector.load %arg3[%c0_3, %c0_4] : memref<1x128xf32, #tpu.memory_space<vmem>>, vector<1x128xf32>
    %4 = vector.broadcast %3 : vector<1x128xf32> to vector<256x128xf32>
    %5 = arith.addf %2, %4 : vector<256x128xf32>
    %cst_5 = arith.constant 0.000000e+00 : f32
    %6 = vector.broadcast %cst_5 : f32 to vector<256x128xf32>
    %7 = arith.cmpf ogt, %5, %6 : vector<256x128xf32>
    %cst_6 = arith.constant 2.000000e-01 : f32
    %8 = vector.broadcast %cst_6 : f32 to vector<256x128xf32>
    %9 = arith.mulf %8, %5 : vector<256x128xf32>
    %10 = arith.select %7, %5, %9 : vector<256x128xi1>, vector<256x128xf32>
    %11 = arith.truncf %10 : vector<256x128xf32> to vector<256x128xbf16>
    %c0_7 = arith.constant 0 : index
    %c0_8 = arith.constant 0 : index
    %12 = vector.load %arg4[%c0_7, %c0_8] : memref<256x128xbf16, #tpu.memory_space<vmem>>, vector<256x128xbf16>
    tpu.vector_store %arg4[%c0_7, %c0_8], %11 {strides = array<i32>} : memref<256x128xbf16, #tpu.memory_space<vmem>>, vector<256x128xbf16>,
    return
  }
  func.func @transform_0(%arg0: i32) -> (i32, i32) {
    %c0_i32 = arith.constant 0 : i32
    %c0_i32_0 = arith.constant 0 : i32
    return %arg0, %c0_i32 : i32, i32
  }
  func.func @transform_1(%arg0: i32) -> (i32, i32) {
    %c0_i32 = arith.constant 0 : i32
    %c0_i32_0 = arith.constant 0 : i32
    %c0_i32_1 = arith.constant 0 : i32
    return %c0_i32, %c0_i32_0 : i32, i32
  }
  func.func @transform_2(%arg0: i32) -> (i32, i32) {
    %c0_i32 = arith.constant 0 : i32
    %c0_i32_0 = arith.constant 0 : i32
    %c0_i32_1 = arith.constant 0 : i32
    return %c0_i32, %c0_i32_0 : i32, i32
  }
  func.func @transform_3(%arg0: i32) -> (i32, i32) {
    %c0_i32 = arith.constant 0 : i32
    %c0_i32_0 = arith.constant 0 : i32
    return %arg0, %c0_i32 : i32, i32
  }
}

module attributes {stable_mosaic.version = 11 : i64} {
  func.func @_conv_bn_leaky_kernel(%arg0: i32, %arg1: memref<512x512xbf16, #tpu.memory_space<vmem>>, %arg2: memref<512x128xbf16, #tpu.memory_space<vmem>>, %arg3: memref<1x128xf32, #tpu.memory_space<vmem>>, %arg4: memref<1x128xf32, #tpu.memory_space<vmem>>, %arg5: memref<1x128xf32, #tpu.memory_space<vmem>>, %arg6: memref<512x128xbf16, #tpu.memory_space<vmem>>, %arg7: memref<512x128xf32, #tpu.memory_space<vmem>>) attributes {dimension_semantics = [#tpu.dimension_semantics<arbitrary>], iteration_bounds = array<i64: 2>, scalar_prefetch = 0 : i64, scratch_operands = 1 : i64, tpu.core_type = #tpu.core_type<tc>, window_params = [{transform_indices = @transform_0, window_bounds = array<i64: 512, 512>}, {transform_indices = @transform_1, window_bounds = array<i64: 512, 128>}, {pipeline_mode = #tpu.pipeline_mode<synchronous>, transform_indices = @transform_2, window_bounds = array<i64: 1, 128>}, {pipeline_mode = #tpu.pipeline_mode<synchronous>, transform_indices = @transform_3, window_bounds = array<i64: 1, 128>}, {pipeline_mode = #tpu.pipeline_mode<synchronous>, transform_indices = @transform_4, window_bounds = array<i64: 1, 128>}, {pipeline_mode = #tpu.pipeline_mode<synchronous>, transform_indices = @transform_5, window_bounds = array<i64: 512, 128>}]} {
    %c0_i32 = arith.constant 0 : i32
    %0 = arith.cmpi eq, %arg0, %c0_i32 : i32
    %1 = arith.extui %0 : i1 to i32
    %c0_i32_0 = arith.constant 0 : i32
    %2 = arith.cmpi ne, %1, %c0_i32_0 : i32
    scf.if %2 {
      %cst_9 = arith.constant 0.000000e+00 : f32
      %12 = vector.broadcast %cst_9 : f32 to vector<512x128xf32>
      %c0_10 = arith.constant 0 : index
      %c0_11 = arith.constant 0 : index
      %13 = vector.load %arg7[%c0_10, %c0_11] : memref<512x128xf32, #tpu.memory_space<vmem>>, vector<512x128xf32>
      tpu.vector_store %arg7[%c0_10, %c0_11], %12 {strides = array<i32>} : memref<512x128xf32, #tpu.memory_space<vmem>>, vector<512x128xf32>,
    } else {
    }
    %c0 = arith.constant 0 : index
    %c0_1 = arith.constant 0 : index
    %3 = vector.load %arg7[%c0, %c0_1] : memref<512x128xf32, #tpu.memory_space<vmem>>, vector<512x128xf32>
    %c0_2 = arith.constant 0 : index
    %c0_3 = arith.constant 0 : index
    %4 = vector.load %arg1[%c0_2, %c0_3] : memref<512x512xbf16, #tpu.memory_space<vmem>>, vector<512x512xbf16>
    %c0_4 = arith.constant 0 : index
    %c0_5 = arith.constant 0 : index
    %5 = vector.load %arg2[%c0_4, %c0_5] : memref<512x128xbf16, #tpu.memory_space<vmem>>, vector<512x128xbf16>
    %cst = arith.constant dense<0.000000e+00> : vector<512x128xf32>
    %6 = tpu.matmul %4, %5, %cst {dimension_numbers = #tpu.dot_dimension_numbers<[1], [0], [0], [1], [0, 0, 1, 1], [], []>} : vector<512x512xbf16>, vector<512x128xbf16>, vector<512x128xf32> -> vector<512x128xf32>
    %7 = arith.addf %3, %6 : vector<512x128xf32>
    %c0_6 = arith.constant 0 : index
    %c0_7 = arith.constant 0 : index
    %8 = vector.load %arg7[%c0_6, %c0_7] : memref<512x128xf32, #tpu.memory_space<vmem>>, vector<512x128xf32>
    tpu.vector_store %arg7[%c0_6, %c0_7], %7 {strides = array<i32>} : memref<512x128xf32, #tpu.memory_space<vmem>>, vector<512x128xf32>,
    %c1_i32 = arith.constant 1 : i32
    %9 = arith.cmpi eq, %arg0, %c1_i32 : i32
    %10 = arith.extui %9 : i1 to i32
    %c0_i32_8 = arith.constant 0 : i32
    %11 = arith.cmpi ne, %10, %c0_i32_8 : i32
    scf.if %11 {
      %c0_9 = arith.constant 0 : index
      %c0_10 = arith.constant 0 : index
      %12 = vector.load %arg7[%c0_9, %c0_10] : memref<512x128xf32, #tpu.memory_space<vmem>>, vector<512x128xf32>
      %c0_11 = arith.constant 0 : index
      %c0_12 = arith.constant 0 : index
      %13 = vector.load %arg3[%c0_11, %c0_12] : memref<1x128xf32, #tpu.memory_space<vmem>>, vector<1x128xf32>
      %14 = vector.broadcast %13 : vector<1x128xf32> to vector<512x128xf32>
      %15 = arith.addf %12, %14 : vector<512x128xf32>
      %cst_13 = arith.constant dense<0.000000e+00> : vector<128xf32>
      %16 = vector.multi_reduction <add>, %15, %cst_13 [0] : vector<512x128xf32> to vector<128xf32>
      %17 = vector.shape_cast %16 : vector<128xf32> to vector<1x128xf32>
      %18 = arith.mulf %15, %15 : vector<512x128xf32>
      %cst_14 = arith.constant dense<0.000000e+00> : vector<128xf32>
      %19 = vector.multi_reduction <add>, %18, %cst_14 [0] : vector<512x128xf32> to vector<128xf32>
      %20 = vector.shape_cast %19 : vector<128xf32> to vector<1x128xf32>
      %cst_15 = arith.constant 0.001953125 : f32
      %21 = vector.broadcast %cst_15 : f32 to vector<1x128xf32>
      %22 = arith.mulf %17, %21 : vector<1x128xf32>
      %cst_16 = arith.constant 0.001953125 : f32
      %23 = vector.broadcast %cst_16 : f32 to vector<1x128xf32>
      %24 = arith.mulf %20, %23 : vector<1x128xf32>
      %25 = arith.mulf %22, %22 : vector<1x128xf32>
      %26 = arith.subf %24, %25 : vector<1x128xf32>
      %27 = vector.broadcast %22 : vector<1x128xf32> to vector<512x128xf32>
      %28 = arith.subf %15, %27 : vector<512x128xf32>
      %cst_17 = arith.constant 9.99999974E-6 : f32
      %29 = vector.broadcast %cst_17 : f32 to vector<1x128xf32>
      %30 = arith.addf %26, %29 : vector<1x128xf32>
      %31 = math.rsqrt %30 : vector<1x128xf32>
      %32 = vector.broadcast %31 : vector<1x128xf32> to vector<512x128xf32>
      %33 = arith.mulf %28, %32 : vector<512x128xf32>
      %c0_18 = arith.constant 0 : index
      %c0_19 = arith.constant 0 : index
      %34 = vector.load %arg4[%c0_18, %c0_19] : memref<1x128xf32, #tpu.memory_space<vmem>>, vector<1x128xf32>
      %35 = vector.broadcast %34 : vector<1x128xf32> to vector<512x128xf32>
      %36 = arith.mulf %33, %35 : vector<512x128xf32>
      %c0_20 = arith.constant 0 : index
      %c0_21 = arith.constant 0 : index
      %37 = vector.load %arg5[%c0_20, %c0_21] : memref<1x128xf32, #tpu.memory_space<vmem>>, vector<1x128xf32>
      %38 = vector.broadcast %37 : vector<1x128xf32> to vector<512x128xf32>
      %39 = arith.addf %36, %38 : vector<512x128xf32>
      %cst_22 = arith.constant 0.000000e+00 : f32
      %40 = vector.broadcast %cst_22 : f32 to vector<512x128xf32>
      %41 = arith.cmpf ogt, %39, %40 : vector<512x128xf32>
      %cst_23 = arith.constant 2.000000e-01 : f32
      %42 = vector.broadcast %cst_23 : f32 to vector<512x128xf32>
      %43 = arith.mulf %42, %39 : vector<512x128xf32>
      %44 = arith.select %41, %39, %43 : vector<512x128xi1>, vector<512x128xf32>
      %45 = arith.truncf %44 : vector<512x128xf32> to vector<512x128xbf16>
      %c0_24 = arith.constant 0 : index
      %c0_25 = arith.constant 0 : index
      %46 = vector.load %arg6[%c0_24, %c0_25] : memref<512x128xbf16, #tpu.memory_space<vmem>>, vector<512x128xbf16>
      tpu.vector_store %arg6[%c0_24, %c0_25], %45 {strides = array<i32>} : memref<512x128xbf16, #tpu.memory_space<vmem>>, vector<512x128xbf16>,
    } else {
    }
    return
  }
  func.func @transform_0(%arg0: i32) -> (i32, i32) {
    %c0_i32 = arith.constant 0 : i32
    %c0_i32_0 = arith.constant 0 : i32
    return %c0_i32, %arg0 : i32, i32
  }
  func.func @transform_1(%arg0: i32) -> (i32, i32) {
    %c0_i32 = arith.constant 0 : i32
    %c0_i32_0 = arith.constant 0 : i32
    return %arg0, %c0_i32 : i32, i32
  }
  func.func @transform_2(%arg0: i32) -> (i32, i32) {
    %c0_i32 = arith.constant 0 : i32
    %c0_i32_0 = arith.constant 0 : i32
    %c0_i32_1 = arith.constant 0 : i32
    return %c0_i32, %c0_i32_0 : i32, i32
  }
  func.func @transform_3(%arg0: i32) -> (i32, i32) {
    %c0_i32 = arith.constant 0 : i32
    %c0_i32_0 = arith.constant 0 : i32
    %c0_i32_1 = arith.constant 0 : i32
    return %c0_i32, %c0_i32_0 : i32, i32
  }
  func.func @transform_4(%arg0: i32) -> (i32, i32) {
    %c0_i32 = arith.constant 0 : i32
    %c0_i32_0 = arith.constant 0 : i32
    %c0_i32_1 = arith.constant 0 : i32
    return %c0_i32, %c0_i32_0 : i32, i32
  }
  func.func @transform_5(%arg0: i32) -> (i32, i32) {
    %c0_i32 = arith.constant 0 : i32
    %c0_i32_0 = arith.constant 0 : i32
    %c0_i32_1 = arith.constant 0 : i32
    return %c0_i32, %c0_i32_0 : i32, i32
  }
}

module attributes {stable_mosaic.version = 11 : i64} {
  func.func @_conv_bn_leaky_kernel(%arg0: i32, %arg1: memref<128x512xbf16, #tpu.memory_space<vmem>>, %arg2: memref<512x256xbf16, #tpu.memory_space<vmem>>, %arg3: memref<1x256xf32, #tpu.memory_space<vmem>>, %arg4: memref<1x256xf32, #tpu.memory_space<vmem>>, %arg5: memref<1x256xf32, #tpu.memory_space<vmem>>, %arg6: memref<128x256xbf16, #tpu.memory_space<vmem>>, %arg7: memref<128x256xf32, #tpu.memory_space<vmem>>) attributes {dimension_semantics = [#tpu.dimension_semantics<arbitrary>], iteration_bounds = array<i64: 4>, scalar_prefetch = 0 : i64, scratch_operands = 1 : i64, tpu.core_type = #tpu.core_type<tc>, window_params = [{transform_indices = @transform_0, window_bounds = array<i64: 128, 512>}, {transform_indices = @transform_1, window_bounds = array<i64: 512, 256>}, {pipeline_mode = #tpu.pipeline_mode<synchronous>, transform_indices = @transform_2, window_bounds = array<i64: 1, 256>}, {pipeline_mode = #tpu.pipeline_mode<synchronous>, transform_indices = @transform_3, window_bounds = array<i64: 1, 256>}, {pipeline_mode = #tpu.pipeline_mode<synchronous>, transform_indices = @transform_4, window_bounds = array<i64: 1, 256>}, {pipeline_mode = #tpu.pipeline_mode<synchronous>, transform_indices = @transform_5, window_bounds = array<i64: 128, 256>}]} {
    %c0_i32 = arith.constant 0 : i32
    %0 = arith.cmpi eq, %arg0, %c0_i32 : i32
    %1 = arith.extui %0 : i1 to i32
    %c0_i32_0 = arith.constant 0 : i32
    %2 = arith.cmpi ne, %1, %c0_i32_0 : i32
    scf.if %2 {
      %cst_9 = arith.constant 0.000000e+00 : f32
      %12 = vector.broadcast %cst_9 : f32 to vector<128x256xf32>
      %c0_10 = arith.constant 0 : index
      %c0_11 = arith.constant 0 : index
      %13 = vector.load %arg7[%c0_10, %c0_11] : memref<128x256xf32, #tpu.memory_space<vmem>>, vector<128x256xf32>
      tpu.vector_store %arg7[%c0_10, %c0_11], %12 {strides = array<i32>} : memref<128x256xf32, #tpu.memory_space<vmem>>, vector<128x256xf32>,
    } else {
    }
    %c0 = arith.constant 0 : index
    %c0_1 = arith.constant 0 : index
    %3 = vector.load %arg7[%c0, %c0_1] : memref<128x256xf32, #tpu.memory_space<vmem>>, vector<128x256xf32>
    %c0_2 = arith.constant 0 : index
    %c0_3 = arith.constant 0 : index
    %4 = vector.load %arg1[%c0_2, %c0_3] : memref<128x512xbf16, #tpu.memory_space<vmem>>, vector<128x512xbf16>
    %c0_4 = arith.constant 0 : index
    %c0_5 = arith.constant 0 : index
    %5 = vector.load %arg2[%c0_4, %c0_5] : memref<512x256xbf16, #tpu.memory_space<vmem>>, vector<512x256xbf16>
    %cst = arith.constant dense<0.000000e+00> : vector<128x256xf32>
    %6 = tpu.matmul %4, %5, %cst {dimension_numbers = #tpu.dot_dimension_numbers<[1], [0], [0], [1], [0, 0, 1, 1], [], []>} : vector<128x512xbf16>, vector<512x256xbf16>, vector<128x256xf32> -> vector<128x256xf32>
    %7 = arith.addf %3, %6 : vector<128x256xf32>
    %c0_6 = arith.constant 0 : index
    %c0_7 = arith.constant 0 : index
    %8 = vector.load %arg7[%c0_6, %c0_7] : memref<128x256xf32, #tpu.memory_space<vmem>>, vector<128x256xf32>
    tpu.vector_store %arg7[%c0_6, %c0_7], %7 {strides = array<i32>} : memref<128x256xf32, #tpu.memory_space<vmem>>, vector<128x256xf32>,
    %c3_i32 = arith.constant 3 : i32
    %9 = arith.cmpi eq, %arg0, %c3_i32 : i32
    %10 = arith.extui %9 : i1 to i32
    %c0_i32_8 = arith.constant 0 : i32
    %11 = arith.cmpi ne, %10, %c0_i32_8 : i32
    scf.if %11 {
      %c0_9 = arith.constant 0 : index
      %c0_10 = arith.constant 0 : index
      %12 = vector.load %arg7[%c0_9, %c0_10] : memref<128x256xf32, #tpu.memory_space<vmem>>, vector<128x256xf32>
      %c0_11 = arith.constant 0 : index
      %c0_12 = arith.constant 0 : index
      %13 = vector.load %arg3[%c0_11, %c0_12] : memref<1x256xf32, #tpu.memory_space<vmem>>, vector<1x256xf32>
      %14 = vector.broadcast %13 : vector<1x256xf32> to vector<128x256xf32>
      %15 = arith.addf %12, %14 : vector<128x256xf32>
      %cst_13 = arith.constant dense<0.000000e+00> : vector<256xf32>
      %16 = vector.multi_reduction <add>, %15, %cst_13 [0] : vector<128x256xf32> to vector<256xf32>
      %17 = vector.shape_cast %16 : vector<256xf32> to vector<1x256xf32>
      %18 = arith.mulf %15, %15 : vector<128x256xf32>
      %cst_14 = arith.constant dense<0.000000e+00> : vector<256xf32>
      %19 = vector.multi_reduction <add>, %18, %cst_14 [0] : vector<128x256xf32> to vector<256xf32>
      %20 = vector.shape_cast %19 : vector<256xf32> to vector<1x256xf32>
      %cst_15 = arith.constant 7.812500e-03 : f32
      %21 = vector.broadcast %cst_15 : f32 to vector<1x256xf32>
      %22 = arith.mulf %17, %21 : vector<1x256xf32>
      %cst_16 = arith.constant 7.812500e-03 : f32
      %23 = vector.broadcast %cst_16 : f32 to vector<1x256xf32>
      %24 = arith.mulf %20, %23 : vector<1x256xf32>
      %25 = arith.mulf %22, %22 : vector<1x256xf32>
      %26 = arith.subf %24, %25 : vector<1x256xf32>
      %27 = vector.broadcast %22 : vector<1x256xf32> to vector<128x256xf32>
      %28 = arith.subf %15, %27 : vector<128x256xf32>
      %cst_17 = arith.constant 9.99999974E-6 : f32
      %29 = vector.broadcast %cst_17 : f32 to vector<1x256xf32>
      %30 = arith.addf %26, %29 : vector<1x256xf32>
      %31 = math.rsqrt %30 : vector<1x256xf32>
      %32 = vector.broadcast %31 : vector<1x256xf32> to vector<128x256xf32>
      %33 = arith.mulf %28, %32 : vector<128x256xf32>
      %c0_18 = arith.constant 0 : index
      %c0_19 = arith.constant 0 : index
      %34 = vector.load %arg4[%c0_18, %c0_19] : memref<1x256xf32, #tpu.memory_space<vmem>>, vector<1x256xf32>
      %35 = vector.broadcast %34 : vector<1x256xf32> to vector<128x256xf32>
      %36 = arith.mulf %33, %35 : vector<128x256xf32>
      %c0_20 = arith.constant 0 : index
      %c0_21 = arith.constant 0 : index
      %37 = vector.load %arg5[%c0_20, %c0_21] : memref<1x256xf32, #tpu.memory_space<vmem>>, vector<1x256xf32>
      %38 = vector.broadcast %37 : vector<1x256xf32> to vector<128x256xf32>
      %39 = arith.addf %36, %38 : vector<128x256xf32>
      %cst_22 = arith.constant 0.000000e+00 : f32
      %40 = vector.broadcast %cst_22 : f32 to vector<128x256xf32>
      %41 = arith.cmpf ogt, %39, %40 : vector<128x256xf32>
      %cst_23 = arith.constant 2.000000e-01 : f32
      %42 = vector.broadcast %cst_23 : f32 to vector<128x256xf32>
      %43 = arith.mulf %42, %39 : vector<128x256xf32>
      %44 = arith.select %41, %39, %43 : vector<128x256xi1>, vector<128x256xf32>
      %45 = arith.truncf %44 : vector<128x256xf32> to vector<128x256xbf16>
      %c0_24 = arith.constant 0 : index
      %c0_25 = arith.constant 0 : index
      %46 = vector.load %arg6[%c0_24, %c0_25] : memref<128x256xbf16, #tpu.memory_space<vmem>>, vector<128x256xbf16>
      tpu.vector_store %arg6[%c0_24, %c0_25], %45 {strides = array<i32>} : memref<128x256xbf16, #tpu.memory_space<vmem>>, vector<128x256xbf16>,
    } else {
    }
    return
  }
  func.func @transform_0(%arg0: i32) -> (i32, i32) {
    %c0_i32 = arith.constant 0 : i32
    %c0_i32_0 = arith.constant 0 : i32
    return %c0_i32, %arg0 : i32, i32
  }
  func.func @transform_1(%arg0: i32) -> (i32, i32) {
    %c0_i32 = arith.constant 0 : i32
    %c0_i32_0 = arith.constant 0 : i32
    return %arg0, %c0_i32 : i32, i32
  }
  func.func @transform_2(%arg0: i32) -> (i32, i32) {
    %c0_i32 = arith.constant 0 : i32
    %c0_i32_0 = arith.constant 0 : i32
    %c0_i32_1 = arith.constant 0 : i32
    return %c0_i32, %c0_i32_0 : i32, i32
  }
  func.func @transform_3(%arg0: i32) -> (i32, i32) {
    %c0_i32 = arith.constant 0 : i32
    %c0_i32_0 = arith.constant 0 : i32
    %c0_i32_1 = arith.constant 0 : i32
    return %c0_i32, %c0_i32_0 : i32, i32
  }
  func.func @transform_4(%arg0: i32) -> (i32, i32) {
    %c0_i32 = arith.constant 0 : i32
    %c0_i32_0 = arith.constant 0 : i32
    %c0_i32_1 = arith.constant 0 : i32
    return %c0_i32, %c0_i32_0 : i32, i32
  }
  func.func @transform_5(%arg0: i32) -> (i32, i32) {
    %c0_i32 = arith.constant 0 : i32
    %c0_i32_0 = arith.constant 0 : i32
    %c0_i32_1 = arith.constant 0 : i32
    return %c0_i32, %c0_i32_0 : i32, i32
  }
}

module attributes {stable_mosaic.version = 11 : i64} {
  func.func @_conv_bn_leaky_kernel(%arg0: i32, %arg1: memref<32x512xbf16, #tpu.memory_space<vmem>>, %arg2: memref<512x512xbf16, #tpu.memory_space<vmem>>, %arg3: memref<1x512xf32, #tpu.memory_space<vmem>>, %arg4: memref<1x512xf32, #tpu.memory_space<vmem>>, %arg5: memref<1x512xf32, #tpu.memory_space<vmem>>, %arg6: memref<32x512xbf16, #tpu.memory_space<vmem>>, %arg7: memref<32x512xf32, #tpu.memory_space<vmem>>) attributes {dimension_semantics = [#tpu.dimension_semantics<arbitrary>], iteration_bounds = array<i64: 8>, scalar_prefetch = 0 : i64, scratch_operands = 1 : i64, tpu.core_type = #tpu.core_type<tc>, window_params = [{transform_indices = @transform_0, window_bounds = array<i64: 32, 512>}, {transform_indices = @transform_1, window_bounds = array<i64: 512, 512>}, {pipeline_mode = #tpu.pipeline_mode<synchronous>, transform_indices = @transform_2, window_bounds = array<i64: 1, 512>}, {pipeline_mode = #tpu.pipeline_mode<synchronous>, transform_indices = @transform_3, window_bounds = array<i64: 1, 512>}, {pipeline_mode = #tpu.pipeline_mode<synchronous>, transform_indices = @transform_4, window_bounds = array<i64: 1, 512>}, {pipeline_mode = #tpu.pipeline_mode<synchronous>, transform_indices = @transform_5, window_bounds = array<i64: 32, 512>}]} {
    %c0_i32 = arith.constant 0 : i32
    %0 = arith.cmpi eq, %arg0, %c0_i32 : i32
    %1 = arith.extui %0 : i1 to i32
    %c0_i32_0 = arith.constant 0 : i32
    %2 = arith.cmpi ne, %1, %c0_i32_0 : i32
    scf.if %2 {
      %cst_9 = arith.constant 0.000000e+00 : f32
      %12 = vector.broadcast %cst_9 : f32 to vector<32x512xf32>
      %c0_10 = arith.constant 0 : index
      %c0_11 = arith.constant 0 : index
      %13 = vector.load %arg7[%c0_10, %c0_11] : memref<32x512xf32, #tpu.memory_space<vmem>>, vector<32x512xf32>
      tpu.vector_store %arg7[%c0_10, %c0_11], %12 {strides = array<i32>} : memref<32x512xf32, #tpu.memory_space<vmem>>, vector<32x512xf32>,
    } else {
    }
    %c0 = arith.constant 0 : index
    %c0_1 = arith.constant 0 : index
    %3 = vector.load %arg7[%c0, %c0_1] : memref<32x512xf32, #tpu.memory_space<vmem>>, vector<32x512xf32>
    %c0_2 = arith.constant 0 : index
    %c0_3 = arith.constant 0 : index
    %4 = vector.load %arg1[%c0_2, %c0_3] : memref<32x512xbf16, #tpu.memory_space<vmem>>, vector<32x512xbf16>
    %c0_4 = arith.constant 0 : index
    %c0_5 = arith.constant 0 : index
    %5 = vector.load %arg2[%c0_4, %c0_5] : memref<512x512xbf16, #tpu.memory_space<vmem>>, vector<512x512xbf16>
    %cst = arith.constant dense<0.000000e+00> : vector<32x512xf32>
    %6 = tpu.matmul %4, %5, %cst {dimension_numbers = #tpu.dot_dimension_numbers<[1], [0], [0], [1], [0, 0, 1, 1], [], []>} : vector<32x512xbf16>, vector<512x512xbf16>, vector<32x512xf32> -> vector<32x512xf32>
    %7 = arith.addf %3, %6 : vector<32x512xf32>
    %c0_6 = arith.constant 0 : index
    %c0_7 = arith.constant 0 : index
    %8 = vector.load %arg7[%c0_6, %c0_7] : memref<32x512xf32, #tpu.memory_space<vmem>>, vector<32x512xf32>
    tpu.vector_store %arg7[%c0_6, %c0_7], %7 {strides = array<i32>} : memref<32x512xf32, #tpu.memory_space<vmem>>, vector<32x512xf32>,
    %c7_i32 = arith.constant 7 : i32
    %9 = arith.cmpi eq, %arg0, %c7_i32 : i32
    %10 = arith.extui %9 : i1 to i32
    %c0_i32_8 = arith.constant 0 : i32
    %11 = arith.cmpi ne, %10, %c0_i32_8 : i32
    scf.if %11 {
      %c0_9 = arith.constant 0 : index
      %c0_10 = arith.constant 0 : index
      %12 = vector.load %arg7[%c0_9, %c0_10] : memref<32x512xf32, #tpu.memory_space<vmem>>, vector<32x512xf32>
      %c0_11 = arith.constant 0 : index
      %c0_12 = arith.constant 0 : index
      %13 = vector.load %arg3[%c0_11, %c0_12] : memref<1x512xf32, #tpu.memory_space<vmem>>, vector<1x512xf32>
      %14 = vector.broadcast %13 : vector<1x512xf32> to vector<32x512xf32>
      %15 = arith.addf %12, %14 : vector<32x512xf32>
      %cst_13 = arith.constant dense<0.000000e+00> : vector<512xf32>
      %16 = vector.multi_reduction <add>, %15, %cst_13 [0] : vector<32x512xf32> to vector<512xf32>
      %17 = vector.shape_cast %16 : vector<512xf32> to vector<1x512xf32>
      %18 = arith.mulf %15, %15 : vector<32x512xf32>
      %cst_14 = arith.constant dense<0.000000e+00> : vector<512xf32>
      %19 = vector.multi_reduction <add>, %18, %cst_14 [0] : vector<32x512xf32> to vector<512xf32>
      %20 = vector.shape_cast %19 : vector<512xf32> to vector<1x512xf32>
      %cst_15 = arith.constant 3.125000e-02 : f32
      %21 = vector.broadcast %cst_15 : f32 to vector<1x512xf32>
      %22 = arith.mulf %17, %21 : vector<1x512xf32>
      %cst_16 = arith.constant 3.125000e-02 : f32
      %23 = vector.broadcast %cst_16 : f32 to vector<1x512xf32>
      %24 = arith.mulf %20, %23 : vector<1x512xf32>
      %25 = arith.mulf %22, %22 : vector<1x512xf32>
      %26 = arith.subf %24, %25 : vector<1x512xf32>
      %27 = vector.broadcast %22 : vector<1x512xf32> to vector<32x512xf32>
      %28 = arith.subf %15, %27 : vector<32x512xf32>
      %cst_17 = arith.constant 9.99999974E-6 : f32
      %29 = vector.broadcast %cst_17 : f32 to vector<1x512xf32>
      %30 = arith.addf %26, %29 : vector<1x512xf32>
      %31 = math.rsqrt %30 : vector<1x512xf32>
      %32 = vector.broadcast %31 : vector<1x512xf32> to vector<32x512xf32>
      %33 = arith.mulf %28, %32 : vector<32x512xf32>
      %c0_18 = arith.constant 0 : index
      %c0_19 = arith.constant 0 : index
      %34 = vector.load %arg4[%c0_18, %c0_19] : memref<1x512xf32, #tpu.memory_space<vmem>>, vector<1x512xf32>
      %35 = vector.broadcast %34 : vector<1x512xf32> to vector<32x512xf32>
      %36 = arith.mulf %33, %35 : vector<32x512xf32>
      %c0_20 = arith.constant 0 : index
      %c0_21 = arith.constant 0 : index
      %37 = vector.load %arg5[%c0_20, %c0_21] : memref<1x512xf32, #tpu.memory_space<vmem>>, vector<1x512xf32>
      %38 = vector.broadcast %37 : vector<1x512xf32> to vector<32x512xf32>
      %39 = arith.addf %36, %38 : vector<32x512xf32>
      %cst_22 = arith.constant 0.000000e+00 : f32
      %40 = vector.broadcast %cst_22 : f32 to vector<32x512xf32>
      %41 = arith.cmpf ogt, %39, %40 : vector<32x512xf32>
      %cst_23 = arith.constant 2.000000e-01 : f32
      %42 = vector.broadcast %cst_23 : f32 to vector<32x512xf32>
      %43 = arith.mulf %42, %39 : vector<32x512xf32>
      %44 = arith.select %41, %39, %43 : vector<32x512xi1>, vector<32x512xf32>
      %45 = arith.truncf %44 : vector<32x512xf32> to vector<32x512xbf16>
      %c0_24 = arith.constant 0 : index
      %c0_25 = arith.constant 0 : index
      %46 = vector.load %arg6[%c0_24, %c0_25] : memref<32x512xbf16, #tpu.memory_space<vmem>>, vector<32x512xbf16>
      tpu.vector_store %arg6[%c0_24, %c0_25], %45 {strides = array<i32>} : memref<32x512xbf16, #tpu.memory_space<vmem>>, vector<32x512xbf16>,
    } else {
    }
    return
  }
  func.func @transform_0(%arg0: i32) -> (i32, i32) {
    %c0_i32 = arith.constant 0 : i32
    %c0_i32_0 = arith.constant 0 : i32
    return %c0_i32, %arg0 : i32, i32
  }
  func.func @transform_1(%arg0: i32) -> (i32, i32) {
    %c0_i32 = arith.constant 0 : i32
    %c0_i32_0 = arith.constant 0 : i32
    return %arg0, %c0_i32 : i32, i32
  }
  func.func @transform_2(%arg0: i32) -> (i32, i32) {
    %c0_i32 = arith.constant 0 : i32
    %c0_i32_0 = arith.constant 0 : i32
    %c0_i32_1 = arith.constant 0 : i32
    return %c0_i32, %c0_i32_0 : i32, i32
  }
  func.func @transform_3(%arg0: i32) -> (i32, i32) {
    %c0_i32 = arith.constant 0 : i32
    %c0_i32_0 = arith.constant 0 : i32
    %c0_i32_1 = arith.constant 0 : i32
    return %c0_i32, %c0_i32_0 : i32, i32
  }
  func.func @transform_4(%arg0: i32) -> (i32, i32) {
    %c0_i32 = arith.constant 0 : i32
    %c0_i32_0 = arith.constant 0 : i32
    %c0_i32_1 = arith.constant 0 : i32
    return %c0_i32, %c0_i32_0 : i32, i32
  }
  func.func @transform_5(%arg0: i32) -> (i32, i32) {
    %c0_i32 = arith.constant 0 : i32
    %c0_i32_0 = arith.constant 0 : i32
    %c0_i32_1 = arith.constant 0 : i32
    return %c0_i32, %c0_i32_0 : i32, i32
  }
}

</mosaic_0001>

<bundles_post_ra>
// kernel: d_forward.4
= control target key start
LH: loop header
LB: loop body
LE: loop exit
PB: predicated region body
PF: predicated region fallthrough
CT: control target
= control target key end

     0   :  { %s1164_s12 = smov 0   ;;  %s1290_s0 = inlined_call_operand.vmem [shape: bf16[2048,48], index: 0, kind: input, shape index: {}]   ;;  %s1291_s1 = inlined_call_operand.vmem [shape: bf16[48,128], index: 1, kind: input, shape index: {}]   ;;  %s1292_s2 = inlined_call_operand.vmem [shape: f32[1,128], index: 2, kind: input, shape index: {}]   ;;  %s1293_s3 = inlined_call_operand.vmem [shape: bf16[2048,128], index: 3, kind: output, shape index: {}]  }
   0x1 LB: > { %s840_s13 = sadd.s32 4294967295, %s1142_s12   ;;  %p844_p0 = scmp.ge.s32.totalorder %s1142_s12, 1  ;;  %s1142_s12 = sphi %s1164_s12, %s13_s12  }
   0x2   : > { %p138_p1 = scmp.lt.s32.totalorder %s1142_s12, 9 }
   0x4   : > { %p139_p2 = pnand %p844_p0, %p138_p1 }
   0x5   : > { %s845_s16 = sshll.u32 (!%p139_p2), %s840_s13, 5 }
   0x6   : > { %142 = sbr.rel (%p139_p2) target bundleno = 259 (0x103), region = 32  ;;  %p163_p3 = scmp.lt.s32.totalorder (!%p139_p2), %s845_s16, 255 }
   0xb   : > { %v1117_v0 = vld [vmem:[%s1291_s1 + $0x10] sm:$0xff]   ;;  %v1118_v1 = vld [vmem:[%s1291_s1 + $0x8] sm:$0xff]   ;;  %s1295_s16 = smov (!%p163_p3, %s845_s16), 255  ;;  %v1119_v2 = vld [vmem:[%s1291_s1] sm:$0xff]   ;;  %vm318_vm0 = vcmask 392192  }
   0xc   : > { %1065 = vmatprep.subr.bf16.mxu0 %v1117_v0  ;;  %1103 = vmatprep.subr.bf16.mxu1 %v1117_v0  ;;  %s846_s21 = sshll.u32 %s1295_s16, 2  ;;  %v1226_v19 = vld [vmem:[%s1292_s2] ss:$0 sm:$0xff] }
   0xd   : > { %1066 = vmatpush3.bf16.msra.mxu0 %v1117_v0  ;;  %1106 = vmatpush3.bf16.msra.mxu1 %v1117_v0  ;;  %s1189_s24 = scalar_lea.vmem %s1290_s0, %s846_s21  ;;  %s1241_s29 = scalar_lea.vmem %s1293_s3, %s846_s21 }
   0xe   : > { %1067 = vmatprep.subr.bf16.mxu0 %v1118_v1  ;;  %1104 = vmatprep.subr.bf16.mxu1 %v1118_v1  ;;  %v1120_v3 = vld [vmem:[%s1189_s24] sm:$0xff]   ;;  %v1122_v5 = vld [vmem:[%s1189_s24 + $0x8] sm:$0xff]   ;;  %v1124_v7 = vld [vmem:[%s1189_s24 + $0x10] sm:$0xff]  }
   0xf   : > { %v1121_v4 = vld [vmem:[%s1189_s24 + $0x40] sm:$0xff]   ;;  %1071 = vmatprep.mubr.msk.bf16.mxu0 %vm318_vm0, %v1120_v3  ;;  %v1123_v6 = vld [vmem:[%s1189_s24 + $0x48] sm:$0xff]   ;;  %v1125_v8 = vld [vmem:[%s1189_s24 + $0x50] sm:$0xff]  }
  0x10   : > { %1087 = vmatprep.mubr.msk.bf16.mxu1 %vm318_vm0, %v1121_v4  ;;  %v1126_v9 = vld [vmem:[%s1189_s24 + $0x18] sm:$0xff]   ;;  %v1128_v11 = vld [vmem:[%s1189_s24 + $0x20] sm:$0xff]   ;;  %v1130_v13 = vld [vmem:[%s1189_s24 + $0x28] sm:$0xff]  }
  0x11   : > { %1068 = vmatpush3.bf16.msra.mxu0 %v1118_v1  ;;  %1107 = vmatpush3.bf16.msra.mxu1 %v1118_v1  ;;  %v1127_v10 = vld [vmem:[%s1189_s24 + $0x58] sm:$0xff]   ;;  %v1129_v12 = vld [vmem:[%s1189_s24 + $0x60] sm:$0xff]   ;;  %v1131_v14 = vld [vmem:[%s1189_s24 + $0x68] sm:$0xff]  }
  0x12   : > { %1069 = vmatprep.subr.bf16.mxu0 %v1119_v2  ;;  %1105 = vmatprep.subr.bf16.mxu1 %v1119_v2  ;;  %v1132_v15 = vld [vmem:[%s1189_s24 + $0x30] sm:$0xff]   ;;  %v1134_v17 = vld [vmem:[%s1189_s24 + $0x38] sm:$0xff]  }
  0x13   : > { %v1133_v16 = vld [vmem:[%s1189_s24 + $0x70] sm:$0xff]   ;;  %v1135_v18 = vld [vmem:[%s1189_s24 + $0x78] sm:$0xff]  }
  0x15   : > { %1070 = vmatpush3.bf16.msra.mxu0 %v1119_v2  ;;  %1108 = vmatpush3.bf16.msra.mxu1 %v1119_v2 }
  0x18   : > { %1072 = vmatmul.mubr.msk.bf16.vlgmr.msra.gmra.mxu0 %vm318_vm0, %v1122_v5  ;;  %1088 = vmatmul.mubr.msk.bf16.vlgmr.msra.gmra.mxu1 %vm318_vm0, %v1123_v6 }
  0x19   : > { %1075 = vmatprep.mubr.msk.bf16.mxu0 %vm318_vm0, %v1124_v7  ;;  %1091 = vmatprep.mubr.msk.bf16.mxu1 %vm318_vm0, %v1125_v8 }
  0x20   : > { %1076 = vmatmul.mubr.msk.bf16.gmra.mxu0 %vm318_vm0, %v1126_v9  ;;  %1092 = vmatmul.mubr.msk.bf16.gmra.mxu1 %vm318_vm0, %v1127_v10 }
  0x21   : > { %1079 = vmatprep.mubr.msk.bf16.mxu0 %vm318_vm0, %v1128_v11  ;;  %1095 = vmatprep.mubr.msk.bf16.mxu1 %vm318_vm0, %v1129_v12 }
  0x28   : > { %1080 = vmatmul.mubr.msk.bf16.gmra.mxu0 %vm318_vm0, %v1130_v13  ;;  %1096 = vmatmul.mubr.msk.bf16.gmra.mxu1 %vm318_vm0, %v1131_v14 }
  0x29   : > { %1083 = vmatprep.mubr.msk.bf16.mxu0 %vm318_vm0, %v1132_v15  ;;  %1099 = vmatprep.mubr.msk.bf16.mxu1 %vm318_vm0, %v1133_v16 }
  0x30   : > { %1084 = vmatmul.mubr.msk.bf16.gmra.mxu0 %vm318_vm0, %v1134_v17  ;;  %1100 = vmatmul.mubr.msk.bf16.gmra.mxu1 %vm318_vm0, %v1135_v18 }
  0xd8   : > { %v1073_v20 = vpop.f32.mrf.mxu0  ;;  %v1089_v21 = vpop.f32.mrf.mxu1 }
  0xd9   : > { %v410_v22 = vadd.f32 %v1073_v20, %v1226_v19  ;;  %v474_v23 = vadd.f32 %v1089_v21, %v1226_v19 }
  0xda   : > { %v401_v24 = vpop.f32.mrf.mxu0  ;;  %v465_v25 = vpop.f32.mrf.mxu1 }
  0xdb   : > { %vm530_vm1 = vcmp.gt.f32.partialorder %v410_v22, 0.0  ;;  %v562_v26 = vmul.f32 0.2, %v410_v22  ;;  %vm546_vm2 = vcmp.gt.f32.partialorder %v474_v23, 0.0  ;;  %v578_v27 = vmul.f32 0.2, %v474_v23 }
  0xdc   : > { %v402_v28 = vadd.f32 %v1226_v19, %v401_v24  ;;  %v466_v29 = vadd.f32 %v1226_v19, %v465_v25  ;;  %v1074_v30 = vpop.f32.mrf.mxu0  ;;  %v1090_v31 = vpop.f32.mrf.mxu1 }
  0xdd   : > { %v594_v32 = vsel %vm530_vm1, %v410_v22, %v562_v26  ;;  %v413_v33 = vadd.f32 %v1074_v30, %v1226_v19  ;;  %v477_v34 = vadd.f32 %v1090_v31, %v1226_v19  ;;  %v610_v35 = vsel %vm546_vm2, %v474_v23, %v578_v27 }
  0xde   : > { %vm528_vm3 = vcmp.gt.f32.partialorder %v402_v28, 0.0  ;;  %v560_v36 = vmul.f32 0.2, %v402_v28  ;;  %vm544_vm4 = vcmp.gt.f32.partialorder %v466_v29, 0.0  ;;  %v404_v37 = vpop.f32.mrf.mxu0  ;;  %v468_v38 = vpop.f32.mrf.mxu1  ;;  %v576_v42 = vmul.f32 0.2, %v466_v29 }
  0xdf   : > { %vm531_vm5 = vcmp.gt.f32.partialorder %v413_v33, 0.0  ;;  %v563_v39 = vmul.f32 0.2, %v413_v33  ;;  %vm547_vm6 = vcmp.gt.f32.partialorder %v477_v34, 0.0  ;;  %v579_v40 = vmul.f32 0.2, %v477_v34 }
  0xe0   : > { %v592_v41 = vsel %vm528_vm3, %v402_v28, %v560_v36  ;;  %v405_v43 = vadd.f32 %v1226_v19, %v404_v37  ;;  %v469_v44 = vadd.f32 %v1226_v19, %v468_v38  ;;  %v1077_v45 = vpop.f32.mrf.mxu0  ;;  %v1093_v46 = vpop.f32.mrf.mxu1  ;;  %v608_v58 = vsel %vm544_vm4, %v466_v29, %v576_v42 }
  0xe1   : > { %v595_v47 = vsel %vm531_vm5, %v413_v33, %v563_v39  ;;  %v611_v48 = vsel %vm547_vm6, %v477_v34, %v579_v40  ;;  %v426_v49 = vadd.f32 %v1077_v45, %v1226_v19  ;;  %v490_v50 = vadd.f32 %v1093_v46, %v1226_v19 }
  0xe2   : > { %v959_v51 = vpack.c.bf16 %v595_v47, %v594_v32  ;;  %v999_v52 = vpack.c.bf16 %v611_v48, %v610_v35  ;;  %vm529_vm7 = vcmp.gt.f32.partialorder %v405_v43, 0.0  ;;  %v561_v53 = vmul.f32 0.2, %v405_v43  ;;  %v417_v54 = vpop.f32.mrf.mxu0  ;;  %v481_v55 = vpop.f32.mrf.mxu1 }
  0xe3   : > { %vm545_vm8 = vcmp.gt.f32.partialorder %v469_v44, 0.0  ;;  %v577_v56 = vmul.f32 0.2, %v469_v44  ;;  %vm534_vm9 = vcmp.gt.f32.partialorder %v426_v49, 0.0  ;;  %v566_v57 = vmul.f32 0.2, %v426_v49 }
  0xe4   : > { %1031 = vst [vmem:[%s1241_s29 + $0x8] sm:$0xff] %v959_v51   ;;  %1039 = vst [vmem:[%s1241_s29 + $0x48] sm:$0xff] %v999_v52   ;;  %v593_v59 = vsel %vm529_vm7, %v405_v43, %v561_v53  ;;  %v582_v60 = vmul.f32 0.2, %v490_v50  ;;  %v418_v61 = vadd.f32 %v1226_v19, %v417_v54  ;;  %v1078_v62 = vpop.f32.mrf.mxu0  ;;  %v1094_v63 = vpop.f32.mrf.mxu1  ;;  %vm550_vm10 = vcmp.gt.f32.partialorder %v490_v50, 0.0 }
  0xe5   : > { %v954_v0 = vpack.c.bf16 %v593_v59, %v592_v41  ;;  %v609_v1 = vsel %vm545_vm8, %v469_v44, %v577_v56  ;;  %v482_v2 = vadd.f32 %v1226_v19, %v481_v55  ;;  %v598_v4 = vsel %vm534_vm9, %v426_v49, %v566_v57 }
  0xe6   : > { %v994_v3 = vpack.c.bf16 %v609_v1, %v608_v58  ;;  %vm532_vm11 = vcmp.gt.f32.partialorder %v418_v61, 0.0  ;;  %v564_v5 = vmul.f32 0.2, %v418_v61  ;;  %v420_v6 = vpop.f32.mrf.mxu0  ;;  %v484_v7 = vpop.f32.mrf.mxu1  ;;  %v429_v9 = vadd.f32 %v1078_v62, %v1226_v19 }
  0xe7   : > { %955 = vst [vmem:[%s1241_s29] sm:$0xff] %v954_v0   ;;  %vm548_vm12 = vcmp.gt.f32.partialorder %v482_v2, 0.0  ;;  %v580_v8 = vmul.f32 0.2, %v482_v2  ;;  %v493_v10 = vadd.f32 %v1094_v63, %v1226_v19  ;;  %v614_v11 = vsel %vm550_vm10, %v490_v50, %v582_v60 }
  0xe8   : > { %1038 = vst [vmem:[%s1241_s29 + $0x40] sm:$0xff] %v994_v3   ;;  %v596_v12 = vsel %vm532_vm11, %v418_v61, %v564_v5  ;;  %v421_v13 = vadd.f32 %v1226_v19, %v420_v6  ;;  %v485_v14 = vadd.f32 %v1226_v19, %v484_v7  ;;  %v1081_v15 = vpop.f32.mrf.mxu0  ;;  %v1097_v16 = vpop.f32.mrf.mxu1  ;;  %vm535_vm13 = vcmp.gt.f32.partialorder %v429_v9, 0.0 }
  0xe9   : > { %v612_v17 = vsel %vm548_vm12, %v482_v2, %v580_v8  ;;  %v567_v18 = vmul.f32 0.2, %v429_v9  ;;  %vm551_vm14 = vcmp.gt.f32.partialorder %v493_v10, 0.0  ;;  %v583_v20 = vmul.f32 0.2, %v493_v10 }
  0xea   : > { %vm533_vm15 = vcmp.gt.f32.partialorder %v421_v13, 0.0  ;;  %v565_v21 = vmul.f32 0.2, %v421_v13  ;;  %vm549_vm0 = vcmp.gt.f32.partialorder %v485_v14, 0.0  ;;  %v433_v22 = vpop.f32.mrf.mxu0  ;;  %v497_v23 = vpop.f32.mrf.mxu1  ;;  %v581_v25 = vmul.f32 0.2, %v485_v14 }
  0xeb   : > { %v599_v24 = vsel %vm535_vm13, %v429_v9, %v567_v18  ;;  %v442_v26 = vadd.f32 %v1081_v15, %v1226_v19  ;;  %v506_v27 = vadd.f32 %v1097_v16, %v1226_v19  ;;  %v615_v29 = vsel %vm551_vm14, %v493_v10, %v583_v20 }
  0xec   : > { %v969_v28 = vpack.c.bf16 %v599_v24, %v598_v4  ;;  %v597_v30 = vsel %vm533_vm15, %v421_v13, %v565_v21  ;;  %v434_v31 = vadd.f32 %v1226_v19, %v433_v22  ;;  %v1082_v32 = vpop.f32.mrf.mxu0  ;;  %v1098_v33 = vpop.f32.mrf.mxu1  ;;  %v1009_v34 = vpack.c.bf16 %v615_v29, %v614_v11 }
  0xed   : > { %v964_v35 = vpack.c.bf16 %v597_v30, %v596_v12  ;;  %v613_v36 = vsel %vm549_vm0, %v485_v14, %v581_v25  ;;  %vm538_vm1 = vcmp.gt.f32.partialorder %v442_v26, 0.0  ;;  %v570_v38 = vmul.f32 0.2, %v442_v26 }
  0xee   : > { %1033 = vst [vmem:[%s1241_s29 + $0x18] sm:$0xff] %v969_v28   ;;  %v1004_v37 = vpack.c.bf16 %v613_v36, %v612_v17  ;;  %vm554_vm2 = vcmp.gt.f32.partialorder %v506_v27, 0.0  ;;  %v586_v39 = vmul.f32 0.2, %v506_v27  ;;  %v436_v40 = vpop.f32.mrf.mxu0  ;;  %v500_v41 = vpop.f32.mrf.mxu1  ;;  %1041 = vst [vmem:[%s1241_s29 + $0x58] sm:$0xff] %v1009_v34   ;;  %vm536_vm3 = vcmp.gt.f32.partialorder %v434_v31, 0.0 }
  0xef   : > { %1032 = vst [vmem:[%s1241_s29 + $0x10] sm:$0xff] %v964_v35   ;;  %v568_v42 = vmul.f32 0.2, %v434_v31  ;;  %v498_v43 = vadd.f32 %v1226_v19, %v497_v23  ;;  %v445_v44 = vadd.f32 %v1082_v32, %v1226_v19  ;;  %v602_v45 = vsel %vm538_vm1, %v442_v26, %v570_v38 }
  0xf0   : > { %1040 = vst [vmem:[%s1241_s29 + $0x50] sm:$0xff] %v1004_v37   ;;  %v509_v46 = vadd.f32 %v1098_v33, %v1226_v19  ;;  %v437_v47 = vadd.f32 %v1226_v19, %v436_v40  ;;  %v1085_v48 = vpop.f32.mrf.mxu0  ;;  %v1101_v49 = vpop.f32.mrf.mxu1  ;;  %v618_v50 = vsel %vm554_vm2, %v506_v27, %v586_v39  ;;  %v501_v58 = vadd.f32 %v1226_v19, %v500_v41 }
  0xf1   : > { %v600_v51 = vsel %vm536_vm3, %v434_v31, %v568_v42  ;;  %vm552_vm4 = vcmp.gt.f32.partialorder %v498_v43, 0.0  ;;  %vm539_vm5 = vcmp.gt.f32.partialorder %v445_v44, 0.0  ;;  %v571_v52 = vmul.f32 0.2, %v445_v44 }
  0xf2   : > { %vm555_vm6 = vcmp.gt.f32.partialorder %v509_v46, 0.0  ;;  %v587_v53 = vmul.f32 0.2, %v509_v46  ;;  %vm537_vm7 = vcmp.gt.f32.partialorder %v437_v47, 0.0  ;;  %v449_v54 = vpop.f32.mrf.mxu0  ;;  %v513_v55 = vpop.f32.mrf.mxu1  ;;  %v584_v56 = vmul.f32 0.2, %v498_v43 }
  0xf3   : > { %v569_v57 = vmul.f32 0.2, %v437_v47  ;;  %v458_v59 = vadd.f32 %v1085_v48, %v1226_v19  ;;  %v603_v60 = vsel %vm539_vm5, %v445_v44, %v571_v52  ;;  %v522_v62 = vadd.f32 %v1101_v49, %v1226_v19 }
  0xf4   : > { %v619_v61 = vsel %vm555_vm6, %v509_v46, %v587_v53  ;;  %v450_v63 = vadd.f32 %v1226_v19, %v449_v54  ;;  %v1086_v0 = vpop.f32.mrf.mxu0  ;;  %v1102_v1 = vpop.f32.mrf.mxu1  ;;  %v979_v2 = vpack.c.bf16 %v603_v60, %v602_v45  ;;  %vm553_vm8 = vcmp.gt.f32.partialorder %v501_v58, 0.0 }
  0xf5   : > { %v1019_v3 = vpack.c.bf16 %v619_v61, %v618_v50  ;;  %v601_v4 = vsel %vm537_vm7, %v437_v47, %v569_v57  ;;  %v585_v6 = vmul.f32 0.2, %v501_v58  ;;  %v574_v7 = vmul.f32 0.2, %v458_v59 }
  0xf6   : > { %v974_v5 = vpack.c.bf16 %v601_v4, %v600_v51  ;;  %v616_v8 = vsel %vm552_vm4, %v498_v43, %v584_v56  ;;  %1035 = vst [vmem:[%s1241_s29 + $0x28] sm:$0xff] %v979_v2   ;;  %vm542_vm9 = vcmp.gt.f32.partialorder %v458_v59, 0.0  ;;  %v590_v10 = vmul.f32 0.2, %v522_v62  ;;  %v452_v13 = vpop.f32.mrf.mxu0  ;;  %v516_v14 = vpop.f32.mrf.mxu1 }
  0xf7   : > { %1043 = vst [vmem:[%s1241_s29 + $0x68] sm:$0xff] %v1019_v3   ;;  %v617_v9 = vsel %vm553_vm8, %v501_v58, %v585_v6  ;;  %v514_v11 = vadd.f32 %v1226_v19, %v513_v55  ;;  %v461_v12 = vadd.f32 %v1086_v0, %v1226_v19  ;;  %vm558_vm10 = vcmp.gt.f32.partialorder %v522_v62, 0.0 }
  0xf8   : > { %1034 = vst [vmem:[%s1241_s29 + $0x20] sm:$0xff] %v974_v5   ;;  %v1014_v15 = vpack.c.bf16 %v617_v9, %v616_v8  ;;  %vm540_vm11 = vcmp.gt.f32.partialorder %v450_v63, 0.0  ;;  %v525_v16 = vadd.f32 %v1102_v1, %v1226_v19  ;;  %v606_v17 = vsel %vm542_vm9, %v458_v59, %v574_v7 }
  0xf9   : > { %v572_v18 = vmul.f32 0.2, %v450_v63  ;;  %vm543_vm12 = vcmp.gt.f32.partialorder %v461_v12, 0.0  ;;  %v575_v20 = vmul.f32 0.2, %v461_v12  ;;  %v453_v22 = vadd.f32 %v1226_v19, %v452_v13 }
  0xfa   : > { %1042 = vst [vmem:[%s1241_s29 + $0x60] sm:$0xff] %v1014_v15   ;;  %vm559_vm13 = vcmp.gt.f32.partialorder %v525_v16, 0.0  ;;  %v591_v21 = vmul.f32 0.2, %v525_v16  ;;  %v517_v23 = vadd.f32 %v1226_v19, %v516_v14  ;;  %v622_v24 = vsel %vm558_vm10, %v522_v62, %v590_v10 }
  0xfb   : > { %vm556_vm14 = vcmp.gt.f32.partialorder %v514_v11, 0.0  ;;  %v588_v25 = vmul.f32 0.2, %v514_v11  ;;  %v607_v26 = vsel %vm543_vm12, %v461_v12, %v575_v20  ;;  %vm541_vm15 = vcmp.gt.f32.partialorder %v453_v22, 0.0 }
  0xfc   : > { %v989_v27 = vpack.c.bf16 %v607_v26, %v606_v17  ;;  %v623_v28 = vsel %vm559_vm13, %v525_v16, %v591_v21  ;;  %v573_v29 = vmul.f32 0.2, %v453_v22  ;;  %vm557_vm0 = vcmp.gt.f32.partialorder %v517_v23, 0.0 }
  0xfd   : > { %v1029_v30 = vpack.c.bf16 %v623_v28, %v622_v24  ;;  %v589_v31 = vmul.f32 0.2, %v517_v23  ;;  %v604_v32 = vsel %vm540_vm11, %v450_v63, %v572_v18  ;;  %v620_v34 = vsel %vm556_vm14, %v514_v11, %v588_v25 }
  0xfe   : > { %1037 = vst [vmem:[%s1241_s29 + $0x38] sm:$0xff] %v989_v27   ;;  %v605_v33 = vsel %vm541_vm15, %v453_v22, %v573_v29 }
  0xff   : > { %1045 = vst [vmem:[%s1241_s29 + $0x78] sm:$0xff] %v1029_v30   ;;  %v984_v19 = vpack.c.bf16 %v605_v33, %v604_v32  ;;  %v621_v35 = vsel %vm557_vm0, %v517_v23, %v589_v31 }
 0x100   : > { %v1024_v36 = vpack.c.bf16 %v621_v35, %v620_v34 }
 0x101   : > { %1036 = vst [vmem:[%s1241_s29 + $0x30] sm:$0xff] %v984_v19  }
 0x102   : > { %1044 = vst [vmem:[%s1241_s29 + $0x70] sm:$0xff] %v1024_v36  }
 0x103 PF: > { %s13_s12 = sadd.s32 1, %s1142_s12  }
 0x104   : > { %p10_p4 = scmp.ge.s32.totalorder %s13_s12, 10  }
 0x106   :  { %12 = sbr.rel (!%p10_p4) target bundleno = 1 (0x1), region = 62 }

// kernel: d_forward.5
= control target key start
LH: loop header
LB: loop body
LE: loop exit
PB: predicated region body
PF: predicated region fallthrough
CT: control target
= control target key end

     0   :  { %s4350_s18 = smov 0   ;;  %s4352_s19 = smov 0   ;;  %s5938_s0 = inlined_call_operand.vmem [shape: bf16[512,1024], index: 0, kind: input, shape index: {}]   ;;  %s5939_s1 = inlined_call_operand.vmem [shape: bf16[1024,128], index: 1, kind: input, shape index: {}]   ;;  %s5940_s2 = inlined_call_operand.vmem [shape: f32[1,128], index: 2, kind: input, shape index: {}]   ;;  %s5941_s3 = inlined_call_operand.vmem [shape: f32[1,128], index: 3, kind: input, shape index: {}]   ;;  %s5942_s4 = inlined_call_operand.vmem [shape: f32[1,128], index: 4, kind: input, shape index: {}]   ;;  %s5943_s5 = inlined_call_operand.vmem [shape: bf16[512,128], index: 5, kind: output, shape index: {}]  }
   0x1   :  { %s4354_s20 = smov 0  }
   0x2 LB: > { %s4366_s21 = sadd.s32 4294967295, %s4316_s20   ;;  %s4369_s22 = sadd.s32 1, %s4316_s20   ;;  %s4316_s20 = sphi %s4354_s20, %s6123_s20   ;;  %s4312_s19 = sphi %s4352_s19, %s6122_s19   ;;  %s4308_s18 = sphi %s4350_s18, %s6121_s18  }
   0x3   : > { %s19_s23 = ssub.s32 %s4316_s20, %s4369_s22  ;;  %s22_s24 = sadd.s32 1, %s4312_s19 }
   0x4   : > { %p20_p0 = scmp.eq.s32.totalorder %s19_s23, 0  ;;  %p29_p1 = scmp.ne.s32.totalorder %s4312_s19, %s4308_s18 }
   0x5   : > { %p30_p2 = scmp.eq.s32.totalorder %s4316_s20, 0  ;;  %p3547_p4 = scmp.ge.s32.totalorder %s4316_s20, 2 }
   0x6   : > { %s4378_s25 = scalar_select %p20_p0, %s4312_s19, %s22_s24  }
   0x7   : > { %p31_p3 = por %p30_p2, %p29_p1  ;;  %174 = sbr.rel (%p3547_p4) target bundleno = 80 (0x50), region = 28 }
   0xc   : > { %177 = sbr.rel (!%p31_p3) target bundleno = 80 (0x50), region = 32  ;;  %s179_s26 = sand.u32 (%p31_p3), 1, %s4312_s19  }
   0xd   : > { %s3786_s27 = sshll.u32 (%p31_p3), %s4316_s20, 4  ;;  %s3548_s28 = sshll.u32 (%p31_p3), %s179_s26, 10 }
   0xe   : > { %s4386_s6 = scalar_lea.vmem (%p31_p3), %s5938_s0, %s3786_s27  ;;  %s4391_s7 = scalar_lea.vmem (%p31_p3), [#allocation3], %s3548_s28 }
   0xf   : > { %v197_v0 = vld [vmem:[%s4386_s6] sm:$0xff] (%p31_p3)  ;;  %v199_v1 = vld [vmem:[%s4386_s6 + $0x8] sm:$0xff] (%p31_p3) }
  0x10   : > { %v201_v2 = vld [vmem:[%s4386_s6 + $0x20] sm:$0xff] (%p31_p3)  ;;  %198 = vst [vmem:[%s4391_s7] sm:$0xff] (%p31_p3), %v197_v0  ;;  %200 = vst [vmem:[%s4391_s7 + $0x8] sm:$0xff] (%p31_p3), %v199_v1  ;;  %v203_v3 = vld [vmem:[%s4386_s6 + $0x28] sm:$0xff] (%p31_p3) }
  0x11   : > { %202 = vst [vmem:[%s4391_s7 + $0x10] sm:$0xff] %v201_v2  ;;  %v205_v4 = vld [vmem:[%s4386_s6 + $0x40] sm:$0xff]  ;;  %v207_v5 = vld [vmem:[%s4386_s6 + $0x48] sm:$0xff]  ;;  %204 = vst [vmem:[%s4391_s7 + $0x18] sm:$0xff] %v203_v3 }
  0x12   : > { %206 = vst [vmem:[%s4391_s7 + $0x20] sm:$0xff] %v205_v4  ;;  %208 = vst [vmem:[%s4391_s7 + $0x28] sm:$0xff] %v207_v5  ;;  %v209_v6 = vld [vmem:[%s4386_s6 + $0x60] sm:$0xff]  ;;  %v211_v7 = vld [vmem:[%s4386_s6 + $0x68] sm:$0xff] }
  0x13   : > { %v213_v8 = vld [vmem:[%s4386_s6 + $0x80] sm:$0xff]  ;;  %210 = vst [vmem:[%s4391_s7 + $0x30] sm:$0xff] %v209_v6  ;;  %212 = vst [vmem:[%s4391_s7 + $0x38] sm:$0xff] %v211_v7  ;;  %v215_v9 = vld [vmem:[%s4386_s6 + $0x88] sm:$0xff] }
  0x14   : > { %214 = vst [vmem:[%s4391_s7 + $0x40] sm:$0xff] %v213_v8  ;;  %v217_v10 = vld [vmem:[%s4386_s6 + $0xa0] sm:$0xff]  ;;  %v219_v11 = vld [vmem:[%s4386_s6 + $0xa8] sm:$0xff]  ;;  %216 = vst [vmem:[%s4391_s7 + $0x48] sm:$0xff] %v215_v9 }
  0x15   : > { %218 = vst [vmem:[%s4391_s7 + $0x50] sm:$0xff] %v217_v10  ;;  %220 = vst [vmem:[%s4391_s7 + $0x58] sm:$0xff] %v219_v11  ;;  %v221_v12 = vld [vmem:[%s4386_s6 + $0xc0] sm:$0xff]  ;;  %v223_v13 = vld [vmem:[%s4386_s6 + $0xc8] sm:$0xff] }
  0x16   : > { %v225_v14 = vld [vmem:[%s4386_s6 + $0xe0] sm:$0xff]  ;;  %222 = vst [vmem:[%s4391_s7 + $0x60] sm:$0xff] %v221_v12  ;;  %224 = vst [vmem:[%s4391_s7 + $0x68] sm:$0xff] %v223_v13  ;;  %v227_v15 = vld [vmem:[%s4386_s6 + $0xe8] sm:$0xff] }
  0x17   : > { %226 = vst [vmem:[%s4391_s7 + $0x70] sm:$0xff] %v225_v14  ;;  %v229_v16 = vld [vmem:[%s4386_s6 + $0x100] sm:$0xff]  ;;  %v231_v17 = vld [vmem:[%s4386_s6 + $0x108] sm:$0xff]  ;;  %228 = vst [vmem:[%s4391_s7 + $0x78] sm:$0xff] %v227_v15 }
  0x18   : > { %230 = vst [vmem:[%s4391_s7 + $0x80] sm:$0xff] %v229_v16  ;;  %232 = vst [vmem:[%s4391_s7 + $0x88] sm:$0xff] %v231_v17  ;;  %v233_v18 = vld [vmem:[%s4386_s6 + $0x120] sm:$0xff]  ;;  %v235_v19 = vld [vmem:[%s4386_s6 + $0x128] sm:$0xff] }
  0x19   : > { %v237_v20 = vld [vmem:[%s4386_s6 + $0x140] sm:$0xff]  ;;  %234 = vst [vmem:[%s4391_s7 + $0x90] sm:$0xff] %v233_v18  ;;  %236 = vst [vmem:[%s4391_s7 + $0x98] sm:$0xff] %v235_v19  ;;  %v239_v21 = vld [vmem:[%s4386_s6 + $0x148] sm:$0xff] }
  0x1a   : > { %238 = vst [vmem:[%s4391_s7 + $0xa0] sm:$0xff] %v237_v20  ;;  %v241_v22 = vld [vmem:[%s4386_s6 + $0x160] sm:$0xff]  ;;  %v243_v23 = vld [vmem:[%s4386_s6 + $0x168] sm:$0xff]  ;;  %240 = vst [vmem:[%s4391_s7 + $0xa8] sm:$0xff] %v239_v21 }
  0x1b   : > { %242 = vst [vmem:[%s4391_s7 + $0xb0] sm:$0xff] %v241_v22  ;;  %244 = vst [vmem:[%s4391_s7 + $0xb8] sm:$0xff] %v243_v23  ;;  %v245_v24 = vld [vmem:[%s4386_s6 + $0x180] sm:$0xff]  ;;  %v247_v25 = vld [vmem:[%s4386_s6 + $0x188] sm:$0xff] }
  0x1c   : > { %v249_v26 = vld [vmem:[%s4386_s6 + $0x1a0] sm:$0xff]  ;;  %246 = vst [vmem:[%s4391_s7 + $0xc0] sm:$0xff] %v245_v24  ;;  %248 = vst [vmem:[%s4391_s7 + $0xc8] sm:$0xff] %v247_v25  ;;  %v251_v27 = vld [vmem:[%s4386_s6 + $0x1a8] sm:$0xff] }
  0x1d   : > { %250 = vst [vmem:[%s4391_s7 + $0xd0] sm:$0xff] %v249_v26  ;;  %v253_v28 = vld [vmem:[%s4386_s6 + $0x1c0] sm:$0xff]  ;;  %v255_v29 = vld [vmem:[%s4386_s6 + $0x1c8] sm:$0xff]  ;;  %252 = vst [vmem:[%s4391_s7 + $0xd8] sm:$0xff] %v251_v27 }
  0x1e   : > { %254 = vst [vmem:[%s4391_s7 + $0xe0] sm:$0xff] %v253_v28  ;;  %256 = vst [vmem:[%s4391_s7 + $0xe8] sm:$0xff] %v255_v29  ;;  %v257_v30 = vld [vmem:[%s4386_s6 + $0x1e0] sm:$0xff]  ;;  %v259_v31 = vld [vmem:[%s4386_s6 + $0x1e8] sm:$0xff] }
  0x1f   : > { %v261_v32 = vld [vmem:[%s4386_s6 + $0x200] sm:$0xff]  ;;  %258 = vst [vmem:[%s4391_s7 + $0xf0] sm:$0xff] %v257_v30  ;;  %260 = vst [vmem:[%s4391_s7 + $0xf8] sm:$0xff] %v259_v31  ;;  %v263_v33 = vld [vmem:[%s4386_s6 + $0x208] sm:$0xff] }
  0x20   : > { %262 = vst [vmem:[%s4391_s7 + $0x100] sm:$0xff] %v261_v32  ;;  %v265_v34 = vld [vmem:[%s4386_s6 + $0x220] sm:$0xff]  ;;  %v267_v35 = vld [vmem:[%s4386_s6 + $0x228] sm:$0xff]  ;;  %264 = vst [vmem:[%s4391_s7 + $0x108] sm:$0xff] %v263_v33 }
  0x21   : > { %266 = vst [vmem:[%s4391_s7 + $0x110] sm:$0xff] %v265_v34  ;;  %268 = vst [vmem:[%s4391_s7 + $0x118] sm:$0xff] %v267_v35  ;;  %v269_v36 = vld [vmem:[%s4386_s6 + $0x240] sm:$0xff]  ;;  %v271_v37 = vld [vmem:[%s4386_s6 + $0x248] sm:$0xff] }
  0x22   : > { %v273_v38 = vld [vmem:[%s4386_s6 + $0x260] sm:$0xff]  ;;  %270 = vst [vmem:[%s4391_s7 + $0x120] sm:$0xff] %v269_v36  ;;  %272 = vst [vmem:[%s4391_s7 + $0x128] sm:$0xff] %v271_v37  ;;  %v275_v39 = vld [vmem:[%s4386_s6 + $0x268] sm:$0xff] }
  0x23   : > { %274 = vst [vmem:[%s4391_s7 + $0x130] sm:$0xff] %v273_v38  ;;  %v277_v40 = vld [vmem:[%s4386_s6 + $0x280] sm:$0xff]  ;;  %v279_v41 = vld [vmem:[%s4386_s6 + $0x288] sm:$0xff]  ;;  %276 = vst [vmem:[%s4391_s7 + $0x138] sm:$0xff] %v275_v39 }
  0x24   : > { %278 = vst [vmem:[%s4391_s7 + $0x140] sm:$0xff] %v277_v40  ;;  %280 = vst [vmem:[%s4391_s7 + $0x148] sm:$0xff] %v279_v41  ;;  %v281_v42 = vld [vmem:[%s4386_s6 + $0x2a0] sm:$0xff]  ;;  %v283_v43 = vld [vmem:[%s4386_s6 + $0x2a8] sm:$0xff] }
  0x25   : > { %v285_v44 = vld [vmem:[%s4386_s6 + $0x2c0] sm:$0xff]  ;;  %282 = vst [vmem:[%s4391_s7 + $0x150] sm:$0xff] %v281_v42  ;;  %284 = vst [vmem:[%s4391_s7 + $0x158] sm:$0xff] %v283_v43  ;;  %v287_v45 = vld [vmem:[%s4386_s6 + $0x2c8] sm:$0xff] }
  0x26   : > { %286 = vst [vmem:[%s4391_s7 + $0x160] sm:$0xff] %v285_v44  ;;  %v289_v46 = vld [vmem:[%s4386_s6 + $0x2e0] sm:$0xff]  ;;  %v291_v47 = vld [vmem:[%s4386_s6 + $0x2e8] sm:$0xff]  ;;  %288 = vst [vmem:[%s4391_s7 + $0x168] sm:$0xff] %v287_v45 }
  0x27   : > { %290 = vst [vmem:[%s4391_s7 + $0x170] sm:$0xff] %v289_v46  ;;  %292 = vst [vmem:[%s4391_s7 + $0x178] sm:$0xff] %v291_v47  ;;  %v293_v48 = vld [vmem:[%s4386_s6 + $0x300] sm:$0xff]  ;;  %v295_v49 = vld [vmem:[%s4386_s6 + $0x308] sm:$0xff] }
  0x28   : > { %v297_v50 = vld [vmem:[%s4386_s6 + $0x320] sm:$0xff]  ;;  %294 = vst [vmem:[%s4391_s7 + $0x180] sm:$0xff] %v293_v48  ;;  %296 = vst [vmem:[%s4391_s7 + $0x188] sm:$0xff] %v295_v49  ;;  %v299_v51 = vld [vmem:[%s4386_s6 + $0x328] sm:$0xff] }
  0x29   : > { %298 = vst [vmem:[%s4391_s7 + $0x190] sm:$0xff] %v297_v50  ;;  %v301_v52 = vld [vmem:[%s4386_s6 + $0x340] sm:$0xff]  ;;  %v303_v53 = vld [vmem:[%s4386_s6 + $0x348] sm:$0xff]  ;;  %300 = vst [vmem:[%s4391_s7 + $0x198] sm:$0xff] %v299_v51 }
  0x2a   : > { %302 = vst [vmem:[%s4391_s7 + $0x1a0] sm:$0xff] %v301_v52  ;;  %304 = vst [vmem:[%s4391_s7 + $0x1a8] sm:$0xff] %v303_v53  ;;  %v305_v54 = vld [vmem:[%s4386_s6 + $0x360] sm:$0xff]  ;;  %v307_v55 = vld [vmem:[%s4386_s6 + $0x368] sm:$0xff] }
  0x2b   : > { %v309_v56 = vld [vmem:[%s4386_s6 + $0x380] sm:$0xff]  ;;  %306 = vst [vmem:[%s4391_s7 + $0x1b0] sm:$0xff] %v305_v54  ;;  %308 = vst [vmem:[%s4391_s7 + $0x1b8] sm:$0xff] %v307_v55  ;;  %v311_v57 = vld [vmem:[%s4386_s6 + $0x388] sm:$0xff] }
  0x2c   : > { %310 = vst [vmem:[%s4391_s7 + $0x1c0] sm:$0xff] %v309_v56  ;;  %v313_v58 = vld [vmem:[%s4386_s6 + $0x3a0] sm:$0xff]  ;;  %v315_v59 = vld [vmem:[%s4386_s6 + $0x3a8] sm:$0xff]  ;;  %312 = vst [vmem:[%s4391_s7 + $0x1c8] sm:$0xff] %v311_v57 }
  0x2d   : > { %314 = vst [vmem:[%s4391_s7 + $0x1d0] sm:$0xff] %v313_v58  ;;  %316 = vst [vmem:[%s4391_s7 + $0x1d8] sm:$0xff] %v315_v59  ;;  %v317_v60 = vld [vmem:[%s4386_s6 + $0x3c0] sm:$0xff]  ;;  %v319_v61 = vld [vmem:[%s4386_s6 + $0x3c8] sm:$0xff] }
  0x2e   : > { %v321_v62 = vld [vmem:[%s4386_s6 + $0x3e0] sm:$0xff]  ;;  %318 = vst [vmem:[%s4391_s7 + $0x1e0] sm:$0xff] %v317_v60  ;;  %320 = vst [vmem:[%s4391_s7 + $0x1e8] sm:$0xff] %v319_v61  ;;  %v323_v63 = vld [vmem:[%s4386_s6 + $0x3e8] sm:$0xff] }
  0x2f   : > { %322 = vst [vmem:[%s4391_s7 + $0x1f0] sm:$0xff] %v321_v62  ;;  %v325_v0 = vld [vmem:[%s4386_s6 + $0x400] sm:$0xff]  ;;  %v327_v1 = vld [vmem:[%s4386_s6 + $0x408] sm:$0xff]  ;;  %324 = vst [vmem:[%s4391_s7 + $0x1f8] sm:$0xff] %v323_v63 }
  0x30   : > { %326 = vst [vmem:[%s4391_s7 + $0x200] sm:$0xff] %v325_v0  ;;  %328 = vst [vmem:[%s4391_s7 + $0x208] sm:$0xff] %v327_v1  ;;  %v329_v2 = vld [vmem:[%s4386_s6 + $0x420] sm:$0xff]  ;;  %v331_v3 = vld [vmem:[%s4386_s6 + $0x428] sm:$0xff] }
  0x31   : > { %v333_v4 = vld [vmem:[%s4386_s6 + $0x440] sm:$0xff]  ;;  %330 = vst [vmem:[%s4391_s7 + $0x210] sm:$0xff] %v329_v2  ;;  %332 = vst [vmem:[%s4391_s7 + $0x218] sm:$0xff] %v331_v3  ;;  %v335_v5 = vld [vmem:[%s4386_s6 + $0x448] sm:$0xff] }
  0x32   : > { %334 = vst [vmem:[%s4391_s7 + $0x220] sm:$0xff] %v333_v4  ;;  %v337_v6 = vld [vmem:[%s4386_s6 + $0x460] sm:$0xff]  ;;  %v339_v7 = vld [vmem:[%s4386_s6 + $0x468] sm:$0xff]  ;;  %336 = vst [vmem:[%s4391_s7 + $0x228] sm:$0xff] %v335_v5 }
  0x33   : > { %338 = vst [vmem:[%s4391_s7 + $0x230] sm:$0xff] %v337_v6  ;;  %340 = vst [vmem:[%s4391_s7 + $0x238] sm:$0xff] %v339_v7  ;;  %v341_v8 = vld [vmem:[%s4386_s6 + $0x480] sm:$0xff]  ;;  %v343_v9 = vld [vmem:[%s4386_s6 + $0x488] sm:$0xff] }
  0x34   : > { %v345_v10 = vld [vmem:[%s4386_s6 + $0x4a0] sm:$0xff]  ;;  %342 = vst [vmem:[%s4391_s7 + $0x240] sm:$0xff] %v341_v8  ;;  %344 = vst [vmem:[%s4391_s7 + $0x248] sm:$0xff] %v343_v9  ;;  %v347_v11 = vld [vmem:[%s4386_s6 + $0x4a8] sm:$0xff] }
  0x35   : > { %346 = vst [vmem:[%s4391_s7 + $0x250] sm:$0xff] %v345_v10  ;;  %v349_v12 = vld [vmem:[%s4386_s6 + $0x4c0] sm:$0xff]  ;;  %v351_v13 = vld [vmem:[%s4386_s6 + $0x4c8] sm:$0xff]  ;;  %348 = vst [vmem:[%s4391_s7 + $0x258] sm:$0xff] %v347_v11 }
  0x36   : > { %350 = vst [vmem:[%s4391_s7 + $0x260] sm:$0xff] %v349_v12  ;;  %352 = vst [vmem:[%s4391_s7 + $0x268] sm:$0xff] %v351_v13  ;;  %v353_v14 = vld [vmem:[%s4386_s6 + $0x4e0] sm:$0xff]  ;;  %v355_v15 = vld [vmem:[%s4386_s6 + $0x4e8] sm:$0xff] }
  0x37   : > { %v357_v16 = vld [vmem:[%s4386_s6 + $0x500] sm:$0xff]  ;;  %354 = vst [vmem:[%s4391_s7 + $0x270] sm:$0xff] %v353_v14  ;;  %356 = vst [vmem:[%s4391_s7 + $0x278] sm:$0xff] %v355_v15  ;;  %v359_v17 = vld [vmem:[%s4386_s6 + $0x508] sm:$0xff] }
  0x38   : > { %358 = vst [vmem:[%s4391_s7 + $0x280] sm:$0xff] %v357_v16  ;;  %v361_v18 = vld [vmem:[%s4386_s6 + $0x520] sm:$0xff]  ;;  %v363_v19 = vld [vmem:[%s4386_s6 + $0x528] sm:$0xff]  ;;  %360 = vst [vmem:[%s4391_s7 + $0x288] sm:$0xff] %v359_v17 }
  0x39   : > { %362 = vst [vmem:[%s4391_s7 + $0x290] sm:$0xff] %v361_v18  ;;  %364 = vst [vmem:[%s4391_s7 + $0x298] sm:$0xff] %v363_v19  ;;  %v365_v20 = vld [vmem:[%s4386_s6 + $0x540] sm:$0xff]  ;;  %v367_v21 = vld [vmem:[%s4386_s6 + $0x548] sm:$0xff] }
  0x3a   : > { %v369_v22 = vld [vmem:[%s4386_s6 + $0x560] sm:$0xff]  ;;  %366 = vst [vmem:[%s4391_s7 + $0x2a0] sm:$0xff] %v365_v20  ;;  %368 = vst [vmem:[%s4391_s7 + $0x2a8] sm:$0xff] %v367_v21  ;;  %v371_v23 = vld [vmem:[%s4386_s6 + $0x568] sm:$0xff] }
  0x3b   : > { %370 = vst [vmem:[%s4391_s7 + $0x2b0] sm:$0xff] %v369_v22  ;;  %v373_v24 = vld [vmem:[%s4386_s6 + $0x580] sm:$0xff]  ;;  %v375_v25 = vld [vmem:[%s4386_s6 + $0x588] sm:$0xff]  ;;  %372 = vst [vmem:[%s4391_s7 + $0x2b8] sm:$0xff] %v371_v23 }
  0x3c   : > { %374 = vst [vmem:[%s4391_s7 + $0x2c0] sm:$0xff] %v373_v24  ;;  %376 = vst [vmem:[%s4391_s7 + $0x2c8] sm:$0xff] %v375_v25  ;;  %v377_v26 = vld [vmem:[%s4386_s6 + $0x5a0] sm:$0xff]  ;;  %v379_v27 = vld [vmem:[%s4386_s6 + $0x5a8] sm:$0xff] }
  0x3d   : > { %v381_v28 = vld [vmem:[%s4386_s6 + $0x5c0] sm:$0xff]  ;;  %378 = vst [vmem:[%s4391_s7 + $0x2d0] sm:$0xff] %v377_v26  ;;  %380 = vst [vmem:[%s4391_s7 + $0x2d8] sm:$0xff] %v379_v27  ;;  %v383_v29 = vld [vmem:[%s4386_s6 + $0x5c8] sm:$0xff] }
  0x3e   : > { %382 = vst [vmem:[%s4391_s7 + $0x2e0] sm:$0xff] %v381_v28  ;;  %v385_v30 = vld [vmem:[%s4386_s6 + $0x5e0] sm:$0xff]  ;;  %v387_v31 = vld [vmem:[%s4386_s6 + $0x5e8] sm:$0xff]  ;;  %384 = vst [vmem:[%s4391_s7 + $0x2e8] sm:$0xff] %v383_v29 }
  0x3f   : > { %386 = vst [vmem:[%s4391_s7 + $0x2f0] sm:$0xff] %v385_v30  ;;  %388 = vst [vmem:[%s4391_s7 + $0x2f8] sm:$0xff] %v387_v31  ;;  %v389_v32 = vld [vmem:[%s4386_s6 + $0x600] sm:$0xff]  ;;  %v391_v33 = vld [vmem:[%s4386_s6 + $0x608] sm:$0xff] }
  0x40   : > { %v393_v34 = vld [vmem:[%s4386_s6 + $0x620] sm:$0xff]  ;;  %390 = vst [vmem:[%s4391_s7 + $0x300] sm:$0xff] %v389_v32  ;;  %392 = vst [vmem:[%s4391_s7 + $0x308] sm:$0xff] %v391_v33  ;;  %v395_v35 = vld [vmem:[%s4386_s6 + $0x628] sm:$0xff] }
  0x41   : > { %394 = vst [vmem:[%s4391_s7 + $0x310] sm:$0xff] %v393_v34  ;;  %v397_v36 = vld [vmem:[%s4386_s6 + $0x640] sm:$0xff]  ;;  %v399_v37 = vld [vmem:[%s4386_s6 + $0x648] sm:$0xff]  ;;  %396 = vst [vmem:[%s4391_s7 + $0x318] sm:$0xff] %v395_v35 }
  0x42   : > { %398 = vst [vmem:[%s4391_s7 + $0x320] sm:$0xff] %v397_v36  ;;  %400 = vst [vmem:[%s4391_s7 + $0x328] sm:$0xff] %v399_v37  ;;  %v401_v38 = vld [vmem:[%s4386_s6 + $0x660] sm:$0xff]  ;;  %v403_v39 = vld [vmem:[%s4386_s6 + $0x668] sm:$0xff] }
  0x43   : > { %v405_v40 = vld [vmem:[%s4386_s6 + $0x680] sm:$0xff]  ;;  %402 = vst [vmem:[%s4391_s7 + $0x330] sm:$0xff] %v401_v38  ;;  %404 = vst [vmem:[%s4391_s7 + $0x338] sm:$0xff] %v403_v39  ;;  %v407_v41 = vld [vmem:[%s4386_s6 + $0x688] sm:$0xff] }
  0x44   : > { %406 = vst [vmem:[%s4391_s7 + $0x340] sm:$0xff] %v405_v40  ;;  %v409_v42 = vld [vmem:[%s4386_s6 + $0x6a0] sm:$0xff]  ;;  %v411_v43 = vld [vmem:[%s4386_s6 + $0x6a8] sm:$0xff]  ;;  %408 = vst [vmem:[%s4391_s7 + $0x348] sm:$0xff] %v407_v41 }
  0x45   : > { %410 = vst [vmem:[%s4391_s7 + $0x350] sm:$0xff] %v409_v42  ;;  %412 = vst [vmem:[%s4391_s7 + $0x358] sm:$0xff] %v411_v43  ;;  %v413_v44 = vld [vmem:[%s4386_s6 + $0x6c0] sm:$0xff]  ;;  %v415_v45 = vld [vmem:[%s4386_s6 + $0x6c8] sm:$0xff] }
  0x46   : > { %v417_v46 = vld [vmem:[%s4386_s6 + $0x6e0] sm:$0xff]  ;;  %414 = vst [vmem:[%s4391_s7 + $0x360] sm:$0xff] %v413_v44  ;;  %416 = vst [vmem:[%s4391_s7 + $0x368] sm:$0xff] %v415_v45  ;;  %v419_v47 = vld [vmem:[%s4386_s6 + $0x6e8] sm:$0xff] }
  0x47   : > { %418 = vst [vmem:[%s4391_s7 + $0x370] sm:$0xff] %v417_v46  ;;  %v421_v48 = vld [vmem:[%s4386_s6 + $0x700] sm:$0xff]  ;;  %v423_v49 = vld [vmem:[%s4386_s6 + $0x708] sm:$0xff]  ;;  %420 = vst [vmem:[%s4391_s7 + $0x378] sm:$0xff] %v419_v47 }
  0x48   : > { %422 = vst [vmem:[%s4391_s7 + $0x380] sm:$0xff] %v421_v48  ;;  %424 = vst [vmem:[%s4391_s7 + $0x388] sm:$0xff] %v423_v49  ;;  %v425_v50 = vld [vmem:[%s4386_s6 + $0x720] sm:$0xff]  ;;  %v427_v51 = vld [vmem:[%s4386_s6 + $0x728] sm:$0xff] }
  0x49   : > { %v429_v52 = vld [vmem:[%s4386_s6 + $0x740] sm:$0xff]  ;;  %426 = vst [vmem:[%s4391_s7 + $0x390] sm:$0xff] %v425_v50  ;;  %428 = vst [vmem:[%s4391_s7 + $0x398] sm:$0xff] %v427_v51  ;;  %v431_v53 = vld [vmem:[%s4386_s6 + $0x748] sm:$0xff] }
  0x4a   : > { %430 = vst [vmem:[%s4391_s7 + $0x3a0] sm:$0xff] %v429_v52  ;;  %v433_v54 = vld [vmem:[%s4386_s6 + $0x760] sm:$0xff]  ;;  %v435_v55 = vld [vmem:[%s4386_s6 + $0x768] sm:$0xff]  ;;  %432 = vst [vmem:[%s4391_s7 + $0x3a8] sm:$0xff] %v431_v53 }
  0x4b   : > { %434 = vst [vmem:[%s4391_s7 + $0x3b0] sm:$0xff] %v433_v54  ;;  %436 = vst [vmem:[%s4391_s7 + $0x3b8] sm:$0xff] %v435_v55  ;;  %v437_v56 = vld [vmem:[%s4386_s6 + $0x780] sm:$0xff]  ;;  %v439_v57 = vld [vmem:[%s4386_s6 + $0x788] sm:$0xff] }
  0x4c   : > { %v441_v58 = vld [vmem:[%s4386_s6 + $0x7a0] sm:$0xff]  ;;  %438 = vst [vmem:[%s4391_s7 + $0x3c0] sm:$0xff] %v437_v56  ;;  %440 = vst [vmem:[%s4391_s7 + $0x3c8] sm:$0xff] %v439_v57  ;;  %v443_v59 = vld [vmem:[%s4386_s6 + $0x7a8] sm:$0xff] }
  0x4d   : > { %442 = vst [vmem:[%s4391_s7 + $0x3d0] sm:$0xff] %v441_v58  ;;  %v445_v60 = vld [vmem:[%s4386_s6 + $0x7c0] sm:$0xff]  ;;  %v447_v61 = vld [vmem:[%s4386_s6 + $0x7c8] sm:$0xff]  ;;  %444 = vst [vmem:[%s4391_s7 + $0x3d8] sm:$0xff] %v443_v59 }
  0x4e   : > { %446 = vst [vmem:[%s4391_s7 + $0x3e0] sm:$0xff] %v445_v60  ;;  %448 = vst [vmem:[%s4391_s7 + $0x3e8] sm:$0xff] %v447_v61  ;;  %v449_v62 = vld [vmem:[%s4386_s6 + $0x7e0] sm:$0xff]  ;;  %v451_v63 = vld [vmem:[%s4386_s6 + $0x7e8] sm:$0xff] }
  0x4f   : > { %450 = vst [vmem:[%s4391_s7 + $0x3f0] sm:$0xff] %v449_v62  ;;  %452 = vst [vmem:[%s4391_s7 + $0x3f8] sm:$0xff] %v451_v63 }
  0x50 PF: > { %p3551_p5 = scmp.ge.s32.totalorder %s4316_s20, 1  ;;  %p466_p6 = scmp.lt.s32.totalorder %s4316_s20, 3 }
  0x52   : > { %p467_p7 = pnand %p3551_p5, %p466_p6 }
  0x53   : > { %s473_s8 = sand.u32 (!%p467_p7), 1, %s4308_s18   ;;  %s3553_s9 = sshll.u32 (!%p467_p7), %s4366_s21, 6 }
  0x54   : > { %470 = sbr.rel (%p467_p7) target bundleno = 942 (0x3ae), region = 59  ;;  %s3552_s10 = sshll.u32 (!%p467_p7), %s473_s8, 10 }
  0x55   : > { %p502_p8 = scmp.lt.s32.totalorder (!%p467_p7), %s3553_s9, 127  ;;  %s4655_s15 = scalar_lea.vmem (!%p467_p7), [#allocation3], %s3552_s10 }
  0x56   : > { %p3555_p9 = scmp.ne.s32.totalorder (!%p467_p7), %s4366_s21, 0 }
  0x59   : > { %s6125_s9 = smov (!%p502_p8, %s3553_s9), 127  ;;  %511 = sbr.rel (%p3555_p9) target bundleno = 127 (0x7f), region = 67 }
  0x5a   : > { %s3554_s11 = sshll.u32 %s6125_s9, 2 }
  0x5b   : > { %s4653_s14 = scalar_lea.vmem %s5939_s1, %s3554_s11 }
  0x5e   : > { %v4318_v0 = vmov 0.0  }
  0x5f   : > { %512 = vst [vmem:[#allocation2 + $0xb0] sm:$0xff] %v4318_v0  ;;  %513 = vst [vmem:[#allocation2 + $0x1b0] sm:$0xff] %v4318_v0 }
  0x60   : > { %514 = vst [vmem:[#allocation2 + $0xd8] sm:$0xff] %v4318_v0  ;;  %515 = vst [vmem:[#allocation2 + $0x18] sm:$0xff] %v4318_v0 }
  0x61   : > { %516 = vst [vmem:[#allocation2 + $0x50] sm:$0xff] %v4318_v0  ;;  %517 = vst [vmem:[#allocation2 + $0x168] sm:$0xff] %v4318_v0 }
  0x62   : > { %518 = vst [vmem:[#allocation2 + $0x130] sm:$0xff] %v4318_v0  ;;  %519 = vst [vmem:[#allocation2 + $0x48] sm:$0xff] %v4318_v0 }
  0x63   : > { %520 = vst [vmem:[#allocation2 + $0x180] sm:$0xff] %v4318_v0  ;;  %521 = vst [vmem:[#allocation2 + $0x110] sm:$0xff] %v4318_v0 }
  0x64   : > { %522 = vst [vmem:[#allocation2 + $0x118] sm:$0xff] %v4318_v0  ;;  %523 = vst [vmem:[#allocation2 + $0x98] sm:$0xff] %v4318_v0 }
  0x65   : > { %524 = vst [vmem:[#allocation2 + $0x120] sm:$0xff] %v4318_v0  ;;  %525 = vst [vmem:[#allocation2 + $0x150] sm:$0xff] %v4318_v0 }
  0x66   : > { %526 = vst [vmem:[#allocation2 + $0x108] sm:$0xff] %v4318_v0  ;;  %527 = vst [vmem:[#allocation2 + $0x60] sm:$0xff] %v4318_v0 }
  0x67   : > { %528 = vst [vmem:[#allocation2 + $0xe0] sm:$0xff] %v4318_v0  ;;  %529 = vst [vmem:[#allocation2 + $0x188] sm:$0xff] %v4318_v0 }
  0x68   : > { %530 = vst [vmem:[#allocation2 + $0x138] sm:$0xff] %v4318_v0  ;;  %531 = vst [vmem:[#allocation2 + $0x140] sm:$0xff] %v4318_v0 }
  0x69   : > { %532 = vst [vmem:[#allocation2 + $0x80] sm:$0xff] %v4318_v0  ;;  %533 = vst [vmem:[#allocation2 + $0x1a8] sm:$0xff] %v4318_v0 }
  0x6a   : > { %534 = vst [vmem:[#allocation2 + $0x1b8] sm:$0xff] %v4318_v0  ;;  %535 = vst [vmem:[#allocation2 + $0x28] sm:$0xff] %v4318_v0 }
  0x6b   : > { %536 = vst [vmem:[#allocation2 + $0x1e8] sm:$0xff] %v4318_v0  ;;  %537 = vst [vmem:[#allocation2 + $0xf8] sm:$0xff] %v4318_v0 }
  0x6c   : > { %538 = vst [vmem:[#allocation2 + $0x160] sm:$0xff] %v4318_v0  ;;  %539 = vst [vmem:[#allocation2 + $0x30] sm:$0xff] %v4318_v0 }
  0x6d   : > { %540 = vst [vmem:[#allocation2 + $0x1e0] sm:$0xff] %v4318_v0  ;;  %541 = vst [vmem:[#allocation2] sm:$0xff] %v4318_v0 }
  0x6e   : > { %542 = vst [vmem:[#allocation2 + $0xf0] sm:$0xff] %v4318_v0  ;;  %543 = vst [vmem:[#allocation2 + $0x8] sm:$0xff] %v4318_v0 }
  0x6f   : > { %544 = vst [vmem:[#allocation2 + $0x148] sm:$0xff] %v4318_v0  ;;  %545 = vst [vmem:[#allocation2 + $0x1d0] sm:$0xff] %v4318_v0 }
  0x70   : > { %546 = vst [vmem:[#allocation2 + $0x100] sm:$0xff] %v4318_v0  ;;  %547 = vst [vmem:[#allocation2 + $0xc8] sm:$0xff] %v4318_v0 }
  0x71   : > { %548 = vst [vmem:[#allocation2 + $0x40] sm:$0xff] %v4318_v0  ;;  %549 = vst [vmem:[#allocation2 + $0x1f8] sm:$0xff] %v4318_v0 }
  0x72   : > { %550 = vst [vmem:[#allocation2 + $0x20] sm:$0xff] %v4318_v0  ;;  %551 = vst [vmem:[#allocation2 + $0x128] sm:$0xff] %v4318_v0 }
  0x73   : > { %552 = vst [vmem:[#allocation2 + $0x1a0] sm:$0xff] %v4318_v0  ;;  %553 = vst [vmem:[#allocation2 + $0x1f0] sm:$0xff] %v4318_v0 }
  0x74   : > { %554 = vst [vmem:[#allocation2 + $0xe8] sm:$0xff] %v4318_v0  ;;  %555 = vst [vmem:[#allocation2 + $0x78] sm:$0xff] %v4318_v0 }
  0x75   : > { %556 = vst [vmem:[#allocation2 + $0x70] sm:$0xff] %v4318_v0  ;;  %557 = vst [vmem:[#allocation2 + $0x90] sm:$0xff] %v4318_v0 }
  0x76   : > { %558 = vst [vmem:[#allocation2 + $0x1d8] sm:$0xff] %v4318_v0  ;;  %559 = vst [vmem:[#allocation2 + $0xd0] sm:$0xff] %v4318_v0 }
  0x77   : > { %560 = vst [vmem:[#allocation2 + $0xb8] sm:$0xff] %v4318_v0  ;;  %561 = vst [vmem:[#allocation2 + $0x88] sm:$0xff] %v4318_v0 }
  0x78   : > { %562 = vst [vmem:[#allocation2 + $0xa8] sm:$0xff] %v4318_v0  ;;  %563 = vst [vmem:[#allocation2 + $0x1c8] sm:$0xff] %v4318_v0 }
  0x79   : > { %564 = vst [vmem:[#allocation2 + $0x170] sm:$0xff] %v4318_v0  ;;  %565 = vst [vmem:[#allocation2 + $0x178] sm:$0xff] %v4318_v0 }
  0x7a   : > { %566 = vst [vmem:[#allocation2 + $0x68] sm:$0xff] %v4318_v0  ;;  %567 = vst [vmem:[#allocation2 + $0x190] sm:$0xff] %v4318_v0 }
  0x7b   : > { %568 = vst [vmem:[#allocation2 + $0x198] sm:$0xff] %v4318_v0  ;;  %569 = vst [vmem:[#allocation2 + $0x38] sm:$0xff] %v4318_v0 }
  0x7c   : > { %570 = vst [vmem:[#allocation2 + $0xc0] sm:$0xff] %v4318_v0  ;;  %571 = vst [vmem:[#allocation2 + $0x1c0] sm:$0xff] %v4318_v0 }
  0x7d   : > { %572 = vst [vmem:[#allocation2 + $0x158] sm:$0xff] %v4318_v0  ;;  %573 = vst [vmem:[#allocation2 + $0x10] sm:$0xff] %v4318_v0 }
  0x7e   : > { %574 = vst [vmem:[#allocation2 + $0x58] sm:$0xff] %v4318_v0  ;;  %575 = vst [vmem:[#allocation2 + $0xa0] sm:$0xff] %v4318_v0 }
  0x7f PF: > { %v4068_v1 = vld [vmem:[%s4653_s14 + $0x38] sm:$0xff]   ;;  %v4319_v2 = vmov 0   ;;  %v4070_v4 = vld [vmem:[%s4653_s14 + $0x30] sm:$0xff]   ;;  %v4072_v6 = vld [vmem:[%s4653_s14 + $0x28] sm:$0xff]   ;;  %p3716_p10 = scmp.ne.s32.totalorder %s4366_s21, 1 }
  0x80   : > { %1664 = vmatprep.subr.bf16.mxu0 %v4319_v2  ;;  %1953 = vmatprep.subr.bf16.mxu1 %v4319_v2  ;;  %v4069_v3 = vld [vmem:[%s4653_s14 + $0xb8] sm:$0xff]   ;;  %v4071_v5 = vld [vmem:[%s4653_s14 + $0xb0] sm:$0xff]   ;;  %v4073_v7 = vld [vmem:[%s4653_s14 + $0xa8] sm:$0xff]  }
  0x81   : > { %1665 = vmatpush1.bf16.msra.mxu0 %v4068_v1  ;;  %1954 = vmatpush1.bf16.msra.mxu1 %v4069_v3  ;;  %v4074_v8 = vld [vmem:[%s4653_s14 + $0x20] sm:$0xff]   ;;  %v4076_v10 = vld [vmem:[%s4653_s14 + $0x18] sm:$0xff]   ;;  %v4078_v12 = vld [vmem:[%s4653_s14 + $0x10] sm:$0xff]  }
  0x82   : > { %1666 = vmatprep.subr.bf16.mxu0 %v4319_v2  ;;  %1955 = vmatprep.subr.bf16.mxu1 %v4319_v2  ;;  %v4075_v9 = vld [vmem:[%s4653_s14 + $0xa0] sm:$0xff]   ;;  %v4077_v11 = vld [vmem:[%s4653_s14 + $0x98] sm:$0xff]   ;;  %v4079_v13 = vld [vmem:[%s4653_s14 + $0x90] sm:$0xff]  }
  0x83   : > { %v4080_v14 = vld [vmem:[%s4653_s14 + $0x8] sm:$0xff]   ;;  %v4082_v16 = vld [vmem:[%s4653_s14] sm:$0xff]   ;;  %v4084_v18 = vld [vmem:[%s4653_s14 + $0x78] sm:$0xff]  }
  0x84   : > { %v4081_v15 = vld [vmem:[%s4653_s14 + $0x88] sm:$0xff]   ;;  %v4083_v17 = vld [vmem:[%s4653_s14 + $0x80] sm:$0xff]   ;;  %v4085_v19 = vld [vmem:[%s4653_s14 + $0xf8] sm:$0xff]  }
  0x85   : > { %1667 = vmatpush1.bf16.msra.mxu0 %v4070_v4  ;;  %1956 = vmatpush1.bf16.msra.mxu1 %v4071_v5  ;;  %v4102_v20 = vld [vmem:[%s4655_s15 + $0x4] ss:$16 sps:$4 sm:$0xff]   ;;  %v4105_v22 = vld [vmem:[%s4655_s15 + $0xc] ss:$16 sps:$4 sm:$0xff]   ;;  %v4100_v36 = vld [vmem:[%s4655_s15] ss:$16 sps:$4 sm:$0xff]  }
  0x86   : > { %1668 = vmatprep.subr.bf16.mxu0 %v4319_v2  ;;  %1957 = vmatprep.subr.bf16.mxu1 %v4319_v2  ;;  %v4086_v21 = vld [vmem:[%s4653_s14 + $0x70] sm:$0xff]   ;;  %v4088_v24 = vld [vmem:[%s4653_s14 + $0x68] sm:$0xff]   ;;  %v4090_v26 = vld [vmem:[%s4653_s14 + $0x60] sm:$0xff]  }
  0x87   : > { %v4087_v23 = vld [vmem:[%s4653_s14 + $0xf0] sm:$0xff]   ;;  %1696 = vmatprep.mubr.bf16.mxu0 %v4102_v20  ;;  %1985 = vmatprep.mubr.bf16.mxu1 %v4105_v22  ;;  %v4089_v25 = vld [vmem:[%s4653_s14 + $0xe8] sm:$0xff]   ;;  %v4091_v27 = vld [vmem:[%s4653_s14 + $0xe0] sm:$0xff]  }
  0x88   : > { %v4092_v28 = vld [vmem:[%s4653_s14 + $0x58] sm:$0xff]   ;;  %v4094_v30 = vld [vmem:[%s4653_s14 + $0x50] sm:$0xff]   ;;  %v4096_v32 = vld [vmem:[%s4653_s14 + $0x48] sm:$0xff]  }
  0x89   : > { %1669 = vmatpush1.bf16.msra.mxu0 %v4072_v6  ;;  %1958 = vmatpush1.bf16.msra.mxu1 %v4073_v7  ;;  %v4093_v29 = vld [vmem:[%s4653_s14 + $0xd8] sm:$0xff]   ;;  %v4095_v31 = vld [vmem:[%s4653_s14 + $0xd0] sm:$0xff]   ;;  %v4097_v33 = vld [vmem:[%s4653_s14 + $0xc8] sm:$0xff]  }
  0x8a   : > { %1670 = vmatprep.subr.bf16.mxu0 %v4319_v2  ;;  %1959 = vmatprep.subr.bf16.mxu1 %v4319_v2  ;;  %v4098_v34 = vld [vmem:[%s4653_s14 + $0x40] sm:$0xff]   ;;  %v4103_v37 = vld [vmem:[%s4655_s15 + $0x8] ss:$16 sps:$4 sm:$0xff]   ;;  %v4108_v39 = vld [vmem:[%s4655_s15 + $0x2c] ss:$16 sps:$4 sm:$0xff]  }
  0x8b   : > { %v4099_v35 = vld [vmem:[%s4653_s14 + $0xc0] sm:$0xff]   ;;  %v4111_v41 = vld [vmem:[%s4655_s15 + $0x28] ss:$16 sps:$4 sm:$0xff]   ;;  %v4114_v43 = vld [vmem:[%s4655_s15 + $0x4c] ss:$16 sps:$4 sm:$0xff]  }
  0x8c   : > { %v4106_v38 = vld [vmem:[%s4655_s15 + $0x24] ss:$16 sps:$4 sm:$0xff]   ;;  %v4110_v40 = vld [vmem:[%s4655_s15 + $0x20] ss:$16 sps:$4 sm:$0xff]   ;;  %v4117_v45 = vld [vmem:[%s4655_s15 + $0x48] ss:$16 sps:$4 sm:$0xff]  }
  0x8d   : > { %1671 = vmatpush1.bf16.msra.mxu0 %v4074_v8  ;;  %1960 = vmatpush1.bf16.msra.mxu1 %v4075_v9  ;;  %v4112_v42 = vld [vmem:[%s4655_s15 + $0x44] ss:$16 sps:$4 sm:$0xff]   ;;  %v4116_v44 = vld [vmem:[%s4655_s15 + $0x40] ss:$16 sps:$4 sm:$0xff]   ;;  %v4120_v47 = vld [vmem:[%s4655_s15 + $0x6c] ss:$16 sps:$4 sm:$0xff]  }
  0x8e   : > { %1672 = vmatprep.subr.bf16.mxu0 %v4319_v2  ;;  %1961 = vmatprep.subr.bf16.mxu1 %v4319_v2  ;;  %v4118_v46 = vld [vmem:[%s4655_s15 + $0x64] ss:$16 sps:$4 sm:$0xff]   ;;  %v4122_v48 = vld [vmem:[%s4655_s15 + $0x60] ss:$16 sps:$4 sm:$0xff]   ;;  %v4123_v49 = vld [vmem:[%s4655_s15 + $0x68] ss:$16 sps:$4 sm:$0xff]  }
  0x8f   : > { %v4124_v50 = vld [vmem:[%s4655_s15 + $0x84] ss:$16 sps:$4 sm:$0xff]   ;;  %v4126_v51 = vld [vmem:[%s4655_s15 + $0x8c] ss:$16 sps:$4 sm:$0xff]   ;;  %v4128_v52 = vld [vmem:[%s4655_s15 + $0x80] ss:$16 sps:$4 sm:$0xff]  }
  0x90   : > { %v4129_v53 = vld [vmem:[%s4655_s15 + $0x88] ss:$16 sps:$4 sm:$0xff]   ;;  %v4130_v54 = vld [vmem:[%s4655_s15 + $0xa4] ss:$16 sps:$4 sm:$0xff]   ;;  %v4132_v55 = vld [vmem:[%s4655_s15 + $0xac] ss:$16 sps:$4 sm:$0xff]  }
  0x91   : > { %1673 = vmatpush1.bf16.msra.mxu0 %v4076_v10  ;;  %1962 = vmatpush1.bf16.msra.mxu1 %v4077_v11  ;;  %v4134_v56 = vld [vmem:[%s4655_s15 + $0xa0] ss:$16 sps:$4 sm:$0xff]   ;;  %v4135_v57 = vld [vmem:[%s4655_s15 + $0xa8] ss:$16 sps:$4 sm:$0xff]   ;;  %v4136_v58 = vld [vmem:[%s4655_s15 + $0xc4] ss:$16 sps:$4 sm:$0xff]  }
  0x92   : > { %1674 = vmatprep.subr.bf16.mxu0 %v4319_v2  ;;  %1963 = vmatprep.subr.bf16.mxu1 %v4319_v2  ;;  %v4138_v59 = vld [vmem:[%s4655_s15 + $0xcc] ss:$16 sps:$4 sm:$0xff]   ;;  %v4140_v60 = vld [vmem:[%s4655_s15 + $0xc0] ss:$16 sps:$4 sm:$0xff]   ;;  %v4141_v61 = vld [vmem:[%s4655_s15 + $0xc8] ss:$16 sps:$4 sm:$0xff]  }
  0x93   : > { %v4142_v62 = vld [vmem:[%s4655_s15 + $0xe4] ss:$16 sps:$4 sm:$0xff]   ;;  %v4144_v63 = vld [vmem:[%s4655_s15 + $0xec] ss:$16 sps:$4 sm:$0xff]   ;;  %v4146_v0 = vld [vmem:[%s4655_s15 + $0xe0] ss:$16 sps:$4 sm:$0xff]  }
  0x94   : > { %v4147_v1 = vld [vmem:[%s4655_s15 + $0xe8] ss:$16 sps:$4 sm:$0xff]   ;;  %v4150_v3 = vld [vmem:[%s4655_s15 + $0x10c] ss:$16 sps:$4 sm:$0xff]   ;;  %v4152_v4 = vld [vmem:[%s4655_s15 + $0x100] ss:$16 sps:$4 sm:$0xff]  }
  0x95   : > { %1675 = vmatpush1.bf16.msra.mxu0 %v4078_v12  ;;  %1964 = vmatpush1.bf16.msra.mxu1 %v4079_v13  ;;  %v4153_v5 = vld [vmem:[%s4655_s15 + $0x108] ss:$16 sps:$4 sm:$0xff]   ;;  %v4154_v6 = vld [vmem:[%s4655_s15 + $0x124] ss:$16 sps:$4 sm:$0xff]   ;;  %v4156_v7 = vld [vmem:[%s4655_s15 + $0x12c] ss:$16 sps:$4 sm:$0xff]  }
  0x96   : > { %1676 = vmatprep.subr.bf16.mxu0 %v4319_v2  ;;  %1965 = vmatprep.subr.bf16.mxu1 %v4319_v2  ;;  %v4158_v8 = vld [vmem:[%s4655_s15 + $0x120] ss:$16 sps:$4 sm:$0xff]   ;;  %v4159_v9 = vld [vmem:[%s4655_s15 + $0x128] ss:$16 sps:$4 sm:$0xff]   ;;  %v4160_v10 = vld [vmem:[%s4655_s15 + $0x144] ss:$16 sps:$4 sm:$0xff]  }
  0x97   : > { %v4162_v11 = vld [vmem:[%s4655_s15 + $0x14c] ss:$16 sps:$4 sm:$0xff]   ;;  %v4164_v12 = vld [vmem:[%s4655_s15 + $0x140] ss:$16 sps:$4 sm:$0xff]   ;;  %v4165_v13 = vld [vmem:[%s4655_s15 + $0x148] ss:$16 sps:$4 sm:$0xff]  }
  0x98   : > { %v4176_v20 = vld [vmem:[%s4655_s15 + $0x180] ss:$16 sps:$4 sm:$0xff]   ;;  %v4178_v22 = vld [vmem:[%s4655_s15 + $0x1a4] ss:$16 sps:$4 sm:$0xff]  }
  0x99   : > { %1677 = vmatpush1.bf16.msra.mxu0 %v4080_v14  ;;  %1966 = vmatpush1.bf16.msra.mxu1 %v4081_v15  ;;  %v4166_v14 = vld [vmem:[%s4655_s15 + $0x164] ss:$16 sps:$4 sm:$0xff]   ;;  %v4168_v15 = vld [vmem:[%s4655_s15 + $0x16c] ss:$16 sps:$4 sm:$0xff]  }
  0x9a   : > { %1678 = vmatprep.subr.bf16.mxu0 %v4319_v2  ;;  %1967 = vmatprep.subr.bf16.mxu1 %v4319_v2 }
  0x9d   : > { %1679 = vmatpush1.bf16.msra.mxu0 %v4082_v16  ;;  %1968 = vmatpush1.bf16.msra.mxu1 %v4083_v17  ;;  %v4170_v16 = vld [vmem:[%s4655_s15 + $0x160] ss:$16 sps:$4 sm:$0xff]   ;;  %v4171_v17 = vld [vmem:[%s4655_s15 + $0x168] ss:$16 sps:$4 sm:$0xff]  }
  0x9e   : > { %1680 = vmatprep.subr.bf16.mxu0 %v4319_v2  ;;  %1969 = vmatprep.subr.bf16.mxu1 %v4319_v2 }
  0xa1   : > { %1681 = vmatpush2.bf16.msra.mxu0 %v4084_v18  ;;  %1970 = vmatpush2.bf16.msra.mxu1 %v4085_v19  ;;  %v4172_v18 = vld [vmem:[%s4655_s15 + $0x184] ss:$16 sps:$4 sm:$0xff]   ;;  %v4174_v19 = vld [vmem:[%s4655_s15 + $0x18c] ss:$16 sps:$4 sm:$0xff]  }
  0xa2   : > { %1682 = vmatprep.subr.bf16.mxu0 %v4319_v2  ;;  %1971 = vmatprep.subr.bf16.mxu1 %v4319_v2 }
  0xa5   : > { %1683 = vmatpush2.bf16.msra.mxu0 %v4086_v21  ;;  %1972 = vmatpush2.bf16.msra.mxu1 %v4087_v23  ;;  %v4177_v21 = vld [vmem:[%s4655_s15 + $0x188] ss:$16 sps:$4 sm:$0xff]   ;;  %v4180_v23 = vld [vmem:[%s4655_s15 + $0x1ac] ss:$16 sps:$4 sm:$0xff]  }
  0xa6   : > { %1684 = vmatprep.subr.bf16.mxu0 %v4319_v2  ;;  %1973 = vmatprep.subr.bf16.mxu1 %v4319_v2 }
  0xa9   : > { %1685 = vmatpush2.bf16.msra.mxu0 %v4088_v24  ;;  %1974 = vmatpush2.bf16.msra.mxu1 %v4089_v25  ;;  %v4182_v24 = vld [vmem:[%s4655_s15 + $0x1a0] ss:$16 sps:$4 sm:$0xff]   ;;  %v4183_v25 = vld [vmem:[%s4655_s15 + $0x1a8] ss:$16 sps:$4 sm:$0xff]  }
  0xaa   : > { %1686 = vmatprep.subr.bf16.mxu0 %v4319_v2  ;;  %1975 = vmatprep.subr.bf16.mxu1 %v4319_v2 }
  0xad   : > { %1687 = vmatpush2.bf16.msra.mxu0 %v4090_v26  ;;  %1976 = vmatpush2.bf16.msra.mxu1 %v4091_v27  ;;  %v4184_v26 = vld [vmem:[%s4655_s15 + $0x1c4] ss:$16 sps:$4 sm:$0xff]   ;;  %v4186_v27 = vld [vmem:[%s4655_s15 + $0x1cc] ss:$16 sps:$4 sm:$0xff]  }
  0xae   : > { %1688 = vmatprep.subr.bf16.mxu0 %v4319_v2  ;;  %1977 = vmatprep.subr.bf16.mxu1 %v4319_v2 }
  0xb1   : > { %1689 = vmatpush2.bf16.msra.mxu0 %v4092_v28  ;;  %1978 = vmatpush2.bf16.msra.mxu1 %v4093_v29  ;;  %v4188_v28 = vld [vmem:[%s4655_s15 + $0x1c0] ss:$16 sps:$4 sm:$0xff]   ;;  %v4189_v29 = vld [vmem:[%s4655_s15 + $0x1c8] ss:$16 sps:$4 sm:$0xff]  }
  0xb2   : > { %1690 = vmatprep.subr.bf16.mxu0 %v4319_v2  ;;  %1979 = vmatprep.subr.bf16.mxu1 %v4319_v2 }
  0xb5   : > { %1691 = vmatpush2.bf16.msra.mxu0 %v4094_v30  ;;  %1980 = vmatpush2.bf16.msra.mxu1 %v4095_v31  ;;  %v4190_v30 = vld [vmem:[%s4655_s15 + $0x1e4] ss:$16 sps:$4 sm:$0xff]   ;;  %v4192_v31 = vld [vmem:[%s4655_s15 + $0x1ec] ss:$16 sps:$4 sm:$0xff]  }
  0xb6   : > { %1692 = vmatprep.subr.bf16.mxu0 %v4319_v2  ;;  %1981 = vmatprep.subr.bf16.mxu1 %v4319_v2 }
  0xb9   : > { %1693 = vmatpush2.bf16.msra.mxu0 %v4096_v32  ;;  %1982 = vmatpush2.bf16.msra.mxu1 %v4097_v33  ;;  %v4194_v32 = vld [vmem:[%s4655_s15 + $0x1e0] ss:$16 sps:$4 sm:$0xff]   ;;  %v4195_v33 = vld [vmem:[%s4655_s15 + $0x1e8] ss:$16 sps:$4 sm:$0xff]  }
  0xba   : > { %1694 = vmatprep.subr.bf16.mxu0 %v4319_v2  ;;  %1983 = vmatprep.subr.bf16.mxu1 %v4319_v2  ;;  %v4148_v2 = vld [vmem:[%s4655_s15 + $0x104] ss:$16 sps:$4 sm:$0xff]  }
  0xbd   : > { %1695 = vmatpush2.bf16.msra.mxu0 %v4098_v34  ;;  %1984 = vmatpush2.bf16.msra.mxu1 %v4099_v35  ;;  %v4196_v34 = vld [vmem:[%s4655_s15 + $0x204] ss:$16 sps:$4 sm:$0xff]   ;;  %v4198_v35 = vld [vmem:[%s4655_s15 + $0x20c] ss:$16 sps:$4 sm:$0xff]  }
  0xc0   : > { %1697 = vmatmul.mubr.bf16.vlgmr.msra.gmra.mxu0 %v4100_v36  ;;  %1986 = vmatmul.mubr.bf16.vlgmr.msra.gmra.mxu1 %v4103_v37  ;;  %v4200_v36 = vld [vmem:[%s4655_s15 + $0x200] ss:$16 sps:$4 sm:$0xff]   ;;  %v4201_v37 = vld [vmem:[%s4655_s15 + $0x208] ss:$16 sps:$4 sm:$0xff]  }
  0xc1   : > { %1704 = vmatprep.mubr.bf16.mxu0 %v4106_v38  ;;  %1993 = vmatprep.mubr.bf16.mxu1 %v4108_v39  ;;  %v4202_v38 = vld [vmem:[%s4655_s15 + $0x224] ss:$16 sps:$4 sm:$0xff]   ;;  %v4204_v39 = vld [vmem:[%s4655_s15 + $0x22c] ss:$16 sps:$4 sm:$0xff]  }
  0xc8   : > { %1705 = vmatmul.mubr.bf16.gmra.mxu0 %v4110_v40  ;;  %1994 = vmatmul.mubr.bf16.gmra.mxu1 %v4111_v41  ;;  %v4206_v40 = vld [vmem:[%s4655_s15 + $0x220] ss:$16 sps:$4 sm:$0xff]   ;;  %v4207_v41 = vld [vmem:[%s4655_s15 + $0x228] ss:$16 sps:$4 sm:$0xff]  }
  0xc9   : > { %1712 = vmatprep.mubr.bf16.mxu0 %v4112_v42  ;;  %2001 = vmatprep.mubr.bf16.mxu1 %v4114_v43  ;;  %v4208_v42 = vld [vmem:[%s4655_s15 + $0x244] ss:$16 sps:$4 sm:$0xff]   ;;  %v4210_v43 = vld [vmem:[%s4655_s15 + $0x24c] ss:$16 sps:$4 sm:$0xff]  }
  0xd0   : > { %1713 = vmatmul.mubr.bf16.gmra.mxu0 %v4116_v44  ;;  %2002 = vmatmul.mubr.bf16.gmra.mxu1 %v4117_v45  ;;  %v4212_v44 = vld [vmem:[%s4655_s15 + $0x240] ss:$16 sps:$4 sm:$0xff]   ;;  %v4213_v45 = vld [vmem:[%s4655_s15 + $0x248] ss:$16 sps:$4 sm:$0xff]  }
  0xd1   : > { %1720 = vmatprep.mubr.bf16.mxu0 %v4118_v46  ;;  %2009 = vmatprep.mubr.bf16.mxu1 %v4120_v47  ;;  %v4214_v46 = vld [vmem:[%s4655_s15 + $0x264] ss:$16 sps:$4 sm:$0xff]   ;;  %v4216_v47 = vld [vmem:[%s4655_s15 + $0x26c] ss:$16 sps:$4 sm:$0xff]  }
  0xd8   : > { %1721 = vmatmul.mubr.bf16.gmra.mxu0 %v4122_v48  ;;  %2010 = vmatmul.mubr.bf16.gmra.mxu1 %v4123_v49  ;;  %v4218_v48 = vld [vmem:[%s4655_s15 + $0x260] ss:$16 sps:$4 sm:$0xff]   ;;  %v4219_v49 = vld [vmem:[%s4655_s15 + $0x268] ss:$16 sps:$4 sm:$0xff]  }
  0xd9   : > { %1728 = vmatprep.mubr.bf16.mxu0 %v4124_v50  ;;  %2017 = vmatprep.mubr.bf16.mxu1 %v4126_v51  ;;  %v4220_v50 = vld [vmem:[%s4655_s15 + $0x284] ss:$16 sps:$4 sm:$0xff]   ;;  %v4222_v51 = vld [vmem:[%s4655_s15 + $0x28c] ss:$16 sps:$4 sm:$0xff]  }
  0xe0   : > { %1729 = vmatmul.mubr.bf16.gmra.mxu0 %v4128_v52  ;;  %2018 = vmatmul.mubr.bf16.gmra.mxu1 %v4129_v53  ;;  %v4224_v52 = vld [vmem:[%s4655_s15 + $0x280] ss:$16 sps:$4 sm:$0xff]   ;;  %v4225_v53 = vld [vmem:[%s4655_s15 + $0x288] ss:$16 sps:$4 sm:$0xff]  }
  0xe1   : > { %1736 = vmatprep.mubr.bf16.mxu0 %v4130_v54  ;;  %2025 = vmatprep.mubr.bf16.mxu1 %v4132_v55  ;;  %v4226_v54 = vld [vmem:[%s4655_s15 + $0x2a4] ss:$16 sps:$4 sm:$0xff]   ;;  %v4228_v55 = vld [vmem:[%s4655_s15 + $0x2ac] ss:$16 sps:$4 sm:$0xff]  }
  0xe8   : > { %1737 = vmatmul.mubr.bf16.gmra.mxu0 %v4134_v56  ;;  %2026 = vmatmul.mubr.bf16.gmra.mxu1 %v4135_v57  ;;  %v4230_v56 = vld [vmem:[%s4655_s15 + $0x2a0] ss:$16 sps:$4 sm:$0xff]   ;;  %v4231_v57 = vld [vmem:[%s4655_s15 + $0x2a8] ss:$16 sps:$4 sm:$0xff]  }
  0xe9   : > { %1744 = vmatprep.mubr.bf16.mxu0 %v4136_v58  ;;  %2033 = vmatprep.mubr.bf16.mxu1 %v4138_v59  ;;  %v4232_v58 = vld [vmem:[%s4655_s15 + $0x2c4] ss:$16 sps:$4 sm:$0xff]   ;;  %v4234_v59 = vld [vmem:[%s4655_s15 + $0x2cc] ss:$16 sps:$4 sm:$0xff]  }
  0xf0   : > { %1745 = vmatmul.mubr.bf16.gmra.mxu0 %v4140_v60  ;;  %2034 = vmatmul.mubr.bf16.gmra.mxu1 %v4141_v61  ;;  %v4236_v60 = vld [vmem:[%s4655_s15 + $0x2c0] ss:$16 sps:$4 sm:$0xff]   ;;  %v4237_v61 = vld [vmem:[%s4655_s15 + $0x2c8] ss:$16 sps:$4 sm:$0xff]  }
  0xf1   : > { %1752 = vmatprep.mubr.bf16.mxu0 %v4142_v62  ;;  %2041 = vmatprep.mubr.bf16.mxu1 %v4144_v63  ;;  %v4238_v62 = vld [vmem:[%s4655_s15 + $0x2e4] ss:$16 sps:$4 sm:$0xff]   ;;  %v4240_v63 = vld [vmem:[%s4655_s15 + $0x2ec] ss:$16 sps:$4 sm:$0xff]  }
  0xf8   : > { %1753 = vmatmul.mubr.bf16.gmra.mxu0 %v4146_v0  ;;  %2042 = vmatmul.mubr.bf16.gmra.mxu1 %v4147_v1  ;;  %v4242_v0 = vld [vmem:[%s4655_s15 + $0x2e0] ss:$16 sps:$4 sm:$0xff]   ;;  %v4243_v1 = vld [vmem:[%s4655_s15 + $0x2e8] ss:$16 sps:$4 sm:$0xff]  }
  0xf9   : > { %1760 = vmatprep.mubr.bf16.mxu0 %v4148_v2  ;;  %2049 = vmatprep.mubr.bf16.mxu1 %v4150_v3  ;;  %v4244_v2 = vld [vmem:[%s4655_s15 + $0x304] ss:$16 sps:$4 sm:$0xff]   ;;  %v4246_v3 = vld [vmem:[%s4655_s15 + $0x30c] ss:$16 sps:$4 sm:$0xff]  }
 0x100   : > { %1761 = vmatmul.mubr.bf16.gmra.mxu0 %v4152_v4  ;;  %2050 = vmatmul.mubr.bf16.gmra.mxu1 %v4153_v5  ;;  %v4248_v4 = vld [vmem:[%s4655_s15 + $0x300] ss:$16 sps:$4 sm:$0xff]   ;;  %v4249_v5 = vld [vmem:[%s4655_s15 + $0x308] ss:$16 sps:$4 sm:$0xff]  }
 0x101   : > { %1768 = vmatprep.mubr.bf16.mxu0 %v4154_v6  ;;  %2057 = vmatprep.mubr.bf16.mxu1 %v4156_v7  ;;  %v4250_v6 = vld [vmem:[%s4655_s15 + $0x324] ss:$16 sps:$4 sm:$0xff]   ;;  %v4252_v7 = vld [vmem:[%s4655_s15 + $0x32c] ss:$16 sps:$4 sm:$0xff]  }
 0x108   : > { %1769 = vmatmul.mubr.bf16.gmra.mxu0 %v4158_v8  ;;  %2058 = vmatmul.mubr.bf16.gmra.mxu1 %v4159_v9  ;;  %v576_v9 = vld [vmem:[#allocation2 + $0xb0] sm:$0xff] }
 0x109   : > { %1776 = vmatprep.mubr.bf16.mxu0 %v4160_v10  ;;  %2065 = vmatprep.mubr.bf16.mxu1 %v4162_v11 }
 0x110   : > { %1777 = vmatmul.mubr.bf16.gmra.mxu0 %v4164_v12  ;;  %2066 = vmatmul.mubr.bf16.gmra.mxu1 %v4165_v13 }
 0x111   : > { %1784 = vmatprep.mubr.bf16.mxu0 %v4166_v14  ;;  %2073 = vmatprep.mubr.bf16.mxu1 %v4168_v15 }
 0x118   : > { %1785 = vmatmul.mubr.bf16.gmra.mxu0 %v4170_v16  ;;  %2074 = vmatmul.mubr.bf16.gmra.mxu1 %v4171_v17  ;;  %v4254_v16 = vld [vmem:[%s4655_s15 + $0x320] ss:$16 sps:$4 sm:$0xff]  }
 0x119   : > { %1792 = vmatprep.mubr.bf16.mxu0 %v4172_v18  ;;  %2081 = vmatprep.mubr.bf16.mxu1 %v4174_v19  ;;  %v577_v17 = vld [vmem:[#allocation2 + $0x1b0] sm:$0xff]  ;;  %v4255_v19 = vld [vmem:[%s4655_s15 + $0x328] ss:$16 sps:$4 sm:$0xff]  }
 0x120   : > { %1793 = vmatmul.mubr.bf16.gmra.mxu0 %v4176_v20  ;;  %2082 = vmatmul.mubr.bf16.gmra.mxu1 %v4177_v21  ;;  %v4256_v20 = vld [vmem:[%s4655_s15 + $0x344] ss:$16 sps:$4 sm:$0xff]  }
 0x121   : > { %1800 = vmatprep.mubr.bf16.mxu0 %v4178_v22  ;;  %2089 = vmatprep.mubr.bf16.mxu1 %v4180_v23  ;;  %v4258_v23 = vld [vmem:[%s4655_s15 + $0x34c] ss:$16 sps:$4 sm:$0xff]  }
 0x128   : > { %1801 = vmatmul.mubr.bf16.gmra.mxu0 %v4182_v24  ;;  %2090 = vmatmul.mubr.bf16.gmra.mxu1 %v4183_v25 }
 0x129   : > { %1808 = vmatprep.mubr.bf16.mxu0 %v4184_v26  ;;  %2097 = vmatprep.mubr.bf16.mxu1 %v4186_v27  ;;  %v578_v27 = vld [vmem:[#allocation2 + $0xd8] sm:$0xff] }
 0x130   : > { %1809 = vmatmul.mubr.bf16.gmra.mxu0 %v4188_v28  ;;  %2098 = vmatmul.mubr.bf16.gmra.mxu1 %v4189_v29 }
 0x131   : > { %1816 = vmatprep.mubr.bf16.mxu0 %v4190_v30  ;;  %2105 = vmatprep.mubr.bf16.mxu1 %v4192_v31 }
 0x138   : > { %1817 = vmatmul.mubr.bf16.gmra.mxu0 %v4194_v32  ;;  %2106 = vmatmul.mubr.bf16.gmra.mxu1 %v4195_v33 }
 0x139   : > { %1824 = vmatprep.mubr.bf16.mxu0 %v4196_v34  ;;  %2113 = vmatprep.mubr.bf16.mxu1 %v4198_v35  ;;  %v4260_v34 = vld [vmem:[%s4655_s15 + $0x340] ss:$16 sps:$4 sm:$0xff]   ;;  %v579_v35 = vld [vmem:[#allocation2 + $0x18] sm:$0xff] }
 0x140   : > { %1825 = vmatmul.mubr.bf16.gmra.mxu0 %v4200_v36  ;;  %2114 = vmatmul.mubr.bf16.gmra.mxu1 %v4201_v37  ;;  %v4261_v37 = vld [vmem:[%s4655_s15 + $0x348] ss:$16 sps:$4 sm:$0xff]  }
 0x141   : > { %1832 = vmatprep.mubr.bf16.mxu0 %v4202_v38  ;;  %2121 = vmatprep.mubr.bf16.mxu1 %v4204_v39  ;;  %v4262_v38 = vld [vmem:[%s4655_s15 + $0x364] ss:$16 sps:$4 sm:$0xff]  }
 0x148   : > { %1833 = vmatmul.mubr.bf16.gmra.mxu0 %v4206_v40  ;;  %2122 = vmatmul.mubr.bf16.gmra.mxu1 %v4207_v41  ;;  %v4264_v41 = vld [vmem:[%s4655_s15 + $0x36c] ss:$16 sps:$4 sm:$0xff]  }
 0x149   : > { %1840 = vmatprep.mubr.bf16.mxu0 %v4208_v42  ;;  %2129 = vmatprep.mubr.bf16.mxu1 %v4210_v43 }
 0x150   : > { %1841 = vmatmul.mubr.bf16.gmra.mxu0 %v4212_v44  ;;  %2130 = vmatmul.mubr.bf16.gmra.mxu1 %v4213_v45  ;;  %v580_v45 = vld [vmem:[#allocation2 + $0x50] sm:$0xff] }
 0x151   : > { %1848 = vmatprep.mubr.bf16.mxu0 %v4214_v46  ;;  %2137 = vmatprep.mubr.bf16.mxu1 %v4216_v47 }
 0x158   : > { %1849 = vmatmul.mubr.bf16.gmra.mxu0 %v4218_v48  ;;  %2138 = vmatmul.mubr.bf16.gmra.mxu1 %v4219_v49 }
 0x159   : > { %1856 = vmatprep.mubr.bf16.mxu0 %v4220_v50  ;;  %2145 = vmatprep.mubr.bf16.mxu1 %v4222_v51 }
 0x160   : > { %1857 = vmatmul.mubr.bf16.gmra.mxu0 %v4224_v52  ;;  %2146 = vmatmul.mubr.bf16.gmra.mxu1 %v4225_v53  ;;  %v4266_v52 = vld [vmem:[%s4655_s15 + $0x360] ss:$16 sps:$4 sm:$0xff]   ;;  %v581_v53 = vld [vmem:[#allocation2 + $0x168] sm:$0xff] }
 0x161   : > { %1864 = vmatprep.mubr.bf16.mxu0 %v4226_v54  ;;  %2153 = vmatprep.mubr.bf16.mxu1 %v4228_v55  ;;  %v4267_v55 = vld [vmem:[%s4655_s15 + $0x368] ss:$16 sps:$4 sm:$0xff]  }
 0x168   : > { %1865 = vmatmul.mubr.bf16.gmra.mxu0 %v4230_v56  ;;  %2154 = vmatmul.mubr.bf16.gmra.mxu1 %v4231_v57  ;;  %v4270_v56 = vld [vmem:[%s4655_s15 + $0x384] ss:$16 sps:$4 sm:$0xff]  }
 0x169   : > { %1872 = vmatprep.mubr.bf16.mxu0 %v4232_v58  ;;  %2161 = vmatprep.mubr.bf16.mxu1 %v4234_v59  ;;  %v4273_v59 = vld [vmem:[%s4655_s15 + $0x38c] ss:$16 sps:$4 sm:$0xff]  }
 0x170   : > { %1873 = vmatmul.mubr.bf16.gmra.mxu0 %v4236_v60  ;;  %2162 = vmatmul.mubr.bf16.gmra.mxu1 %v4237_v61 }
 0x171   : > { %1880 = vmatprep.mubr.bf16.mxu0 %v4238_v62  ;;  %2169 = vmatprep.mubr.bf16.mxu1 %v4240_v63  ;;  %v582_v63 = vld [vmem:[#allocation2 + $0x130] sm:$0xff] }
 0x178   : > { %1881 = vmatmul.mubr.bf16.gmra.mxu0 %v4242_v0  ;;  %2170 = vmatmul.mubr.bf16.gmra.mxu1 %v4243_v1 }
 0x179   : > { %1888 = vmatprep.mubr.bf16.mxu0 %v4244_v2  ;;  %2177 = vmatprep.mubr.bf16.mxu1 %v4246_v3 }
 0x180   : > { %v1698_v8 = vpop.f32.mrf.mxu0  ;;  %1889 = vmatmul.mubr.bf16.gmra.mxu0 %v4248_v4  ;;  %v1987_v10 = vpop.f32.mrf.mxu1  ;;  %2178 = vmatmul.mubr.bf16.gmra.mxu1 %v4249_v5 }
 0x181   : > { %1896 = vmatprep.mubr.bf16.mxu0 %v4250_v6  ;;  %v1988_v11 = vadd.f32 %v1987_v10, %v1698_v8  ;;  %2185 = vmatprep.mubr.bf16.mxu1 %v4252_v7  ;;  %v4268_v6 = vld [vmem:[%s4655_s15 + $0x380] ss:$16 sps:$4 sm:$0xff]   ;;  %v583_v7 = vld [vmem:[#allocation2 + $0x48] sm:$0xff]  ;;  %v4276_v10 = vld [vmem:[%s4655_s15 + $0x3a4] ss:$16 sps:$4 sm:$0xff]  }
 0x182   : > { %v1700_v12 = vpop.f32.mrf.mxu0  ;;  %v1989_v13 = vpop.f32.mrf.mxu1 }
 0x183   : > { %v2242_v14 = vadd.f32 %v1988_v11, %v576_v9  ;;  %v4271_v9 = vld [vmem:[%s4655_s15 + $0x388] ss:$16 sps:$4 sm:$0xff]   ;;  %v4279_v13 = vld [vmem:[%s4655_s15 + $0x3ac] ss:$16 sps:$4 sm:$0xff]  }
 0x184   : > { %v1701_v15 = vpop.f32.mrf.mxu0  ;;  %v1990_v18 = vpop.f32.mrf.mxu1 }
 0x185   : > { %2306 = vst [vmem:[#allocation2 + $0xb0] sm:$0xff] %v2242_v14  ;;  %v1991_v21 = vadd.f32 %v1990_v18, %v1701_v15 }
 0x186   : > { %v1703_v22 = vpop.f32.mrf.mxu0  ;;  %v1992_v24 = vpop.f32.mrf.mxu1 }
 0x187   : > { %v2243_v25 = vadd.f32 %v1991_v21, %v577_v17  ;;  %v584_v17 = vld [vmem:[#allocation2 + $0x180] sm:$0xff] }
 0x188   : > { %v1706_v26 = vpop.f32.mrf.mxu0  ;;  %1897 = vmatmul.mubr.bf16.gmra.mxu0 %v4254_v16  ;;  %v1995_v28 = vpop.f32.mrf.mxu1  ;;  %2186 = vmatmul.mubr.bf16.gmra.mxu1 %v4255_v19  ;;  %v4274_v24 = vld [vmem:[%s4655_s15 + $0x3a0] ss:$16 sps:$4 sm:$0xff]  }
 0x189   : > { %1904 = vmatprep.mubr.bf16.mxu0 %v4256_v20  ;;  %2307 = vst [vmem:[#allocation2 + $0x1b0] sm:$0xff] %v2243_v25  ;;  %v1996_v29 = vadd.f32 %v1995_v28, %v1706_v26  ;;  %2193 = vmatprep.mubr.bf16.mxu1 %v4258_v23  ;;  %v585_v25 = vld [vmem:[#allocation2 + $0x110] sm:$0xff] }
 0x18a   : > { %v1708_v30 = vpop.f32.mrf.mxu0  ;;  %v1997_v31 = vpop.f32.mrf.mxu1  ;;  %v4282_v28 = vld [vmem:[%s4655_s15 + $0x3c4] ss:$16 sps:$4 sm:$0xff]  }
 0x18b   : > { %v2244_v32 = vadd.f32 %v1996_v29, %v578_v27  ;;  %v4277_v27 = vld [vmem:[%s4655_s15 + $0x3a8] ss:$16 sps:$4 sm:$0xff]   ;;  %v4285_v31 = vld [vmem:[%s4655_s15 + $0x3cc] ss:$16 sps:$4 sm:$0xff]  }
 0x18c   : > { %v1709_v33 = vpop.f32.mrf.mxu0  ;;  %v1998_v36 = vpop.f32.mrf.mxu1 }
 0x18d   : > { %2308 = vst [vmem:[#allocation2 + $0xd8] sm:$0xff] %v2244_v32  ;;  %v1999_v39 = vadd.f32 %v1998_v36, %v1709_v33 }
 0x18e   : > { %v1711_v40 = vpop.f32.mrf.mxu0  ;;  %v2000_v42 = vpop.f32.mrf.mxu1 }
 0x18f   : > { %v2245_v43 = vadd.f32 %v1999_v39, %v579_v35  ;;  %v586_v35 = vld [vmem:[#allocation2 + $0x118] sm:$0xff]  ;;  %v4280_v42 = vld [vmem:[%s4655_s15 + $0x3c0] ss:$16 sps:$4 sm:$0xff]  }
 0x190   : > { %v1714_v44 = vpop.f32.mrf.mxu0  ;;  %1905 = vmatmul.mubr.bf16.gmra.mxu0 %v4260_v34  ;;  %v2003_v46 = vpop.f32.mrf.mxu1  ;;  %2194 = vmatmul.mubr.bf16.gmra.mxu1 %v4261_v37 }
 0x191   : > { %1912 = vmatprep.mubr.bf16.mxu0 %v4262_v38  ;;  %2309 = vst [vmem:[#allocation2 + $0x18] sm:$0xff] %v2245_v43  ;;  %v2004_v47 = vadd.f32 %v2003_v46, %v1714_v44  ;;  %2201 = vmatprep.mubr.bf16.mxu1 %v4264_v41  ;;  %v587_v43 = vld [vmem:[#allocation2 + $0x98] sm:$0xff]  ;;  %v4288_v46 = vld [vmem:[%s4655_s15 + $0x3e4] ss:$16 sps:$4 sm:$0xff]  }
 0x192   : > { %v1716_v48 = vpop.f32.mrf.mxu0  ;;  %v2005_v49 = vpop.f32.mrf.mxu1 }
 0x193   : > { %v2246_v50 = vadd.f32 %v2004_v47, %v580_v45  ;;  %v4283_v45 = vld [vmem:[%s4655_s15 + $0x3c8] ss:$16 sps:$4 sm:$0xff]   ;;  %v4291_v49 = vld [vmem:[%s4655_s15 + $0x3ec] ss:$16 sps:$4 sm:$0xff]  }
 0x194   : > { %v1717_v51 = vpop.f32.mrf.mxu0  ;;  %v2006_v54 = vpop.f32.mrf.mxu1 }
 0x195   : > { %2310 = vst [vmem:[#allocation2 + $0x50] sm:$0xff] %v2246_v50  ;;  %v2007_v57 = vadd.f32 %v2006_v54, %v1717_v51 }
 0x196   : > { %v1719_v58 = vpop.f32.mrf.mxu0  ;;  %v2008_v60 = vpop.f32.mrf.mxu1 }
 0x197   : > { %v2247_v61 = vadd.f32 %v2007_v57, %v581_v53  ;;  %v588_v53 = vld [vmem:[#allocation2 + $0x120] sm:$0xff] }
 0x198   : > { %v1722_v62 = vpop.f32.mrf.mxu0  ;;  %1913 = vmatmul.mubr.bf16.gmra.mxu0 %v4266_v52  ;;  %v2011_v0 = vpop.f32.mrf.mxu1  ;;  %2202 = vmatmul.mubr.bf16.gmra.mxu1 %v4267_v55  ;;  %v4286_v60 = vld [vmem:[%s4655_s15 + $0x3e0] ss:$16 sps:$4 sm:$0xff]  }
 0x199   : > { %1920 = vmatprep.mubr.bf16.mxu0 %v4270_v56  ;;  %2311 = vst [vmem:[#allocation2 + $0x168] sm:$0xff] %v2247_v61  ;;  %v2012_v1 = vadd.f32 %v2011_v0, %v1722_v62  ;;  %2209 = vmatprep.mubr.bf16.mxu1 %v4273_v59  ;;  %v589_v61 = vld [vmem:[#allocation2 + $0x150] sm:$0xff] }
 0x19a   : > { %v1724_v2 = vpop.f32.mrf.mxu0  ;;  %v2013_v3 = vpop.f32.mrf.mxu1 }
 0x19b   : > { %v2248_v4 = vadd.f32 %v2012_v1, %v582_v63  ;;  %v4289_v63 = vld [vmem:[%s4655_s15 + $0x3e8] ss:$16 sps:$4 sm:$0xff]  }
 0x19c   : > { %v1725_v5 = vpop.f32.mrf.mxu0  ;;  %v2014_v8 = vpop.f32.mrf.mxu1 }
 0x19d   : > { %2312 = vst [vmem:[#allocation2 + $0x130] sm:$0xff] %v2248_v4  ;;  %v2015_v11 = vadd.f32 %v2014_v8, %v1725_v5  ;;  %v590_v5 = vld [vmem:[#allocation2 + $0x108] sm:$0xff] }
 0x19e   : > { %v1727_v12 = vpop.f32.mrf.mxu0  ;;  %v2016_v14 = vpop.f32.mrf.mxu1 }
 0x19f   : > { %v2249_v15 = vadd.f32 %v2015_v11, %v583_v7  ;;  %v591_v12 = vld [vmem:[#allocation2 + $0x60] sm:$0xff] }
 0x1a0   : > { %v1730_v16 = vpop.f32.mrf.mxu0  ;;  %1921 = vmatmul.mubr.bf16.gmra.mxu0 %v4268_v6  ;;  %v2019_v18 = vpop.f32.mrf.mxu1  ;;  %2210 = vmatmul.mubr.bf16.gmra.mxu1 %v4271_v9 }
 0x1a1   : > { %1928 = vmatprep.mubr.bf16.mxu0 %v4276_v10  ;;  %2313 = vst [vmem:[#allocation2 + $0x48] sm:$0xff] %v2249_v15  ;;  %v2020_v19 = vadd.f32 %v2019_v18, %v1730_v16  ;;  %2217 = vmatprep.mubr.bf16.mxu1 %v4279_v13 }
 0x1a2   : > { %v1732_v20 = vpop.f32.mrf.mxu0  ;;  %v2021_v21 = vpop.f32.mrf.mxu1 }
 0x1a3   : > { %v2250_v22 = vadd.f32 %v2020_v19, %v584_v17  ;;  %v592_v19 = vld [vmem:[#allocation2 + $0xe0] sm:$0xff] }
 0x1a4   : > { %v1733_v23 = vpop.f32.mrf.mxu0  ;;  %v2022_v26 = vpop.f32.mrf.mxu1 }
 0x1a5   : > { %2314 = vst [vmem:[#allocation2 + $0x180] sm:$0xff] %v2250_v22  ;;  %v2023_v29 = vadd.f32 %v2022_v26, %v1733_v23  ;;  %v593_v26 = vld [vmem:[#allocation2 + $0x188] sm:$0xff] }
 0x1a6   : > { %v1735_v30 = vpop.f32.mrf.mxu0  ;;  %v2024_v32 = vpop.f32.mrf.mxu1 }
 0x1a7   : > { %v2251_v33 = vadd.f32 %v2023_v29, %v585_v25 }
 0x1a8   : > { %v1738_v34 = vpop.f32.mrf.mxu0  ;;  %1929 = vmatmul.mubr.bf16.gmra.mxu0 %v4274_v24  ;;  %v2027_v36 = vpop.f32.mrf.mxu1  ;;  %2218 = vmatmul.mubr.bf16.gmra.mxu1 %v4277_v27 }
 0x1a9   : > { %1936 = vmatprep.mubr.bf16.mxu0 %v4282_v28  ;;  %2315 = vst [vmem:[#allocation2 + $0x110] sm:$0xff] %v2251_v33  ;;  %v2028_v37 = vadd.f32 %v2027_v36, %v1738_v34  ;;  %2225 = vmatprep.mubr.bf16.mxu1 %v4285_v31  ;;  %v594_v33 = vld [vmem:[#allocation2 + $0x138] sm:$0xff] }
 0x1aa   : > { %v1740_v38 = vpop.f32.mrf.mxu0  ;;  %v2029_v39 = vpop.f32.mrf.mxu1 }
 0x1ab   : > { %v2252_v40 = vadd.f32 %v2028_v37, %v586_v35 }
 0x1ac   : > { %v1741_v41 = vpop.f32.mrf.mxu0  ;;  %v2030_v44 = vpop.f32.mrf.mxu1 }
 0x1ad   : > { %2316 = vst [vmem:[#allocation2 + $0x118] sm:$0xff] %v2252_v40  ;;  %v2031_v47 = vadd.f32 %v2030_v44, %v1741_v41  ;;  %v595_v40 = vld [vmem:[#allocation2 + $0x140] sm:$0xff] }
 0x1ae   : > { %v1743_v48 = vpop.f32.mrf.mxu0  ;;  %v2032_v50 = vpop.f32.mrf.mxu1 }
 0x1af   : > { %v2253_v51 = vadd.f32 %v2031_v47, %v587_v43  ;;  %v596_v47 = vld [vmem:[#allocation2 + $0x80] sm:$0xff] }
 0x1b0   : > { %v1746_v52 = vpop.f32.mrf.mxu0  ;;  %1937 = vmatmul.mubr.bf16.gmra.mxu0 %v4280_v42  ;;  %v2035_v54 = vpop.f32.mrf.mxu1  ;;  %2226 = vmatmul.mubr.bf16.gmra.mxu1 %v4283_v45 }
 0x1b1   : > { %1944 = vmatprep.mubr.bf16.mxu0 %v4288_v46  ;;  %2317 = vst [vmem:[#allocation2 + $0x98] sm:$0xff] %v2253_v51  ;;  %v2036_v55 = vadd.f32 %v2035_v54, %v1746_v52  ;;  %2233 = vmatprep.mubr.bf16.mxu1 %v4291_v49  ;;  %v597_v54 = vld [vmem:[#allocation2 + $0x1a8] sm:$0xff] }
 0x1b2   : > { %v1748_v56 = vpop.f32.mrf.mxu0  ;;  %v2037_v57 = vpop.f32.mrf.mxu1 }
 0x1b3   : > { %v2254_v58 = vadd.f32 %v2036_v55, %v588_v53 }
 0x1b4   : > { %v1749_v59 = vpop.f32.mrf.mxu0  ;;  %v2038_v62 = vpop.f32.mrf.mxu1 }
 0x1b5   : > { %2318 = vst [vmem:[#allocation2 + $0x120] sm:$0xff] %v2254_v58  ;;  %v2039_v0 = vadd.f32 %v2038_v62, %v1749_v59 }
 0x1b6   : > { %v1751_v1 = vpop.f32.mrf.mxu0  ;;  %v2040_v2 = vpop.f32.mrf.mxu1 }
 0x1b7   : > { %v2255_v3 = vadd.f32 %v2039_v0, %v589_v61  ;;  %v598_v61 = vld [vmem:[#allocation2 + $0x1b8] sm:$0xff] }
 0x1b8   : > { %v1754_v4 = vpop.f32.mrf.mxu0  ;;  %1945 = vmatmul.mubr.bf16.gmra.mxu0 %v4286_v60  ;;  %v2043_v6 = vpop.f32.mrf.mxu1  ;;  %2234 = vmatmul.mubr.bf16.gmra.mxu1 %v4289_v63 }
 0x1b9   : > { %2319 = vst [vmem:[#allocation2 + $0x150] sm:$0xff] %v2255_v3  ;;  %v2044_v7 = vadd.f32 %v2043_v6, %v1754_v4  ;;  %v599_v4 = vld [vmem:[#allocation2 + $0x28] sm:$0xff] }
 0x1ba   : > { %v1756_v8 = vpop.f32.mrf.mxu0  ;;  %v2045_v9 = vpop.f32.mrf.mxu1 }
 0x1bb   : > { %v2256_v10 = vadd.f32 %v2044_v7, %v590_v5 }
 0x1bc   : > { %v1757_v11 = vpop.f32.mrf.mxu0  ;;  %v2046_v13 = vpop.f32.mrf.mxu1 }
 0x1bd   : > { %2320 = vst [vmem:[#allocation2 + $0x108] sm:$0xff] %v2256_v10  ;;  %v2047_v14 = vadd.f32 %v2046_v13, %v1757_v11  ;;  %v600_v11 = vld [vmem:[#allocation2 + $0x1e8] sm:$0xff] }
 0x1be   : > { %v1759_v15 = vpop.f32.mrf.mxu0  ;;  %v2048_v16 = vpop.f32.mrf.mxu1 }
 0x1bf   : > { %v2257_v17 = vadd.f32 %v2047_v14, %v591_v12 }
 0x1c0   : > { %v1762_v18 = vpop.f32.mrf.mxu0  ;;  %v2051_v20 = vpop.f32.mrf.mxu1 }
 0x1c1   : > { %2321 = vst [vmem:[#allocation2 + $0x60] sm:$0xff] %v2257_v17  ;;  %v2052_v21 = vadd.f32 %v2051_v20, %v1762_v18  ;;  %v601_v18 = vld [vmem:[#allocation2 + $0xf8] sm:$0xff] }
 0x1c2   : > { %v1764_v22 = vpop.f32.mrf.mxu0  ;;  %v2053_v23 = vpop.f32.mrf.mxu1 }
 0x1c3   : > { %v2258_v24 = vadd.f32 %v2052_v21, %v592_v19 }
 0x1c4   : > { %v1765_v25 = vpop.f32.mrf.mxu0  ;;  %v2054_v27 = vpop.f32.mrf.mxu1 }
 0x1c5   : > { %2322 = vst [vmem:[#allocation2 + $0xe0] sm:$0xff] %v2258_v24  ;;  %v2055_v28 = vadd.f32 %v2054_v27, %v1765_v25  ;;  %v602_v25 = vld [vmem:[#allocation2 + $0x160] sm:$0xff] }
 0x1c6   : > { %v1767_v29 = vpop.f32.mrf.mxu0  ;;  %v2056_v30 = vpop.f32.mrf.mxu1 }
 0x1c7   : > { %v2259_v31 = vadd.f32 %v2055_v28, %v593_v26 }
 0x1c8   : > { %v1770_v32 = vpop.f32.mrf.mxu0  ;;  %v2059_v34 = vpop.f32.mrf.mxu1 }
 0x1c9   : > { %2323 = vst [vmem:[#allocation2 + $0x188] sm:$0xff] %v2259_v31  ;;  %v2060_v35 = vadd.f32 %v2059_v34, %v1770_v32  ;;  %v603_v32 = vld [vmem:[#allocation2 + $0x30] sm:$0xff] }
 0x1ca   : > { %v1772_v36 = vpop.f32.mrf.mxu0  ;;  %v2061_v37 = vpop.f32.mrf.mxu1 }
 0x1cb   : > { %v2260_v38 = vadd.f32 %v2060_v35, %v594_v33 }
 0x1cc   : > { %v1773_v39 = vpop.f32.mrf.mxu0  ;;  %v2062_v41 = vpop.f32.mrf.mxu1 }
 0x1cd   : > { %2324 = vst [vmem:[#allocation2 + $0x138] sm:$0xff] %v2260_v38  ;;  %v2063_v42 = vadd.f32 %v2062_v41, %v1773_v39  ;;  %v604_v39 = vld [vmem:[#allocation2 + $0x1e0] sm:$0xff] }
 0x1ce   : > { %v1775_v43 = vpop.f32.mrf.mxu0  ;;  %v2064_v44 = vpop.f32.mrf.mxu1 }
 0x1cf   : > { %v2261_v45 = vadd.f32 %v2063_v42, %v595_v40 }
 0x1d0   : > { %v1778_v46 = vpop.f32.mrf.mxu0  ;;  %v2067_v48 = vpop.f32.mrf.mxu1 }
 0x1d1   : > { %2325 = vst [vmem:[#allocation2 + $0x140] sm:$0xff] %v2261_v45  ;;  %v2068_v49 = vadd.f32 %v2067_v48, %v1778_v46  ;;  %v605_v46 = vld [vmem:[#allocation2] sm:$0xff] }
 0x1d2   : > { %v1780_v50 = vpop.f32.mrf.mxu0  ;;  %v2069_v51 = vpop.f32.mrf.mxu1 }
 0x1d3   : > { %v2262_v52 = vadd.f32 %v2068_v49, %v596_v47 }
 0x1d4   : > { %v1781_v53 = vpop.f32.mrf.mxu0  ;;  %v2070_v55 = vpop.f32.mrf.mxu1 }
 0x1d5   : > { %2326 = vst [vmem:[#allocation2 + $0x80] sm:$0xff] %v2262_v52  ;;  %v2071_v56 = vadd.f32 %v2070_v55, %v1781_v53  ;;  %v606_v53 = vld [vmem:[#allocation2 + $0xf0] sm:$0xff] }
 0x1d6   : > { %v1783_v57 = vpop.f32.mrf.mxu0  ;;  %v2072_v58 = vpop.f32.mrf.mxu1 }
 0x1d7   : > { %v2263_v59 = vadd.f32 %v2071_v56, %v597_v54 }
 0x1d8   : > { %v1786_v60 = vpop.f32.mrf.mxu0  ;;  %v2075_v62 = vpop.f32.mrf.mxu1 }
 0x1d9   : > { %2327 = vst [vmem:[#allocation2 + $0x1a8] sm:$0xff] %v2263_v59  ;;  %v2076_v63 = vadd.f32 %v2075_v62, %v1786_v60  ;;  %v607_v60 = vld [vmem:[#allocation2 + $0x8] sm:$0xff] }
 0x1da   : > { %v1788_v0 = vpop.f32.mrf.mxu0  ;;  %v2077_v1 = vpop.f32.mrf.mxu1 }
 0x1db   : > { %v2264_v2 = vadd.f32 %v2076_v63, %v598_v61 }
 0x1dc   : > { %v1789_v3 = vpop.f32.mrf.mxu0  ;;  %v2078_v5 = vpop.f32.mrf.mxu1 }
 0x1dd   : > { %2328 = vst [vmem:[#allocation2 + $0x1b8] sm:$0xff] %v2264_v2  ;;  %v2079_v6 = vadd.f32 %v2078_v5, %v1789_v3  ;;  %v608_v3 = vld [vmem:[#allocation2 + $0x148] sm:$0xff] }
 0x1de   : > { %v1791_v7 = vpop.f32.mrf.mxu0  ;;  %v2080_v8 = vpop.f32.mrf.mxu1 }
 0x1df   : > { %v2265_v9 = vadd.f32 %v2079_v6, %v599_v4 }
 0x1e0   : > { %v1794_v10 = vpop.f32.mrf.mxu0  ;;  %v2083_v12 = vpop.f32.mrf.mxu1 }
 0x1e1   : > { %2329 = vst [vmem:[#allocation2 + $0x28] sm:$0xff] %v2265_v9  ;;  %v2084_v13 = vadd.f32 %v2083_v12, %v1794_v10  ;;  %v609_v10 = vld [vmem:[#allocation2 + $0x1d0] sm:$0xff] }
 0x1e2   : > { %v1796_v14 = vpop.f32.mrf.mxu0  ;;  %v2085_v15 = vpop.f32.mrf.mxu1 }
 0x1e3   : > { %v2266_v16 = vadd.f32 %v2084_v13, %v600_v11 }
 0x1e4   : > { %v1797_v17 = vpop.f32.mrf.mxu0  ;;  %v2086_v19 = vpop.f32.mrf.mxu1 }
 0x1e5   : > { %2330 = vst [vmem:[#allocation2 + $0x1e8] sm:$0xff] %v2266_v16  ;;  %v2087_v20 = vadd.f32 %v2086_v19, %v1797_v17  ;;  %v610_v17 = vld [vmem:[#allocation2 + $0x100] sm:$0xff] }
 0x1e6   : > { %v1799_v21 = vpop.f32.mrf.mxu0  ;;  %v2088_v22 = vpop.f32.mrf.mxu1 }
 0x1e7   : > { %v2267_v23 = vadd.f32 %v2087_v20, %v601_v18 }
 0x1e8   : > { %v1802_v24 = vpop.f32.mrf.mxu0  ;;  %v2091_v26 = vpop.f32.mrf.mxu1 }
 0x1e9   : > { %2331 = vst [vmem:[#allocation2 + $0xf8] sm:$0xff] %v2267_v23  ;;  %v2092_v27 = vadd.f32 %v2091_v26, %v1802_v24  ;;  %v611_v24 = vld [vmem:[#allocation2 + $0xc8] sm:$0xff] }
 0x1ea   : > { %v1804_v28 = vpop.f32.mrf.mxu0  ;;  %v2093_v29 = vpop.f32.mrf.mxu1 }
 0x1eb   : > { %v2268_v30 = vadd.f32 %v2092_v27, %v602_v25 }
 0x1ec   : > { %v1805_v31 = vpop.f32.mrf.mxu0  ;;  %v2094_v33 = vpop.f32.mrf.mxu1 }
 0x1ed   : > { %2332 = vst [vmem:[#allocation2 + $0x160] sm:$0xff] %v2268_v30  ;;  %v2095_v34 = vadd.f32 %v2094_v33, %v1805_v31  ;;  %v612_v31 = vld [vmem:[#allocation2 + $0x40] sm:$0xff] }
 0x1ee   : > { %v1807_v35 = vpop.f32.mrf.mxu0  ;;  %v2096_v36 = vpop.f32.mrf.mxu1 }
 0x1ef   : > { %v2269_v37 = vadd.f32 %v2095_v34, %v603_v32 }
 0x1f0   : > { %v1810_v38 = vpop.f32.mrf.mxu0  ;;  %v2099_v40 = vpop.f32.mrf.mxu1 }
 0x1f1   : > { %2333 = vst [vmem:[#allocation2 + $0x30] sm:$0xff] %v2269_v37  ;;  %v2100_v41 = vadd.f32 %v2099_v40, %v1810_v38  ;;  %v613_v38 = vld [vmem:[#allocation2 + $0x1f8] sm:$0xff] }
 0x1f2   : > { %v1812_v42 = vpop.f32.mrf.mxu0  ;;  %v2101_v43 = vpop.f32.mrf.mxu1 }
 0x1f3   : > { %v2270_v44 = vadd.f32 %v2100_v41, %v604_v39 }
 0x1f4   : > { %v1813_v45 = vpop.f32.mrf.mxu0  ;;  %v2102_v47 = vpop.f32.mrf.mxu1 }
 0x1f5   : > { %2334 = vst [vmem:[#allocation2 + $0x1e0] sm:$0xff] %v2270_v44  ;;  %v2103_v48 = vadd.f32 %v2102_v47, %v1813_v45  ;;  %v614_v45 = vld [vmem:[#allocation2 + $0x20] sm:$0xff] }
 0x1f6   : > { %v1815_v49 = vpop.f32.mrf.mxu0  ;;  %v2104_v50 = vpop.f32.mrf.mxu1 }
 0x1f7   : > { %v2271_v51 = vadd.f32 %v2103_v48, %v605_v46 }
 0x1f8   : > { %v1818_v52 = vpop.f32.mrf.mxu0  ;;  %v2107_v54 = vpop.f32.mrf.mxu1 }
 0x1f9   : > { %2335 = vst [vmem:[#allocation2] sm:$0xff] %v2271_v51  ;;  %v2108_v55 = vadd.f32 %v2107_v54, %v1818_v52  ;;  %v615_v52 = vld [vmem:[#allocation2 + $0x128] sm:$0xff] }
 0x1fa   : > { %v1820_v56 = vpop.f32.mrf.mxu0  ;;  %v2109_v57 = vpop.f32.mrf.mxu1 }
 0x1fb   : > { %v2272_v58 = vadd.f32 %v2108_v55, %v606_v53 }
 0x1fc   : > { %v1821_v59 = vpop.f32.mrf.mxu0  ;;  %v2110_v61 = vpop.f32.mrf.mxu1 }
 0x1fd   : > { %2336 = vst [vmem:[#allocation2 + $0xf0] sm:$0xff] %v2272_v58  ;;  %v2111_v62 = vadd.f32 %v2110_v61, %v1821_v59  ;;  %v616_v59 = vld [vmem:[#allocation2 + $0x1a0] sm:$0xff] }
 0x1fe   : > { %v1823_v63 = vpop.f32.mrf.mxu0  ;;  %v2112_v0 = vpop.f32.mrf.mxu1 }
 0x1ff   : > { %v2273_v1 = vadd.f32 %v2111_v62, %v607_v60 }
 0x200   : > { %v1826_v2 = vpop.f32.mrf.mxu0  ;;  %v2115_v4 = vpop.f32.mrf.mxu1 }
 0x201   : > { %2337 = vst [vmem:[#allocation2 + $0x8] sm:$0xff] %v2273_v1  ;;  %v2116_v5 = vadd.f32 %v2115_v4, %v1826_v2  ;;  %v617_v2 = vld [vmem:[#allocation2 + $0x1f0] sm:$0xff] }
 0x202   : > { %v1828_v6 = vpop.f32.mrf.mxu0  ;;  %v2117_v7 = vpop.f32.mrf.mxu1 }
 0x203   : > { %v2274_v8 = vadd.f32 %v2116_v5, %v608_v3 }
 0x204   : > { %v1829_v9 = vpop.f32.mrf.mxu0  ;;  %v2118_v11 = vpop.f32.mrf.mxu1 }
 0x205   : > { %2338 = vst [vmem:[#allocation2 + $0x148] sm:$0xff] %v2274_v8  ;;  %v2119_v12 = vadd.f32 %v2118_v11, %v1829_v9  ;;  %v618_v9 = vld [vmem:[#allocation2 + $0xe8] sm:$0xff] }
 0x206   : > { %v1831_v13 = vpop.f32.mrf.mxu0  ;;  %v2120_v14 = vpop.f32.mrf.mxu1 }
 0x207   : > { %v2275_v15 = vadd.f32 %v2119_v12, %v609_v10 }
 0x208   : > { %v1834_v16 = vpop.f32.mrf.mxu0  ;;  %v2123_v18 = vpop.f32.mrf.mxu1 }
 0x209   : > { %2339 = vst [vmem:[#allocation2 + $0x1d0] sm:$0xff] %v2275_v15  ;;  %v2124_v19 = vadd.f32 %v2123_v18, %v1834_v16  ;;  %v619_v16 = vld [vmem:[#allocation2 + $0x78] sm:$0xff] }
 0x20a   : > { %v1836_v20 = vpop.f32.mrf.mxu0  ;;  %v2125_v21 = vpop.f32.mrf.mxu1 }
 0x20b   : > { %v2276_v22 = vadd.f32 %v2124_v19, %v610_v17 }
 0x20c   : > { %v1837_v23 = vpop.f32.mrf.mxu0  ;;  %v2126_v25 = vpop.f32.mrf.mxu1 }
 0x20d   : > { %2340 = vst [vmem:[#allocation2 + $0x100] sm:$0xff] %v2276_v22  ;;  %v2127_v26 = vadd.f32 %v2126_v25, %v1837_v23  ;;  %v620_v23 = vld [vmem:[#allocation2 + $0x70] sm:$0xff] }
 0x20e   : > { %v1839_v27 = vpop.f32.mrf.mxu0  ;;  %v2128_v28 = vpop.f32.mrf.mxu1 }
 0x20f   : > { %v2277_v29 = vadd.f32 %v2127_v26, %v611_v24 }
 0x210   : > { %v1842_v30 = vpop.f32.mrf.mxu0  ;;  %v2131_v32 = vpop.f32.mrf.mxu1 }
 0x211   : > { %2341 = vst [vmem:[#allocation2 + $0xc8] sm:$0xff] %v2277_v29  ;;  %v2132_v33 = vadd.f32 %v2131_v32, %v1842_v30  ;;  %v621_v30 = vld [vmem:[#allocation2 + $0x90] sm:$0xff] }
 0x212   : > { %v1844_v34 = vpop.f32.mrf.mxu0  ;;  %v2133_v35 = vpop.f32.mrf.mxu1 }
 0x213   : > { %v2278_v36 = vadd.f32 %v2132_v33, %v612_v31 }
 0x214   : > { %v1845_v37 = vpop.f32.mrf.mxu0  ;;  %v2134_v39 = vpop.f32.mrf.mxu1 }
 0x215   : > { %2342 = vst [vmem:[#allocation2 + $0x40] sm:$0xff] %v2278_v36  ;;  %v2135_v40 = vadd.f32 %v2134_v39, %v1845_v37  ;;  %v622_v37 = vld [vmem:[#allocation2 + $0x1d8] sm:$0xff] }
 0x216   : > { %v1847_v41 = vpop.f32.mrf.mxu0  ;;  %v2136_v42 = vpop.f32.mrf.mxu1 }
 0x217   : > { %v2279_v43 = vadd.f32 %v2135_v40, %v613_v38 }
 0x218   : > { %v1850_v44 = vpop.f32.mrf.mxu0  ;;  %v2139_v46 = vpop.f32.mrf.mxu1 }
 0x219   : > { %2343 = vst [vmem:[#allocation2 + $0x1f8] sm:$0xff] %v2279_v43  ;;  %v2140_v47 = vadd.f32 %v2139_v46, %v1850_v44  ;;  %v623_v44 = vld [vmem:[#allocation2 + $0xd0] sm:$0xff] }
 0x21a   : > { %v1852_v48 = vpop.f32.mrf.mxu0  ;;  %v2141_v49 = vpop.f32.mrf.mxu1 }
 0x21b   : > { %v2280_v50 = vadd.f32 %v2140_v47, %v614_v45 }
 0x21c   : > { %v1853_v51 = vpop.f32.mrf.mxu0  ;;  %v2142_v53 = vpop.f32.mrf.mxu1 }
 0x21d   : > { %2344 = vst [vmem:[#allocation2 + $0x20] sm:$0xff] %v2280_v50  ;;  %v2143_v54 = vadd.f32 %v2142_v53, %v1853_v51  ;;  %v624_v51 = vld [vmem:[#allocation2 + $0xb8] sm:$0xff] }
 0x21e   : > { %v1855_v55 = vpop.f32.mrf.mxu0  ;;  %v2144_v56 = vpop.f32.mrf.mxu1 }
 0x21f   : > { %v2281_v57 = vadd.f32 %v2143_v54, %v615_v52 }
 0x220   : > { %v1858_v58 = vpop.f32.mrf.mxu0  ;;  %v2147_v60 = vpop.f32.mrf.mxu1 }
 0x221   : > { %2345 = vst [vmem:[#allocation2 + $0x128] sm:$0xff] %v2281_v57  ;;  %v2148_v61 = vadd.f32 %v2147_v60, %v1858_v58  ;;  %v625_v58 = vld [vmem:[#allocation2 + $0x88] sm:$0xff] }
 0x222   : > { %v1860_v62 = vpop.f32.mrf.mxu0  ;;  %v2149_v63 = vpop.f32.mrf.mxu1 }
 0x223   : > { %v2282_v0 = vadd.f32 %v2148_v61, %v616_v59 }
 0x224   : > { %v1861_v1 = vpop.f32.mrf.mxu0  ;;  %v2150_v3 = vpop.f32.mrf.mxu1 }
 0x225   : > { %2346 = vst [vmem:[#allocation2 + $0x1a0] sm:$0xff] %v2282_v0  ;;  %v2151_v4 = vadd.f32 %v2150_v3, %v1861_v1  ;;  %v626_v1 = vld [vmem:[#allocation2 + $0xa8] sm:$0xff] }
 0x226   : > { %v1863_v5 = vpop.f32.mrf.mxu0  ;;  %v2152_v6 = vpop.f32.mrf.mxu1 }
 0x227   : > { %v2283_v7 = vadd.f32 %v2151_v4, %v617_v2 }
 0x228   : > { %v1866_v8 = vpop.f32.mrf.mxu0  ;;  %v2155_v10 = vpop.f32.mrf.mxu1 }
 0x229   : > { %2347 = vst [vmem:[#allocation2 + $0x1f0] sm:$0xff] %v2283_v7  ;;  %v2156_v11 = vadd.f32 %v2155_v10, %v1866_v8  ;;  %v627_v8 = vld [vmem:[#allocation2 + $0x1c8] sm:$0xff] }
 0x22a   : > { %v1868_v12 = vpop.f32.mrf.mxu0  ;;  %v2157_v13 = vpop.f32.mrf.mxu1 }
 0x22b   : > { %v2284_v14 = vadd.f32 %v2156_v11, %v618_v9 }
 0x22c   : > { %v1869_v15 = vpop.f32.mrf.mxu0  ;;  %v2158_v17 = vpop.f32.mrf.mxu1 }
 0x22d   : > { %2348 = vst [vmem:[#allocation2 + $0xe8] sm:$0xff] %v2284_v14  ;;  %v2159_v18 = vadd.f32 %v2158_v17, %v1869_v15  ;;  %v628_v15 = vld [vmem:[#allocation2 + $0x170] sm:$0xff] }
 0x22e   : > { %v1871_v19 = vpop.f32.mrf.mxu0  ;;  %v2160_v20 = vpop.f32.mrf.mxu1 }
 0x22f   : > { %v2285_v21 = vadd.f32 %v2159_v18, %v619_v16 }
 0x230   : > { %v1874_v22 = vpop.f32.mrf.mxu0  ;;  %v2163_v24 = vpop.f32.mrf.mxu1 }
 0x231   : > { %2349 = vst [vmem:[#allocation2 + $0x78] sm:$0xff] %v2285_v21  ;;  %v2164_v25 = vadd.f32 %v2163_v24, %v1874_v22  ;;  %v629_v22 = vld [vmem:[#allocation2 + $0x178] sm:$0xff] }
 0x232   : > { %v1876_v26 = vpop.f32.mrf.mxu0  ;;  %v2165_v27 = vpop.f32.mrf.mxu1 }
 0x233   : > { %v2286_v28 = vadd.f32 %v2164_v25, %v620_v23 }
 0x234   : > { %v1877_v29 = vpop.f32.mrf.mxu0  ;;  %v2166_v31 = vpop.f32.mrf.mxu1 }
 0x235   : > { %2350 = vst [vmem:[#allocation2 + $0x70] sm:$0xff] %v2286_v28  ;;  %v2167_v32 = vadd.f32 %v2166_v31, %v1877_v29  ;;  %v630_v29 = vld [vmem:[#allocation2 + $0x68] sm:$0xff] }
 0x236   : > { %v1879_v33 = vpop.f32.mrf.mxu0  ;;  %v2168_v34 = vpop.f32.mrf.mxu1 }
 0x237   : > { %v2287_v35 = vadd.f32 %v2167_v32, %v621_v30 }
 0x238   : > { %v1882_v36 = vpop.f32.mrf.mxu0  ;;  %v2171_v38 = vpop.f32.mrf.mxu1 }
 0x239   : > { %2351 = vst [vmem:[#allocation2 + $0x90] sm:$0xff] %v2287_v35  ;;  %v2172_v39 = vadd.f32 %v2171_v38, %v1882_v36  ;;  %v631_v36 = vld [vmem:[#allocation2 + $0x190] sm:$0xff] }
 0x23a   : > { %v1884_v40 = vpop.f32.mrf.mxu0  ;;  %v2173_v41 = vpop.f32.mrf.mxu1 }
 0x23b   : > { %v2288_v42 = vadd.f32 %v2172_v39, %v622_v37 }
 0x23c   : > { %v1885_v43 = vpop.f32.mrf.mxu0  ;;  %v2174_v45 = vpop.f32.mrf.mxu1 }
 0x23d   : > { %2352 = vst [vmem:[#allocation2 + $0x1d8] sm:$0xff] %v2288_v42  ;;  %v2175_v46 = vadd.f32 %v2174_v45, %v1885_v43  ;;  %v632_v43 = vld [vmem:[#allocation2 + $0x198] sm:$0xff] }
 0x23e   : > { %v1887_v47 = vpop.f32.mrf.mxu0  ;;  %v2176_v48 = vpop.f32.mrf.mxu1 }
 0x23f   : > { %v2289_v49 = vadd.f32 %v2175_v46, %v623_v44 }
 0x240   : > { %v1890_v50 = vpop.f32.mrf.mxu0  ;;  %v2179_v52 = vpop.f32.mrf.mxu1 }
 0x241   : > { %2353 = vst [vmem:[#allocation2 + $0xd0] sm:$0xff] %v2289_v49  ;;  %v2180_v53 = vadd.f32 %v2179_v52, %v1890_v50  ;;  %v633_v50 = vld [vmem:[#allocation2 + $0x38] sm:$0xff] }
 0x242   : > { %v1892_v54 = vpop.f32.mrf.mxu0  ;;  %v2181_v55 = vpop.f32.mrf.mxu1 }
 0x243   : > { %v2290_v56 = vadd.f32 %v2180_v53, %v624_v51 }
 0x244   : > { %v1893_v57 = vpop.f32.mrf.mxu0  ;;  %v2182_v59 = vpop.f32.mrf.mxu1 }
 0x245   : > { %2354 = vst [vmem:[#allocation2 + $0xb8] sm:$0xff] %v2290_v56  ;;  %v2183_v60 = vadd.f32 %v2182_v59, %v1893_v57  ;;  %v634_v57 = vld [vmem:[#allocation2 + $0xc0] sm:$0xff] }
 0x246   : > { %v1895_v61 = vpop.f32.mrf.mxu0  ;;  %v2184_v62 = vpop.f32.mrf.mxu1 }
 0x247   : > { %v2291_v63 = vadd.f32 %v2183_v60, %v625_v58 }
 0x248   : > { %v1898_v0 = vpop.f32.mrf.mxu0  ;;  %v2187_v2 = vpop.f32.mrf.mxu1 }
 0x249   : > { %2355 = vst [vmem:[#allocation2 + $0x88] sm:$0xff] %v2291_v63  ;;  %v2188_v3 = vadd.f32 %v2187_v2, %v1898_v0  ;;  %v635_v0 = vld [vmem:[#allocation2 + $0x1c0] sm:$0xff] }
 0x24a   : > { %v1900_v4 = vpop.f32.mrf.mxu0  ;;  %v2189_v5 = vpop.f32.mrf.mxu1 }
 0x24b   : > { %v2292_v6 = vadd.f32 %v2188_v3, %v626_v1 }
 0x24c   : > { %v1901_v7 = vpop.f32.mrf.mxu0  ;;  %v2190_v9 = vpop.f32.mrf.mxu1 }
 0x24d   : > { %2356 = vst [vmem:[#allocation2 + $0xa8] sm:$0xff] %v2292_v6  ;;  %v2191_v10 = vadd.f32 %v2190_v9, %v1901_v7  ;;  %v636_v7 = vld [vmem:[#allocation2 + $0x158] sm:$0xff] }
 0x24e   : > { %v1903_v11 = vpop.f32.mrf.mxu0  ;;  %v2192_v12 = vpop.f32.mrf.mxu1 }
 0x24f   : > { %v2293_v13 = vadd.f32 %v2191_v10, %v627_v8 }
 0x250   : > { %v1906_v14 = vpop.f32.mrf.mxu0  ;;  %v2195_v16 = vpop.f32.mrf.mxu1 }
 0x251   : > { %2357 = vst [vmem:[#allocation2 + $0x1c8] sm:$0xff] %v2293_v13  ;;  %v2196_v17 = vadd.f32 %v2195_v16, %v1906_v14  ;;  %v637_v14 = vld [vmem:[#allocation2 + $0x10] sm:$0xff] }
 0x252   : > { %v1908_v18 = vpop.f32.mrf.mxu0  ;;  %v2197_v19 = vpop.f32.mrf.mxu1 }
 0x253   : > { %v2294_v20 = vadd.f32 %v2196_v17, %v628_v15 }
 0x254   : > { %v1909_v21 = vpop.f32.mrf.mxu0  ;;  %v2198_v23 = vpop.f32.mrf.mxu1 }
 0x255   : > { %2358 = vst [vmem:[#allocation2 + $0x170] sm:$0xff] %v2294_v20  ;;  %v2199_v24 = vadd.f32 %v2198_v23, %v1909_v21  ;;  %v638_v21 = vld [vmem:[#allocation2 + $0x58] sm:$0xff] }
 0x256   : > { %v1911_v25 = vpop.f32.mrf.mxu0  ;;  %v2200_v26 = vpop.f32.mrf.mxu1 }
 0x257   : > { %v2295_v27 = vadd.f32 %v2199_v24, %v629_v22 }
 0x258   : > { %v1914_v28 = vpop.f32.mrf.mxu0  ;;  %v2203_v30 = vpop.f32.mrf.mxu1 }
 0x259   : > { %2359 = vst [vmem:[#allocation2 + $0x178] sm:$0xff] %v2295_v27  ;;  %v2204_v31 = vadd.f32 %v2203_v30, %v1914_v28  ;;  %v639_v28 = vld [vmem:[#allocation2 + $0xa0] sm:$0xff] }
 0x25a   : > { %v1916_v32 = vpop.f32.mrf.mxu0  ;;  %v2205_v33 = vpop.f32.mrf.mxu1 }
 0x25b   : > { %v2296_v34 = vadd.f32 %v2204_v31, %v630_v29 }
 0x25c   : > { %v1917_v35 = vpop.f32.mrf.mxu0  ;;  %v2206_v37 = vpop.f32.mrf.mxu1 }
 0x25d   : > { %2360 = vst [vmem:[#allocation2 + $0x68] sm:$0xff] %v2296_v34  ;;  %v2207_v38 = vadd.f32 %v2206_v37, %v1917_v35 }
 0x25e   : > { %v1919_v39 = vpop.f32.mrf.mxu0  ;;  %v2208_v40 = vpop.f32.mrf.mxu1 }
 0x25f   : > { %v2297_v41 = vadd.f32 %v2207_v38, %v631_v36 }
 0x260   : > { %v1922_v42 = vpop.f32.mrf.mxu0  ;;  %v2211_v44 = vpop.f32.mrf.mxu1 }
 0x261   : > { %2361 = vst [vmem:[#allocation2 + $0x190] sm:$0xff] %v2297_v41  ;;  %v2212_v45 = vadd.f32 %v2211_v44, %v1922_v42 }
 0x262   : > { %v1924_v46 = vpop.f32.mrf.mxu0  ;;  %v2213_v47 = vpop.f32.mrf.mxu1 }
 0x263   : > { %v2298_v48 = vadd.f32 %v2212_v45, %v632_v43 }
 0x264   : > { %v1925_v49 = vpop.f32.mrf.mxu0  ;;  %v2214_v51 = vpop.f32.mrf.mxu1 }
 0x265   : > { %2362 = vst [vmem:[#allocation2 + $0x198] sm:$0xff] %v2298_v48  ;;  %v2215_v52 = vadd.f32 %v2214_v51, %v1925_v49 }
 0x266   : > { %v1927_v53 = vpop.f32.mrf.mxu0  ;;  %v2216_v54 = vpop.f32.mrf.mxu1 }
 0x267   : > { %v2299_v55 = vadd.f32 %v2215_v52, %v633_v50 }
 0x268   : > { %v1930_v56 = vpop.f32.mrf.mxu0  ;;  %v2219_v58 = vpop.f32.mrf.mxu1 }
 0x269   : > { %2363 = vst [vmem:[#allocation2 + $0x38] sm:$0xff] %v2299_v55  ;;  %v2220_v59 = vadd.f32 %v2219_v58, %v1930_v56 }
 0x26a   : > { %v1932_v60 = vpop.f32.mrf.mxu0  ;;  %v2221_v61 = vpop.f32.mrf.mxu1 }
 0x26b   : > { %v2300_v62 = vadd.f32 %v2220_v59, %v634_v57 }
 0x26c   : > { %v1933_v63 = vpop.f32.mrf.mxu0  ;;  %v2222_v1 = vpop.f32.mrf.mxu1 }
 0x26d   : > { %2364 = vst [vmem:[#allocation2 + $0xc0] sm:$0xff] %v2300_v62  ;;  %v2223_v2 = vadd.f32 %v2222_v1, %v1933_v63 }
 0x26e   : > { %v1935_v3 = vpop.f32.mrf.mxu0  ;;  %v2224_v4 = vpop.f32.mrf.mxu1 }
 0x26f   : > { %v2301_v5 = vadd.f32 %v2223_v2, %v635_v0 }
 0x270   : > { %v1938_v6 = vpop.f32.mrf.mxu0  ;;  %v2227_v8 = vpop.f32.mrf.mxu1 }
 0x271   : > { %2365 = vst [vmem:[#allocation2 + $0x1c0] sm:$0xff] %v2301_v5  ;;  %v2228_v9 = vadd.f32 %v2227_v8, %v1938_v6 }
 0x272   : > { %v1940_v10 = vpop.f32.mrf.mxu0  ;;  %v2229_v11 = vpop.f32.mrf.mxu1 }
 0x273   : > { %v2302_v12 = vadd.f32 %v2228_v9, %v636_v7 }
 0x274   : > { %v1941_v13 = vpop.f32.mrf.mxu0  ;;  %v2230_v15 = vpop.f32.mrf.mxu1 }
 0x275   : > { %2366 = vst [vmem:[#allocation2 + $0x158] sm:$0xff] %v2302_v12  ;;  %v2231_v16 = vadd.f32 %v2230_v15, %v1941_v13 }
 0x276   : > { %v1943_v17 = vpop.f32.mrf.mxu0  ;;  %v2232_v18 = vpop.f32.mrf.mxu1 }
 0x277   : > { %v2303_v19 = vadd.f32 %v2231_v16, %v637_v14 }
 0x278   : > { %v1946_v20 = vpop.f32.mrf.mxu0  ;;  %v2235_v22 = vpop.f32.mrf.mxu1 }
 0x279   : > { %2367 = vst [vmem:[#allocation2 + $0x10] sm:$0xff] %v2303_v19  ;;  %v2236_v23 = vadd.f32 %v2235_v22, %v1946_v20 }
 0x27a   : > { %v1948_v24 = vpop.f32.mrf.mxu0  ;;  %v2237_v25 = vpop.f32.mrf.mxu1 }
 0x27b   : > { %v2304_v26 = vadd.f32 %v2236_v23, %v638_v21 }
 0x27c   : > { %v1949_v27 = vpop.f32.mrf.mxu0  ;;  %v2238_v29 = vpop.f32.mrf.mxu1 }
 0x27d   : > { %2368 = vst [vmem:[#allocation2 + $0x58] sm:$0xff] %v2304_v26  ;;  %v2239_v30 = vadd.f32 %v2238_v29, %v1949_v27  ;;  %2373 = sbr.rel (%p3716_p10) target bundleno = 942 (0x3ae), region = 71 }
 0x27e   : > { %v1951_v31 = vpop.f32.mrf.mxu0  ;;  %v2240_v32 = vpop.f32.mrf.mxu1 }
 0x27f   : > { %v2305_v33 = vadd.f32 %v2239_v30, %v639_v28 }
 0x281   : > { %2369 = vst [vmem:[#allocation2 + $0xa0] sm:$0xff] %v2305_v33 }
 0x282   : > { %v2374_v34 = vld [vmem:[#allocation2 + $0xb0] sm:$0xff]  ;;  %v4918_v36 = vld [vmem:[%s5940_s2] ss:$0 sm:$0xff]  ;;  %v2376_v37 = vld [vmem:[#allocation2 + $0xd8] sm:$0xff] }
 0x283   : > { %v2375_v35 = vld [vmem:[#allocation2 + $0x1b0] sm:$0xff]  ;;  %v4921_v38 = vadd.f32 %v4918_v36, %v2374_v34  ;;  %v2377_v40 = vld [vmem:[#allocation2 + $0x18] sm:$0xff]  ;;  %v4927_v41 = vadd.f32 %v4918_v36, %v2376_v37  ;;  %v2379_v45 = vld [vmem:[#allocation2 + $0x168] sm:$0xff] }
 0x284   : > { %v4924_v39 = vadd.f32 %v4918_v36, %v2375_v35  ;;  %v2378_v42 = vld [vmem:[#allocation2 + $0x50] sm:$0xff]  ;;  %v4930_v43 = vadd.f32 %v4918_v36, %v2377_v40  ;;  %v4939_v49 = vadd.f32 %v4918_v36, %v2379_v45  ;;  %v2381_v51 = vld [vmem:[#allocation2 + $0x48] sm:$0xff]  ;;  %v2382_v54 = vld [vmem:[#allocation2 + $0x180] sm:$0xff] }
 0x285   : > { %v4935_v46 = vadd.f32 %v4918_v36, %v2378_v42  ;;  %v2380_v48 = vld [vmem:[#allocation2 + $0x130] sm:$0xff]  ;;  %v4947_v55 = vadd.f32 %v4918_v36, %v2381_v51  ;;  %v4951_v58 = vadd.f32 %v4918_v36, %v2382_v54  ;;  %v2384_v60 = vld [vmem:[#allocation2 + $0x118] sm:$0xff]  ;;  %v2578_v2 = vmul.f32 %v4921_v38, %v4921_v38  ;;  %v2386_v4 = vld [vmem:[#allocation2 + $0x120] sm:$0xff] }
 0x286   : > { %v2509_v44 = vadd.f32 %v4924_v39, %v4921_v38  ;;  %v4943_v52 = vadd.f32 %v4918_v36, %v2380_v48  ;;  %v2383_v57 = vld [vmem:[#allocation2 + $0x110] sm:$0xff]  ;;  %v2385_v63 = vld [vmem:[#allocation2 + $0x98] sm:$0xff]  ;;  %v4959_v0 = vadd.f32 %v4918_v36, %v2384_v60  ;;  %v2579_v3 = vmul.f32 %v4924_v39, %v4924_v39  ;;  %v2388_v13 = vld [vmem:[#allocation2 + $0x108] sm:$0xff] }
 0x287   : > { %v4955_v61 = vadd.f32 %v4918_v36, %v2383_v57  ;;  %v4967_v5 = vadd.f32 %v4918_v36, %v2385_v63  ;;  %v2580_v7 = vmul.f32 %v4927_v41, %v4927_v41  ;;  %v2387_v8 = vld [vmem:[#allocation2 + $0x150] sm:$0xff]  ;;  %v4973_v9 = vadd.f32 %v4918_v36, %v2386_v4  ;;  %v2389_v18 = vld [vmem:[#allocation2 + $0x60] sm:$0xff]  ;;  %v2391_v28 = vld [vmem:[#allocation2 + $0x188] sm:$0xff] }
 0x288   : > { %v2510_v47 = vadd.f32 %v2509_v44, %v4927_v41  ;;  %v2581_v11 = vmul.f32 %v4930_v43, %v4930_v43  ;;  %v2642_v12 = vadd.f32 %v2579_v3, %v2578_v2  ;;  %v4979_v14 = vadd.f32 %v4918_v36, %v2387_v8  ;;  %v2390_v23 = vld [vmem:[#allocation2 + $0xe0] sm:$0xff]  ;;  %v2392_v33 = vld [vmem:[#allocation2 + $0x138] sm:$0xff]  ;;  %v2395_v57 = vld [vmem:[#allocation2 + $0x1a8] sm:$0xff] }
 0x289   : > { %v2582_v16 = vmul.f32 %v4935_v46, %v4935_v46  ;;  %v4985_v19 = vadd.f32 %v4918_v36, %v2388_v13  ;;  %v2583_v21 = vmul.f32 %v4939_v49, %v4939_v49  ;;  %v4991_v24 = vadd.f32 %v4918_v36, %v2389_v18  ;;  %v2393_v42 = vld [vmem:[#allocation2 + $0x140] sm:$0xff]  ;;  %v2398_v13 = vld [vmem:[#allocation2 + $0x1e8] sm:$0xff] }
 0x28a   : > { %v2511_v50 = vadd.f32 %v2510_v47, %v4930_v43  ;;  %v2643_v17 = vadd.f32 %v2642_v12, %v2580_v7  ;;  %v2584_v26 = vmul.f32 %v4943_v52, %v4943_v52  ;;  %v4997_v29 = vadd.f32 %v4918_v36, %v2390_v23  ;;  %v2397_v7 = vld [vmem:[#allocation2 + $0x28] sm:$0xff] }
 0x28b   : > { %v2585_v31 = vmul.f32 %v4947_v55, %v4947_v55  ;;  %v5003_v34 = vadd.f32 %v4918_v36, %v2391_v28  ;;  %v2586_v37 = vmul.f32 %v4951_v58, %v4951_v58  ;;  %v5009_v44 = vadd.f32 %v4918_v36, %v2392_v33 }
 0x28c   : > { %v2512_v53 = vadd.f32 %v2511_v50, %v4935_v46  ;;  %v2644_v22 = vadd.f32 %v2643_v17, %v2581_v11  ;;  %v2587_v47 = vmul.f32 %v4955_v61, %v4955_v61  ;;  %v2394_v50 = vld [vmem:[#allocation2 + $0x80] sm:$0xff]  ;;  %v5015_v51 = vadd.f32 %v4918_v36, %v2393_v42 }
 0x28d   : > { %v2588_v54 = vmul.f32 %v4959_v0, %v4959_v0  ;;  %v5027_v2 = vadd.f32 %v4918_v36, %v2395_v57  ;;  %v2590_v4 = vmul.f32 %v4973_v9, %v4973_v9  ;;  %v2591_v11 = vmul.f32 %v4979_v14, %v4979_v14  ;;  %v2402_v42 = vld [vmem:[#allocation2 + $0x1e0] sm:$0xff] }
 0x28e   : > { %v2513_v56 = vadd.f32 %v2512_v53, %v4939_v49  ;;  %v2645_v27 = vadd.f32 %v2644_v22, %v2582_v16  ;;  %v2592_v17 = vmul.f32 %v4985_v19, %v4985_v19  ;;  %v2593_v23 = vmul.f32 %v4991_v24, %v4991_v24 }
 0x28f   : > { %v2597_v57 = vmul.f32 %v5015_v51, %v5015_v51 }
 0x290   : > { %v2514_v59 = vadd.f32 %v2513_v56, %v4943_v52  ;;  %v2646_v32 = vadd.f32 %v2645_v27, %v2583_v21  ;;  %v5045_v21 = vadd.f32 %v4918_v36, %v2398_v13  ;;  %v2406_v13 = vld [vmem:[#allocation2 + $0x148] sm:$0xff] }
 0x292   : > { %v2515_v62 = vadd.f32 %v2514_v59, %v4947_v55  ;;  %v2647_v40 = vadd.f32 %v2646_v32, %v2584_v26  ;;  %v5021_v59 = vadd.f32 %v4918_v36, %v2394_v50  ;;  %v2400_v26 = vld [vmem:[#allocation2 + $0x160] sm:$0xff]  ;;  %v2401_v32 = vld [vmem:[#allocation2 + $0x30] sm:$0xff] }
 0x293   : > { %v5057_v33 = vadd.f32 %v4918_v36, %v2400_v26 }
 0x294   : > { %v2516_v1 = vadd.f32 %v2515_v62, %v4951_v58  ;;  %v2648_v48 = vadd.f32 %v2647_v40, %v2585_v31  ;;  %v2589_v62 = vmul.f32 %v4967_v5, %v4967_v5 }
 0x296   : > { %v2517_v6 = vadd.f32 %v2516_v1, %v4955_v61  ;;  %v2649_v56 = vadd.f32 %v2648_v48, %v2586_v37  ;;  %v2396_v1 = vld [vmem:[#allocation2 + $0x1b8] sm:$0xff]  ;;  %v2595_v37 = vmul.f32 %v5003_v34, %v5003_v34  ;;  %v2596_v48 = vmul.f32 %v5009_v44, %v5009_v44 }
 0x297   : > { %v5033_v8 = vadd.f32 %v4918_v36, %v2396_v1 }
 0x298   : > { %v2518_v10 = vadd.f32 %v2517_v6, %v4959_v0  ;;  %v2650_v63 = vadd.f32 %v2649_v56, %v2587_v47 }
 0x29a   : > { %v2519_v15 = vadd.f32 %v2518_v10, %v4967_v5  ;;  %v2651_v6 = vadd.f32 %v2650_v63, %v2588_v54  ;;  %v5069_v54 = vadd.f32 %v4918_v36, %v2402_v42 }
 0x29c   : > { %v2520_v20 = vadd.f32 %v2519_v15, %v4973_v9  ;;  %v2652_v12 = vadd.f32 %v2651_v6, %v2589_v62  ;;  %v5039_v15 = vadd.f32 %v4918_v36, %v2397_v7  ;;  %v2404_v62 = vld [vmem:[#allocation2 + $0xf0] sm:$0xff]  ;;  %v2405_v6 = vld [vmem:[#allocation2 + $0x8] sm:$0xff] }
 0x29d   : > { %v5081_v7 = vadd.f32 %v4918_v36, %v2404_v62 }
 0x29e   : > { %v2521_v25 = vadd.f32 %v2520_v20, %v4979_v14  ;;  %v2653_v18 = vadd.f32 %v2652_v12, %v2590_v4  ;;  %v2399_v20 = vld [vmem:[#allocation2 + $0xf8] sm:$0xff]  ;;  %v2601_v26 = vmul.f32 %v5039_v15, %v5039_v15 }
 0x29f   : > { %v5051_v27 = vadd.f32 %v4918_v36, %v2399_v20 }
 0x2a0   : > { %v2522_v30 = vadd.f32 %v2521_v25, %v4985_v19  ;;  %v2654_v25 = vadd.f32 %v2653_v18, %v2591_v11  ;;  %v2599_v11 = vmul.f32 %v5027_v2, %v5027_v2  ;;  %v2600_v18 = vmul.f32 %v5033_v8, %v5033_v8 }
 0x2a2   : > { %v2523_v35 = vadd.f32 %v2522_v30, %v4991_v24  ;;  %v2594_v30 = vmul.f32 %v4997_v29, %v4997_v29  ;;  %v2655_v31 = vadd.f32 %v2654_v25, %v2592_v17 }
 0x2a4   : > { %v2524_v45 = vadd.f32 %v2523_v35, %v4997_v29  ;;  %v2656_v40 = vadd.f32 %v2655_v31, %v2593_v23  ;;  %v5093_v23 = vadd.f32 %v4918_v36, %v2406_v13 }
 0x2a6   : > { %v2525_v53 = vadd.f32 %v2524_v45, %v5003_v34  ;;  %v5063_v45 = vadd.f32 %v4918_v36, %v2401_v32  ;;  %v2657_v50 = vadd.f32 %v2656_v40, %v2594_v30  ;;  %v2408_v30 = vld [vmem:[#allocation2 + $0x100] sm:$0xff]  ;;  %v2409_v40 = vld [vmem:[#allocation2 + $0xc8] sm:$0xff] }
 0x2a7   : > { %v5105_v42 = vadd.f32 %v4918_v36, %v2408_v30  ;;  %v2414_v30 = vld [vmem:[#allocation2 + $0x1a0] sm:$0xff] }
 0x2a8   : > { %v2526_v60 = vadd.f32 %v2525_v53, %v5009_v44  ;;  %v2403_v53 = vld [vmem:[#allocation2] sm:$0xff] }
 0x2a9   : > { %v5075_v63 = vadd.f32 %v4918_v36, %v2403_v53  ;;  %v2410_v53 = vld [vmem:[#allocation2 + $0x40] sm:$0xff] }
 0x2aa   : > { %v2527_v3 = vadd.f32 %v2526_v60, %v5015_v51  ;;  %v2658_v60 = vadd.f32 %v2657_v50, %v2595_v37 }
 0x2ac   : > { %v2528_v10 = vadd.f32 %v2527_v3, %v5021_v59  ;;  %v2598_v3 = vmul.f32 %v5021_v59, %v5021_v59  ;;  %v2659_v4 = vadd.f32 %v2658_v60, %v2596_v48  ;;  %v2603_v48 = vmul.f32 %v5051_v27, %v5051_v27 }
 0x2ad   : > { %v2604_v60 = vmul.f32 %v5057_v33, %v5057_v33 }
 0x2ae   : > { %v2529_v16 = vadd.f32 %v2528_v10, %v5027_v2  ;;  %v2660_v12 = vadd.f32 %v2659_v4, %v2597_v57 }
 0x2b0   : > { %v2530_v22 = vadd.f32 %v2529_v16, %v5033_v8  ;;  %v5087_v16 = vadd.f32 %v4918_v36, %v2405_v6  ;;  %v2661_v20 = vadd.f32 %v2660_v12, %v2598_v3  ;;  %v5117_v3 = vadd.f32 %v4918_v36, %v2410_v53 }
 0x2b1   : > { %v2605_v6 = vmul.f32 %v5063_v45, %v5063_v45 }
 0x2b2   : > { %v2531_v28 = vadd.f32 %v2530_v22, %v5039_v15  ;;  %v2407_v22 = vld [vmem:[#allocation2 + $0x1d0] sm:$0xff]  ;;  %v2609_v53 = vmul.f32 %v5087_v16, %v5087_v16 }
 0x2b3   : > { %v5099_v31 = vadd.f32 %v4918_v36, %v2407_v22 }
 0x2b4   : > { %v2532_v35 = vadd.f32 %v2531_v28, %v5045_v21  ;;  %v2662_v28 = vadd.f32 %v2661_v20, %v2599_v11  ;;  %v2412_v11 = vld [vmem:[#allocation2 + $0x20] sm:$0xff]  ;;  %v2413_v20 = vld [vmem:[#allocation2 + $0x128] sm:$0xff] }
 0x2b5   : > { %v5129_v22 = vadd.f32 %v4918_v36, %v2412_v11 }
 0x2b6   : > { %v2533_v47 = vadd.f32 %v2532_v35, %v5051_v27  ;;  %v2602_v35 = vmul.f32 %v5045_v21, %v5045_v21  ;;  %v2663_v37 = vadd.f32 %v2662_v28, %v2600_v18 }
 0x2b7   : > { %5991 = vst [vmem:[#allocation4_spill] sm:$0xff] %v5129_v22 }
 0x2b8   : > { %v2534_v56 = vadd.f32 %v2533_v47, %v5057_v33  ;;  %v2664_v50 = vadd.f32 %v2663_v37, %v2601_v26  ;;  %v2607_v26 = vmul.f32 %v5075_v63, %v5075_v63  ;;  %v2608_v37 = vmul.f32 %v5081_v7, %v5081_v7 }
 0x2ba   : > { %v2535_v1 = vadd.f32 %v2534_v56, %v5063_v45  ;;  %v5111_v56 = vadd.f32 %v4918_v36, %v2409_v40  ;;  %v2665_v62 = vadd.f32 %v2664_v50, %v2602_v35 }
 0x2bc   : > { %v2536_v10 = vadd.f32 %v2535_v1, %v5069_v54  ;;  %v2411_v1 = vld [vmem:[#allocation2 + $0x1f8] sm:$0xff] }
 0x2bd   : > { %v5123_v12 = vadd.f32 %v4918_v36, %v2411_v1 }
 0x2be   : > { %v2537_v17 = vadd.f32 %v2536_v10, %v5075_v63  ;;  %v2666_v10 = vadd.f32 %v2665_v62, %v2603_v48  ;;  %v5141_v48 = vadd.f32 %v4918_v36, %v2414_v30 }
 0x2c0   : > { %v2538_v25 = vadd.f32 %v2537_v17, %v5081_v7  ;;  %v2606_v17 = vmul.f32 %v5069_v54, %v5069_v54  ;;  %v2667_v18 = vadd.f32 %v2666_v10, %v2604_v60  ;;  %5993 = vst [vmem:[#allocation6_spill] sm:$0xff] %v5141_v48  ;;  %v2416_v60 = vld [vmem:[#allocation2 + $0xe8] sm:$0xff]  ;;  %v2417_v10 = vld [vmem:[#allocation2 + $0x78] sm:$0xff] }
 0x2c1   : > { %v5153_v11 = vadd.f32 %v4918_v36, %v2416_v60 }
 0x2c2   : > { %v2539_v32 = vadd.f32 %v2538_v25, %v5087_v16  ;;  %v2668_v28 = vadd.f32 %v2667_v18, %v2605_v6 }
 0x2c3   : > { %5995 = vst [vmem:[#allocation8_spill] sm:$0xff] %v5153_v11 }
 0x2c4   : > { %v2540_v47 = vadd.f32 %v2539_v32, %v5093_v23  ;;  %v5135_v32 = vadd.f32 %v4918_v36, %v2413_v20  ;;  %v2669_v40 = vadd.f32 %v2668_v28, %v2606_v17  ;;  %v2611_v17 = vmul.f32 %v5099_v31, %v5099_v31  ;;  %v2418_v20 = vld [vmem:[#allocation2 + $0x70] sm:$0xff] }
 0x2c5   : > { %v2612_v28 = vmul.f32 %v5105_v42, %v5105_v42 }
 0x2c6   : > { %v2541_v57 = vadd.f32 %v2540_v47, %v5099_v31  ;;  %5992 = vst [vmem:[#allocation5_spill] sm:$0xff] %v5135_v32  ;;  %v2415_v47 = vld [vmem:[#allocation2 + $0x1f0] sm:$0xff] }
 0x2c7   : > { %v5147_v62 = vadd.f32 %v4918_v36, %v2415_v47  ;;  %v2613_v47 = vmul.f32 %v5111_v56, %v5111_v56 }
 0x2c8   : > { %v2542_v4 = vadd.f32 %v2541_v57, %v5105_v42  ;;  %v2670_v57 = vadd.f32 %v2669_v40, %v2607_v26 }
 0x2c9   : > { %5994 = vst [vmem:[#allocation7_spill] sm:$0xff] %v5147_v62 }
 0x2ca   : > { %v2543_v13 = vadd.f32 %v2542_v4, %v5111_v56  ;;  %v2610_v4 = vmul.f32 %v5093_v23, %v5093_v23  ;;  %v2671_v6 = vadd.f32 %v2670_v57, %v2608_v37  ;;  %v5165_v37 = vadd.f32 %v4918_v36, %v2418_v20  ;;  %v2422_v20 = vld [vmem:[#allocation2 + $0xb8] sm:$0xff] }
 0x2cc   : > { %v2544_v25 = vadd.f32 %v2543_v13, %v5117_v3  ;;  %v2672_v18 = vadd.f32 %v2671_v6, %v2609_v53  ;;  %5997 = vst [vmem:[#allocation10_spill] sm:$0xff] %v5165_v37  ;;  %v2420_v53 = vld [vmem:[#allocation2 + $0x1d8] sm:$0xff]  ;;  %v2421_v6 = vld [vmem:[#allocation2 + $0xd0] sm:$0xff] }
 0x2ce   : > { %v2545_v35 = vadd.f32 %v2544_v25, %v5123_v12  ;;  %v5159_v25 = vadd.f32 %v4918_v36, %v2417_v10  ;;  %v2673_v30 = vadd.f32 %v2672_v18, %v2610_v4  ;;  %v5177_v10 = vadd.f32 %v4918_v36, %v2420_v53 }
 0x2cf   : > { %v2615_v18 = vmul.f32 %v5123_v12, %v5123_v12 }
 0x2d0   : > { %v2546_v50 = vadd.f32 %v2545_v35, %v5129_v22  ;;  %5996 = vst [vmem:[#allocation9_spill] sm:$0xff] %v5159_v25  ;;  %v2419_v35 = vld [vmem:[#allocation2 + $0x90] sm:$0xff]  ;;  %5999 = vst [vmem:[#allocation12_spill] sm:$0xff] %v5177_v10 }
 0x2d1   : > { %v5171_v57 = vadd.f32 %v4918_v36, %v2419_v35  ;;  %v2616_v35 = vmul.f32 %v5129_v22, %v5129_v22  ;;  %v2618_v22 = vmul.f32 %v5141_v48, %v5141_v48 }
 0x2d2   : > { %v2547_v1 = vadd.f32 %v2546_v50, %v5135_v32  ;;  %v2674_v50 = vadd.f32 %v2673_v30, %v2611_v17 }
 0x2d3   : > { %5998 = vst [vmem:[#allocation11_spill] sm:$0xff] %v5171_v57 }
 0x2d4   : > { %v2548_v13 = vadd.f32 %v2547_v1, %v5141_v48  ;;  %v2614_v1 = vmul.f32 %v5117_v3, %v5117_v3  ;;  %v2675_v4 = vadd.f32 %v2674_v50, %v2612_v28  ;;  %v5189_v50 = vadd.f32 %v4918_v36, %v2422_v20 }
 0x2d5   : > { %v2620_v48 = vmul.f32 %v5153_v11, %v5153_v11 }
 0x2d6   : > { %v2549_v26 = vadd.f32 %v2548_v13, %v5147_v62  ;;  %v2676_v17 = vadd.f32 %v2675_v4, %v2613_v47  ;;  %6001 = vst [vmem:[#allocation14_spill] sm:$0xff] %v5189_v50  ;;  %v2424_v4 = vld [vmem:[#allocation2 + $0xa8] sm:$0xff] }
 0x2d7   : > { %v5201_v20 = vadd.f32 %v4918_v36, %v2424_v4 }
 0x2d8   : > { %v2550_v40 = vadd.f32 %v2549_v26, %v5153_v11  ;;  %v5183_v26 = vadd.f32 %v4918_v36, %v2421_v6  ;;  %v2677_v28 = vadd.f32 %v2676_v17, %v2614_v1  ;;  %v2425_v17 = vld [vmem:[#allocation2 + $0x1c8] sm:$0xff]  ;;  %v2622_v11 = vmul.f32 %v5165_v37, %v5165_v37 }
 0x2d9   : > { %6003 = vst [vmem:[#allocation16_spill] sm:$0xff] %v5201_v20 }
 0x2da   : > { %v2551_v60 = vadd.f32 %v2550_v40, %v5159_v25  ;;  %6000 = vst [vmem:[#allocation13_spill] sm:$0xff] %v5183_v26  ;;  %v2423_v40 = vld [vmem:[#allocation2 + $0x88] sm:$0xff]  ;;  %v2678_v47 = vadd.f32 %v2677_v28, %v2615_v18  ;;  %v2426_v28 = vld [vmem:[#allocation2 + $0x170] sm:$0xff] }
 0x2db   : > { %v5195_v6 = vadd.f32 %v4918_v36, %v2423_v40  ;;  %v5207_v40 = vadd.f32 %v4918_v36, %v2425_v17  ;;  %v5213_v4 = vadd.f32 %v4918_v36, %v2426_v28 }
 0x2dc   : > { %v2552_v13 = vadd.f32 %v2551_v60, %v5165_v37  ;;  %v2617_v60 = vmul.f32 %v5135_v32, %v5135_v32  ;;  %v2679_v1 = vadd.f32 %v2678_v47, %v2616_v35  ;;  %v2619_v32 = vmul.f32 %v5147_v62, %v5147_v62  ;;  %v2427_v47 = vld [vmem:[#allocation2 + $0x178] sm:$0xff] }
 0x2dd   : > { %6002 = vst [vmem:[#allocation15_spill] sm:$0xff] %v5195_v6  ;;  %6004 = vst [vmem:[#allocation17_spill] sm:$0xff] %v5207_v40  ;;  %v2621_v62 = vmul.f32 %v5159_v25, %v5159_v25  ;;  %v5219_v17 = vadd.f32 %v4918_v36, %v2427_v47  ;;  %v2623_v25 = vmul.f32 %v5171_v57, %v5171_v57 }
 0x2de   : > { %v2553_v30 = vadd.f32 %v2552_v13, %v5171_v57  ;;  %v2680_v18 = vadd.f32 %v2679_v1, %v2617_v60  ;;  %6005 = vst [vmem:[#allocation18_spill] sm:$0xff] %v5213_v4  ;;  %v2428_v1 = vld [vmem:[#allocation2 + $0x68] sm:$0xff]  ;;  %v2624_v37 = vmul.f32 %v5177_v10, %v5177_v10  ;;  %v2625_v57 = vmul.f32 %v5183_v26, %v5183_v26 }
 0x2df   : > { %6006 = vst [vmem:[#allocation19_spill] sm:$0xff] %v5219_v17  ;;  %v5225_v28 = vadd.f32 %v4918_v36, %v2428_v1 }
 0x2e0   : > { %v2554_v53 = vadd.f32 %v2553_v30, %v5177_v10  ;;  %v2681_v35 = vadd.f32 %v2680_v18, %v2618_v22  ;;  %v2429_v18 = vld [vmem:[#allocation2 + $0x190] sm:$0xff]  ;;  %v2626_v10 = vmul.f32 %v5189_v50, %v5189_v50 }
 0x2e1   : > { %6007 = vst [vmem:[#allocation20_spill] sm:$0xff] %v5225_v28  ;;  %v5231_v47 = vadd.f32 %v4918_v36, %v2429_v18 }
 0x2e2   : > { %v2555_v13 = vadd.f32 %v2554_v53, %v5183_v26  ;;  %v2682_v60 = vadd.f32 %v2681_v35, %v2619_v32  ;;  %v2430_v35 = vld [vmem:[#allocation2 + $0x198] sm:$0xff]  ;;  %v2627_v26 = vmul.f32 %v5195_v6, %v5195_v6 }
 0x2e3   : > { %6008 = vst [vmem:[#allocation21_spill] sm:$0xff] %v5231_v47  ;;  %v5237_v1 = vadd.f32 %v4918_v36, %v2430_v35 }
 0x2e4   : > { %v2556_v30 = vadd.f32 %v2555_v13, %v5189_v50  ;;  %v2683_v22 = vadd.f32 %v2682_v60, %v2620_v48  ;;  %v2431_v60 = vld [vmem:[#allocation2 + $0x38] sm:$0xff]  ;;  %v2628_v50 = vmul.f32 %v5201_v20, %v5201_v20 }
 0x2e5   : > { %6009 = vst [vmem:[#allocation22_spill] sm:$0xff] %v5237_v1  ;;  %v5243_v18 = vadd.f32 %v4918_v36, %v2431_v60 }
 0x2e6   : > { %v2557_v53 = vadd.f32 %v2556_v30, %v5195_v6  ;;  %v2684_v32 = vadd.f32 %v2683_v22, %v2621_v62  ;;  %v2432_v22 = vld [vmem:[#allocation2 + $0xc0] sm:$0xff]  ;;  %v2629_v6 = vmul.f32 %v5207_v40, %v5207_v40 }
 0x2e7   : > { %6010 = vst [vmem:[#allocation23_spill] sm:$0xff] %v5243_v18  ;;  %v5249_v35 = vadd.f32 %v4918_v36, %v2432_v22 }
 0x2e8   : > { %v2558_v13 = vadd.f32 %v2557_v53, %v5201_v20  ;;  %v2685_v48 = vadd.f32 %v2684_v32, %v2622_v11  ;;  %v2433_v32 = vld [vmem:[#allocation2 + $0x1c0] sm:$0xff]  ;;  %v2630_v20 = vmul.f32 %v5213_v4, %v5213_v4 }
 0x2e9   : > { %6011 = vst [vmem:[#allocation24_spill] sm:$0xff] %v5249_v35  ;;  %v5255_v60 = vadd.f32 %v4918_v36, %v2433_v32 }
 0x2ea   : > { %v2559_v30 = vadd.f32 %v2558_v13, %v5207_v40  ;;  %v2686_v62 = vadd.f32 %v2685_v48, %v2623_v25  ;;  %v2434_v48 = vld [vmem:[#allocation2 + $0x158] sm:$0xff]  ;;  %v2631_v40 = vmul.f32 %v5219_v17, %v5219_v17 }
 0x2eb   : > { %6012 = vst [vmem:[#allocation25_spill] sm:$0xff] %v5255_v60  ;;  %v5261_v22 = vadd.f32 %v4918_v36, %v2434_v48 }
 0x2ec   : > { %v2560_v53 = vadd.f32 %v2559_v30, %v5213_v4  ;;  %v2687_v11 = vadd.f32 %v2686_v62, %v2624_v37  ;;  %v2435_v62 = vld [vmem:[#allocation2 + $0x10] sm:$0xff] }
 0x2ed   : > { %6013 = vst [vmem:[#allocation26_spill] sm:$0xff] %v5261_v22  ;;  %v5267_v32 = vadd.f32 %v4918_v36, %v2435_v62 }
 0x2ee   : > { %v2561_v13 = vadd.f32 %v2560_v53, %v5219_v17  ;;  %v2688_v25 = vadd.f32 %v2687_v11, %v2625_v57  ;;  %v2436_v11 = vld [vmem:[#allocation2 + $0x58] sm:$0xff] }
 0x2ef   : > { %6014 = vst [vmem:[#allocation27_spill] sm:$0xff] %v5267_v32  ;;  %v5273_v48 = vadd.f32 %v4918_v36, %v2436_v11 }
 0x2f0   : > { %v2562_v30 = vadd.f32 %v2561_v13, %v5225_v28  ;;  %v2689_v37 = vadd.f32 %v2688_v25, %v2626_v10  ;;  %v2437_v25 = vld [vmem:[#allocation2 + $0xa0] sm:$0xff] }
 0x2f1   : > { %6015 = vst [vmem:[#allocation28_spill] sm:$0xff] %v5273_v48 }
 0x2f2   : > { %v2563_v53 = vadd.f32 %v2562_v30, %v5231_v47  ;;  %v2690_v57 = vadd.f32 %v2689_v37, %v2627_v26  ;;  %v5279_v37 = vadd.f32 %v4918_v36, %v2437_v25  ;;  %v2635_v25 = vmul.f32 %v5243_v18, %v5243_v18 }
 0x2f4   : > { %v2564_v13 = vadd.f32 %v2563_v53, %v5237_v1  ;;  %v2691_v10 = vadd.f32 %v2690_v57, %v2628_v50  ;;  %6016 = vst [vmem:[#allocation29_spill] sm:$0xff] %v5279_v37  ;;  %v2633_v57 = vmul.f32 %v5231_v47, %v5231_v47  ;;  %v2637_v47 = vmul.f32 %v5255_v60, %v5255_v60 }
 0x2f6   : > { %v2565_v30 = vadd.f32 %v2564_v13, %v5243_v18  ;;  %v2692_v26 = vadd.f32 %v2691_v10, %v2629_v6  ;;  %v2634_v6 = vmul.f32 %v5237_v1, %v5237_v1 }
 0x2f8   : > { %v2566_v53 = vadd.f32 %v2565_v30, %v5249_v35  ;;  %v2693_v4 = vadd.f32 %v2692_v26, %v2630_v20  ;;  %v2636_v20 = vmul.f32 %v5249_v35, %v5249_v35 }
 0x2fa   : > { %v2567_v13 = vadd.f32 %v2566_v53, %v5255_v60  ;;  %v2632_v53 = vmul.f32 %v5225_v28, %v5225_v28  ;;  %v2694_v11 = vadd.f32 %v2693_v4, %v2631_v40  ;;  %v2638_v4 = vmul.f32 %v5261_v22, %v5261_v22 }
 0x2fc   : > { %v2568_v30 = vadd.f32 %v2567_v13, %v5261_v22  ;;  %v2695_v10 = vadd.f32 %v2694_v11, %v2632_v53  ;;  %v2639_v53 = vmul.f32 %v5267_v32, %v5267_v32 }
 0x2fe   : > { %v2569_v62 = vadd.f32 %v2568_v30, %v5267_v32  ;;  %v2696_v30 = vadd.f32 %v2695_v10, %v2633_v57  ;;  %v2640_v57 = vmul.f32 %v5273_v48, %v5273_v48 }
 0x300   : > { %v2570_v50 = vadd.f32 %v2569_v62, %v5273_v48  ;;  %v2697_v26 = vadd.f32 %v2696_v30, %v2634_v6 }
 0x302   : > { %v2571_v13 = vadd.f32 %v2570_v50, %v5279_v37  ;;  %v2698_v40 = vadd.f32 %v2697_v26, %v2635_v25 }
 0x304   : > { %v2572_v36 = vrot.slane %v2571_v13, 4  ;;  %v2699_v50 = vadd.f32 %v2698_v40, %v2636_v20 }
 0x306   : > { %v2573_v62 = vadd.f32 %v2572_v36, %v2571_v13  ;;  %v2700_v11 = vadd.f32 %v2699_v50, %v2637_v47  ;;  %v2641_v13 = vmul.f32 %v5279_v37, %v5279_v37 }
 0x308   : > { %v2574_v1 = vrot.slane %v2573_v62, 2  ;;  %v2701_v10 = vadd.f32 %v2700_v11, %v2638_v4 }
 0x30a   : > { %v2575_v35 = vadd.f32 %v2574_v1, %v2573_v62  ;;  %v2702_v6 = vadd.f32 %v2701_v10, %v2639_v53 }
 0x30c   : > { %v2703_v36 = vadd.f32 %v2702_v6, %v2640_v57  ;;  %v2576_v25 = vrot.slane %v2575_v35, 1 }
 0x30e   : > { %v2704_v30 = vadd.f32 %v2703_v36, %v2641_v13  ;;  %v2577_v22 = vadd.f32 %v2576_v25, %v2575_v35 }
 0x310   : > { %v2705_v26 = vrot.slane %v2704_v30, 4  ;;  %v5304_v18 = vmul.f32 0.001953125, %v2577_v22  ;;  %v5433_v22 = vld [vmem:[%s5941_s3] ss:$0 sm:$0xff] }
 0x312   : > { %v2706_v20 = vadd.f32 %v2705_v26, %v2704_v30  ;;  %v2713_v4 = vmul.f32 %v5304_v18, %v5304_v18  ;;  %v6025_v26 = vld [vmem:[#allocation12_spill] sm:$0xff]  ;;  %v6038_v10 = vsub.f32 %v4921_v38, %v5304_v18  ;;  %v6041_v6 = vsub.f32 %v4930_v43, %v5304_v18 }
 0x313   : > { %v5462_v38 = vld [vmem:[%s5942_s4] ss:$0 sm:$0xff]  ;;  %v6044_v43 = vsub.f32 %v4943_v52, %v5304_v18 }
 0x314   : > { %v2707_v40 = vrot.slane %v2706_v20, 2 }
 0x316   : > { %v2708_v60 = vadd.f32 %v2707_v40, %v2706_v20  ;;  %v6020_v40 = vld [vmem:[#allocation7_spill] sm:$0xff] }
 0x318   : > { %v2709_v47 = vrot.slane %v2708_v60, 1 }
 0x31a   : > { %v2710_v50 = vadd.f32 %v2709_v47, %v2708_v60  ;;  %v6021_v47 = vld [vmem:[#allocation8_spill] sm:$0xff]  ;;  %v6040_v60 = vsub.f32 %v4927_v41, %v5304_v18  ;;  %v6043_v41 = vsub.f32 %v4939_v49, %v5304_v18 }
 0x31c   : > { %v2712_v1 = vmul.f32 0.001953125, %v2710_v50  ;;  %v6022_v50 = vld [vmem:[#allocation9_spill] sm:$0xff] }
 0x31e   : > { %v2714_v62 = vsub.f32 %v2712_v1, %v2713_v4  ;;  %v6017_v1 = vld [vmem:[#allocation4_spill] sm:$0xff]  ;;  %v6039_v4 = vsub.f32 %v4924_v39, %v5304_v18  ;;  %v6042_v39 = vsub.f32 %v4935_v46, %v5304_v18 }
 0x320   : > { %v2779_v57 = vadd.f32 1e-05, %v2714_v62  ;;  %v6018_v62 = vld [vmem:[#allocation5_spill] sm:$0xff] }
 0x322   : > { %4292 = vrsqrt.f32 %v2779_v57  ;;  %v6019_v57 = vld [vmem:[#allocation6_spill] sm:$0xff] }
 0x32f   : > { %v5428_v30 = vpop.eup %4292 }
 0x330   : > { %v2781_v20 = vmul.f32 %v5428_v30, %v6038_v10  ;;  %v2782_v53 = vmul.f32 %v5428_v30, %v6039_v4  ;;  %v2783_v36 = vmul.f32 %v5428_v30, %v6040_v60  ;;  %v2784_v13 = vmul.f32 %v5428_v30, %v6041_v6 }
 0x331   : > { %v2785_v10 = vmul.f32 %v5428_v30, %v6042_v39  ;;  %v2786_v60 = vmul.f32 %v5428_v30, %v6043_v41  ;;  %v2787_v6 = vmul.f32 %v5428_v30, %v6044_v43  ;;  %v6045_v4 = vsub.f32 %v4947_v55, %v5304_v18 }
 0x332   : > { %v2852_v48 = vmul.f32 %v5433_v22, %v2781_v20  ;;  %v2853_v46 = vmul.f32 %v5433_v22, %v2782_v53  ;;  %v2854_v39 = vmul.f32 %v5433_v22, %v2783_v36  ;;  %v2855_v49 = vmul.f32 %v5433_v22, %v2784_v13 }
 0x333   : > { %v2788_v37 = vmul.f32 %v5428_v30, %v6045_v4  ;;  %v2856_v41 = vmul.f32 %v5433_v22, %v2785_v10  ;;  %v2857_v32 = vmul.f32 %v5433_v22, %v2786_v60  ;;  %v2858_v52 = vmul.f32 %v5433_v22, %v2787_v6 }
 0x334   : > { %v2923_v55 = vadd.f32 %v5462_v38, %v2852_v48  ;;  %v2924_v4 = vadd.f32 %v5462_v38, %v2853_v46  ;;  %v2925_v20 = vadd.f32 %v5462_v38, %v2854_v39  ;;  %v2926_v53 = vadd.f32 %v5462_v38, %v2855_v49 }
 0x335   : > { %v2859_v43 = vmul.f32 %v5433_v22, %v2788_v37  ;;  %v2927_v36 = vadd.f32 %v5462_v38, %v2856_v41  ;;  %v2928_v13 = vadd.f32 %v5462_v38, %v2857_v32  ;;  %v2929_v10 = vadd.f32 %v5462_v38, %v2858_v52 }
 0x336   : > { %vm2987_vm0 = vcmp.gt.f32.partialorder %v2923_v55, 0.0  ;;  %vm2988_vm1 = vcmp.gt.f32.partialorder %v2924_v4, 0.0  ;;  %v3051_v6 = vmul.f32 0.2, %v2923_v55  ;;  %v3052_v37 = vmul.f32 0.2, %v2924_v4 }
 0x337   : > { %v2930_v60 = vadd.f32 %v5462_v38, %v2859_v43  ;;  %vm2989_vm2 = vcmp.gt.f32.partialorder %v2925_v20, 0.0  ;;  %vm2990_vm3 = vcmp.gt.f32.partialorder %v2926_v53, 0.0  ;;  %v3053_v48 = vmul.f32 0.2, %v2925_v20 }
 0x338   : > { %v3054_v46 = vmul.f32 0.2, %v2926_v53  ;;  %v3115_v25 = vsel %vm2987_vm0, %v2923_v55, %v3051_v6  ;;  %v3116_v39 = vsel %vm2988_vm1, %v2924_v4, %v3052_v37  ;;  %vm2991_vm4 = vcmp.gt.f32.partialorder %v2927_v36, 0.0 }
 0x339   : > { %vm2992_vm5 = vcmp.gt.f32.partialorder %v2928_v13, 0.0  ;;  %v3854_v49 = vpack.c.bf16 %v3116_v39, %v3115_v25  ;;  %v3117_v41 = vsel %vm2989_vm2, %v2925_v20, %v3053_v48  ;;  %v3055_v32 = vmul.f32 0.2, %v2927_v36 }
 0x33a   : > { %v3118_v11 = vsel %vm2990_vm3, %v2926_v53, %v3054_v46  ;;  %v3056_v52 = vmul.f32 0.2, %v2928_v13  ;;  %vm2993_vm6 = vcmp.gt.f32.partialorder %v2929_v10, 0.0  ;;  %vm2994_vm7 = vcmp.gt.f32.partialorder %v2930_v60, 0.0 }
 0x33b   : > { %v3859_v35 = vpack.c.bf16 %v3118_v11, %v3117_v41  ;;  %3855 = vst [vmem:[%s5943_s5] sm:$0xff] %v3854_v49   ;;  %v3119_v43 = vsel %vm2991_vm4, %v2927_v36, %v3055_v32  ;;  %v3057_v28 = vmul.f32 0.2, %v2929_v10  ;;  %v3058_v17 = vmul.f32 0.2, %v2930_v60 }
 0x33c   : > { %v6046_v55 = vsub.f32 %v4951_v58, %v5304_v18  ;;  %v3120_v11 = vsel %vm2992_vm5, %v2928_v13, %v3056_v52  ;;  %v6047_v25 = vsub.f32 %v4955_v61, %v5304_v18  ;;  %v6048_v53 = vsub.f32 %v4959_v0, %v5304_v18 }
 0x33d   : > { %4011 = vst [vmem:[%s5943_s5 + $0x8] sm:$0xff] %v3859_v35   ;;  %v6049_v58 = vsub.f32 %v4967_v5, %v5304_v18  ;;  %v3864_v37 = vpack.c.bf16 %v3120_v11, %v3119_v43  ;;  %v3121_v48 = vsel %vm2993_vm6, %v2929_v10, %v3057_v28  ;;  %v3122_v46 = vsel %vm2994_vm7, %v2930_v60, %v3058_v17 }
 0x33e   : > { %v2789_v4 = vmul.f32 %v5428_v30, %v6046_v55  ;;  %v2790_v20 = vmul.f32 %v5428_v30, %v6047_v25  ;;  %v2791_v36 = vmul.f32 %v5428_v30, %v6048_v53  ;;  %v3869_v13 = vpack.c.bf16 %v3122_v46, %v3121_v48 }
 0x33f   : > { %v2792_v6 = vmul.f32 %v5428_v30, %v6049_v58  ;;  %4012 = vst [vmem:[%s5943_s5 + $0x10] sm:$0xff] %v3864_v37   ;;  %v6050_v5 = vsub.f32 %v4973_v9, %v5304_v18  ;;  %v6051_v28 = vsub.f32 %v4979_v14, %v5304_v18  ;;  %v6052_v60 = vsub.f32 %v4985_v19, %v5304_v18 }
 0x340   : > { %v2860_v35 = vmul.f32 %v5433_v22, %v2789_v4  ;;  %v2861_v61 = vmul.f32 %v5433_v22, %v2790_v20  ;;  %v2862_v39 = vmul.f32 %v5433_v22, %v2791_v36  ;;  %4013 = vst [vmem:[%s5943_s5 + $0x18] sm:$0xff] %v3869_v13   ;;  %v6053_v14 = vsub.f32 %v4991_v24, %v5304_v18 }
 0x341   : > { %v2863_v49 = vmul.f32 %v5433_v22, %v2792_v6  ;;  %v2793_v17 = vmul.f32 %v5428_v30, %v6050_v5  ;;  %v2794_v10 = vmul.f32 %v5428_v30, %v6051_v28  ;;  %v2795_v41 = vmul.f32 %v5428_v30, %v6052_v60 }
 0x342   : > { %v2931_v0 = vadd.f32 %v5462_v38, %v2860_v35  ;;  %v2932_v32 = vadd.f32 %v5462_v38, %v2861_v61  ;;  %v2933_v9 = vadd.f32 %v5462_v38, %v2862_v39  ;;  %v2796_v43 = vmul.f32 %v5428_v30, %v6053_v14 }
 0x343   : > { %v2934_v52 = vadd.f32 %v5462_v38, %v2863_v49  ;;  %v2864_v19 = vmul.f32 %v5433_v22, %v2793_v17  ;;  %v2865_v4 = vmul.f32 %v5433_v22, %v2794_v10  ;;  %v2866_v6 = vmul.f32 %v5433_v22, %v2795_v41 }
 0x344   : > { %vm2995_vm8 = vcmp.gt.f32.partialorder %v2931_v0, 0.0  ;;  %v3059_v55 = vmul.f32 0.2, %v2931_v0  ;;  %vm2996_vm9 = vcmp.gt.f32.partialorder %v2932_v32, 0.0  ;;  %v3060_v11 = vmul.f32 0.2, %v2932_v32 }
 0x345   : > { %vm2997_vm10 = vcmp.gt.f32.partialorder %v2933_v9, 0.0  ;;  %vm2998_vm11 = vcmp.gt.f32.partialorder %v2934_v52, 0.0  ;;  %v3061_v20 = vmul.f32 0.2, %v2933_v9  ;;  %v3062_v53 = vmul.f32 0.2, %v2934_v52 }
 0x346   : > { %v3123_v25 = vsel %vm2995_vm8, %v2931_v0, %v3059_v55  ;;  %v2935_v36 = vadd.f32 %v5462_v38, %v2864_v19  ;;  %v3124_v58 = vsel %vm2996_vm9, %v2932_v32, %v3060_v11  ;;  %v2936_v24 = vadd.f32 %v5462_v38, %v2865_v4 }
 0x347   : > { %v2867_v37 = vmul.f32 %v5433_v22, %v2796_v43  ;;  %v3874_v48 = vpack.c.bf16 %v3124_v58, %v3123_v25  ;;  %v3125_v46 = vsel %vm2997_vm10, %v2933_v9, %v3061_v20  ;;  %v3126_v35 = vsel %vm2998_vm11, %v2934_v52, %v3062_v53 }
 0x348   : > { %vm2999_vm12 = vcmp.gt.f32.partialorder %v2935_v36, 0.0  ;;  %v3879_v13 = vpack.c.bf16 %v3126_v35, %v3125_v46  ;;  %vm3000_vm13 = vcmp.gt.f32.partialorder %v2936_v24, 0.0  ;;  %v3063_v61 = vmul.f32 0.2, %v2935_v36 }
 0x349   : > { %v3064_v39 = vmul.f32 0.2, %v2936_v24  ;;  %4014 = vst [vmem:[%s5943_s5 + $0x20] sm:$0xff] %v3874_v48   ;;  %v2937_v49 = vadd.f32 %v5462_v38, %v2866_v6  ;;  %v2938_v0 = vadd.f32 %v5462_v38, %v2867_v37  ;;  %v6054_v5 = vsub.f32 %v4997_v29, %v5304_v18 }
 0x34a   : > { %v6055_v28 = vsub.f32 %v5003_v34, %v5304_v18  ;;  %4015 = vst [vmem:[%s5943_s5 + $0x28] sm:$0xff] %v3879_v13   ;;  %v3127_v60 = vsel %vm2999_vm12, %v2935_v36, %v3063_v61  ;;  %v6056_v32 = vsub.f32 %v5009_v44, %v5304_v18  ;;  %v6057_v29 = vsub.f32 %v5015_v51, %v5304_v18 }
 0x34b   : > { %v2797_v17 = vmul.f32 %v5428_v30, %v6054_v5  ;;  %v3128_v41 = vsel %vm3000_vm13, %v2936_v24, %v3064_v39  ;;  %vm3001_vm14 = vcmp.gt.f32.partialorder %v2937_v49, 0.0  ;;  %vm3002_vm15 = vcmp.gt.f32.partialorder %v2938_v0, 0.0 }
 0x34c   : > { %v2798_v10 = vmul.f32 %v5428_v30, %v6055_v28  ;;  %v2799_v9 = vmul.f32 %v5428_v30, %v6056_v32  ;;  %v2800_v52 = vmul.f32 %v5428_v30, %v6057_v29  ;;  %v3884_v14 = vpack.c.bf16 %v3128_v41, %v3127_v60 }
 0x34d   : > { %v3065_v34 = vmul.f32 0.2, %v2937_v49  ;;  %v3066_v43 = vmul.f32 0.2, %v2938_v0  ;;  %v2868_v55 = vmul.f32 %v5433_v22, %v2797_v17  ;;  %v6058_v11 = vsub.f32 %v5021_v59, %v5304_v18 }
 0x34e   : > { %v2869_v19 = vmul.f32 %v5433_v22, %v2798_v10  ;;  %v2870_v4 = vmul.f32 %v5433_v22, %v2799_v9  ;;  %4016 = vst [vmem:[%s5943_s5 + $0x30] sm:$0xff] %v3884_v14   ;;  %v2871_v51 = vmul.f32 %v5433_v22, %v2800_v52  ;;  %v6059_v20 = vsub.f32 %v5027_v2, %v5304_v18 }
 0x34f   : > { %v3129_v44 = vsel %vm3001_vm14, %v2937_v49, %v3065_v34  ;;  %v2801_v25 = vmul.f32 %v5428_v30, %v6058_v11  ;;  %v3130_v36 = vsel %vm3002_vm15, %v2938_v0, %v3066_v43  ;;  %v2939_v58 = vadd.f32 %v5462_v38, %v2868_v55 }
 0x350   : > { %v2802_v53 = vmul.f32 %v5428_v30, %v6059_v20  ;;  %v2940_v24 = vadd.f32 %v5462_v38, %v2869_v19  ;;  %v2941_v6 = vadd.f32 %v5462_v38, %v2870_v4  ;;  %v3889_v37 = vpack.c.bf16 %v3130_v36, %v3129_v44 }
 0x351   : > { %v2942_v48 = vadd.f32 %v5462_v38, %v2871_v51  ;;  %v2872_v46 = vmul.f32 %v5433_v22, %v2801_v25  ;;  %vm3003_vm0 = vcmp.gt.f32.partialorder %v2939_v58, 0.0  ;;  %v3067_v35 = vmul.f32 0.2, %v2939_v58 }
 0x352   : > { %v2873_v59 = vmul.f32 %v5433_v22, %v2802_v53  ;;  %vm3004_vm1 = vcmp.gt.f32.partialorder %v2940_v24, 0.0  ;;  %v3068_v2 = vmul.f32 0.2, %v2940_v24  ;;  %4017 = vst [vmem:[%s5943_s5 + $0x38] sm:$0xff] %v3889_v37   ;;  %vm3005_vm2 = vcmp.gt.f32.partialorder %v2941_v6, 0.0 }
 0x353   : > { %vm3006_vm3 = vcmp.gt.f32.partialorder %v2942_v48, 0.0  ;;  %v3069_v13 = vmul.f32 0.2, %v2941_v6  ;;  %v3070_v61 = vmul.f32 0.2, %v2942_v48  ;;  %v3131_v39 = vsel %vm3003_vm0, %v2939_v58, %v3067_v35 }
 0x354   : > { %v3132_v49 = vsel %vm3004_vm1, %v2940_v24, %v3068_v2  ;;  %v2943_v0 = vadd.f32 %v5462_v38, %v2872_v46  ;;  %v2944_v5 = vadd.f32 %v5462_v38, %v2873_v59  ;;  %v6060_v60 = vsub.f32 %v5033_v8, %v5304_v18 }
 0x355   : > { %v3894_v17 = vpack.c.bf16 %v3132_v49, %v3131_v39  ;;  %v3133_v28 = vsel %vm3005_vm2, %v2941_v6, %v3069_v13  ;;  %v3134_v10 = vsel %vm3006_vm3, %v2942_v48, %v3070_v61  ;;  %v6061_v52 = vsub.f32 %v5039_v15, %v5304_v18 }
 0x356   : > { %v2803_v41 = vmul.f32 %v5428_v30, %v6060_v60  ;;  %v3899_v32 = vpack.c.bf16 %v3134_v10, %v3133_v28  ;;  %vm3007_vm4 = vcmp.gt.f32.partialorder %v2943_v0, 0.0  ;;  %vm3008_vm5 = vcmp.gt.f32.partialorder %v2944_v5, 0.0 }
 0x357   : > { %v3071_v9 = vmul.f32 0.2, %v2943_v0  ;;  %4018 = vst [vmem:[%s5943_s5 + $0x40] sm:$0xff] %v3894_v17   ;;  %v3072_v29 = vmul.f32 0.2, %v2944_v5  ;;  %v2804_v14 = vmul.f32 %v5428_v30, %v6061_v52  ;;  %v6062_v8 = vsub.f32 %v5045_v21, %v5304_v18 }
 0x358   : > { %v2874_v34 = vmul.f32 %v5433_v22, %v2803_v41  ;;  %4019 = vst [vmem:[%s5943_s5 + $0x48] sm:$0xff] %v3899_v32   ;;  %v6063_v19 = vsub.f32 %v5051_v27, %v5304_v18  ;;  %v6064_v15 = vsub.f32 %v5057_v33, %v5304_v18  ;;  %v6065_v21 = vsub.f32 %v5063_v45, %v5304_v18 }
 0x359   : > { %v2805_v43 = vmul.f32 %v5428_v30, %v6062_v8  ;;  %v3135_v55 = vsel %vm3007_vm4, %v2943_v0, %v3071_v9  ;;  %v3136_v11 = vsel %vm3008_vm5, %v2944_v5, %v3072_v29  ;;  %v2875_v25 = vmul.f32 %v5433_v22, %v2804_v14 }
 0x35a   : > { %v2806_v4 = vmul.f32 %v5428_v30, %v6063_v19  ;;  %v2807_v44 = vmul.f32 %v5428_v30, %v6064_v15  ;;  %v2808_v51 = vmul.f32 %v5428_v30, %v6065_v21  ;;  %v2945_v20 = vadd.f32 %v5462_v38, %v2874_v34 }
 0x35b   : > { %v2876_v53 = vmul.f32 %v5433_v22, %v2805_v43  ;;  %v3904_v27 = vpack.c.bf16 %v3136_v11, %v3135_v55  ;;  %v2946_v24 = vadd.f32 %v5462_v38, %v2875_v25  ;;  %v6066_v59 = vsub.f32 %v5069_v54, %v5304_v18 }
 0x35c   : > { %v2877_v36 = vmul.f32 %v5433_v22, %v2806_v4  ;;  %v2878_v58 = vmul.f32 %v5433_v22, %v2807_v44  ;;  %v2879_v33 = vmul.f32 %v5433_v22, %v2808_v51  ;;  %vm3009_vm6 = vcmp.gt.f32.partialorder %v2945_v20, 0.0 }
 0x35d   : > { %v3073_v45 = vmul.f32 0.2, %v2945_v20  ;;  %v2947_v6 = vadd.f32 %v5462_v38, %v2876_v53  ;;  %4020 = vst [vmem:[%s5943_s5 + $0x50] sm:$0xff] %v3904_v27   ;;  %v2809_v35 = vmul.f32 %v5428_v30, %v6066_v59  ;;  %vm3010_vm7 = vcmp.gt.f32.partialorder %v2946_v24, 0.0 }
 0x35e   : > { %v2948_v37 = vadd.f32 %v5462_v38, %v2877_v36  ;;  %v2949_v48 = vadd.f32 %v5462_v38, %v2878_v58  ;;  %v2950_v46 = vadd.f32 %v5462_v38, %v2879_v33  ;;  %v3074_v2 = vmul.f32 0.2, %v2946_v24 }
 0x35f   : > { %v3137_v13 = vsel %vm3009_vm6, %v2945_v20, %v3073_v45  ;;  %vm3011_vm8 = vcmp.gt.f32.partialorder %v2947_v6, 0.0  ;;  %v3075_v61 = vmul.f32 0.2, %v2947_v6  ;;  %v6067_v54 = vsub.f32 %v5075_v63, %v5304_v18 }
 0x360   : > { %vm3012_vm9 = vcmp.gt.f32.partialorder %v2948_v37, 0.0  ;;  %v3076_v39 = vmul.f32 0.2, %v2948_v37  ;;  %vm3013_vm10 = vcmp.gt.f32.partialorder %v2949_v48, 0.0  ;;  %v3138_v49 = vsel %vm3010_vm7, %v2946_v24, %v3074_v2 }
 0x361   : > { %vm3014_vm11 = vcmp.gt.f32.partialorder %v2950_v46, 0.0  ;;  %v3077_v0 = vmul.f32 0.2, %v2949_v48  ;;  %v3078_v5 = vmul.f32 0.2, %v2950_v46  ;;  %v3909_v17 = vpack.c.bf16 %v3138_v49, %v3137_v13 }
 0x362   : > { %v3139_v28 = vsel %vm3011_vm8, %v2947_v6, %v3075_v61  ;;  %v3140_v10 = vsel %vm3012_vm9, %v2948_v37, %v3076_v39  ;;  %v2810_v60 = vmul.f32 %v5428_v30, %v6067_v54  ;;  %v2880_v29 = vmul.f32 %v5433_v22, %v2809_v35 }
 0x363   : > { %v3914_v41 = vpack.c.bf16 %v3140_v10, %v3139_v28  ;;  %v3141_v32 = vsel %vm3013_vm10, %v2949_v48, %v3077_v0  ;;  %v3142_v9 = vsel %vm3014_vm11, %v2950_v46, %v3078_v5  ;;  %4021 = vst [vmem:[%s5943_s5 + $0x58] sm:$0xff] %v3909_v17   ;;  %v6068_v34 = vsub.f32 %v5081_v7, %v5304_v18 }
 0x364   : > { %v3919_v52 = vpack.c.bf16 %v3142_v9, %v3141_v32  ;;  %v2881_v14 = vmul.f32 %v5433_v22, %v2810_v60  ;;  %v6069_v63 = vsub.f32 %v5087_v16, %v5304_v18  ;;  %v2951_v55 = vadd.f32 %v5462_v38, %v2880_v29 }
 0x365   : > { %v2811_v8 = vmul.f32 %v5428_v30, %v6068_v34  ;;  %4022 = vst [vmem:[%s5943_s5 + $0x60] sm:$0xff] %v3914_v41   ;;  %v6070_v19 = vsub.f32 %v5093_v23, %v5304_v18  ;;  %v6071_v7 = vsub.f32 %v5099_v31, %v5304_v18  ;;  %v6072_v16 = vsub.f32 %v5105_v42, %v5304_v18 }
 0x366   : > { %v2812_v43 = vmul.f32 %v5428_v30, %v6069_v63  ;;  %4023 = vst [vmem:[%s5943_s5 + $0x68] sm:$0xff] %v3919_v52   ;;  %v2952_v21 = vadd.f32 %v5462_v38, %v2881_v14  ;;  %v6073_v31 = vsub.f32 %v5111_v56, %v5304_v18  ;;  %vm3015_vm12 = vcmp.gt.f32.partialorder %v2951_v55, 0.0 }
 0x367   : > { %v2813_v4 = vmul.f32 %v5428_v30, %v6070_v19  ;;  %v2814_v15 = vmul.f32 %v5428_v30, %v6071_v7  ;;  %v2815_v44 = vmul.f32 %v5428_v30, %v6072_v16  ;;  %v2882_v23 = vmul.f32 %v5433_v22, %v2811_v8 }
 0x368   : > { %v2883_v51 = vmul.f32 %v5433_v22, %v2812_v43  ;;  %v2816_v11 = vmul.f32 %v5428_v30, %v6073_v31  ;;  %v3079_v25 = vmul.f32 0.2, %v2951_v55  ;;  %vm3016_vm13 = vcmp.gt.f32.partialorder %v2952_v21, 0.0 }
 0x369   : > { %v2884_v42 = vmul.f32 %v5433_v22, %v2813_v4  ;;  %v2885_v20 = vmul.f32 %v5433_v22, %v2814_v15  ;;  %v3080_v53 = vmul.f32 0.2, %v2952_v21  ;;  %v2953_v27 = vadd.f32 %v5462_v38, %v2882_v23 }
 0x36a   : > { %v2954_v36 = vadd.f32 %v5462_v38, %v2883_v51  ;;  %v3143_v58 = vsel %vm3015_vm12, %v2951_v55, %v3079_v25  ;;  %v2886_v56 = vmul.f32 %v5433_v22, %v2815_v44  ;;  %v2887_v2 = vmul.f32 %v5433_v22, %v2816_v11 }
 0x36b   : > { %v2955_v33 = vadd.f32 %v5462_v38, %v2884_v42  ;;  %v2956_v24 = vadd.f32 %v5462_v38, %v2885_v20  ;;  %v3144_v45 = vsel %vm3016_vm13, %v2952_v21, %v3080_v53  ;;  %vm3017_vm14 = vcmp.gt.f32.partialorder %v2953_v27, 0.0 }
 0x36c   : > { %vm3018_vm15 = vcmp.gt.f32.partialorder %v2954_v36, 0.0  ;;  %v3081_v6 = vmul.f32 0.2, %v2953_v27  ;;  %v3924_v37 = vpack.c.bf16 %v3144_v45, %v3143_v58  ;;  %v3082_v48 = vmul.f32 0.2, %v2954_v36 }
 0x36d   : > { %vm3019_vm0 = vcmp.gt.f32.partialorder %v2955_v33, 0.0  ;;  %vm3020_vm1 = vcmp.gt.f32.partialorder %v2956_v24, 0.0  ;;  %v3083_v59 = vmul.f32 0.2, %v2955_v33  ;;  %v3084_v35 = vmul.f32 0.2, %v2956_v24 }
 0x36e   : > { %v3145_v46 = vsel %vm3017_vm14, %v2953_v27, %v3081_v6  ;;  %4024 = vst [vmem:[%s5943_s5 + $0x70] sm:$0xff] %v3924_v37   ;;  %v3146_v13 = vsel %vm3018_vm15, %v2954_v36, %v3082_v48  ;;  %v2957_v61 = vadd.f32 %v5462_v38, %v2886_v56  ;;  %v6074_v39 = vsub.f32 %v5117_v3, %v5304_v18 }
 0x36f   : > { %v6075_v0 = vsub.f32 %v5123_v12, %v5304_v18  ;;  %v3929_v17 = vpack.c.bf16 %v3146_v13, %v3145_v46  ;;  %v3147_v28 = vsel %vm3019_vm0, %v2955_v33, %v3083_v59  ;;  %v3148_v10 = vsel %vm3020_vm1, %v2956_v24, %v3084_v35  ;;  %v6082_v59 = vld [vmem:[#allocation10_spill] sm:$0xff] }
 0x370   : > { %v2817_v49 = vmul.f32 %v5428_v30, %v6074_v39  ;;  %v2958_v54 = vadd.f32 %v5462_v38, %v2887_v2  ;;  %v3934_v60 = vpack.c.bf16 %v3148_v10, %v3147_v28  ;;  %vm3021_vm2 = vcmp.gt.f32.partialorder %v2957_v61, 0.0 }
 0x371   : > { %v2818_v5 = vmul.f32 %v5428_v30, %v6075_v0  ;;  %v3085_v41 = vmul.f32 0.2, %v2957_v61  ;;  %4025 = vst [vmem:[%s5943_s5 + $0x78] sm:$0xff] %v3929_v17   ;;  %v6076_v9 = vsub.f32 %v6017_v1, %v5304_v18  ;;  %v6077_v34 = vsub.f32 %v6018_v62, %v5304_v18 }
 0x372   : > { %v2888_v32 = vmul.f32 %v5433_v22, %v2817_v49  ;;  %vm3022_vm3 = vcmp.gt.f32.partialorder %v2958_v54, 0.0  ;;  %v3086_v3 = vmul.f32 0.2, %v2958_v54  ;;  %4026 = vst [vmem:[%s5943_s5 + $0x80] sm:$0xff] %v3934_v60   ;;  %v6078_v63 = vsub.f32 %v6019_v57, %v5304_v18 }
 0x373   : > { %v2889_v12 = vmul.f32 %v5433_v22, %v2818_v5  ;;  %v2819_v29 = vmul.f32 %v5428_v30, %v6076_v9  ;;  %v3149_v52 = vsel %vm3021_vm2, %v2957_v61, %v3085_v41  ;;  %v2820_v8 = vmul.f32 %v5428_v30, %v6077_v34  ;;  %v6084_v61 = vld [vmem:[#allocation11_spill] sm:$0xff] }
 0x374   : > { %v2959_v14 = vadd.f32 %v5462_v38, %v2888_v32  ;;  %v2821_v43 = vmul.f32 %v5428_v30, %v6078_v63  ;;  %v3150_v1 = vsel %vm3022_vm3, %v2958_v54, %v3086_v3  ;;  %v6079_v4 = vsub.f32 %v6020_v40, %v5304_v18  ;;  %v6087_v54 = vld [vmem:[#allocation13_spill] sm:$0xff] }
 0x375   : > { %v2960_v55 = vadd.f32 %v5462_v38, %v2889_v12  ;;  %v2890_v19 = vmul.f32 %v5433_v22, %v2819_v29  ;;  %v3939_v15 = vpack.c.bf16 %v3150_v1, %v3149_v52  ;;  %v2891_v16 = vmul.f32 %v5433_v22, %v2820_v8  ;;  %v6089_v8 = vld [vmem:[#allocation14_spill] sm:$0xff] }
 0x376   : > { %v2822_v7 = vmul.f32 %v5428_v30, %v6079_v4  ;;  %vm3023_vm4 = vcmp.gt.f32.partialorder %v2959_v14, 0.0  ;;  %v3087_v62 = vmul.f32 0.2, %v2959_v14  ;;  %v2892_v21 = vmul.f32 %v5433_v22, %v2821_v43 }
 0x377   : > { %vm3024_vm5 = vcmp.gt.f32.partialorder %v2960_v55, 0.0  ;;  %v3088_v44 = vmul.f32 0.2, %v2960_v55  ;;  %v2961_v57 = vadd.f32 %v5462_v38, %v2890_v19  ;;  %4027 = vst [vmem:[%s5943_s5 + $0x88] sm:$0xff] %v3939_v15   ;;  %v2962_v40 = vadd.f32 %v5462_v38, %v2891_v16 }
 0x378   : > { %v3151_v23 = vsel %vm3023_vm4, %v2959_v14, %v3087_v62  ;;  %v2893_v51 = vmul.f32 %v5433_v22, %v2822_v7  ;;  %v6080_v31 = vsub.f32 %v6021_v47, %v5304_v18  ;;  %v2963_v20 = vadd.f32 %v5462_v38, %v2892_v21 }
 0x379   : > { %v3152_v25 = vsel %vm3024_vm5, %v2960_v55, %v3088_v44  ;;  %vm3025_vm6 = vcmp.gt.f32.partialorder %v2961_v57, 0.0  ;;  %v3089_v42 = vmul.f32 0.2, %v2961_v57  ;;  %vm3026_vm7 = vcmp.gt.f32.partialorder %v2962_v40, 0.0 }
 0x37a   : > { %v2823_v11 = vmul.f32 %v5428_v30, %v6080_v31  ;;  %v3944_v53 = vpack.c.bf16 %v3152_v25, %v3151_v23  ;;  %v3090_v27 = vmul.f32 0.2, %v2962_v40  ;;  %v2964_v36 = vadd.f32 %v5462_v38, %v2893_v51  ;;  %v6093_v51 = vld [vmem:[#allocation16_spill] sm:$0xff] }
 0x37b   : > { %v3153_v58 = vsel %vm3025_vm6, %v2961_v57, %v3089_v42  ;;  %vm3027_vm8 = vcmp.gt.f32.partialorder %v2963_v20, 0.0  ;;  %v3091_v33 = vmul.f32 0.2, %v2963_v20  ;;  %v6081_v24 = vsub.f32 %v6022_v50, %v5304_v18  ;;  %v6091_v57 = vld [vmem:[#allocation15_spill] sm:$0xff] }
 0x37c   : > { %4028 = vst [vmem:[%s5943_s5 + $0x90] sm:$0xff] %v3944_v53   ;;  %v3154_v56 = vsel %vm3026_vm7, %v2962_v40, %v3090_v27  ;;  %vm3028_vm9 = vcmp.gt.f32.partialorder %v2964_v36, 0.0  ;;  %v3092_v45 = vmul.f32 0.2, %v2964_v36  ;;  %v2894_v6 = vmul.f32 %v5433_v22, %v2823_v11  ;;  %v6095_v53 = vld [vmem:[#allocation17_spill] sm:$0xff] }
 0x37d   : > { %v2824_v47 = vmul.f32 %v5428_v30, %v6081_v24  ;;  %v3949_v37 = vpack.c.bf16 %v3154_v56, %v3153_v58  ;;  %v3155_v48 = vsel %vm3027_vm8, %v2963_v20, %v3091_v33  ;;  %v6083_v35 = vsub.f32 %v6082_v59, %v5304_v18 }
 0x37e   : > { %v3156_v2 = vsel %vm3028_vm9, %v2964_v36, %v3092_v45  ;;  %v2965_v13 = vadd.f32 %v5462_v38, %v2894_v6  ;;  %v6085_v39 = vsub.f32 %v6084_v61, %v5304_v18  ;;  %v6086_v0 = vsub.f32 %v6025_v26, %v5304_v18  ;;  %v6097_v45 = vld [vmem:[#allocation18_spill] sm:$0xff] }
 0x37f   : > { %v2895_v46 = vmul.f32 %v5433_v22, %v2824_v47  ;;  %v2825_v50 = vmul.f32 %v5428_v30, %v6083_v35  ;;  %4029 = vst [vmem:[%s5943_s5 + $0x98] sm:$0xff] %v3949_v37   ;;  %v3954_v17 = vpack.c.bf16 %v3156_v2, %v3155_v48  ;;  %v6088_v60 = vsub.f32 %v6087_v54, %v5304_v18  ;;  %v6099_v48 = vld [vmem:[#allocation19_spill] sm:$0xff]  ;;  %v6101_v35 = vld [vmem:[#allocation20_spill] sm:$0xff] }
 0x380   : > { %v2826_v49 = vmul.f32 %v5428_v30, %v6085_v39  ;;  %v2827_v5 = vmul.f32 %v5428_v30, %v6086_v0  ;;  %vm3029_vm10 = vcmp.gt.f32.partialorder %v2965_v13, 0.0  ;;  %v3093_v32 = vmul.f32 0.2, %v2965_v13 }
 0x381   : > { %v2966_v28 = vadd.f32 %v5462_v38, %v2895_v46  ;;  %v2896_v10 = vmul.f32 %v5433_v22, %v2825_v50  ;;  %v2828_v41 = vmul.f32 %v5428_v30, %v6088_v60  ;;  %4030 = vst [vmem:[%s5943_s5 + $0xa0] sm:$0xff] %v3954_v17   ;;  %v6090_v63 = vsub.f32 %v6089_v8, %v5304_v18  ;;  %v6103_v17 = vld [vmem:[#allocation21_spill] sm:$0xff] }
 0x382   : > { %v2897_v26 = vmul.f32 %v5433_v22, %v2826_v49  ;;  %v2898_v3 = vmul.f32 %v5433_v22, %v2827_v5  ;;  %v3157_v52 = vsel %vm3029_vm10, %v2965_v13, %v3093_v32  ;;  %v6092_v21 = vsub.f32 %v6091_v57, %v5304_v18 }
 0x383   : > { %vm3030_vm11 = vcmp.gt.f32.partialorder %v2966_v28, 0.0  ;;  %v3094_v12 = vmul.f32 0.2, %v2966_v28  ;;  %v2967_v9 = vadd.f32 %v5462_v38, %v2896_v10  ;;  %v2899_v29 = vmul.f32 %v5433_v22, %v2828_v41 }
 0x384   : > { %v2968_v14 = vadd.f32 %v5462_v38, %v2897_v26  ;;  %v2969_v34 = vadd.f32 %v5462_v38, %v2898_v3  ;;  %v2829_v43 = vmul.f32 %v5428_v30, %v6090_v63  ;;  %v2830_v23 = vmul.f32 %v5428_v30, %v6092_v21  ;;  %v6109_v21 = vld [vmem:[#allocation24_spill] sm:$0xff] }
 0x385   : > { %v3158_v1 = vsel %vm3030_vm11, %v2966_v28, %v3094_v12  ;;  %vm3031_vm12 = vcmp.gt.f32.partialorder %v2967_v9, 0.0  ;;  %v3095_v55 = vmul.f32 0.2, %v2967_v9  ;;  %v2970_v19 = vadd.f32 %v5462_v38, %v2899_v29 }
 0x386   : > { %v3959_v4 = vpack.c.bf16 %v3158_v1, %v3157_v52  ;;  %vm3032_vm13 = vcmp.gt.f32.partialorder %v2968_v14, 0.0  ;;  %v3096_v7 = vmul.f32 0.2, %v2968_v14  ;;  %vm3033_vm14 = vcmp.gt.f32.partialorder %v2969_v34, 0.0 }
 0x387   : > { %v3159_v15 = vsel %vm3031_vm12, %v2967_v9, %v3095_v55  ;;  %vm3034_vm15 = vcmp.gt.f32.partialorder %v2970_v19, 0.0  ;;  %v3097_v62 = vmul.f32 0.2, %v2969_v34  ;;  %v3098_v16 = vmul.f32 0.2, %v2970_v19 }
 0x388   : > { %4031 = vst [vmem:[%s5943_s5 + $0xa8] sm:$0xff] %v3959_v4   ;;  %v3160_v44 = vsel %vm3032_vm13, %v2968_v14, %v3096_v7  ;;  %v2900_v40 = vmul.f32 %v5433_v22, %v2829_v43  ;;  %v6094_v31 = vsub.f32 %v6093_v51, %v5304_v18  ;;  %v6096_v27 = vsub.f32 %v6095_v53, %v5304_v18  ;;  %v6111_v51 = vld [vmem:[#allocation25_spill] sm:$0xff] }
 0x389   : > { %v3964_v25 = vpack.c.bf16 %v3160_v44, %v3159_v15  ;;  %v3161_v42 = vsel %vm3033_vm14, %v2969_v34, %v3097_v62  ;;  %v3162_v20 = vsel %vm3034_vm15, %v2970_v19, %v3098_v16  ;;  %v2901_v33 = vmul.f32 %v5433_v22, %v2830_v23  ;;  %v6105_v19 = vld [vmem:[#allocation22_spill] sm:$0xff]  ;;  %v6107_v15 = vld [vmem:[#allocation23_spill] sm:$0xff] }
 0x38a   : > { %v2831_v11 = vmul.f32 %v5428_v30, %v6094_v31  ;;  %v2832_v36 = vmul.f32 %v5428_v30, %v6096_v27  ;;  %v3969_v58 = vpack.c.bf16 %v3162_v20, %v3161_v42  ;;  %v2971_v24 = vadd.f32 %v5462_v38, %v2900_v40 }
 0x38b   : > { %4032 = vst [vmem:[%s5943_s5 + $0xb0] sm:$0xff] %v3964_v25   ;;  %v6098_v6 = vsub.f32 %v6097_v45, %v5304_v18  ;;  %v6100_v46 = vsub.f32 %v6099_v48, %v5304_v18  ;;  %v6102_v50 = vsub.f32 %v6101_v35, %v5304_v18  ;;  %v2972_v13 = vadd.f32 %v5462_v38, %v2901_v33  ;;  %v6115_v45 = vld [vmem:[#allocation27_spill] sm:$0xff] }
 0x38c   : > { %v2902_v47 = vmul.f32 %v5433_v22, %v2831_v11  ;;  %v2903_v56 = vmul.f32 %v5433_v22, %v2832_v36  ;;  %4033 = vst [vmem:[%s5943_s5 + $0xb8] sm:$0xff] %v3969_v58   ;;  %vm3035_vm0 = vcmp.gt.f32.partialorder %v2971_v24, 0.0  ;;  %v3099_v61 = vmul.f32 0.2, %v2971_v24 }
 0x38d   : > { %v2833_v37 = vmul.f32 %v5428_v30, %v6098_v6  ;;  %v2834_v59 = vmul.f32 %v5428_v30, %v6100_v46  ;;  %v2835_v2 = vmul.f32 %v5428_v30, %v6102_v50  ;;  %v6104_v28 = vsub.f32 %v6103_v17, %v5304_v18 }
 0x38e   : > { %v2973_v39 = vadd.f32 %v5462_v38, %v2902_v47  ;;  %v2974_v49 = vadd.f32 %v5462_v38, %v2903_v56  ;;  %vm3036_vm1 = vcmp.gt.f32.partialorder %v2972_v13, 0.0  ;;  %v3100_v54 = vmul.f32 0.2, %v2972_v13 }
 0x38f   : > { %v2904_v0 = vmul.f32 %v5433_v22, %v2833_v37  ;;  %v2905_v5 = vmul.f32 %v5433_v22, %v2834_v59  ;;  %v2836_v10 = vmul.f32 %v5428_v30, %v6104_v28  ;;  %v3163_v60 = vsel %vm3035_vm0, %v2971_v24, %v3099_v61  ;;  %v6113_v24 = vld [vmem:[#allocation26_spill] sm:$0xff] }
 0x390   : > { %vm3037_vm2 = vcmp.gt.f32.partialorder %v2973_v39, 0.0  ;;  %vm3038_vm3 = vcmp.gt.f32.partialorder %v2974_v49, 0.0  ;;  %v3101_v41 = vmul.f32 0.2, %v2973_v39  ;;  %v3102_v32 = vmul.f32 0.2, %v2974_v49 }
 0x391   : > { %v2975_v26 = vadd.f32 %v5462_v38, %v2904_v0  ;;  %v3164_v3 = vsel %vm3036_vm1, %v2972_v13, %v3100_v54  ;;  %v2976_v12 = vadd.f32 %v5462_v38, %v2905_v5  ;;  %v2906_v9 = vmul.f32 %v5433_v22, %v2835_v2 }
 0x392   : > { %v2907_v29 = vmul.f32 %v5433_v22, %v2836_v10  ;;  %v3974_v52 = vpack.c.bf16 %v3164_v3, %v3163_v60  ;;  %v3165_v14 = vsel %vm3037_vm2, %v2973_v39, %v3101_v41  ;;  %v3166_v34 = vsel %vm3038_vm3, %v2974_v49, %v3102_v32 }
 0x393   : > { %vm3039_vm4 = vcmp.gt.f32.partialorder %v2975_v26, 0.0  ;;  %v3979_v8 = vpack.c.bf16 %v3166_v34, %v3165_v14  ;;  %vm3040_vm5 = vcmp.gt.f32.partialorder %v2976_v12, 0.0  ;;  %v3103_v63 = vmul.f32 0.2, %v2975_v26  ;;  %v6119_v14 = vld [vmem:[#allocation29_spill] sm:$0xff] }
 0x394   : > { %v3104_v43 = vmul.f32 0.2, %v2976_v12  ;;  %4034 = vst [vmem:[%s5943_s5 + $0xc0] sm:$0xff] %v3974_v52   ;;  %v2977_v1 = vadd.f32 %v5462_v38, %v2906_v9  ;;  %v2978_v55 = vadd.f32 %v5462_v38, %v2907_v29  ;;  %v6106_v4 = vsub.f32 %v6105_v19, %v5304_v18 }
 0x395   : > { %v6108_v62 = vsub.f32 %v6107_v15, %v5304_v18  ;;  %4035 = vst [vmem:[%s5943_s5 + $0xc8] sm:$0xff] %v3979_v8   ;;  %v3167_v44 = vsel %vm3039_vm4, %v2975_v26, %v3103_v63  ;;  %v6110_v23 = vsub.f32 %v6109_v21, %v5304_v18  ;;  %v6112_v31 = vsub.f32 %v6111_v51, %v5304_v18  ;;  %v6117_v26 = vld [vmem:[#allocation28_spill] sm:$0xff] }
 0x396   : > { %v2837_v7 = vmul.f32 %v5428_v30, %v6106_v4  ;;  %v3168_v57 = vsel %vm3040_vm5, %v2976_v12, %v3104_v43  ;;  %vm3041_vm6 = vcmp.gt.f32.partialorder %v2977_v1, 0.0  ;;  %vm3042_vm7 = vcmp.gt.f32.partialorder %v2978_v55, 0.0 }
 0x397   : > { %v2838_v16 = vmul.f32 %v5428_v30, %v6108_v62  ;;  %v2839_v40 = vmul.f32 %v5428_v30, %v6110_v23  ;;  %v2840_v11 = vmul.f32 %v5428_v30, %v6112_v31  ;;  %v3984_v25 = vpack.c.bf16 %v3168_v57, %v3167_v44 }
 0x398   : > { %v3105_v42 = vmul.f32 0.2, %v2977_v1  ;;  %v3106_v20 = vmul.f32 0.2, %v2978_v55  ;;  %v2908_v53 = vmul.f32 %v5433_v22, %v2837_v7  ;;  %v6114_v47 = vsub.f32 %v6113_v24, %v5304_v18 }
 0x399   : > { %v2909_v27 = vmul.f32 %v5433_v22, %v2838_v16  ;;  %v2910_v36 = vmul.f32 %v5433_v22, %v2839_v40  ;;  %4036 = vst [vmem:[%s5943_s5 + $0xd0] sm:$0xff] %v3984_v25   ;;  %v2911_v33 = vmul.f32 %v5433_v22, %v2840_v11  ;;  %v6116_v6 = vsub.f32 %v6115_v45, %v5304_v18 }
 0x39a   : > { %v3169_v58 = vsel %vm3041_vm6, %v2977_v1, %v3105_v42  ;;  %v2841_v56 = vmul.f32 %v5428_v30, %v6114_v47  ;;  %v3170_v48 = vsel %vm3042_vm7, %v2978_v55, %v3106_v20  ;;  %v2979_v46 = vadd.f32 %v5462_v38, %v2908_v53 }
 0x39b   : > { %v2842_v37 = vmul.f32 %v5428_v30, %v6116_v6  ;;  %v2980_v59 = vadd.f32 %v5462_v38, %v2909_v27  ;;  %v2981_v35 = vadd.f32 %v5462_v38, %v2910_v36  ;;  %v3989_v50 = vpack.c.bf16 %v3170_v48, %v3169_v58 }
 0x39c   : > { %v2982_v2 = vadd.f32 %v5462_v38, %v2911_v33  ;;  %v2912_v13 = vmul.f32 %v5433_v22, %v2841_v56  ;;  %vm3043_vm8 = vcmp.gt.f32.partialorder %v2979_v46, 0.0  ;;  %v3107_v39 = vmul.f32 0.2, %v2979_v46 }
 0x39d   : > { %v2913_v61 = vmul.f32 %v5433_v22, %v2842_v37  ;;  %vm3044_vm9 = vcmp.gt.f32.partialorder %v2980_v59, 0.0  ;;  %v3108_v49 = vmul.f32 0.2, %v2980_v59  ;;  %4037 = vst [vmem:[%s5943_s5 + $0xd8] sm:$0xff] %v3989_v50   ;;  %vm3045_vm10 = vcmp.gt.f32.partialorder %v2981_v35, 0.0 }
 0x39e   : > { %vm3046_vm11 = vcmp.gt.f32.partialorder %v2982_v2, 0.0  ;;  %v3109_v0 = vmul.f32 0.2, %v2981_v35  ;;  %v3110_v5 = vmul.f32 0.2, %v2982_v2  ;;  %v3171_v17 = vsel %vm3043_vm8, %v2979_v46, %v3107_v39 }
 0x39f   : > { %v3172_v28 = vsel %vm3044_vm9, %v2980_v59, %v3108_v49  ;;  %v2983_v10 = vadd.f32 %v5462_v38, %v2912_v13  ;;  %v2984_v54 = vadd.f32 %v5462_v38, %v2913_v61  ;;  %v6118_v3 = vsub.f32 %v6117_v26, %v5304_v18 }
 0x3a0   : > { %v3994_v60 = vpack.c.bf16 %v3172_v28, %v3171_v17  ;;  %v3173_v41 = vsel %vm3045_vm10, %v2981_v35, %v3109_v0  ;;  %v3174_v32 = vsel %vm3046_vm11, %v2982_v2, %v3110_v5  ;;  %v6120_v34 = vsub.f32 %v6119_v14, %v5304_v18 }
 0x3a1   : > { %v2843_v12 = vmul.f32 %v5428_v30, %v6118_v3  ;;  %v3999_v9 = vpack.c.bf16 %v3174_v32, %v3173_v41  ;;  %vm3047_vm12 = vcmp.gt.f32.partialorder %v2983_v10, 0.0  ;;  %vm3048_vm13 = vcmp.gt.f32.partialorder %v2984_v54, 0.0 }
 0x3a2   : > { %v3111_v29 = vmul.f32 0.2, %v2983_v10  ;;  %4038 = vst [vmem:[%s5943_s5 + $0xe0] sm:$0xff] %v3994_v60   ;;  %v3112_v52 = vmul.f32 0.2, %v2984_v54  ;;  %v2844_v8 = vmul.f32 %v5428_v30, %v6120_v34 }
 0x3a3   : > { %v2914_v63 = vmul.f32 %v5433_v22, %v2843_v12  ;;  %4039 = vst [vmem:[%s5943_s5 + $0xe8] sm:$0xff] %v3999_v9  }
 0x3a4   : > { %v3175_v43 = vsel %vm3047_vm12, %v2983_v10, %v3111_v29  ;;  %v3176_v1 = vsel %vm3048_vm13, %v2984_v54, %v3112_v52  ;;  %v2915_v55 = vmul.f32 %v5433_v22, %v2844_v8 }
 0x3a5   : > { %v2985_v19 = vadd.f32 %v5462_v38, %v2914_v63  ;;  %v4004_v4 = vpack.c.bf16 %v3176_v1, %v3175_v43 }
 0x3a6   : > { %v2986_v7 = vadd.f32 %v5462_v38, %v2915_v55 }
 0x3a7   : > { %vm3049_vm14 = vcmp.gt.f32.partialorder %v2985_v19, 0.0  ;;  %v3113_v15 = vmul.f32 0.2, %v2985_v19  ;;  %4040 = vst [vmem:[%s5943_s5 + $0xf0] sm:$0xff] %v4004_v4  }
 0x3a8   : > { %vm3050_vm15 = vcmp.gt.f32.partialorder %v2986_v7, 0.0  ;;  %v3114_v18 = vmul.f32 0.2, %v2986_v7 }
 0x3a9   : > { %v3177_v30 = vsel %vm3049_vm14, %v2985_v19, %v3113_v15 }
 0x3aa   : > { %v3178_v62 = vsel %vm3050_vm15, %v2986_v7, %v3114_v18 }
 0x3ab   : > { %v4009_v16 = vpack.c.bf16 %v3178_v62, %v3177_v30 }
 0x3ad   : > { %4041 = vst [vmem:[%s5943_s5 + $0xf8] sm:$0xff] %v4009_v16  }
 0x3ae PF: > { %p12_p11 = scmp.ge.s32.totalorder %s4369_s22, 4   ;;  %s6121_s18 = smov %s4312_s19 }
 0x3af   : > { %s6122_s19 = smov %s4378_s25  ;;  %s6123_s20 = smov %s4369_s22 }
 0x3b0   :  { %14 = sbr.rel (!%p12_p11) target bundleno = 2 (0x2), region = 105 }

// kernel: d_forward.6
= control target key start
LH: loop header
LB: loop body
LE: loop exit
PB: predicated region body
PF: predicated region fallthrough
CT: control target
= control target key end

     0   :  { %s2239_s18 = smov 0   ;;  %s2241_s19 = smov 0   ;;  %s2977_s0 = inlined_call_operand.vmem [shape: bf16[128,2048], index: 0, kind: input, shape index: {}]   ;;  %s2978_s1 = inlined_call_operand.vmem [shape: bf16[2048,256], index: 1, kind: input, shape index: {}]   ;;  %s2979_s2 = inlined_call_operand.vmem [shape: f32[1,256], index: 2, kind: input, shape index: {}]   ;;  %s2980_s3 = inlined_call_operand.vmem [shape: f32[1,256], index: 3, kind: input, shape index: {}]   ;;  %s2981_s4 = inlined_call_operand.vmem [shape: f32[1,256], index: 4, kind: input, shape index: {}]   ;;  %s2982_s5 = inlined_call_operand.vmem [shape: bf16[128,256], index: 5, kind: output, shape index: {}]  }
   0x1   :  { %s2243_s20 = smov 0  }
   0x2 LB: > { %s2255_s21 = sadd.s32 4294967295, %s2206_s20   ;;  %s2258_s22 = sadd.s32 1, %s2206_s20   ;;  %s2206_s20 = sphi %s2243_s20, %s3009_s20   ;;  %s2202_s19 = sphi %s2241_s19, %s3008_s19   ;;  %s2198_s18 = sphi %s2239_s18, %s3007_s18  }
   0x3   : > { %s19_s23 = ssub.s32 %s2206_s20, %s2258_s22  ;;  %s22_s24 = sadd.s32 1, %s2202_s19 }
   0x4   : > { %p20_p0 = scmp.eq.s32.totalorder %s19_s23, 0  ;;  %p29_p1 = scmp.ne.s32.totalorder %s2202_s19, %s2198_s18 }
   0x5   : > { %p30_p2 = scmp.eq.s32.totalorder %s2206_s20, 0  ;;  %p1868_p4 = scmp.ge.s32.totalorder %s2206_s20, 4 }
   0x6   : > { %s2267_s25 = scalar_select %p20_p0, %s2202_s19, %s22_s24  }
   0x7   : > { %p31_p3 = por %p30_p2, %p29_p1  ;;  %174 = sbr.rel (%p1868_p4) target bundleno = 32 (0x20), region = 28 }
   0xc   : > { %177 = sbr.rel (!%p31_p3) target bundleno = 32 (0x20), region = 32  ;;  %s179_s26 = sand.u32 (%p31_p3), 1, %s2202_s19  }
   0xd   : > { %s1993_s27 = sshll.u32 (%p31_p3), %s2206_s20, 4  ;;  %s1869_s28 = sshll.u32 (%p31_p3), %s179_s26, 8 }
   0xe   : > { %s2275_s6 = scalar_lea.vmem (%p31_p3), %s2977_s0, %s1993_s27  ;;  %s2280_s7 = scalar_lea.vmem (%p31_p3), [#allocation3], %s1869_s28 }
   0xf   : > { %v197_v0 = vld [vmem:[%s2275_s6] sm:$0xff] (%p31_p3)  ;;  %v199_v1 = vld [vmem:[%s2275_s6 + $0x8] sm:$0xff] (%p31_p3) }
  0x10   : > { %v201_v2 = vld [vmem:[%s2275_s6 + $0x40] sm:$0xff] (%p31_p3)  ;;  %198 = vst [vmem:[%s2280_s7] sm:$0xff] (%p31_p3), %v197_v0  ;;  %200 = vst [vmem:[%s2280_s7 + $0x8] sm:$0xff] (%p31_p3), %v199_v1  ;;  %v203_v3 = vld [vmem:[%s2275_s6 + $0x48] sm:$0xff] (%p31_p3) }
  0x11   : > { %202 = vst [vmem:[%s2280_s7 + $0x10] sm:$0xff] %v201_v2  ;;  %v205_v4 = vld [vmem:[%s2275_s6 + $0x80] sm:$0xff]  ;;  %v207_v5 = vld [vmem:[%s2275_s6 + $0x88] sm:$0xff]  ;;  %204 = vst [vmem:[%s2280_s7 + $0x18] sm:$0xff] %v203_v3 }
  0x12   : > { %206 = vst [vmem:[%s2280_s7 + $0x20] sm:$0xff] %v205_v4  ;;  %208 = vst [vmem:[%s2280_s7 + $0x28] sm:$0xff] %v207_v5  ;;  %v209_v6 = vld [vmem:[%s2275_s6 + $0xc0] sm:$0xff]  ;;  %v211_v7 = vld [vmem:[%s2275_s6 + $0xc8] sm:$0xff] }
  0x13   : > { %v213_v8 = vld [vmem:[%s2275_s6 + $0x100] sm:$0xff]  ;;  %210 = vst [vmem:[%s2280_s7 + $0x30] sm:$0xff] %v209_v6  ;;  %212 = vst [vmem:[%s2280_s7 + $0x38] sm:$0xff] %v211_v7  ;;  %v215_v9 = vld [vmem:[%s2275_s6 + $0x108] sm:$0xff] }
  0x14   : > { %214 = vst [vmem:[%s2280_s7 + $0x40] sm:$0xff] %v213_v8  ;;  %v217_v10 = vld [vmem:[%s2275_s6 + $0x140] sm:$0xff]  ;;  %v219_v11 = vld [vmem:[%s2275_s6 + $0x148] sm:$0xff]  ;;  %216 = vst [vmem:[%s2280_s7 + $0x48] sm:$0xff] %v215_v9 }
  0x15   : > { %218 = vst [vmem:[%s2280_s7 + $0x50] sm:$0xff] %v217_v10  ;;  %220 = vst [vmem:[%s2280_s7 + $0x58] sm:$0xff] %v219_v11  ;;  %v221_v12 = vld [vmem:[%s2275_s6 + $0x180] sm:$0xff]  ;;  %v223_v13 = vld [vmem:[%s2275_s6 + $0x188] sm:$0xff] }
  0x16   : > { %v225_v14 = vld [vmem:[%s2275_s6 + $0x1c0] sm:$0xff]  ;;  %222 = vst [vmem:[%s2280_s7 + $0x60] sm:$0xff] %v221_v12  ;;  %224 = vst [vmem:[%s2280_s7 + $0x68] sm:$0xff] %v223_v13  ;;  %v227_v15 = vld [vmem:[%s2275_s6 + $0x1c8] sm:$0xff] }
  0x17   : > { %226 = vst [vmem:[%s2280_s7 + $0x70] sm:$0xff] %v225_v14  ;;  %v229_v16 = vld [vmem:[%s2275_s6 + $0x200] sm:$0xff]  ;;  %v231_v17 = vld [vmem:[%s2275_s6 + $0x208] sm:$0xff]  ;;  %228 = vst [vmem:[%s2280_s7 + $0x78] sm:$0xff] %v227_v15 }
  0x18   : > { %230 = vst [vmem:[%s2280_s7 + $0x80] sm:$0xff] %v229_v16  ;;  %232 = vst [vmem:[%s2280_s7 + $0x88] sm:$0xff] %v231_v17  ;;  %v233_v18 = vld [vmem:[%s2275_s6 + $0x240] sm:$0xff]  ;;  %v235_v19 = vld [vmem:[%s2275_s6 + $0x248] sm:$0xff] }
  0x19   : > { %v237_v20 = vld [vmem:[%s2275_s6 + $0x280] sm:$0xff]  ;;  %234 = vst [vmem:[%s2280_s7 + $0x90] sm:$0xff] %v233_v18  ;;  %236 = vst [vmem:[%s2280_s7 + $0x98] sm:$0xff] %v235_v19  ;;  %v239_v21 = vld [vmem:[%s2275_s6 + $0x288] sm:$0xff] }
  0x1a   : > { %238 = vst [vmem:[%s2280_s7 + $0xa0] sm:$0xff] %v237_v20  ;;  %v241_v22 = vld [vmem:[%s2275_s6 + $0x2c0] sm:$0xff]  ;;  %v243_v23 = vld [vmem:[%s2275_s6 + $0x2c8] sm:$0xff]  ;;  %240 = vst [vmem:[%s2280_s7 + $0xa8] sm:$0xff] %v239_v21 }
  0x1b   : > { %242 = vst [vmem:[%s2280_s7 + $0xb0] sm:$0xff] %v241_v22  ;;  %244 = vst [vmem:[%s2280_s7 + $0xb8] sm:$0xff] %v243_v23  ;;  %v245_v24 = vld [vmem:[%s2275_s6 + $0x300] sm:$0xff]  ;;  %v247_v25 = vld [vmem:[%s2275_s6 + $0x308] sm:$0xff] }
  0x1c   : > { %v249_v26 = vld [vmem:[%s2275_s6 + $0x340] sm:$0xff]  ;;  %246 = vst [vmem:[%s2280_s7 + $0xc0] sm:$0xff] %v245_v24  ;;  %248 = vst [vmem:[%s2280_s7 + $0xc8] sm:$0xff] %v247_v25  ;;  %v251_v27 = vld [vmem:[%s2275_s6 + $0x348] sm:$0xff] }
  0x1d   : > { %250 = vst [vmem:[%s2280_s7 + $0xd0] sm:$0xff] %v249_v26  ;;  %v253_v28 = vld [vmem:[%s2275_s6 + $0x380] sm:$0xff]  ;;  %v255_v29 = vld [vmem:[%s2275_s6 + $0x388] sm:$0xff]  ;;  %252 = vst [vmem:[%s2280_s7 + $0xd8] sm:$0xff] %v251_v27 }
  0x1e   : > { %254 = vst [vmem:[%s2280_s7 + $0xe0] sm:$0xff] %v253_v28  ;;  %256 = vst [vmem:[%s2280_s7 + $0xe8] sm:$0xff] %v255_v29  ;;  %v257_v30 = vld [vmem:[%s2275_s6 + $0x3c0] sm:$0xff]  ;;  %v259_v31 = vld [vmem:[%s2275_s6 + $0x3c8] sm:$0xff] }
  0x1f   : > { %258 = vst [vmem:[%s2280_s7 + $0xf0] sm:$0xff] %v257_v30  ;;  %260 = vst [vmem:[%s2280_s7 + $0xf8] sm:$0xff] %v259_v31 }
  0x20 PF: > { %p1872_p5 = scmp.ge.s32.totalorder %s2206_s20, 1  ;;  %p275_p6 = scmp.lt.s32.totalorder %s2206_s20, 5 }
  0x22   : > { %p276_p7 = pnand %p1872_p5, %p275_p6 }
  0x23   : > { %s282_s8 = sand.u32 (!%p276_p7), 1, %s2198_s18   ;;  %s1874_s9 = sshll.u32 (!%p276_p7), %s2255_s21, 6 }
  0x24   : > { %279 = sbr.rel (%p276_p7) target bundleno = 528 (0x210), region = 59  ;;  %s1873_s10 = sshll.u32 (!%p276_p7), %s282_s8, 8 }
  0x25   : > { %p312_p8 = scmp.lt.s32.totalorder (!%p276_p7), %s1874_s9, 255  ;;  %s2352_s15 = scalar_lea.vmem (!%p276_p7), [#allocation3], %s1873_s10 }
  0x26   : > { %p1877_p9 = scmp.ne.s32.totalorder (!%p276_p7), %s2255_s21, 0 }
  0x29   : > { %s3011_s9 = smov (!%p312_p8, %s1874_s9), 255  ;;  %321 = sbr.rel (%p1877_p9) target bundleno = 63 (0x3f), region = 67 }
  0x2a   : > { %s1994_s11 = sshll.u32 %s3011_s9, 3 }
  0x2b   : > { %s2350_s14 = scalar_lea.vmem %s2978_s1, %s1994_s11 }
  0x2e   : > { %v2208_v32 = vmov 0.0  }
  0x2f   : > { %322 = vst [vmem:[#allocation2 + $0xb0] sm:$0xff] %v2208_v32  ;;  %323 = vst [vmem:[#allocation2] sm:$0xff] %v2208_v32 }
  0x30   : > { %324 = vst [vmem:[#allocation2 + $0xd8] sm:$0xff] %v2208_v32  ;;  %325 = vst [vmem:[#allocation2 + $0x18] sm:$0xff] %v2208_v32 }
  0x31   : > { %326 = vst [vmem:[#allocation2 + $0x50] sm:$0xff] %v2208_v32  ;;  %327 = vst [vmem:[#allocation2 + $0x68] sm:$0xff] %v2208_v32 }
  0x32   : > { %328 = vst [vmem:[#allocation2 + $0x30] sm:$0xff] %v2208_v32  ;;  %329 = vst [vmem:[#allocation2 + $0x48] sm:$0xff] %v2208_v32 }
  0x33   : > { %330 = vst [vmem:[#allocation2 + $0x80] sm:$0xff] %v2208_v32  ;;  %331 = vst [vmem:[#allocation2 + $0x88] sm:$0xff] %v2208_v32 }
  0x34   : > { %332 = vst [vmem:[#allocation2 + $0xe8] sm:$0xff] %v2208_v32  ;;  %333 = vst [vmem:[#allocation2 + $0xb8] sm:$0xff] %v2208_v32 }
  0x35   : > { %334 = vst [vmem:[#allocation2 + $0x60] sm:$0xff] %v2208_v32  ;;  %335 = vst [vmem:[#allocation2 + $0xf0] sm:$0xff] %v2208_v32 }
  0x36   : > { %336 = vst [vmem:[#allocation2 + $0x8] sm:$0xff] %v2208_v32  ;;  %337 = vst [vmem:[#allocation2 + $0x78] sm:$0xff] %v2208_v32 }
  0x37   : > { %338 = vst [vmem:[#allocation2 + $0x38] sm:$0xff] %v2208_v32  ;;  %339 = vst [vmem:[#allocation2 + $0x58] sm:$0xff] %v2208_v32 }
  0x38   : > { %340 = vst [vmem:[#allocation2 + $0x40] sm:$0xff] %v2208_v32  ;;  %341 = vst [vmem:[#allocation2 + $0xc8] sm:$0xff] %v2208_v32 }
  0x39   : > { %342 = vst [vmem:[#allocation2 + $0xe0] sm:$0xff] %v2208_v32  ;;  %343 = vst [vmem:[#allocation2 + $0x90] sm:$0xff] %v2208_v32 }
  0x3a   : > { %344 = vst [vmem:[#allocation2 + $0x70] sm:$0xff] %v2208_v32  ;;  %345 = vst [vmem:[#allocation2 + $0xc0] sm:$0xff] %v2208_v32 }
  0x3b   : > { %346 = vst [vmem:[#allocation2 + $0xa8] sm:$0xff] %v2208_v32  ;;  %347 = vst [vmem:[#allocation2 + $0xd0] sm:$0xff] %v2208_v32 }
  0x3c   : > { %348 = vst [vmem:[#allocation2 + $0x10] sm:$0xff] %v2208_v32  ;;  %349 = vst [vmem:[#allocation2 + $0x28] sm:$0xff] %v2208_v32 }
  0x3d   : > { %350 = vst [vmem:[#allocation2 + $0xa0] sm:$0xff] %v2208_v32  ;;  %351 = vst [vmem:[#allocation2 + $0xf8] sm:$0xff] %v2208_v32 }
  0x3e   : > { %352 = vst [vmem:[#allocation2 + $0x20] sm:$0xff] %v2208_v32  ;;  %353 = vst [vmem:[#allocation2 + $0x98] sm:$0xff] %v2208_v32 }
  0x3f PF: > { %v2036_v33 = vld [vmem:[%s2350_s14 + $0x74] ss:$8 sps:$4 sm:$0xff]   ;;  %v2040_v35 = vld [vmem:[%s2350_s14 + $0x70] ss:$8 sps:$4 sm:$0xff]   ;;  %v2042_v37 = vld [vmem:[%s2350_s14 + $0x64] ss:$8 sps:$4 sm:$0xff]  }
  0x40   : > { %v2038_v34 = vld [vmem:[%s2350_s14 + $0x174] ss:$8 sps:$4 sm:$0xff]   ;;  %962 = vmatprep.subr.bf16.mxu0 %v2036_v33  ;;  %v2041_v36 = vld [vmem:[%s2350_s14 + $0x170] ss:$8 sps:$4 sm:$0xff]   ;;  %v2044_v38 = vld [vmem:[%s2350_s14 + $0x164] ss:$8 sps:$4 sm:$0xff]  }
  0x41   : > { %1075 = vmatprep.subr.bf16.mxu1 %v2038_v34  ;;  %963 = vmatpush1.bf16.msra.mxu0 %v2040_v35  ;;  %v2046_v39 = vld [vmem:[%s2350_s14 + $0x60] ss:$8 sps:$4 sm:$0xff]   ;;  %v2048_v41 = vld [vmem:[%s2350_s14 + $0x54] ss:$8 sps:$4 sm:$0xff]   ;;  %v2052_v43 = vld [vmem:[%s2350_s14 + $0x50] ss:$8 sps:$4 sm:$0xff]  }
  0x42   : > { %1076 = vmatpush1.bf16.msra.mxu1 %v2041_v36  ;;  %964 = vmatprep.subr.bf16.mxu0 %v2042_v37  ;;  %v2047_v40 = vld [vmem:[%s2350_s14 + $0x160] ss:$8 sps:$4 sm:$0xff]   ;;  %v2050_v42 = vld [vmem:[%s2350_s14 + $0x154] ss:$8 sps:$4 sm:$0xff]   ;;  %v2053_v44 = vld [vmem:[%s2350_s14 + $0x150] ss:$8 sps:$4 sm:$0xff]  }
  0x43   : > { %1077 = vmatprep.subr.bf16.mxu1 %v2044_v38  ;;  %v2054_v45 = vld [vmem:[%s2350_s14 + $0x44] ss:$8 sps:$4 sm:$0xff]   ;;  %v2058_v47 = vld [vmem:[%s2350_s14 + $0x40] ss:$8 sps:$4 sm:$0xff]   ;;  %v2060_v49 = vld [vmem:[%s2350_s14 + $0x34] ss:$8 sps:$4 sm:$0xff]  }
  0x44   : > { %v2056_v46 = vld [vmem:[%s2350_s14 + $0x144] ss:$8 sps:$4 sm:$0xff]   ;;  %v2059_v48 = vld [vmem:[%s2350_s14 + $0x140] ss:$8 sps:$4 sm:$0xff]   ;;  %v2062_v50 = vld [vmem:[%s2350_s14 + $0x134] ss:$8 sps:$4 sm:$0xff]  }
  0x45   : > { %965 = vmatpush1.bf16.msra.mxu0 %v2046_v39  ;;  %v2064_v51 = vld [vmem:[%s2350_s14 + $0x30] ss:$8 sps:$4 sm:$0xff]   ;;  %v2066_v53 = vld [vmem:[%s2350_s14 + $0x24] ss:$8 sps:$4 sm:$0xff]   ;;  %v2070_v55 = vld [vmem:[%s2350_s14 + $0x20] ss:$8 sps:$4 sm:$0xff]  }
  0x46   : > { %1078 = vmatpush1.bf16.msra.mxu1 %v2047_v40  ;;  %966 = vmatprep.subr.bf16.mxu0 %v2048_v41  ;;  %v2065_v52 = vld [vmem:[%s2350_s14 + $0x130] ss:$8 sps:$4 sm:$0xff]   ;;  %v2068_v54 = vld [vmem:[%s2350_s14 + $0x124] ss:$8 sps:$4 sm:$0xff]   ;;  %v2071_v56 = vld [vmem:[%s2350_s14 + $0x120] ss:$8 sps:$4 sm:$0xff]  }
  0x47   : > { %1079 = vmatprep.subr.bf16.mxu1 %v2050_v42  ;;  %v2072_v57 = vld [vmem:[%s2350_s14 + $0x14] ss:$8 sps:$4 sm:$0xff]   ;;  %v2076_v59 = vld [vmem:[%s2350_s14 + $0x10] ss:$8 sps:$4 sm:$0xff]   ;;  %v2078_v61 = vld [vmem:[%s2350_s14 + $0x4] ss:$8 sps:$4 sm:$0xff]  }
  0x48   : > { %v2074_v58 = vld [vmem:[%s2350_s14 + $0x114] ss:$8 sps:$4 sm:$0xff]   ;;  %v2077_v60 = vld [vmem:[%s2350_s14 + $0x110] ss:$8 sps:$4 sm:$0xff]   ;;  %v2080_v62 = vld [vmem:[%s2350_s14 + $0x104] ss:$8 sps:$4 sm:$0xff]  }
  0x49   : > { %967 = vmatpush1.bf16.msra.mxu0 %v2052_v43  ;;  %v2082_v63 = vld [vmem:[%s2350_s14] ss:$8 sps:$4 sm:$0xff]   ;;  %v2084_v1 = vld [vmem:[%s2350_s14 + $0xf4] ss:$8 sps:$4 sm:$0xff]   ;;  %v2088_v3 = vld [vmem:[%s2350_s14 + $0xf0] ss:$8 sps:$4 sm:$0xff]  }
  0x4a   : > { %1080 = vmatpush1.bf16.msra.mxu1 %v2053_v44  ;;  %968 = vmatprep.subr.bf16.mxu0 %v2054_v45  ;;  %v2083_v0 = vld [vmem:[%s2350_s14 + $0x100] ss:$8 sps:$4 sm:$0xff]   ;;  %v2086_v2 = vld [vmem:[%s2350_s14 + $0x1f4] ss:$8 sps:$4 sm:$0xff]   ;;  %v2089_v4 = vld [vmem:[%s2350_s14 + $0x1f0] ss:$8 sps:$4 sm:$0xff]  }
  0x4b   : > { %1081 = vmatprep.subr.bf16.mxu1 %v2056_v46  ;;  %v2090_v5 = vld [vmem:[%s2350_s14 + $0xe4] ss:$8 sps:$4 sm:$0xff]   ;;  %v2094_v7 = vld [vmem:[%s2350_s14 + $0xe0] ss:$8 sps:$4 sm:$0xff]   ;;  %v2096_v9 = vld [vmem:[%s2350_s14 + $0xd4] ss:$8 sps:$4 sm:$0xff]  }
  0x4c   : > { %v2092_v6 = vld [vmem:[%s2350_s14 + $0x1e4] ss:$8 sps:$4 sm:$0xff]   ;;  %v2095_v8 = vld [vmem:[%s2350_s14 + $0x1e0] ss:$8 sps:$4 sm:$0xff]   ;;  %v2098_v10 = vld [vmem:[%s2350_s14 + $0x1d4] ss:$8 sps:$4 sm:$0xff]  }
  0x4d   : > { %969 = vmatpush1.bf16.msra.mxu0 %v2058_v47  ;;  %v2100_v11 = vld [vmem:[%s2350_s14 + $0xd0] ss:$8 sps:$4 sm:$0xff]   ;;  %v2102_v13 = vld [vmem:[%s2350_s14 + $0xc4] ss:$8 sps:$4 sm:$0xff]   ;;  %v2106_v15 = vld [vmem:[%s2350_s14 + $0xc0] ss:$8 sps:$4 sm:$0xff]  }
  0x4e   : > { %1082 = vmatpush1.bf16.msra.mxu1 %v2059_v48  ;;  %970 = vmatprep.subr.bf16.mxu0 %v2060_v49  ;;  %v2101_v12 = vld [vmem:[%s2350_s14 + $0x1d0] ss:$8 sps:$4 sm:$0xff]   ;;  %v2104_v14 = vld [vmem:[%s2350_s14 + $0x1c4] ss:$8 sps:$4 sm:$0xff]   ;;  %v2107_v16 = vld [vmem:[%s2350_s14 + $0x1c0] ss:$8 sps:$4 sm:$0xff]  }
  0x4f   : > { %1083 = vmatprep.subr.bf16.mxu1 %v2062_v50  ;;  %v2108_v17 = vld [vmem:[%s2350_s14 + $0xb4] ss:$8 sps:$4 sm:$0xff]   ;;  %v2112_v21 = vld [vmem:[%s2350_s14 + $0xb0] ss:$8 sps:$4 sm:$0xff]   ;;  %v2114_v23 = vld [vmem:[%s2350_s14 + $0xa4] ss:$8 sps:$4 sm:$0xff]  }
  0x50   : > { %v2134_v18 = vld [vmem:[%s2352_s15 + $0x4] ss:$16 sps:$4 sm:$0xff]   ;;  %v2137_v20 = vld [vmem:[%s2352_s15 + $0xc] ss:$16 sps:$4 sm:$0xff]   ;;  %v2113_v22 = vld [vmem:[%s2350_s14 + $0x1b0] ss:$8 sps:$4 sm:$0xff]  }
  0x51   : > { %971 = vmatpush1.bf16.msra.mxu0 %v2064_v51  ;;  %v2110_v19 = vld [vmem:[%s2350_s14 + $0x1b4] ss:$8 sps:$4 sm:$0xff]   ;;  %994 = vmatprep.mubr.bf16.mxu0 %v2134_v18  ;;  %v2116_v24 = vld [vmem:[%s2350_s14 + $0x1a4] ss:$8 sps:$4 sm:$0xff]   ;;  %v2118_v25 = vld [vmem:[%s2350_s14 + $0xa0] ss:$8 sps:$4 sm:$0xff]  }
  0x52   : > { %1084 = vmatpush1.bf16.msra.mxu1 %v2065_v52  ;;  %972 = vmatprep.subr.bf16.mxu0 %v2066_v53  ;;  %v2119_v26 = vld [vmem:[%s2350_s14 + $0x1a0] ss:$8 sps:$4 sm:$0xff]   ;;  %v2120_v27 = vld [vmem:[%s2350_s14 + $0x94] ss:$8 sps:$4 sm:$0xff]   ;;  %v2124_v29 = vld [vmem:[%s2350_s14 + $0x90] ss:$8 sps:$4 sm:$0xff]  }
  0x53   : > { %1085 = vmatprep.subr.bf16.mxu1 %v2068_v54  ;;  %1107 = vmatprep.mubr.bf16.mxu1 %v2137_v20  ;;  %v2122_v28 = vld [vmem:[%s2350_s14 + $0x194] ss:$8 sps:$4 sm:$0xff]   ;;  %v2125_v30 = vld [vmem:[%s2350_s14 + $0x190] ss:$8 sps:$4 sm:$0xff]   ;;  %v2126_v31 = vld [vmem:[%s2350_s14 + $0x84] ss:$8 sps:$4 sm:$0xff]  }
  0x54   : > { %v2128_v32 = vld [vmem:[%s2350_s14 + $0x184] ss:$8 sps:$4 sm:$0xff]   ;;  %v2130_v33 = vld [vmem:[%s2350_s14 + $0x80] ss:$8 sps:$4 sm:$0xff]   ;;  %p1974_p10 = scmp.ne.s32.totalorder %s2255_s21, 3 }
  0x55   : > { %973 = vmatpush1.bf16.msra.mxu0 %v2070_v55  ;;  %v2131_v34 = vld [vmem:[%s2350_s14 + $0x180] ss:$8 sps:$4 sm:$0xff]   ;;  %v2138_v37 = vld [vmem:[%s2352_s15 + $0x24] ss:$16 sps:$4 sm:$0xff]   ;;  %v2140_v38 = vld [vmem:[%s2352_s15 + $0x2c] ss:$16 sps:$4 sm:$0xff]  }
  0x56   : > { %1086 = vmatpush1.bf16.msra.mxu1 %v2071_v56  ;;  %974 = vmatprep.subr.bf16.mxu0 %v2072_v57  ;;  %v2132_v35 = vld [vmem:[%s2352_s15] ss:$16 sps:$4 sm:$0xff]   ;;  %v2135_v36 = vld [vmem:[%s2352_s15 + $0x8] ss:$16 sps:$4 sm:$0xff]   ;;  %v2144_v41 = vld [vmem:[%s2352_s15 + $0x44] ss:$16 sps:$4 sm:$0xff]  }
  0x57   : > { %1087 = vmatprep.subr.bf16.mxu1 %v2074_v58  ;;  %v2142_v39 = vld [vmem:[%s2352_s15 + $0x20] ss:$16 sps:$4 sm:$0xff]   ;;  %v2143_v40 = vld [vmem:[%s2352_s15 + $0x28] ss:$16 sps:$4 sm:$0xff]   ;;  %v2146_v42 = vld [vmem:[%s2352_s15 + $0x4c] ss:$16 sps:$4 sm:$0xff]  }
  0x58   : > { %v2148_v43 = vld [vmem:[%s2352_s15 + $0x40] ss:$16 sps:$4 sm:$0xff]   ;;  %v2149_v44 = vld [vmem:[%s2352_s15 + $0x48] ss:$16 sps:$4 sm:$0xff]   ;;  %v2150_v45 = vld [vmem:[%s2352_s15 + $0x64] ss:$16 sps:$4 sm:$0xff]  }
  0x59   : > { %975 = vmatpush1.bf16.msra.mxu0 %v2076_v59  ;;  %v2152_v46 = vld [vmem:[%s2352_s15 + $0x6c] ss:$16 sps:$4 sm:$0xff]   ;;  %v2154_v47 = vld [vmem:[%s2352_s15 + $0x60] ss:$16 sps:$4 sm:$0xff]   ;;  %v2155_v48 = vld [vmem:[%s2352_s15 + $0x68] ss:$16 sps:$4 sm:$0xff]  }
  0x5a   : > { %1088 = vmatpush1.bf16.msra.mxu1 %v2077_v60  ;;  %976 = vmatprep.subr.bf16.mxu0 %v2078_v61  ;;  %v2156_v49 = vld [vmem:[%s2352_s15 + $0x84] ss:$16 sps:$4 sm:$0xff]   ;;  %v2158_v50 = vld [vmem:[%s2352_s15 + $0x8c] ss:$16 sps:$4 sm:$0xff]   ;;  %v2160_v51 = vld [vmem:[%s2352_s15 + $0x80] ss:$16 sps:$4 sm:$0xff]  }
  0x5b   : > { %1089 = vmatprep.subr.bf16.mxu1 %v2080_v62  ;;  %v2161_v52 = vld [vmem:[%s2352_s15 + $0x88] ss:$16 sps:$4 sm:$0xff]   ;;  %v2162_v53 = vld [vmem:[%s2352_s15 + $0xa4] ss:$16 sps:$4 sm:$0xff]   ;;  %v2164_v54 = vld [vmem:[%s2352_s15 + $0xac] ss:$16 sps:$4 sm:$0xff]  }
  0x5c   : > { %v2166_v55 = vld [vmem:[%s2352_s15 + $0xa0] ss:$16 sps:$4 sm:$0xff]   ;;  %v2167_v56 = vld [vmem:[%s2352_s15 + $0xa8] ss:$16 sps:$4 sm:$0xff]   ;;  %v2168_v57 = vld [vmem:[%s2352_s15 + $0xc4] ss:$16 sps:$4 sm:$0xff]  }
  0x5d   : > { %977 = vmatpush1.bf16.msra.mxu0 %v2082_v63  ;;  %v2170_v58 = vld [vmem:[%s2352_s15 + $0xcc] ss:$16 sps:$4 sm:$0xff]   ;;  %v2172_v59 = vld [vmem:[%s2352_s15 + $0xc0] ss:$16 sps:$4 sm:$0xff]   ;;  %v2173_v60 = vld [vmem:[%s2352_s15 + $0xc8] ss:$16 sps:$4 sm:$0xff]  }
  0x5e   : > { %1090 = vmatpush1.bf16.msra.mxu1 %v2083_v0  ;;  %978 = vmatprep.subr.bf16.mxu0 %v2084_v1  ;;  %v2174_v61 = vld [vmem:[%s2352_s15 + $0xe4] ss:$16 sps:$4 sm:$0xff]   ;;  %v2176_v62 = vld [vmem:[%s2352_s15 + $0xec] ss:$16 sps:$4 sm:$0xff]   ;;  %v2178_v63 = vld [vmem:[%s2352_s15 + $0xe0] ss:$16 sps:$4 sm:$0xff]  }
  0x5f   : > { %1091 = vmatprep.subr.bf16.mxu1 %v2086_v2  ;;  %v2179_v0 = vld [vmem:[%s2352_s15 + $0xe8] ss:$16 sps:$4 sm:$0xff]   ;;  %v354_v2 = vld [vmem:[#allocation2 + $0xb0] sm:$0xff] }
  0x61   : > { %979 = vmatpush2.bf16.msra.mxu0 %v2088_v3 }
  0x62   : > { %1092 = vmatpush2.bf16.msra.mxu1 %v2089_v4  ;;  %980 = vmatprep.subr.bf16.mxu0 %v2090_v5 }
  0x63   : > { %1093 = vmatprep.subr.bf16.mxu1 %v2092_v6  ;;  %v355_v6 = vld [vmem:[#allocation2] sm:$0xff] }
  0x65   : > { %981 = vmatpush2.bf16.msra.mxu0 %v2094_v7 }
  0x66   : > { %1094 = vmatpush2.bf16.msra.mxu1 %v2095_v8  ;;  %982 = vmatprep.subr.bf16.mxu0 %v2096_v9 }
  0x67   : > { %1095 = vmatprep.subr.bf16.mxu1 %v2098_v10 }
  0x69   : > { %983 = vmatpush2.bf16.msra.mxu0 %v2100_v11  ;;  %v356_v11 = vld [vmem:[#allocation2 + $0xd8] sm:$0xff] }
  0x6a   : > { %1096 = vmatpush2.bf16.msra.mxu1 %v2101_v12  ;;  %984 = vmatprep.subr.bf16.mxu0 %v2102_v13 }
  0x6b   : > { %1097 = vmatprep.subr.bf16.mxu1 %v2104_v14 }
  0x6d   : > { %985 = vmatpush2.bf16.msra.mxu0 %v2106_v15 }
  0x6e   : > { %1098 = vmatpush2.bf16.msra.mxu1 %v2107_v16  ;;  %986 = vmatprep.subr.bf16.mxu0 %v2108_v17  ;;  %v357_v16 = vld [vmem:[#allocation2 + $0x18] sm:$0xff] }
  0x6f   : > { %1099 = vmatprep.subr.bf16.mxu1 %v2110_v19 }
  0x71   : > { %987 = vmatpush2.bf16.msra.mxu0 %v2112_v21  ;;  %v358_v21 = vld [vmem:[#allocation2 + $0x50] sm:$0xff] }
  0x72   : > { %1100 = vmatpush2.bf16.msra.mxu1 %v2113_v22  ;;  %988 = vmatprep.subr.bf16.mxu0 %v2114_v23 }
  0x73   : > { %1101 = vmatprep.subr.bf16.mxu1 %v2116_v24 }
  0x75   : > { %989 = vmatpush2.bf16.msra.mxu0 %v2118_v25 }
  0x76   : > { %1102 = vmatpush2.bf16.msra.mxu1 %v2119_v26  ;;  %990 = vmatprep.subr.bf16.mxu0 %v2120_v27  ;;  %v359_v26 = vld [vmem:[#allocation2 + $0x68] sm:$0xff] }
  0x77   : > { %1103 = vmatprep.subr.bf16.mxu1 %v2122_v28 }
  0x79   : > { %991 = vmatpush2.bf16.msra.mxu0 %v2124_v29 }
  0x7a   : > { %1104 = vmatpush2.bf16.msra.mxu1 %v2125_v30  ;;  %992 = vmatprep.subr.bf16.mxu0 %v2126_v31  ;;  %v360_v31 = vld [vmem:[#allocation2 + $0x30] sm:$0xff] }
  0x7b   : > { %1105 = vmatprep.subr.bf16.mxu1 %v2128_v32 }
  0x7d   : > { %993 = vmatpush2.bf16.msra.mxu0 %v2130_v33 }
  0x7e   : > { %1106 = vmatpush2.bf16.msra.mxu1 %v2131_v34 }
  0x80   : > { %995 = vmatmul.mubr.bf16.vlgmr.msra.gmra.mxu0 %v2132_v35 }
  0x81   : > { %1108 = vmatmul.mubr.bf16.vlgmr.msra.gmra.mxu1 %v2135_v36  ;;  %1004 = vmatprep.mubr.bf16.mxu0 %v2138_v37  ;;  %v361_v36 = vld [vmem:[#allocation2 + $0x48] sm:$0xff] }
  0x82   : > { %1117 = vmatprep.mubr.bf16.mxu1 %v2140_v38 }
  0x88   : > { %1005 = vmatmul.mubr.bf16.gmra.mxu0 %v2142_v39 }
  0x89   : > { %1118 = vmatmul.mubr.bf16.gmra.mxu1 %v2143_v40  ;;  %1014 = vmatprep.mubr.bf16.mxu0 %v2144_v41  ;;  %v362_v41 = vld [vmem:[#allocation2 + $0x80] sm:$0xff] }
  0x8a   : > { %1127 = vmatprep.mubr.bf16.mxu1 %v2146_v42 }
  0x90   : > { %1015 = vmatmul.mubr.bf16.gmra.mxu0 %v2148_v43 }
  0x91   : > { %1128 = vmatmul.mubr.bf16.gmra.mxu1 %v2149_v44  ;;  %1024 = vmatprep.mubr.bf16.mxu0 %v2150_v45 }
  0x92   : > { %1137 = vmatprep.mubr.bf16.mxu1 %v2152_v46  ;;  %v363_v46 = vld [vmem:[#allocation2 + $0x88] sm:$0xff] }
  0x98   : > { %1025 = vmatmul.mubr.bf16.gmra.mxu0 %v2154_v47 }
  0x99   : > { %1138 = vmatmul.mubr.bf16.gmra.mxu1 %v2155_v48  ;;  %1034 = vmatprep.mubr.bf16.mxu0 %v2156_v49 }
  0x9a   : > { %1147 = vmatprep.mubr.bf16.mxu1 %v2158_v50 }
  0xa0   : > { %1035 = vmatmul.mubr.bf16.gmra.mxu0 %v2160_v51  ;;  %v364_v51 = vld [vmem:[#allocation2 + $0xe8] sm:$0xff] }
  0xa1   : > { %1148 = vmatmul.mubr.bf16.gmra.mxu1 %v2161_v52  ;;  %1044 = vmatprep.mubr.bf16.mxu0 %v2162_v53 }
  0xa2   : > { %1157 = vmatprep.mubr.bf16.mxu1 %v2164_v54 }
  0xa8   : > { %1045 = vmatmul.mubr.bf16.gmra.mxu0 %v2166_v55 }
  0xa9   : > { %1158 = vmatmul.mubr.bf16.gmra.mxu1 %v2167_v56  ;;  %1054 = vmatprep.mubr.bf16.mxu0 %v2168_v57  ;;  %v365_v56 = vld [vmem:[#allocation2 + $0xb8] sm:$0xff] }
  0xaa   : > { %1167 = vmatprep.mubr.bf16.mxu1 %v2170_v58 }
  0xb0   : > { %1055 = vmatmul.mubr.bf16.gmra.mxu0 %v2172_v59 }
  0xb1   : > { %1168 = vmatmul.mubr.bf16.gmra.mxu1 %v2173_v60  ;;  %1064 = vmatprep.mubr.bf16.mxu0 %v2174_v61  ;;  %v366_v61 = vld [vmem:[#allocation2 + $0x60] sm:$0xff] }
  0xb2   : > { %1177 = vmatprep.mubr.bf16.mxu1 %v2176_v62 }
  0xb8   : > { %1065 = vmatmul.mubr.bf16.gmra.mxu0 %v2178_v63 }
  0xb9   : > { %1178 = vmatmul.mubr.bf16.gmra.mxu1 %v2179_v0 }
 0x140   : > { %v996_v1 = vpop.f32.mrf.mxu0 }
 0x141   : > { %v1109_v3 = vpop.f32.mrf.mxu1 }
 0x142   : > { %v1110_v4 = vadd.f32 %v1109_v3, %v996_v1  ;;  %v998_v5 = vpop.f32.mrf.mxu0 }
 0x143   : > { %v1111_v7 = vpop.f32.mrf.mxu1 }
 0x144   : > { %v1188_v8 = vadd.f32 %v1110_v4, %v354_v2  ;;  %v1112_v9 = vadd.f32 %v1111_v7, %v998_v5  ;;  %v1000_v10 = vpop.f32.mrf.mxu0  ;;  %v367_v2 = vld [vmem:[#allocation2 + $0xf0] sm:$0xff]  ;;  %v368_v7 = vld [vmem:[#allocation2 + $0x8] sm:$0xff] }
 0x145   : > { %v1113_v12 = vpop.f32.mrf.mxu1 }
 0x146   : > { %1220 = vst [vmem:[#allocation2 + $0xb0] sm:$0xff] %v1188_v8  ;;  %v1189_v13 = vadd.f32 %v1112_v9, %v355_v6  ;;  %v1114_v14 = vadd.f32 %v1113_v12, %v1000_v10  ;;  %v1002_v15 = vpop.f32.mrf.mxu0  ;;  %v369_v12 = vld [vmem:[#allocation2 + $0x78] sm:$0xff] }
 0x147   : > { %v1115_v17 = vpop.f32.mrf.mxu1 }
 0x148   : > { %1221 = vst [vmem:[#allocation2] sm:$0xff] %v1189_v13  ;;  %v1190_v18 = vadd.f32 %v1114_v14, %v356_v11  ;;  %v1116_v19 = vadd.f32 %v1115_v17, %v1002_v15  ;;  %v1006_v20 = vpop.f32.mrf.mxu0  ;;  %v370_v17 = vld [vmem:[#allocation2 + $0x38] sm:$0xff] }
 0x149   : > { %v1119_v22 = vpop.f32.mrf.mxu1 }
 0x14a   : > { %1222 = vst [vmem:[#allocation2 + $0xd8] sm:$0xff] %v1190_v18  ;;  %v1191_v23 = vadd.f32 %v1116_v19, %v357_v16  ;;  %v1120_v24 = vadd.f32 %v1119_v22, %v1006_v20  ;;  %v1008_v25 = vpop.f32.mrf.mxu0  ;;  %v371_v22 = vld [vmem:[#allocation2 + $0x58] sm:$0xff] }
 0x14b   : > { %v1121_v27 = vpop.f32.mrf.mxu1 }
 0x14c   : > { %1223 = vst [vmem:[#allocation2 + $0x18] sm:$0xff] %v1191_v23  ;;  %v1192_v28 = vadd.f32 %v1120_v24, %v358_v21  ;;  %v1122_v29 = vadd.f32 %v1121_v27, %v1008_v25  ;;  %v1010_v30 = vpop.f32.mrf.mxu0  ;;  %v372_v27 = vld [vmem:[#allocation2 + $0x40] sm:$0xff] }
 0x14d   : > { %v1123_v32 = vpop.f32.mrf.mxu1 }
 0x14e   : > { %1224 = vst [vmem:[#allocation2 + $0x50] sm:$0xff] %v1192_v28  ;;  %v1193_v33 = vadd.f32 %v1122_v29, %v359_v26  ;;  %v1124_v34 = vadd.f32 %v1123_v32, %v1010_v30  ;;  %v1012_v35 = vpop.f32.mrf.mxu0  ;;  %v373_v32 = vld [vmem:[#allocation2 + $0xc8] sm:$0xff] }
 0x14f   : > { %v1125_v37 = vpop.f32.mrf.mxu1 }
 0x150   : > { %1225 = vst [vmem:[#allocation2 + $0x68] sm:$0xff] %v1193_v33  ;;  %v1194_v38 = vadd.f32 %v1124_v34, %v360_v31  ;;  %v1126_v39 = vadd.f32 %v1125_v37, %v1012_v35  ;;  %v1016_v40 = vpop.f32.mrf.mxu0  ;;  %v374_v37 = vld [vmem:[#allocation2 + $0xe0] sm:$0xff] }
 0x151   : > { %v1129_v42 = vpop.f32.mrf.mxu1 }
 0x152   : > { %1226 = vst [vmem:[#allocation2 + $0x30] sm:$0xff] %v1194_v38  ;;  %v1195_v43 = vadd.f32 %v1126_v39, %v361_v36  ;;  %v1130_v44 = vadd.f32 %v1129_v42, %v1016_v40  ;;  %v1018_v45 = vpop.f32.mrf.mxu0  ;;  %v375_v42 = vld [vmem:[#allocation2 + $0x90] sm:$0xff] }
 0x153   : > { %v1131_v47 = vpop.f32.mrf.mxu1 }
 0x154   : > { %1227 = vst [vmem:[#allocation2 + $0x48] sm:$0xff] %v1195_v43  ;;  %v1196_v48 = vadd.f32 %v1130_v44, %v362_v41  ;;  %v1132_v49 = vadd.f32 %v1131_v47, %v1018_v45  ;;  %v1020_v50 = vpop.f32.mrf.mxu0  ;;  %v376_v47 = vld [vmem:[#allocation2 + $0x70] sm:$0xff] }
 0x155   : > { %v1133_v52 = vpop.f32.mrf.mxu1 }
 0x156   : > { %1228 = vst [vmem:[#allocation2 + $0x80] sm:$0xff] %v1196_v48  ;;  %v1197_v53 = vadd.f32 %v1132_v49, %v363_v46  ;;  %v1134_v54 = vadd.f32 %v1133_v52, %v1020_v50  ;;  %v1022_v55 = vpop.f32.mrf.mxu0  ;;  %v377_v52 = vld [vmem:[#allocation2 + $0xc0] sm:$0xff] }
 0x157   : > { %v1135_v57 = vpop.f32.mrf.mxu1 }
 0x158   : > { %1229 = vst [vmem:[#allocation2 + $0x88] sm:$0xff] %v1197_v53  ;;  %v1198_v58 = vadd.f32 %v1134_v54, %v364_v51  ;;  %v1136_v59 = vadd.f32 %v1135_v57, %v1022_v55  ;;  %v1026_v60 = vpop.f32.mrf.mxu0  ;;  %v378_v57 = vld [vmem:[#allocation2 + $0xa8] sm:$0xff] }
 0x159   : > { %v1139_v62 = vpop.f32.mrf.mxu1 }
 0x15a   : > { %1230 = vst [vmem:[#allocation2 + $0xe8] sm:$0xff] %v1198_v58  ;;  %v1199_v63 = vadd.f32 %v1136_v59, %v365_v56  ;;  %v1140_v0 = vadd.f32 %v1139_v62, %v1026_v60  ;;  %v1028_v1 = vpop.f32.mrf.mxu0  ;;  %v379_v62 = vld [vmem:[#allocation2 + $0xd0] sm:$0xff] }
 0x15b   : > { %v1141_v3 = vpop.f32.mrf.mxu1 }
 0x15c   : > { %1231 = vst [vmem:[#allocation2 + $0xb8] sm:$0xff] %v1199_v63  ;;  %v1200_v4 = vadd.f32 %v1140_v0, %v366_v61  ;;  %v1142_v5 = vadd.f32 %v1141_v3, %v1028_v1  ;;  %v1030_v6 = vpop.f32.mrf.mxu0  ;;  %v380_v3 = vld [vmem:[#allocation2 + $0x10] sm:$0xff] }
 0x15d   : > { %v1143_v8 = vpop.f32.mrf.mxu1 }
 0x15e   : > { %1232 = vst [vmem:[#allocation2 + $0x60] sm:$0xff] %v1200_v4  ;;  %v1201_v9 = vadd.f32 %v1142_v5, %v367_v2  ;;  %v1144_v10 = vadd.f32 %v1143_v8, %v1030_v6  ;;  %v1032_v11 = vpop.f32.mrf.mxu0  ;;  %v381_v8 = vld [vmem:[#allocation2 + $0x28] sm:$0xff] }
 0x15f   : > { %v1145_v13 = vpop.f32.mrf.mxu1 }
 0x160   : > { %1233 = vst [vmem:[#allocation2 + $0xf0] sm:$0xff] %v1201_v9  ;;  %v1202_v14 = vadd.f32 %v1144_v10, %v368_v7  ;;  %v1146_v15 = vadd.f32 %v1145_v13, %v1032_v11  ;;  %v1036_v16 = vpop.f32.mrf.mxu0  ;;  %v382_v13 = vld [vmem:[#allocation2 + $0xa0] sm:$0xff] }
 0x161   : > { %v1149_v18 = vpop.f32.mrf.mxu1 }
 0x162   : > { %1234 = vst [vmem:[#allocation2 + $0x8] sm:$0xff] %v1202_v14  ;;  %v1203_v19 = vadd.f32 %v1146_v15, %v369_v12  ;;  %v1150_v20 = vadd.f32 %v1149_v18, %v1036_v16  ;;  %v1038_v21 = vpop.f32.mrf.mxu0  ;;  %v383_v18 = vld [vmem:[#allocation2 + $0xf8] sm:$0xff] }
 0x163   : > { %v1151_v23 = vpop.f32.mrf.mxu1 }
 0x164   : > { %1235 = vst [vmem:[#allocation2 + $0x78] sm:$0xff] %v1203_v19  ;;  %v1204_v24 = vadd.f32 %v1150_v20, %v370_v17  ;;  %v1152_v25 = vadd.f32 %v1151_v23, %v1038_v21  ;;  %v1040_v26 = vpop.f32.mrf.mxu0  ;;  %v384_v23 = vld [vmem:[#allocation2 + $0x20] sm:$0xff] }
 0x165   : > { %v1153_v28 = vpop.f32.mrf.mxu1 }
 0x166   : > { %1236 = vst [vmem:[#allocation2 + $0x38] sm:$0xff] %v1204_v24  ;;  %v1205_v29 = vadd.f32 %v1152_v25, %v371_v22  ;;  %v1154_v30 = vadd.f32 %v1153_v28, %v1040_v26  ;;  %v1042_v31 = vpop.f32.mrf.mxu0  ;;  %v385_v28 = vld [vmem:[#allocation2 + $0x98] sm:$0xff] }
 0x167   : > { %v1155_v33 = vpop.f32.mrf.mxu1 }
 0x168   : > { %1237 = vst [vmem:[#allocation2 + $0x58] sm:$0xff] %v1205_v29  ;;  %v1206_v34 = vadd.f32 %v1154_v30, %v372_v27  ;;  %v1156_v35 = vadd.f32 %v1155_v33, %v1042_v31  ;;  %v1046_v36 = vpop.f32.mrf.mxu0 }
 0x169   : > { %v1159_v38 = vpop.f32.mrf.mxu1 }
 0x16a   : > { %1238 = vst [vmem:[#allocation2 + $0x40] sm:$0xff] %v1206_v34  ;;  %v1207_v39 = vadd.f32 %v1156_v35, %v373_v32  ;;  %v1160_v40 = vadd.f32 %v1159_v38, %v1046_v36  ;;  %v1048_v41 = vpop.f32.mrf.mxu0 }
 0x16b   : > { %v1161_v43 = vpop.f32.mrf.mxu1 }
 0x16c   : > { %1239 = vst [vmem:[#allocation2 + $0xc8] sm:$0xff] %v1207_v39  ;;  %v1208_v44 = vadd.f32 %v1160_v40, %v374_v37  ;;  %v1162_v45 = vadd.f32 %v1161_v43, %v1048_v41  ;;  %v1050_v46 = vpop.f32.mrf.mxu0 }
 0x16d   : > { %v1163_v48 = vpop.f32.mrf.mxu1 }
 0x16e   : > { %1240 = vst [vmem:[#allocation2 + $0xe0] sm:$0xff] %v1208_v44  ;;  %v1209_v49 = vadd.f32 %v1162_v45, %v375_v42  ;;  %v1164_v50 = vadd.f32 %v1163_v48, %v1050_v46  ;;  %v1052_v51 = vpop.f32.mrf.mxu0 }
 0x16f   : > { %v1165_v53 = vpop.f32.mrf.mxu1 }
 0x170   : > { %1241 = vst [vmem:[#allocation2 + $0x90] sm:$0xff] %v1209_v49  ;;  %v1210_v54 = vadd.f32 %v1164_v50, %v376_v47  ;;  %v1166_v55 = vadd.f32 %v1165_v53, %v1052_v51  ;;  %v1056_v56 = vpop.f32.mrf.mxu0 }
 0x171   : > { %v1169_v58 = vpop.f32.mrf.mxu1 }
 0x172   : > { %1242 = vst [vmem:[#allocation2 + $0x70] sm:$0xff] %v1210_v54  ;;  %v1211_v59 = vadd.f32 %v1166_v55, %v377_v52  ;;  %v1170_v60 = vadd.f32 %v1169_v58, %v1056_v56  ;;  %v1058_v61 = vpop.f32.mrf.mxu0 }
 0x173   : > { %v1171_v63 = vpop.f32.mrf.mxu1 }
 0x174   : > { %1243 = vst [vmem:[#allocation2 + $0xc0] sm:$0xff] %v1211_v59  ;;  %v1212_v0 = vadd.f32 %v1170_v60, %v378_v57  ;;  %v1172_v1 = vadd.f32 %v1171_v63, %v1058_v61  ;;  %v1060_v2 = vpop.f32.mrf.mxu0 }
 0x175   : > { %v1173_v4 = vpop.f32.mrf.mxu1 }
 0x176   : > { %1244 = vst [vmem:[#allocation2 + $0xa8] sm:$0xff] %v1212_v0  ;;  %v1213_v5 = vadd.f32 %v1172_v1, %v379_v62  ;;  %v1174_v6 = vadd.f32 %v1173_v4, %v1060_v2  ;;  %v1062_v7 = vpop.f32.mrf.mxu0 }
 0x177   : > { %v1175_v9 = vpop.f32.mrf.mxu1 }
 0x178   : > { %1245 = vst [vmem:[#allocation2 + $0xd0] sm:$0xff] %v1213_v5  ;;  %v1214_v10 = vadd.f32 %v1174_v6, %v380_v3  ;;  %v1176_v11 = vadd.f32 %v1175_v9, %v1062_v7  ;;  %v1066_v12 = vpop.f32.mrf.mxu0 }
 0x179   : > { %v1179_v14 = vpop.f32.mrf.mxu1 }
 0x17a   : > { %1246 = vst [vmem:[#allocation2 + $0x10] sm:$0xff] %v1214_v10  ;;  %v1215_v15 = vadd.f32 %v1176_v11, %v381_v8  ;;  %v1180_v16 = vadd.f32 %v1179_v14, %v1066_v12  ;;  %v1068_v17 = vpop.f32.mrf.mxu0 }
 0x17b   : > { %v1181_v19 = vpop.f32.mrf.mxu1 }
 0x17c   : > { %1247 = vst [vmem:[#allocation2 + $0x28] sm:$0xff] %v1215_v15  ;;  %v1216_v20 = vadd.f32 %v1180_v16, %v382_v13  ;;  %v1182_v21 = vadd.f32 %v1181_v19, %v1068_v17  ;;  %v1070_v22 = vpop.f32.mrf.mxu0 }
 0x17d   : > { %v1183_v24 = vpop.f32.mrf.mxu1 }
 0x17e   : > { %1248 = vst [vmem:[#allocation2 + $0xa0] sm:$0xff] %v1216_v20  ;;  %v1217_v25 = vadd.f32 %v1182_v21, %v383_v18  ;;  %v1184_v26 = vadd.f32 %v1183_v24, %v1070_v22  ;;  %v1072_v27 = vpop.f32.mrf.mxu0 }
 0x17f   : > { %v1185_v29 = vpop.f32.mrf.mxu1 }
 0x180   : > { %1249 = vst [vmem:[#allocation2 + $0xf8] sm:$0xff] %v1217_v25  ;;  %v1218_v30 = vadd.f32 %v1184_v26, %v384_v23  ;;  %v1186_v31 = vadd.f32 %v1185_v29, %v1072_v27  ;;  %1255 = sbr.rel (%p1974_p10) target bundleno = 528 (0x210), region = 71 }
 0x182   : > { %1250 = vst [vmem:[#allocation2 + $0x20] sm:$0xff] %v1218_v30  ;;  %v1219_v32 = vadd.f32 %v1186_v31, %v385_v28 }
 0x184   : > { %1251 = vst [vmem:[#allocation2 + $0x98] sm:$0xff] %v1219_v32 }
 0x185   : > { %v1290_v33 = vlaneseq  ;;  %v1288_v37 = vld [vmem:[%s2979_s2] sm:$0x3]  ;;  %v1256_v38 = vld [vmem:[#allocation2 + $0xb0] sm:$0xff]  ;;  %v1258_v42 = vld [vmem:[#allocation2 + $0xd8] sm:$0xff] }
 0x186   : > { %v1257_v41 = vld [vmem:[#allocation2] sm:$0xff]  ;;  %v1259_v43 = vld [vmem:[#allocation2 + $0x18] sm:$0xff]  ;;  %v1260_v44 = vld [vmem:[#allocation2 + $0x50] sm:$0xff] }
 0x187   : > { %v1291_v34 = vshrl.u32 %v1290_v33, 7  ;;  %v1261_v45 = vld [vmem:[#allocation2 + $0x68] sm:$0xff]  ;;  %v1262_v50 = vld [vmem:[#allocation2 + $0x30] sm:$0xff]  ;;  %v1264_v54 = vld [vmem:[#allocation2 + $0x80] sm:$0xff] }
 0x188   : > { %v1263_v51 = vld [vmem:[#allocation2 + $0x48] sm:$0xff]  ;;  %v1267_v61 = vld [vmem:[#allocation2 + $0xb8] sm:$0xff]  ;;  %v1268_v2 = vld [vmem:[#allocation2 + $0x60] sm:$0xff] }
 0x189   : > { %v2452_v35 = vsub.s32 0, %v1291_v34  ;;  %v2454_v36 = vsub.s32 1, %v1291_v34  ;;  %v1265_v55 = vld [vmem:[#allocation2 + $0x88] sm:$0xff]  ;;  %v1269_v3 = vld [vmem:[#allocation2 + $0xf0] sm:$0xff]  ;;  %v1271_v9 = vld [vmem:[#allocation2 + $0x78] sm:$0xff] }
 0x18a   : > { %v1266_v60 = vld [vmem:[#allocation2 + $0xe8] sm:$0xff]  ;;  %v1272_v14 = vld [vmem:[#allocation2 + $0x38] sm:$0xff]  ;;  %v1274_v24 = vld [vmem:[#allocation2 + $0x40] sm:$0xff] }
 0x18b   : > { %v2460_v39 = vrot.slane %v1288_v37, %v2452_v35  ;;  %v2463_v40 = vrot.slane %v1288_v37, %v2454_v36  ;;  %v1270_v8 = vld [vmem:[#allocation2 + $0x8] sm:$0xff]  ;;  %v1273_v15 = vld [vmem:[#allocation2 + $0x58] sm:$0xff]  ;;  %v1276_v32 = vld [vmem:[#allocation2 + $0xe0] sm:$0xff] }
 0x18c   : > { %v1275_v25 = vld [vmem:[#allocation2 + $0xc8] sm:$0xff]  ;;  %v1277_v33 = vld [vmem:[#allocation2 + $0x90] sm:$0xff] }
 0x18d   : > { %v2466_v46 = vadd.f32 %v2460_v39, %v1256_v38  ;;  %v2469_v47 = vadd.f32 %v2463_v40, %v1257_v41  ;;  %v2472_v48 = vadd.f32 %v2460_v39, %v1258_v42  ;;  %v2475_v49 = vadd.f32 %v2463_v40, %v1259_v43 }
 0x18e   : > { %v2478_v52 = vadd.f32 %v2460_v39, %v1260_v44  ;;  %v2481_v53 = vadd.f32 %v2463_v40, %v1261_v45  ;;  %v2484_v56 = vadd.f32 %v2460_v39, %v1262_v50  ;;  %v2487_v57 = vadd.f32 %v2463_v40, %v1263_v51  ;;  %v1278_v50 = vld [vmem:[#allocation2 + $0x70] sm:$0xff]  ;;  %v1279_v51 = vld [vmem:[#allocation2 + $0xc0] sm:$0xff] }
 0x18f   : > { %v1332_v58 = vadd.f32 %v2472_v48, %v2466_v46  ;;  %v1353_v59 = vadd.f32 %v2475_v49, %v2469_v47  ;;  %v2494_v62 = vadd.f32 %v2460_v39, %v1264_v54  ;;  %v2497_v63 = vadd.f32 %v2463_v40, %v1265_v55 }
 0x190   : > { %v2502_v4 = vadd.f32 %v2460_v39, %v1266_v60  ;;  %v2505_v5 = vadd.f32 %v2463_v40, %v1267_v61  ;;  %v2510_v10 = vadd.f32 %v2460_v39, %v1268_v2  ;;  %v2513_v11 = vadd.f32 %v2463_v40, %v1269_v3  ;;  %v1280_v2 = vld [vmem:[#allocation2 + $0xa8] sm:$0xff]  ;;  %v1281_v3 = vld [vmem:[#allocation2 + $0xd0] sm:$0xff] }
 0x191   : > { %v1333_v0 = vadd.f32 %v1332_v58, %v2478_v52  ;;  %v1354_v1 = vadd.f32 %v1353_v59, %v2481_v53  ;;  %v1374_v16 = vmul.f32 %v2466_v46, %v2466_v46  ;;  %v1375_v17 = vmul.f32 %v2469_v47, %v2469_v47 }
 0x192   : > { %v1376_v18 = vmul.f32 %v2472_v48, %v2472_v48  ;;  %v1377_v19 = vmul.f32 %v2475_v49, %v2475_v49  ;;  %v2526_v20 = vadd.f32 %v2460_v39, %v1270_v8  ;;  %v2529_v21 = vadd.f32 %v2463_v40, %v1271_v9 }
 0x193   : > { %v1334_v6 = vadd.f32 %v1333_v0, %v2484_v56  ;;  %v1355_v7 = vadd.f32 %v1354_v1, %v2487_v57  ;;  %v1378_v26 = vmul.f32 %v2478_v52, %v2478_v52  ;;  %v1379_v27 = vmul.f32 %v2481_v53, %v2481_v53 }
 0x194   : > { %v2538_v28 = vadd.f32 %v2460_v39, %v1272_v14  ;;  %v2541_v29 = vadd.f32 %v2463_v40, %v1273_v15  ;;  %v1380_v34 = vmul.f32 %v2484_v56, %v2484_v56  ;;  %v1381_v37 = vmul.f32 %v2487_v57, %v2487_v57 }
 0x195   : > { %v1335_v12 = vadd.f32 %v1334_v6, %v2494_v62  ;;  %v1356_v13 = vadd.f32 %v1355_v7, %v2497_v63  ;;  %v1406_v38 = vadd.f32 %v1376_v18, %v1374_v16  ;;  %v1427_v41 = vadd.f32 %v1377_v19, %v1375_v17  ;;  %v1282_v16 = vld [vmem:[#allocation2 + $0x10] sm:$0xff]  ;;  %v1283_v17 = vld [vmem:[#allocation2 + $0x28] sm:$0xff] }
 0x196   : > { %v2550_v42 = vadd.f32 %v2460_v39, %v1274_v24  ;;  %v2553_v43 = vadd.f32 %v2463_v40, %v1275_v25  ;;  %v1382_v54 = vmul.f32 %v2494_v62, %v2494_v62  ;;  %v1383_v55 = vmul.f32 %v2497_v63, %v2497_v63 }
 0x197   : > { %v1336_v22 = vadd.f32 %v1335_v12, %v2502_v4  ;;  %v1357_v23 = vadd.f32 %v1356_v13, %v2505_v5  ;;  %v1407_v58 = vadd.f32 %v1406_v38, %v1378_v26  ;;  %v1428_v59 = vadd.f32 %v1427_v41, %v1379_v27 }
 0x198   : > { %v2562_v60 = vadd.f32 %v2460_v39, %v1276_v32  ;;  %v2565_v61 = vadd.f32 %v2463_v40, %v1277_v33  ;;  %v1384_v6 = vmul.f32 %v2502_v4, %v2502_v4  ;;  %v1385_v7 = vmul.f32 %v2505_v5, %v2505_v5 }
 0x199   : > { %v1337_v30 = vadd.f32 %v1336_v22, %v2510_v10  ;;  %v1358_v31 = vadd.f32 %v1357_v23, %v2513_v11  ;;  %v1408_v8 = vadd.f32 %v1407_v58, %v1380_v34  ;;  %v1429_v9 = vadd.f32 %v1428_v59, %v1381_v37 }
 0x19a   : > { %v2574_v12 = vadd.f32 %v2460_v39, %v1278_v50  ;;  %v2577_v13 = vadd.f32 %v2463_v40, %v1279_v51  ;;  %v1386_v18 = vmul.f32 %v2510_v10, %v2510_v10  ;;  %v1387_v19 = vmul.f32 %v2513_v11, %v2513_v11  ;;  %v1286_v50 = vld [vmem:[#allocation2 + $0x20] sm:$0xff]  ;;  %v1287_v51 = vld [vmem:[#allocation2 + $0x98] sm:$0xff] }
 0x19b   : > { %v1338_v44 = vadd.f32 %v1337_v30, %v2526_v20  ;;  %v1359_v45 = vadd.f32 %v1358_v31, %v2529_v21  ;;  %v1409_v22 = vadd.f32 %v1408_v8, %v1382_v54  ;;  %v1430_v23 = vadd.f32 %v1429_v9, %v1383_v55  ;;  %v1284_v30 = vld [vmem:[#allocation2 + $0xa0] sm:$0xff]  ;;  %v1285_v31 = vld [vmem:[#allocation2 + $0xf8] sm:$0xff] }
 0x19c   : > { %v2586_v24 = vadd.f32 %v2460_v39, %v1280_v2  ;;  %v2589_v25 = vadd.f32 %v2463_v40, %v1281_v3  ;;  %v1388_v32 = vmul.f32 %v2526_v20, %v2526_v20  ;;  %v1389_v33 = vmul.f32 %v2529_v21, %v2529_v21 }
 0x19d   : > { %v1339_v0 = vadd.f32 %v1338_v44, %v2538_v28  ;;  %v1360_v1 = vadd.f32 %v1359_v45, %v2541_v29  ;;  %v1410_v34 = vadd.f32 %v1409_v22, %v1384_v6  ;;  %v1431_v37 = vadd.f32 %v1430_v23, %v1385_v7 }
 0x19e   : > { %v2598_v38 = vadd.f32 %v2460_v39, %v1282_v16  ;;  %v2601_v41 = vadd.f32 %v2463_v40, %v1283_v17  ;;  %v1390_v54 = vmul.f32 %v2538_v28, %v2538_v28  ;;  %v1391_v55 = vmul.f32 %v2541_v29, %v2541_v29 }
 0x19f   : > { %v1340_v14 = vadd.f32 %v1339_v0, %v2550_v42  ;;  %v1361_v15 = vadd.f32 %v1360_v1, %v2553_v43  ;;  %v1411_v58 = vadd.f32 %v1410_v34, %v1386_v18  ;;  %v1432_v59 = vadd.f32 %v1431_v37, %v1387_v19 }
 0x1a0   : > { %v2610_v0 = vadd.f32 %v2460_v39, %v1284_v30  ;;  %v2613_v1 = vadd.f32 %v2463_v40, %v1285_v31  ;;  %v1392_v6 = vmul.f32 %v2550_v42, %v2550_v42  ;;  %v1393_v7 = vmul.f32 %v2553_v43, %v2553_v43 }
 0x1a1   : > { %v1341_v26 = vadd.f32 %v1340_v14, %v2562_v60  ;;  %v1362_v27 = vadd.f32 %v1361_v15, %v2565_v61  ;;  %v1412_v8 = vadd.f32 %v1411_v58, %v1388_v32  ;;  %v1433_v9 = vadd.f32 %v1432_v59, %v1389_v33 }
 0x1a2   : > { %v2622_v14 = vadd.f32 %v2460_v39, %v1286_v50  ;;  %v2625_v15 = vadd.f32 %v2463_v40, %v1287_v51  ;;  %v1394_v18 = vmul.f32 %v2562_v60, %v2562_v60  ;;  %v1395_v19 = vmul.f32 %v2565_v61, %v2565_v61 }
 0x1a3   : > { %v1342_v44 = vadd.f32 %v1341_v26, %v2574_v12  ;;  %v1363_v45 = vadd.f32 %v1362_v27, %v2577_v13  ;;  %v1413_v22 = vadd.f32 %v1412_v8, %v1390_v54  ;;  %v1434_v23 = vadd.f32 %v1433_v9, %v1391_v55 }
 0x1a4   : > { %2987 = vst [vmem:[#allocation4_spill] sm:$0xff] %v2622_v14  ;;  %2988 = vst [vmem:[#allocation5_spill] sm:$0xff] %v2625_v15  ;;  %v1396_v40 = vmul.f32 %v2574_v12, %v2574_v12  ;;  %v1397_v27 = vmul.f32 %v2577_v13, %v2577_v13  ;;  %v1398_v34 = vmul.f32 %v2586_v24, %v2586_v24 }
 0x1a5   : > { %v1343_v2 = vadd.f32 %v1342_v44, %v2586_v24  ;;  %v1364_v3 = vadd.f32 %v1363_v45, %v2589_v25  ;;  %v1414_v30 = vadd.f32 %v1413_v22, %v1392_v6  ;;  %v1435_v31 = vadd.f32 %v1434_v23, %v1393_v7 }
 0x1a6   : > { %v1399_v37 = vmul.f32 %v2589_v25, %v2589_v25  ;;  %v1400_v54 = vmul.f32 %v2598_v38, %v2598_v38  ;;  %v1401_v55 = vmul.f32 %v2601_v41, %v2601_v41  ;;  %v1402_v6 = vmul.f32 %v2610_v0, %v2610_v0 }
 0x1a7   : > { %v1344_v16 = vadd.f32 %v1343_v2, %v2598_v38  ;;  %v1365_v17 = vadd.f32 %v1364_v3, %v2601_v41  ;;  %v1415_v44 = vadd.f32 %v1414_v30, %v1394_v18  ;;  %v1436_v45 = vadd.f32 %v1435_v31, %v1395_v19 }
 0x1a8   : > { %v1403_v7 = vmul.f32 %v2613_v1, %v2613_v1  ;;  %v1404_v18 = vmul.f32 %v2622_v14, %v2622_v14  ;;  %v1405_v19 = vmul.f32 %v2625_v15, %v2625_v15 }
 0x1a9   : > { %v1345_v26 = vadd.f32 %v1344_v16, %v2610_v0  ;;  %v1366_v39 = vadd.f32 %v1365_v17, %v2613_v1  ;;  %v1416_v58 = vadd.f32 %v1415_v44, %v1396_v40  ;;  %v1437_v59 = vadd.f32 %v1436_v45, %v1397_v27 }
 0x1ab   : > { %v1346_v32 = vadd.f32 %v1345_v26, %v2622_v14  ;;  %v1367_v33 = vadd.f32 %v1366_v39, %v2625_v15  ;;  %v1417_v8 = vadd.f32 %v1416_v58, %v1398_v34  ;;  %v1438_v9 = vadd.f32 %v1437_v59, %v1399_v37 }
 0x1ad   : > { %v1347_v50 = vrot.slane %v1346_v32, 4  ;;  %v1368_v51 = vrot.slane %v1367_v33, 4  ;;  %v1418_v22 = vadd.f32 %v1417_v8, %v1400_v54  ;;  %v1439_v23 = vadd.f32 %v1438_v9, %v1401_v55 }
 0x1af   : > { %v1348_v2 = vadd.f32 %v1347_v50, %v1346_v32  ;;  %v1369_v3 = vadd.f32 %v1368_v51, %v1367_v33  ;;  %v1419_v40 = vadd.f32 %v1418_v22, %v1402_v6  ;;  %v1440_v27 = vadd.f32 %v1439_v23, %v1403_v7 }
 0x1b1   : > { %v1349_v16 = vrot.slane %v1348_v2, 2  ;;  %v1370_v17 = vrot.slane %v1369_v3, 2  ;;  %v1420_v32 = vadd.f32 %v1419_v40, %v1404_v18  ;;  %v1441_v33 = vadd.f32 %v1440_v27, %v1405_v19 }
 0x1b3   : > { %v1350_v26 = vadd.f32 %v1349_v16, %v1348_v2  ;;  %v1371_v39 = vadd.f32 %v1370_v17, %v1369_v3  ;;  %v1421_v34 = vrot.slane %v1420_v32, 4  ;;  %v1442_v37 = vrot.slane %v1441_v33, 4 }
 0x1b5   : > { %v1351_v30 = vrot.slane %v1350_v26, 1  ;;  %v1372_v31 = vrot.slane %v1371_v39, 1  ;;  %v1422_v50 = vadd.f32 %v1421_v34, %v1420_v32  ;;  %v1443_v51 = vadd.f32 %v1442_v37, %v1441_v33 }
 0x1b7   : > { %v1352_v44 = vadd.f32 %v1351_v30, %v1350_v26  ;;  %v1373_v45 = vadd.f32 %v1372_v31, %v1371_v39  ;;  %v1423_v58 = vrot.slane %v1422_v50, 2  ;;  %v1444_v59 = vrot.slane %v1443_v51, 2  ;;  %v1524_v26 = vld [vmem:[%s2980_s3] sm:$0x3] }
 0x1b8   : > { %v2675_v39 = vrot.slane %v1524_v26, %v2454_v36 }
 0x1b9   : > { %v1424_v14 = vadd.f32 %v1423_v58, %v1422_v50  ;;  %v1445_v15 = vadd.f32 %v1444_v59, %v1443_v51  ;;  %v2657_v54 = vmul.f32 0.0078125, %v1352_v44  ;;  %v2659_v55 = vmul.f32 0.0078125, %v1373_v45 }
 0x1bb   : > { %v1425_v2 = vrot.slane %v1424_v14, 1  ;;  %v1446_v3 = vrot.slane %v1445_v15, 1  ;;  %v1452_v8 = vmul.f32 %v2657_v54, %v2657_v54  ;;  %v1453_v9 = vmul.f32 %v2659_v55, %v2659_v55 }
 0x1bc   : > { %v1456_v30 = vsub.f32 %v2466_v46, %v2657_v54  ;;  %v1457_v31 = vsub.f32 %v2469_v47, %v2659_v55  ;;  %v1458_v32 = vsub.f32 %v2472_v48, %v2657_v54  ;;  %v1459_v33 = vsub.f32 %v2475_v49, %v2659_v55 }
 0x1bd   : > { %v1426_v6 = vadd.f32 %v1425_v2, %v1424_v14  ;;  %v1447_v7 = vadd.f32 %v1446_v3, %v1445_v15  ;;  %v1568_v14 = vld [vmem:[%s2981_s4] sm:$0x3]  ;;  %v2672_v15 = vrot.slane %v1524_v26, %v2452_v35  ;;  %v1460_v34 = vsub.f32 %v2478_v52, %v2657_v54 }
 0x1be   : > { %v2678_v40 = vrot.slane %v1568_v14, %v2452_v35  ;;  %v2681_v27 = vrot.slane %v1568_v14, %v2454_v36  ;;  %v1461_v35 = vsub.f32 %v2481_v53, %v2659_v55  ;;  %v1462_v36 = vsub.f32 %v2484_v56, %v2657_v54 }
 0x1bf   : > { %v1450_v16 = vmul.f32 0.0078125, %v1426_v6  ;;  %v1451_v17 = vmul.f32 0.0078125, %v1447_v7  ;;  %v1463_v46 = vsub.f32 %v2487_v57, %v2659_v55  ;;  %v1464_v47 = vsub.f32 %v2494_v62, %v2657_v54 }
 0x1c0   : > { %v1465_v48 = vsub.f32 %v2497_v63, %v2659_v55  ;;  %v1466_v49 = vsub.f32 %v2502_v4, %v2657_v54  ;;  %v1467_v52 = vsub.f32 %v2505_v5, %v2659_v55  ;;  %v1468_v53 = vsub.f32 %v2510_v10, %v2657_v54 }
 0x1c1   : > { %v1454_v18 = vsub.f32 %v1450_v16, %v1452_v8  ;;  %v1455_v19 = vsub.f32 %v1451_v17, %v1453_v9  ;;  %v1469_v56 = vsub.f32 %v2513_v11, %v2659_v55  ;;  %v1470_v57 = vsub.f32 %v2526_v20, %v2657_v54 }
 0x1c2   : > { %v1471_v37 = vsub.f32 %v2529_v21, %v2659_v55 }
 0x1c3   : > { %v1488_v22 = vadd.f32 1e-05, %v1454_v18  ;;  %v1489_v23 = vadd.f32 1e-05, %v1455_v19  ;;  %v2989_v19 = vld [vmem:[#allocation4_spill] sm:$0xff] }
 0x1c5   : > { %2180 = vrsqrt.f32 %v1488_v22 }
 0x1c6   : > { %2182 = vrsqrt.f32 %v1489_v23  ;;  %v2990_v23 = vld [vmem:[#allocation5_spill] sm:$0xff] }
 0x1d2   : > { %v2739_v16 = vpop.eup %2180 }
 0x1d3   : > { %v2749_v14 = vpop.eup %2182  ;;  %v1492_v8 = vmul.f32 %v2739_v16, %v1456_v30  ;;  %v1494_v9 = vmul.f32 %v2739_v16, %v1458_v32  ;;  %v1496_v7 = vmul.f32 %v2739_v16, %v1460_v34  ;;  %v1498_v6 = vmul.f32 %v2739_v16, %v1462_v36 }
 0x1d4   : > { %v1493_v17 = vmul.f32 %v2749_v14, %v1457_v31  ;;  %v1495_v18 = vmul.f32 %v2749_v14, %v1459_v33  ;;  %v1497_v3 = vmul.f32 %v2749_v14, %v1461_v35  ;;  %v1499_v22 = vmul.f32 %v2749_v14, %v1463_v46 }
 0x1d5   : > { %v1536_v26 = vmul.f32 %v2672_v15, %v1492_v8  ;;  %v1538_v2 = vmul.f32 %v2672_v15, %v1494_v9  ;;  %v1540_v30 = vmul.f32 %v2672_v15, %v1496_v7  ;;  %v1542_v32 = vmul.f32 %v2672_v15, %v1498_v6 }
 0x1d6   : > { %v1537_v34 = vmul.f32 %v2675_v39, %v1493_v17  ;;  %v1539_v36 = vmul.f32 %v2675_v39, %v1495_v18  ;;  %v1541_v31 = vmul.f32 %v2675_v39, %v1497_v3  ;;  %v1543_v33 = vmul.f32 %v2675_v39, %v1499_v22 }
 0x1d7   : > { %v1580_v35 = vadd.f32 %v2678_v40, %v1536_v26  ;;  %v1582_v46 = vadd.f32 %v2678_v40, %v1538_v2  ;;  %v1584_v8 = vadd.f32 %v2678_v40, %v1540_v30  ;;  %v1586_v9 = vadd.f32 %v2678_v40, %v1542_v32 }
 0x1d8   : > { %v1581_v7 = vadd.f32 %v2681_v27, %v1537_v34  ;;  %v1583_v6 = vadd.f32 %v2681_v27, %v1539_v36  ;;  %v1585_v17 = vadd.f32 %v2681_v27, %v1541_v31  ;;  %v1587_v18 = vadd.f32 %v2681_v27, %v1543_v33 }
 0x1d9   : > { %vm1612_vm0 = vcmp.gt.f32.partialorder %v1580_v35, 0.0  ;;  %v1644_v3 = vmul.f32 0.2, %v1580_v35  ;;  %vm1614_vm1 = vcmp.gt.f32.partialorder %v1582_v46, 0.0  ;;  %v1646_v22 = vmul.f32 0.2, %v1582_v46 }
 0x1da   : > { %vm1613_vm2 = vcmp.gt.f32.partialorder %v1581_v7, 0.0  ;;  %v1645_v26 = vmul.f32 0.2, %v1581_v7  ;;  %vm1615_vm3 = vcmp.gt.f32.partialorder %v1583_v6, 0.0  ;;  %v1647_v2 = vmul.f32 0.2, %v1583_v6 }
 0x1db   : > { %v1676_v59 = vsel %vm1612_vm0, %v1580_v35, %v1644_v3  ;;  %v1678_v30 = vsel %vm1614_vm1, %v1582_v46, %v1646_v22  ;;  %vm1616_vm4 = vcmp.gt.f32.partialorder %v1584_v8, 0.0  ;;  %vm1617_vm5 = vcmp.gt.f32.partialorder %v1585_v17, 0.0 }
 0x1dc   : > { %v1677_v32 = vsel %vm1613_vm2, %v1581_v7, %v1645_v26  ;;  %v1679_v34 = vsel %vm1615_vm3, %v1583_v6, %v1647_v2  ;;  %v1648_v58 = vmul.f32 0.2, %v1584_v8  ;;  %v1649_v36 = vmul.f32 0.2, %v1585_v17 }
 0x1dd   : > { %v1995_v51 = vpack.c.bf16 %v1677_v32, %v1676_v59  ;;  %v1996_v31 = vpack.c.bf16 %v1679_v34, %v1678_v30  ;;  %vm1618_vm6 = vcmp.gt.f32.partialorder %v1586_v9, 0.0  ;;  %vm1619_vm7 = vcmp.gt.f32.partialorder %v1587_v18, 0.0 }
 0x1de   : > { %v1680_v33 = vsel %vm1616_vm4, %v1584_v8, %v1648_v58  ;;  %v1681_v50 = vsel %vm1617_vm5, %v1585_v17, %v1649_v36  ;;  %v1650_v45 = vmul.f32 0.2, %v1586_v9  ;;  %v1651_v44 = vmul.f32 0.2, %v1587_v18 }
 0x1df   : > { %1804 = vst [vmem:[%s2982_s5] sm:$0xff] %v1995_v51  ;;  %1805 = vst [vmem:[%s2982_s5 + $0x8] sm:$0xff] %v1996_v31  ;;  %v1997_v35 = vpack.c.bf16 %v1681_v50, %v1680_v33  ;;  %v1500_v59 = vmul.f32 %v2739_v16, %v1464_v47  ;;  %v1501_v58 = vmul.f32 %v2749_v14, %v1465_v48 }
 0x1e0   : > { %v1502_v51 = vmul.f32 %v2739_v16, %v1466_v49  ;;  %v1682_v46 = vsel %vm1618_vm6, %v1586_v9, %v1650_v45  ;;  %v1683_v8 = vsel %vm1619_vm7, %v1587_v18, %v1651_v44  ;;  %v1503_v50 = vmul.f32 %v2749_v14, %v1467_v52 }
 0x1e1   : > { %v1504_v62 = vmul.f32 %v2739_v16, %v1468_v53  ;;  %1806 = vst [vmem:[%s2982_s5 + $0x10] sm:$0xff] %v1997_v35  ;;  %v1998_v63 = vpack.c.bf16 %v1683_v8, %v1682_v46  ;;  %v1544_v4 = vmul.f32 %v2672_v15, %v1500_v59  ;;  %v1545_v47 = vmul.f32 %v2675_v39, %v1501_v58 }
 0x1e2   : > { %v1546_v48 = vmul.f32 %v2672_v15, %v1502_v51  ;;  %v1547_v5 = vmul.f32 %v2675_v39, %v1503_v50  ;;  %v1505_v10 = vmul.f32 %v2749_v14, %v1469_v56  ;;  %v1506_v52 = vmul.f32 %v2739_v16, %v1470_v57 }
 0x1e3   : > { %v1548_v49 = vmul.f32 %v2672_v15, %v1504_v62  ;;  %1807 = vst [vmem:[%s2982_s5 + $0x18] sm:$0xff] %v1998_v63  ;;  %v1588_v53 = vadd.f32 %v2678_v40, %v1544_v4  ;;  %v1589_v44 = vadd.f32 %v2681_v27, %v1545_v47  ;;  %v1507_v11 = vmul.f32 %v2749_v14, %v1471_v37 }
 0x1e4   : > { %v1590_v45 = vadd.f32 %v2678_v40, %v1546_v48  ;;  %v1591_v56 = vadd.f32 %v2681_v27, %v1547_v5  ;;  %v1549_v20 = vmul.f32 %v2675_v39, %v1505_v10  ;;  %v1550_v9 = vmul.f32 %v2672_v15, %v1506_v52 }
 0x1e5   : > { %v1592_v57 = vadd.f32 %v2678_v40, %v1548_v49  ;;  %vm1620_vm8 = vcmp.gt.f32.partialorder %v1588_v53, 0.0  ;;  %vm1621_vm9 = vcmp.gt.f32.partialorder %v1589_v44, 0.0  ;;  %v1652_v7 = vmul.f32 0.2, %v1588_v53 }
 0x1e6   : > { %v1653_v6 = vmul.f32 0.2, %v1589_v44  ;;  %vm1622_vm10 = vcmp.gt.f32.partialorder %v1590_v45, 0.0  ;;  %vm1623_vm11 = vcmp.gt.f32.partialorder %v1591_v56, 0.0  ;;  %v1654_v17 = vmul.f32 0.2, %v1590_v45 }
 0x1e7   : > { %v1655_v18 = vmul.f32 0.2, %v1591_v56  ;;  %v1684_v3 = vsel %vm1620_vm8, %v1588_v53, %v1652_v7  ;;  %v1593_v37 = vadd.f32 %v2681_v27, %v1549_v20  ;;  %vm1624_vm12 = vcmp.gt.f32.partialorder %v1592_v57, 0.0 }
 0x1e8   : > { %v1685_v21 = vsel %vm1621_vm9, %v1589_v44, %v1653_v6  ;;  %v1686_v26 = vsel %vm1622_vm10, %v1590_v45, %v1654_v17  ;;  %v1656_v30 = vmul.f32 0.2, %v1592_v57  ;;  %v1551_v36 = vmul.f32 %v2675_v39, %v1507_v11 }
 0x1e9   : > { %v1999_v22 = vpack.c.bf16 %v1685_v21, %v1684_v3  ;;  %v1687_v2 = vsel %vm1623_vm11, %v1591_v56, %v1655_v18  ;;  %vm1625_vm13 = vcmp.gt.f32.partialorder %v1593_v37, 0.0  ;;  %v1657_v34 = vmul.f32 0.2, %v1593_v37 }
 0x1ea   : > { %v2000_v32 = vpack.c.bf16 %v1687_v2, %v1686_v26  ;;  %v1688_v31 = vsel %vm1624_vm12, %v1592_v57, %v1656_v30  ;;  %v1594_v33 = vadd.f32 %v2678_v40, %v1550_v9  ;;  %v2991_v35 = vsub.f32 %v2538_v28, %v2657_v54 }
 0x1eb   : > { %1808 = vst [vmem:[%s2982_s5 + $0x20] sm:$0xff] %v1999_v22  ;;  %v2992_v58 = vsub.f32 %v2541_v29, %v2659_v55  ;;  %v1689_v46 = vsel %vm1625_vm13, %v1593_v37, %v1657_v34  ;;  %v1595_v8 = vadd.f32 %v2681_v27, %v1551_v36  ;;  %v2993_v50 = vsub.f32 %v2550_v42, %v2657_v54 }
 0x1ec   : > { %v1508_v59 = vmul.f32 %v2739_v16, %v2991_v35  ;;  %1809 = vst [vmem:[%s2982_s5 + $0x28] sm:$0xff] %v2000_v32  ;;  %v2994_v28 = vsub.f32 %v2553_v43, %v2659_v55  ;;  %v2001_v29 = vpack.c.bf16 %v1689_v46, %v1688_v31  ;;  %vm1626_vm14 = vcmp.gt.f32.partialorder %v1594_v33, 0.0 }
 0x1ed   : > { %v1509_v51 = vmul.f32 %v2749_v14, %v2992_v58  ;;  %v1510_v62 = vmul.f32 %v2739_v16, %v2993_v50  ;;  %v1658_v4 = vmul.f32 0.2, %v1594_v33  ;;  %vm1627_vm15 = vcmp.gt.f32.partialorder %v1595_v8, 0.0 }
 0x1ee   : > { %v1511_v63 = vmul.f32 %v2749_v14, %v2994_v28  ;;  %v1552_v47 = vmul.f32 %v2672_v15, %v1508_v59  ;;  %v1659_v48 = vmul.f32 0.2, %v1595_v8  ;;  %1810 = vst [vmem:[%s2982_s5 + $0x30] sm:$0xff] %v2001_v29  ;;  %v2995_v52 = vsub.f32 %v2562_v60, %v2657_v54 }
 0x1ef   : > { %v1553_v5 = vmul.f32 %v2675_v39, %v1509_v51  ;;  %v1554_v10 = vmul.f32 %v2672_v15, %v1510_v62  ;;  %v1690_v42 = vsel %vm1626_vm14, %v1594_v33, %v1658_v4  ;;  %v2996_v56 = vsub.f32 %v2565_v61, %v2659_v55 }
 0x1f0   : > { %v1596_v43 = vadd.f32 %v2678_v40, %v1552_v47  ;;  %v1555_v49 = vmul.f32 %v2675_v39, %v1511_v63  ;;  %v1512_v53 = vmul.f32 %v2739_v16, %v2995_v52  ;;  %v1691_v44 = vsel %vm1627_vm15, %v1595_v8, %v1659_v48 }
 0x1f1   : > { %v1597_v45 = vadd.f32 %v2681_v27, %v1553_v5  ;;  %v1598_v11 = vadd.f32 %v2678_v40, %v1554_v10  ;;  %v1513_v20 = vmul.f32 %v2749_v14, %v2996_v56  ;;  %v2002_v57 = vpack.c.bf16 %v1691_v44, %v1690_v42 }
 0x1f2   : > { %vm1628_vm0 = vcmp.gt.f32.partialorder %v1596_v43, 0.0  ;;  %v1660_v9 = vmul.f32 0.2, %v1596_v43  ;;  %v1599_v7 = vadd.f32 %v2681_v27, %v1555_v49  ;;  %v1556_v61 = vmul.f32 %v2672_v15, %v1512_v53 }
 0x1f3   : > { %vm1629_vm1 = vcmp.gt.f32.partialorder %v1597_v45, 0.0  ;;  %v1661_v6 = vmul.f32 0.2, %v1597_v45  ;;  %vm1630_vm2 = vcmp.gt.f32.partialorder %v1598_v11, 0.0  ;;  %v1662_v60 = vmul.f32 0.2, %v1598_v11 }
 0x1f4   : > { %1811 = vst [vmem:[%s2982_s5 + $0x38] sm:$0xff] %v2002_v57  ;;  %v1692_v17 = vsel %vm1628_vm0, %v1596_v43, %v1660_v9  ;;  %vm1631_vm3 = vcmp.gt.f32.partialorder %v1599_v7, 0.0  ;;  %v1663_v18 = vmul.f32 0.2, %v1599_v7  ;;  %v1557_v37 = vmul.f32 %v2675_v39, %v1513_v20 }
 0x1f5   : > { %v1693_v3 = vsel %vm1629_vm1, %v1597_v45, %v1661_v6  ;;  %v1694_v21 = vsel %vm1630_vm2, %v1598_v11, %v1662_v60  ;;  %v2997_v22 = vsub.f32 %v2574_v12, %v2657_v54  ;;  %v1600_v32 = vadd.f32 %v2678_v40, %v1556_v61 }
 0x1f6   : > { %v2003_v2 = vpack.c.bf16 %v1693_v3, %v1692_v17  ;;  %v1695_v30 = vsel %vm1631_vm3, %v1599_v7, %v1663_v18  ;;  %v2998_v34 = vsub.f32 %v2577_v13, %v2659_v55  ;;  %v1601_v33 = vadd.f32 %v2681_v27, %v1557_v37 }
 0x1f7   : > { %v1514_v26 = vmul.f32 %v2739_v16, %v2997_v22  ;;  %v2004_v31 = vpack.c.bf16 %v1695_v30, %v1694_v21  ;;  %v2999_v59 = vsub.f32 %v2586_v24, %v2657_v54  ;;  %vm1632_vm4 = vcmp.gt.f32.partialorder %v1600_v32, 0.0 }
 0x1f8   : > { %v1515_v36 = vmul.f32 %v2749_v14, %v2998_v34  ;;  %1812 = vst [vmem:[%s2982_s5 + $0x40] sm:$0xff] %v2003_v2  ;;  %v1664_v58 = vmul.f32 0.2, %v1600_v32  ;;  %v3000_v51 = vsub.f32 %v2589_v25, %v2659_v55  ;;  %vm1633_vm5 = vcmp.gt.f32.partialorder %v1601_v33, 0.0 }
 0x1f9   : > { %v1558_v35 = vmul.f32 %v2672_v15, %v1514_v26  ;;  %v1516_v12 = vmul.f32 %v2739_v16, %v2999_v59  ;;  %1813 = vst [vmem:[%s2982_s5 + $0x48] sm:$0xff] %v2004_v31  ;;  %v1665_v24 = vmul.f32 0.2, %v1601_v33  ;;  %v3001_v25 = vsub.f32 %v2598_v38, %v2657_v54 }
 0x1fa   : > { %v1559_v13 = vmul.f32 %v2675_v39, %v1515_v36  ;;  %v1517_v46 = vmul.f32 %v2749_v14, %v3000_v51  ;;  %v1696_v62 = vsel %vm1632_vm4, %v1600_v32, %v1664_v58  ;;  %v3002_v52 = vsub.f32 %v2601_v41, %v2659_v55 }
 0x1fb   : > { %v1602_v8 = vadd.f32 %v2678_v40, %v1558_v35  ;;  %v1560_v50 = vmul.f32 %v2672_v15, %v1516_v12  ;;  %v1518_v29 = vmul.f32 %v2739_v16, %v3001_v25  ;;  %v1697_v4 = vsel %vm1633_vm5, %v1601_v33, %v1665_v24 }
 0x1fc   : > { %v1603_v28 = vadd.f32 %v2681_v27, %v1559_v13  ;;  %v1561_v63 = vmul.f32 %v2675_v39, %v1517_v46  ;;  %v2005_v5 = vpack.c.bf16 %v1697_v4, %v1696_v62  ;;  %v1519_v38 = vmul.f32 %v2749_v14, %v3002_v52 }
 0x1fd   : > { %vm1634_vm6 = vcmp.gt.f32.partialorder %v1602_v8, 0.0  ;;  %v1666_v47 = vmul.f32 0.2, %v1602_v8  ;;  %v1604_v48 = vadd.f32 %v2678_v40, %v1560_v50  ;;  %v1562_v45 = vmul.f32 %v2672_v15, %v1518_v29 }
 0x1fe   : > { %vm1635_vm7 = vcmp.gt.f32.partialorder %v1603_v28, 0.0  ;;  %v1667_v10 = vmul.f32 0.2, %v1603_v28  ;;  %v1605_v42 = vadd.f32 %v2681_v27, %v1561_v63  ;;  %1814 = vst [vmem:[%s2982_s5 + $0x50] sm:$0xff] %v2005_v5  ;;  %v1563_v20 = vmul.f32 %v2675_v39, %v1519_v38 }
 0x1ff   : > { %v1698_v43 = vsel %vm1634_vm6, %v1602_v8, %v1666_v47  ;;  %vm1636_vm8 = vcmp.gt.f32.partialorder %v1604_v48, 0.0  ;;  %v1668_v49 = vmul.f32 0.2, %v1604_v48  ;;  %v3003_v57 = vsub.f32 %v2610_v0, %v2657_v54 }
 0x200   : > { %v1699_v53 = vsel %vm1635_vm7, %v1603_v28, %v1667_v10  ;;  %vm1637_vm9 = vcmp.gt.f32.partialorder %v1605_v42, 0.0  ;;  %v1669_v44 = vmul.f32 0.2, %v1605_v42  ;;  %v1606_v7 = vadd.f32 %v2678_v40, %v1562_v45 }
 0x201   : > { %v2006_v11 = vpack.c.bf16 %v1699_v53, %v1698_v43  ;;  %v1700_v56 = vsel %vm1636_vm8, %v1604_v48, %v1668_v49  ;;  %v1520_v41 = vmul.f32 %v2739_v16, %v3003_v57  ;;  %v3004_v6 = vsub.f32 %v2613_v1, %v2659_v55 }
 0x202   : > { %v1701_v9 = vsel %vm1637_vm9, %v1605_v42, %v1669_v44  ;;  %v3005_v17 = vsub.f32 %v2989_v19, %v2657_v54  ;;  %v1607_v61 = vadd.f32 %v2681_v27, %v1563_v20  ;;  %v3006_v21 = vsub.f32 %v2990_v23, %v2659_v55 }
 0x203   : > { %v1521_v60 = vmul.f32 %v2749_v14, %v3004_v6  ;;  %1815 = vst [vmem:[%s2982_s5 + $0x58] sm:$0xff] %v2006_v11  ;;  %v2007_v0 = vpack.c.bf16 %v1701_v9, %v1700_v56  ;;  %v1564_v3 = vmul.f32 %v2672_v15, %v1520_v41  ;;  %vm1638_vm10 = vcmp.gt.f32.partialorder %v1606_v7, 0.0 }
 0x204   : > { %v1522_v18 = vmul.f32 %v2739_v16, %v3005_v17  ;;  %v1523_v1 = vmul.f32 %v2749_v14, %v3006_v21  ;;  %v1670_v37 = vmul.f32 0.2, %v1606_v7  ;;  %vm1639_vm11 = vcmp.gt.f32.partialorder %v1607_v61, 0.0 }
 0x205   : > { %v1565_v54 = vmul.f32 %v2675_v39, %v1521_v60  ;;  %1816 = vst [vmem:[%s2982_s5 + $0x60] sm:$0xff] %v2007_v0  ;;  %v1671_v19 = vmul.f32 0.2, %v1607_v61  ;;  %v1608_v22 = vadd.f32 %v2678_v40, %v1564_v3 }
 0x206   : > { %v1566_v16 = vmul.f32 %v2672_v15, %v1522_v18  ;;  %v1567_v26 = vmul.f32 %v2675_v39, %v1523_v1  ;;  %v1702_v2 = vsel %vm1638_vm10, %v1606_v7, %v1670_v37 }
 0x207   : > { %v1609_v55 = vadd.f32 %v2681_v27, %v1565_v54  ;;  %v1703_v14 = vsel %vm1639_vm11, %v1607_v61, %v1671_v19  ;;  %vm1640_vm12 = vcmp.gt.f32.partialorder %v1608_v22, 0.0  ;;  %v1672_v30 = vmul.f32 0.2, %v1608_v22 }
 0x208   : > { %v1610_v23 = vadd.f32 %v2678_v40, %v1566_v16  ;;  %v1611_v15 = vadd.f32 %v2681_v27, %v1567_v26  ;;  %v2008_v32 = vpack.c.bf16 %v1703_v14, %v1702_v2 }
 0x209   : > { %vm1641_vm13 = vcmp.gt.f32.partialorder %v1609_v55, 0.0  ;;  %v1673_v34 = vmul.f32 0.2, %v1609_v55  ;;  %v1704_v36 = vsel %vm1640_vm12, %v1608_v22, %v1672_v30 }
 0x20a   : > { %vm1642_vm14 = vcmp.gt.f32.partialorder %v1610_v23, 0.0  ;;  %vm1643_vm15 = vcmp.gt.f32.partialorder %v1611_v15, 0.0  ;;  %v1674_v31 = vmul.f32 0.2, %v1610_v23  ;;  %v1675_v33 = vmul.f32 0.2, %v1611_v15 }
 0x20b   : > { %1817 = vst [vmem:[%s2982_s5 + $0x68] sm:$0xff] %v2008_v32  ;;  %v1705_v39 = vsel %vm1641_vm13, %v1609_v55, %v1673_v34 }
 0x20c   : > { %v2009_v35 = vpack.c.bf16 %v1705_v39, %v1704_v36  ;;  %v1706_v40 = vsel %vm1642_vm14, %v1610_v23, %v1674_v31  ;;  %v1707_v59 = vsel %vm1643_vm15, %v1611_v15, %v1675_v33 }
 0x20d   : > { %v2010_v12 = vpack.c.bf16 %v1707_v59, %v1706_v40 }
 0x20e   : > { %1818 = vst [vmem:[%s2982_s5 + $0x70] sm:$0xff] %v2009_v35 }
 0x20f   : > { %1819 = vst [vmem:[%s2982_s5 + $0x78] sm:$0xff] %v2010_v12 }
 0x210 PF: > { %p12_p11 = scmp.ge.s32.totalorder %s2258_s22, 6   ;;  %s3007_s18 = smov %s2202_s19 }
 0x211   : > { %s3008_s19 = smov %s2267_s25  ;;  %s3009_s20 = smov %s2258_s22 }
 0x212   :  { %14 = sbr.rel (!%p12_p11) target bundleno = 2 (0x2), region = 105 }

// kernel: d_forward.7
= control target key start
LH: loop header
LB: loop body
LE: loop exit
PB: predicated region body
PF: predicated region fallthrough
CT: control target
= control target key end

     0   :  { %s2255_s18 = smov 0   ;;  %s2257_s19 = smov 0   ;;  %s2694_s0 = inlined_call_operand.vmem [shape: bf16[32,4096], index: 0, kind: input, shape index: {}]   ;;  %s2695_s1 = inlined_call_operand.vmem [shape: bf16[4096,512], index: 1, kind: input, shape index: {}]   ;;  %s2696_s2 = inlined_call_operand.vmem [shape: f32[1,512], index: 2, kind: input, shape index: {}]   ;;  %s2697_s3 = inlined_call_operand.vmem [shape: f32[1,512], index: 3, kind: input, shape index: {}]   ;;  %s2698_s4 = inlined_call_operand.vmem [shape: f32[1,512], index: 4, kind: input, shape index: {}]   ;;  %s2699_s5 = inlined_call_operand.vmem [shape: bf16[32,512], index: 5, kind: output, shape index: {}]  }
   0x1   :  { %s2259_s20 = smov 0  }
   0x2 LB: > { %s2271_s21 = sadd.s32 4294967295, %s2222_s20   ;;  %s2274_s22 = sadd.s32 1, %s2222_s20   ;;  %s2222_s20 = sphi %s2259_s20, %s2702_s20   ;;  %s2218_s19 = sphi %s2257_s19, %s2701_s19   ;;  %s2214_s18 = sphi %s2255_s18, %s2700_s18  }
   0x3   : > { %s19_s23 = ssub.s32 %s2222_s20, %s2274_s22  ;;  %s22_s24 = sadd.s32 1, %s2218_s19 }
   0x4   : > { %p20_p0 = scmp.eq.s32.totalorder %s19_s23, 0  ;;  %p29_p1 = scmp.ne.s32.totalorder %s2218_s19, %s2214_s18 }
   0x5   : > { %p30_p2 = scmp.eq.s32.totalorder %s2222_s20, 0  ;;  %p1796_p4 = scmp.ge.s32.totalorder %s2222_s20, 8 }
   0x6   : > { %s2283_s25 = scalar_select %p20_p0, %s2218_s19, %s22_s24  }
   0x7   : > { %p31_p3 = por %p30_p2, %p29_p1  ;;  %174 = sbr.rel (%p1796_p4) target bundleno = 20 (0x14), region = 28 }
   0xc   : > { %177 = sbr.rel (!%p31_p3) target bundleno = 20 (0x14), region = 32  ;;  %s179_s26 = sand.u32 (%p31_p3), 1, %s2218_s19  }
   0xd   : > { %s1953_s27 = sshll.u32 (%p31_p3), %s2222_s20, 4  ;;  %s1797_s28 = sshll.u32 (%p31_p3), %s179_s26, 6 }
   0xe   : > { %s184_s6 = scalar_lea.vmem (%p31_p3), %s2694_s0, %s1953_s27  ;;  %s181_s7 = scalar_lea.vmem (%p31_p3), [#allocation3], %s1797_s28 }
   0xf   : > { %v197_v0 = vld [vmem:[%s184_s6] sm:$0xff] (%p31_p3)  ;;  %v199_v1 = vld [vmem:[%s184_s6 + $0x8] sm:$0xff] (%p31_p3) }
  0x10   : > { %v201_v2 = vld [vmem:[%s184_s6 + $0x80] sm:$0xff] (%p31_p3)  ;;  %198 = vst [vmem:[%s181_s7] sm:$0xff] (%p31_p3), %v197_v0  ;;  %200 = vst [vmem:[%s181_s7 + $0x8] sm:$0xff] (%p31_p3), %v199_v1  ;;  %v203_v3 = vld [vmem:[%s184_s6 + $0x88] sm:$0xff] (%p31_p3) }
  0x11   : > { %202 = vst [vmem:[%s181_s7 + $0x10] sm:$0xff] %v201_v2  ;;  %v205_v4 = vld [vmem:[%s184_s6 + $0x100] sm:$0xff]  ;;  %v207_v5 = vld [vmem:[%s184_s6 + $0x108] sm:$0xff]  ;;  %204 = vst [vmem:[%s181_s7 + $0x18] sm:$0xff] %v203_v3 }
  0x12   : > { %206 = vst [vmem:[%s181_s7 + $0x20] sm:$0xff] %v205_v4  ;;  %208 = vst [vmem:[%s181_s7 + $0x28] sm:$0xff] %v207_v5  ;;  %v209_v6 = vld [vmem:[%s184_s6 + $0x180] sm:$0xff]  ;;  %v211_v7 = vld [vmem:[%s184_s6 + $0x188] sm:$0xff] }
  0x13   : > { %210 = vst [vmem:[%s181_s7 + $0x30] sm:$0xff] %v209_v6  ;;  %212 = vst [vmem:[%s181_s7 + $0x38] sm:$0xff] %v211_v7 }
  0x14 PF: > { %p1800_p5 = scmp.ge.s32.totalorder %s2222_s20, 1  ;;  %p227_p6 = scmp.lt.s32.totalorder %s2222_s20, 9 }
  0x16   : > { %p228_p7 = pnand %p1800_p5, %p227_p6 }
  0x17   : > { %s234_s8 = sand.u32 (!%p228_p7), 1, %s2214_s18   ;;  %s1802_s9 = sshll.u32 (!%p228_p7), %s2271_s21, 6 }
  0x18   : > { %231 = sbr.rel (%p228_p7) target bundleno = 469 (0x1d5), region = 59  ;;  %s1801_s10 = sshll.u32 (!%p228_p7), %s234_s8, 6 }
  0x19   : > { %p264_p8 = scmp.lt.s32.totalorder (!%p228_p7), %s1802_s9, 511  ;;  %s2300_s15 = scalar_lea.vmem (!%p228_p7), [#allocation3], %s1801_s10 }
  0x1a   : > { %p1805_p9 = scmp.ne.s32.totalorder (!%p228_p7), %s2271_s21, 0 }
  0x1d   : > { %s2704_s9 = smov (!%p264_p8, %s1802_s9), 511  ;;  %273 = sbr.rel (%p1805_p9) target bundleno = 43 (0x2b), region = 67 }
  0x1e   : > { %s1954_s11 = sshll.u32 %s2704_s9, 4 }
  0x1f   : > { %s2298_s14 = scalar_lea.vmem %s2695_s1, %s1954_s11 }
  0x22   : > { %v2224_v8 = vmov 0.0  }
  0x23   : > { %274 = vst [vmem:[#allocation2 + $0x30] sm:$0xff] %v2224_v8  ;;  %275 = vst [vmem:[#allocation2] sm:$0xff] %v2224_v8 }
  0x24   : > { %276 = vst [vmem:[#allocation2 + $0x58] sm:$0xff] %v2224_v8  ;;  %277 = vst [vmem:[#allocation2 + $0x18] sm:$0xff] %v2224_v8 }
  0x25   : > { %278 = vst [vmem:[#allocation2 + $0x50] sm:$0xff] %v2224_v8  ;;  %279 = vst [vmem:[#allocation2 + $0x68] sm:$0xff] %v2224_v8 }
  0x26   : > { %280 = vst [vmem:[#allocation2 + $0x8] sm:$0xff] %v2224_v8  ;;  %281 = vst [vmem:[#allocation2 + $0x48] sm:$0xff] %v2224_v8 }
  0x27   : > { %282 = vst [vmem:[#allocation2 + $0x40] sm:$0xff] %v2224_v8  ;;  %283 = vst [vmem:[#allocation2 + $0x20] sm:$0xff] %v2224_v8 }
  0x28   : > { %284 = vst [vmem:[#allocation2 + $0x10] sm:$0xff] %v2224_v8  ;;  %285 = vst [vmem:[#allocation2 + $0x38] sm:$0xff] %v2224_v8 }
  0x29   : > { %286 = vst [vmem:[#allocation2 + $0x60] sm:$0xff] %v2224_v8  ;;  %287 = vst [vmem:[#allocation2 + $0x70] sm:$0xff] %v2224_v8 }
  0x2a   : > { %288 = vst [vmem:[#allocation2 + $0x78] sm:$0xff] %v2224_v8  ;;  %289 = vst [vmem:[#allocation2 + $0x28] sm:$0xff] %v2224_v8 }
  0x2b PF: > { %v1988_v9 = vld [vmem:[%s2298_s14 + $0xe4] ss:$16 sps:$4 sm:$0xff]   ;;  %v1992_v11 = vld [vmem:[%s2298_s14 + $0xe0] ss:$16 sps:$4 sm:$0xff]   ;;  %v2357_v60 = vld [vmem:[%s2300_s15 + $0xc] ss:$16 sps:$4 sm:$0xff]  }
  0x2c   : > { %v1990_v10 = vld [vmem:[%s2298_s14 + $0x2e4] ss:$16 sps:$4 sm:$0xff]   ;;  %1122 = vmatprep.subr.bf16.mxu0 %v1988_v9  ;;  %v1993_v12 = vld [vmem:[%s2298_s14 + $0x2e0] ss:$16 sps:$4 sm:$0xff]   ;;  %1207 = vmatprep.mubr.bf16.mxu1 %v2357_v60  ;;  %p1942_p10 = scmp.ne.s32.totalorder %s2271_s21, 7 }
  0x2d   : > { %1175 = vmatprep.subr.bf16.mxu1 %v1990_v10  ;;  %v1994_v13 = vld [vmem:[%s2298_s14 + $0xc4] ss:$16 sps:$4 sm:$0xff]   ;;  %1123 = vmatpush1.bf16.msra.mxu0 %v1992_v11  ;;  %v1998_v15 = vld [vmem:[%s2298_s14 + $0xc0] ss:$16 sps:$4 sm:$0xff]   ;;  %v2092_v11 = vld [vmem:[%s2298_s14 + $0xec] ss:$16 sps:$4 sm:$0xff]  }
  0x2e   : > { %1176 = vmatpush1.bf16.msra.mxu1 %v1993_v12  ;;  %v1996_v14 = vld [vmem:[%s2298_s14 + $0x2c4] ss:$16 sps:$4 sm:$0xff]   ;;  %1124 = vmatprep.subr.bf16.mxu0 %v1994_v13  ;;  %v1999_v16 = vld [vmem:[%s2298_s14 + $0x2c0] ss:$16 sps:$4 sm:$0xff]   ;;  %v2095_v12 = vld [vmem:[%s2298_s14 + $0x2ec] ss:$16 sps:$4 sm:$0xff]  }
  0x2f   : > { %1177 = vmatprep.subr.bf16.mxu1 %v1996_v14  ;;  %v2000_v17 = vld [vmem:[%s2298_s14 + $0xa4] ss:$16 sps:$4 sm:$0xff]   ;;  %v2004_v19 = vld [vmem:[%s2298_s14 + $0xa0] ss:$16 sps:$4 sm:$0xff]   ;;  %v2381_v14 = vld [vmem:[%s2300_s15 + $0x8] ss:$16 sps:$4 sm:$0xff]  }
  0x30   : > { %v2002_v18 = vld [vmem:[%s2298_s14 + $0x2a4] ss:$16 sps:$4 sm:$0xff]   ;;  %v2005_v20 = vld [vmem:[%s2298_s14 + $0x2a0] ss:$16 sps:$4 sm:$0xff]  }
  0x31   : > { %1125 = vmatpush1.bf16.msra.mxu0 %v1998_v15  ;;  %v2006_v21 = vld [vmem:[%s2298_s14 + $0x84] ss:$16 sps:$4 sm:$0xff]   ;;  %v2010_v23 = vld [vmem:[%s2298_s14 + $0x80] ss:$16 sps:$4 sm:$0xff]   ;;  %v2090_v15 = vld [vmem:[%s2298_s14 + $0xe8] ss:$16 sps:$4 sm:$0xff]  }
  0x32   : > { %1178 = vmatpush1.bf16.msra.mxu1 %v1999_v16  ;;  %1126 = vmatprep.subr.bf16.mxu0 %v2000_v17  ;;  %v2008_v22 = vld [vmem:[%s2298_s14 + $0x284] ss:$16 sps:$4 sm:$0xff]   ;;  %v2011_v24 = vld [vmem:[%s2298_s14 + $0x280] ss:$16 sps:$4 sm:$0xff]   ;;  %v2093_v16 = vld [vmem:[%s2298_s14 + $0x2e8] ss:$16 sps:$4 sm:$0xff]  }
  0x33   : > { %1179 = vmatprep.subr.bf16.mxu1 %v2002_v18  ;;  %v2012_v25 = vld [vmem:[%s2298_s14 + $0x64] ss:$16 sps:$4 sm:$0xff]   ;;  %v2016_v27 = vld [vmem:[%s2298_s14 + $0x60] ss:$16 sps:$4 sm:$0xff]   ;;  %v2098_v17 = vld [vmem:[%s2298_s14 + $0xcc] ss:$16 sps:$4 sm:$0xff]  }
  0x34   : > { %v2014_v26 = vld [vmem:[%s2298_s14 + $0x264] ss:$16 sps:$4 sm:$0xff]   ;;  %v2017_v28 = vld [vmem:[%s2298_s14 + $0x260] ss:$16 sps:$4 sm:$0xff]   ;;  %v2101_v18 = vld [vmem:[%s2298_s14 + $0x2cc] ss:$16 sps:$4 sm:$0xff]  }
  0x35   : > { %1127 = vmatpush1.bf16.msra.mxu0 %v2004_v19  ;;  %v2018_v29 = vld [vmem:[%s2298_s14 + $0x44] ss:$16 sps:$4 sm:$0xff]   ;;  %v2022_v31 = vld [vmem:[%s2298_s14 + $0x40] ss:$16 sps:$4 sm:$0xff]   ;;  %v2096_v19 = vld [vmem:[%s2298_s14 + $0xc8] ss:$16 sps:$4 sm:$0xff]  }
  0x36   : > { %1180 = vmatpush1.bf16.msra.mxu1 %v2005_v20  ;;  %1128 = vmatprep.subr.bf16.mxu0 %v2006_v21  ;;  %v2020_v30 = vld [vmem:[%s2298_s14 + $0x244] ss:$16 sps:$4 sm:$0xff]   ;;  %v2023_v32 = vld [vmem:[%s2298_s14 + $0x240] ss:$16 sps:$4 sm:$0xff]   ;;  %v2099_v20 = vld [vmem:[%s2298_s14 + $0x2c8] ss:$16 sps:$4 sm:$0xff]  }
  0x37   : > { %1181 = vmatprep.subr.bf16.mxu1 %v2008_v22  ;;  %v2024_v33 = vld [vmem:[%s2298_s14 + $0x24] ss:$16 sps:$4 sm:$0xff]   ;;  %v2028_v35 = vld [vmem:[%s2298_s14 + $0x20] ss:$16 sps:$4 sm:$0xff]   ;;  %v2104_v21 = vld [vmem:[%s2298_s14 + $0xac] ss:$16 sps:$4 sm:$0xff]  }
  0x38   : > { %v2026_v34 = vld [vmem:[%s2298_s14 + $0x224] ss:$16 sps:$4 sm:$0xff]   ;;  %v2029_v36 = vld [vmem:[%s2298_s14 + $0x220] ss:$16 sps:$4 sm:$0xff]   ;;  %v2107_v22 = vld [vmem:[%s2298_s14 + $0x2ac] ss:$16 sps:$4 sm:$0xff]  }
  0x39   : > { %1129 = vmatpush1.bf16.msra.mxu0 %v2010_v23  ;;  %v2030_v37 = vld [vmem:[%s2298_s14 + $0x4] ss:$16 sps:$4 sm:$0xff]   ;;  %v2034_v39 = vld [vmem:[%s2298_s14] ss:$16 sps:$4 sm:$0xff]   ;;  %v2102_v23 = vld [vmem:[%s2298_s14 + $0xa8] ss:$16 sps:$4 sm:$0xff]  }
  0x3a   : > { %1182 = vmatpush1.bf16.msra.mxu1 %v2011_v24  ;;  %1130 = vmatprep.subr.bf16.mxu0 %v2012_v25  ;;  %v2032_v38 = vld [vmem:[%s2298_s14 + $0x204] ss:$16 sps:$4 sm:$0xff]   ;;  %v2035_v40 = vld [vmem:[%s2298_s14 + $0x200] ss:$16 sps:$4 sm:$0xff]   ;;  %v2105_v24 = vld [vmem:[%s2298_s14 + $0x2a8] ss:$16 sps:$4 sm:$0xff]  }
  0x3b   : > { %1183 = vmatprep.subr.bf16.mxu1 %v2014_v26  ;;  %v2036_v41 = vld [vmem:[%s2298_s14 + $0x1e4] ss:$16 sps:$4 sm:$0xff]   ;;  %v2040_v43 = vld [vmem:[%s2298_s14 + $0x1e0] ss:$16 sps:$4 sm:$0xff]   ;;  %v2110_v25 = vld [vmem:[%s2298_s14 + $0x8c] ss:$16 sps:$4 sm:$0xff]  }
  0x3c   : > { %v2038_v42 = vld [vmem:[%s2298_s14 + $0x3e4] ss:$16 sps:$4 sm:$0xff]   ;;  %v2041_v44 = vld [vmem:[%s2298_s14 + $0x3e0] ss:$16 sps:$4 sm:$0xff]   ;;  %v2113_v26 = vld [vmem:[%s2298_s14 + $0x28c] ss:$16 sps:$4 sm:$0xff]  }
  0x3d   : > { %1131 = vmatpush1.bf16.msra.mxu0 %v2016_v27  ;;  %v2042_v45 = vld [vmem:[%s2298_s14 + $0x1c4] ss:$16 sps:$4 sm:$0xff]   ;;  %v2046_v47 = vld [vmem:[%s2298_s14 + $0x1c0] ss:$16 sps:$4 sm:$0xff]   ;;  %v2108_v27 = vld [vmem:[%s2298_s14 + $0x88] ss:$16 sps:$4 sm:$0xff]  }
  0x3e   : > { %1184 = vmatpush1.bf16.msra.mxu1 %v2017_v28  ;;  %1132 = vmatprep.subr.bf16.mxu0 %v2018_v29  ;;  %v2044_v46 = vld [vmem:[%s2298_s14 + $0x3c4] ss:$16 sps:$4 sm:$0xff]   ;;  %v2047_v48 = vld [vmem:[%s2298_s14 + $0x3c0] ss:$16 sps:$4 sm:$0xff]   ;;  %v2111_v28 = vld [vmem:[%s2298_s14 + $0x288] ss:$16 sps:$4 sm:$0xff]  }
  0x3f   : > { %1185 = vmatprep.subr.bf16.mxu1 %v2020_v30  ;;  %v2048_v49 = vld [vmem:[%s2298_s14 + $0x1a4] ss:$16 sps:$4 sm:$0xff]   ;;  %v2052_v51 = vld [vmem:[%s2298_s14 + $0x1a0] ss:$16 sps:$4 sm:$0xff]   ;;  %v2116_v29 = vld [vmem:[%s2298_s14 + $0x6c] ss:$16 sps:$4 sm:$0xff]  }
  0x40   : > { %v2050_v50 = vld [vmem:[%s2298_s14 + $0x3a4] ss:$16 sps:$4 sm:$0xff]   ;;  %v2053_v52 = vld [vmem:[%s2298_s14 + $0x3a0] ss:$16 sps:$4 sm:$0xff]   ;;  %v2119_v30 = vld [vmem:[%s2298_s14 + $0x26c] ss:$16 sps:$4 sm:$0xff]  }
  0x41   : > { %1133 = vmatpush1.bf16.msra.mxu0 %v2022_v31  ;;  %v2054_v53 = vld [vmem:[%s2298_s14 + $0x184] ss:$16 sps:$4 sm:$0xff]   ;;  %v2058_v55 = vld [vmem:[%s2298_s14 + $0x180] ss:$16 sps:$4 sm:$0xff]   ;;  %v2114_v31 = vld [vmem:[%s2298_s14 + $0x68] ss:$16 sps:$4 sm:$0xff]  }
  0x42   : > { %1186 = vmatpush1.bf16.msra.mxu1 %v2023_v32  ;;  %1134 = vmatprep.subr.bf16.mxu0 %v2024_v33  ;;  %v2056_v54 = vld [vmem:[%s2298_s14 + $0x384] ss:$16 sps:$4 sm:$0xff]   ;;  %v2059_v56 = vld [vmem:[%s2298_s14 + $0x380] ss:$16 sps:$4 sm:$0xff]   ;;  %v2117_v32 = vld [vmem:[%s2298_s14 + $0x268] ss:$16 sps:$4 sm:$0xff]  }
  0x43   : > { %1187 = vmatprep.subr.bf16.mxu1 %v2026_v34  ;;  %v2060_v57 = vld [vmem:[%s2298_s14 + $0x164] ss:$16 sps:$4 sm:$0xff]   ;;  %v2064_v61 = vld [vmem:[%s2298_s14 + $0x160] ss:$16 sps:$4 sm:$0xff]   ;;  %v2122_v33 = vld [vmem:[%s2298_s14 + $0x4c] ss:$16 sps:$4 sm:$0xff]  }
  0x44   : > { %v2353_v58 = vld [vmem:[%s2300_s15 + $0x4] ss:$16 sps:$4 sm:$0xff]   ;;  %v2065_v62 = vld [vmem:[%s2298_s14 + $0x360] ss:$16 sps:$4 sm:$0xff]   ;;  %v2125_v34 = vld [vmem:[%s2298_s14 + $0x24c] ss:$16 sps:$4 sm:$0xff]  }
  0x45   : > { %1135 = vmatpush1.bf16.msra.mxu0 %v2028_v35  ;;  %v2062_v59 = vld [vmem:[%s2298_s14 + $0x364] ss:$16 sps:$4 sm:$0xff]   ;;  %1154 = vmatprep.mubr.bf16.mxu0 %v2353_v58  ;;  %v2070_v1 = vld [vmem:[%s2298_s14 + $0x140] ss:$16 sps:$4 sm:$0xff]  }
  0x46   : > { %1188 = vmatpush1.bf16.msra.mxu1 %v2029_v36  ;;  %1136 = vmatprep.subr.bf16.mxu0 %v2030_v37  ;;  %v2066_v63 = vld [vmem:[%s2298_s14 + $0x144] ss:$16 sps:$4 sm:$0xff]   ;;  %v2071_v2 = vld [vmem:[%s2298_s14 + $0x340] ss:$16 sps:$4 sm:$0xff]   ;;  %v2409_v36 = vld [vmem:[%s2300_s15 + $0x2c] ss:$16 sps:$4 sm:$0xff]  }
  0x47   : > { %1189 = vmatprep.subr.bf16.mxu1 %v2032_v38  ;;  %v2068_v0 = vld [vmem:[%s2298_s14 + $0x344] ss:$16 sps:$4 sm:$0xff]   ;;  %v2076_v5 = vld [vmem:[%s2298_s14 + $0x120] ss:$16 sps:$4 sm:$0xff]   ;;  %v2416_v38 = vld [vmem:[%s2300_s15 + $0x28] ss:$16 sps:$4 sm:$0xff]  }
  0x48   : > { %v2072_v3 = vld [vmem:[%s2298_s14 + $0x124] ss:$16 sps:$4 sm:$0xff]   ;;  %v2077_v6 = vld [vmem:[%s2298_s14 + $0x320] ss:$16 sps:$4 sm:$0xff]  }
  0x49   : > { %1137 = vmatpush1.bf16.msra.mxu0 %v2034_v39  ;;  %v2074_v4 = vld [vmem:[%s2298_s14 + $0x324] ss:$16 sps:$4 sm:$0xff]   ;;  %v2082_v9 = vld [vmem:[%s2298_s14 + $0x100] ss:$16 sps:$4 sm:$0xff]   ;;  %v2120_v39 = vld [vmem:[%s2298_s14 + $0x48] ss:$16 sps:$4 sm:$0xff]  }
  0x4a   : > { %1190 = vmatpush1.bf16.msra.mxu1 %v2035_v40  ;;  %1138 = vmatprep.subr.bf16.mxu0 %v2036_v41  ;;  %v2078_v7 = vld [vmem:[%s2298_s14 + $0x104] ss:$16 sps:$4 sm:$0xff]   ;;  %v2083_v10 = vld [vmem:[%s2298_s14 + $0x300] ss:$16 sps:$4 sm:$0xff]   ;;  %v2123_v40 = vld [vmem:[%s2298_s14 + $0x248] ss:$16 sps:$4 sm:$0xff]  }
  0x4b   : > { %1191 = vmatprep.subr.bf16.mxu1 %v2038_v42  ;;  %v2080_v8 = vld [vmem:[%s2298_s14 + $0x304] ss:$16 sps:$4 sm:$0xff]   ;;  %v2378_v13 = vld [vmem:[%s2300_s15] ss:$16 sps:$4 sm:$0xff]   ;;  %v2128_v41 = vld [vmem:[%s2298_s14 + $0x2c] ss:$16 sps:$4 sm:$0xff]  }
  0x4c   : > { %v2406_v35 = vld [vmem:[%s2300_s15 + $0x24] ss:$16 sps:$4 sm:$0xff]   ;;  %v2413_v37 = vld [vmem:[%s2300_s15 + $0x20] ss:$16 sps:$4 sm:$0xff]   ;;  %v2131_v42 = vld [vmem:[%s2298_s14 + $0x22c] ss:$16 sps:$4 sm:$0xff]  }
  0x4d   : > { %1139 = vmatpush2.bf16.msra.mxu0 %v2040_v43  ;;  %v2126_v43 = vld [vmem:[%s2298_s14 + $0x28] ss:$16 sps:$4 sm:$0xff]  }
  0x4e   : > { %1192 = vmatpush2.bf16.msra.mxu1 %v2041_v44  ;;  %1140 = vmatprep.subr.bf16.mxu0 %v2042_v45  ;;  %v2129_v44 = vld [vmem:[%s2298_s14 + $0x228] ss:$16 sps:$4 sm:$0xff]   ;;  %v2134_v45 = vld [vmem:[%s2298_s14 + $0xc] ss:$16 sps:$4 sm:$0xff]  }
  0x4f   : > { %1193 = vmatprep.subr.bf16.mxu1 %v2044_v46  ;;  %v2137_v46 = vld [vmem:[%s2298_s14 + $0x20c] ss:$16 sps:$4 sm:$0xff]  }
  0x51   : > { %1141 = vmatpush2.bf16.msra.mxu0 %v2046_v47  ;;  %v2132_v47 = vld [vmem:[%s2298_s14 + $0x8] ss:$16 sps:$4 sm:$0xff]  }
  0x52   : > { %1194 = vmatpush2.bf16.msra.mxu1 %v2047_v48  ;;  %1142 = vmatprep.subr.bf16.mxu0 %v2048_v49  ;;  %v2135_v48 = vld [vmem:[%s2298_s14 + $0x208] ss:$16 sps:$4 sm:$0xff]   ;;  %v2140_v49 = vld [vmem:[%s2298_s14 + $0x1ec] ss:$16 sps:$4 sm:$0xff]  }
  0x53   : > { %1195 = vmatprep.subr.bf16.mxu1 %v2050_v50  ;;  %v2143_v50 = vld [vmem:[%s2298_s14 + $0x3ec] ss:$16 sps:$4 sm:$0xff]  }
  0x55   : > { %1143 = vmatpush2.bf16.msra.mxu0 %v2052_v51  ;;  %v2138_v51 = vld [vmem:[%s2298_s14 + $0x1e8] ss:$16 sps:$4 sm:$0xff]  }
  0x56   : > { %1196 = vmatpush2.bf16.msra.mxu1 %v2053_v52  ;;  %1144 = vmatprep.subr.bf16.mxu0 %v2054_v53  ;;  %v2141_v52 = vld [vmem:[%s2298_s14 + $0x3e8] ss:$16 sps:$4 sm:$0xff]   ;;  %v2146_v53 = vld [vmem:[%s2298_s14 + $0x1cc] ss:$16 sps:$4 sm:$0xff]  }
  0x57   : > { %1197 = vmatprep.subr.bf16.mxu1 %v2056_v54  ;;  %v2149_v54 = vld [vmem:[%s2298_s14 + $0x3cc] ss:$16 sps:$4 sm:$0xff]  }
  0x59   : > { %1145 = vmatpush2.bf16.msra.mxu0 %v2058_v55  ;;  %v2144_v55 = vld [vmem:[%s2298_s14 + $0x1c8] ss:$16 sps:$4 sm:$0xff]  }
  0x5a   : > { %1198 = vmatpush2.bf16.msra.mxu1 %v2059_v56  ;;  %1146 = vmatprep.subr.bf16.mxu0 %v2060_v57  ;;  %v2147_v56 = vld [vmem:[%s2298_s14 + $0x3c8] ss:$16 sps:$4 sm:$0xff]   ;;  %v2152_v57 = vld [vmem:[%s2298_s14 + $0x1ac] ss:$16 sps:$4 sm:$0xff]  }
  0x5b   : > { %1199 = vmatprep.subr.bf16.mxu1 %v2062_v59  ;;  %v2150_v59 = vld [vmem:[%s2298_s14 + $0x1a8] ss:$16 sps:$4 sm:$0xff]  }
  0x5d   : > { %1147 = vmatpush2.bf16.msra.mxu0 %v2064_v61  ;;  %v2158_v61 = vld [vmem:[%s2298_s14 + $0x18c] ss:$16 sps:$4 sm:$0xff]  }
  0x5e   : > { %1200 = vmatpush2.bf16.msra.mxu1 %v2065_v62  ;;  %1148 = vmatprep.subr.bf16.mxu0 %v2066_v63  ;;  %v2161_v62 = vld [vmem:[%s2298_s14 + $0x38c] ss:$16 sps:$4 sm:$0xff]   ;;  %v2156_v63 = vld [vmem:[%s2298_s14 + $0x188] ss:$16 sps:$4 sm:$0xff]  }
  0x5f   : > { %1201 = vmatprep.subr.bf16.mxu1 %v2068_v0  ;;  %v2159_v0 = vld [vmem:[%s2298_s14 + $0x388] ss:$16 sps:$4 sm:$0xff]  }
  0x61   : > { %1149 = vmatpush2.bf16.msra.mxu0 %v2070_v1  ;;  %v2164_v1 = vld [vmem:[%s2298_s14 + $0x16c] ss:$16 sps:$4 sm:$0xff]  }
  0x62   : > { %1202 = vmatpush2.bf16.msra.mxu1 %v2071_v2  ;;  %1150 = vmatprep.subr.bf16.mxu0 %v2072_v3  ;;  %v2167_v2 = vld [vmem:[%s2298_s14 + $0x36c] ss:$16 sps:$4 sm:$0xff]   ;;  %v2162_v3 = vld [vmem:[%s2298_s14 + $0x168] ss:$16 sps:$4 sm:$0xff]  }
  0x63   : > { %1203 = vmatprep.subr.bf16.mxu1 %v2074_v4  ;;  %v2165_v4 = vld [vmem:[%s2298_s14 + $0x368] ss:$16 sps:$4 sm:$0xff]  }
  0x65   : > { %1151 = vmatpush2.bf16.msra.mxu0 %v2076_v5  ;;  %v2176_v5 = vld [vmem:[%s2298_s14 + $0x14c] ss:$16 sps:$4 sm:$0xff]  }
  0x66   : > { %1204 = vmatpush2.bf16.msra.mxu1 %v2077_v6  ;;  %1152 = vmatprep.subr.bf16.mxu0 %v2078_v7  ;;  %v2179_v6 = vld [vmem:[%s2298_s14 + $0x34c] ss:$16 sps:$4 sm:$0xff]   ;;  %v2174_v7 = vld [vmem:[%s2298_s14 + $0x148] ss:$16 sps:$4 sm:$0xff]  }
  0x67   : > { %1205 = vmatprep.subr.bf16.mxu1 %v2080_v8  ;;  %v2177_v8 = vld [vmem:[%s2298_s14 + $0x348] ss:$16 sps:$4 sm:$0xff]  }
  0x69   : > { %1153 = vmatpush2.bf16.msra.mxu0 %v2082_v9  ;;  %v2182_v9 = vld [vmem:[%s2298_s14 + $0x12c] ss:$16 sps:$4 sm:$0xff]  }
  0x6a   : > { %1206 = vmatpush2.bf16.msra.mxu1 %v2083_v10  ;;  %1228 = vmatprep.subr.bf16.mxu0 %v2092_v11  ;;  %v2185_v10 = vld [vmem:[%s2298_s14 + $0x32c] ss:$16 sps:$4 sm:$0xff]   ;;  %v2180_v11 = vld [vmem:[%s2298_s14 + $0x128] ss:$16 sps:$4 sm:$0xff]  }
  0x6b   : > { %1281 = vmatprep.subr.bf16.mxu1 %v2095_v12  ;;  %v2183_v12 = vld [vmem:[%s2298_s14 + $0x328] ss:$16 sps:$4 sm:$0xff]  }
  0x6c   : > { %1155 = vmatmul.mubr.bf16.vlgmr.msra.gmra.mxu0 %v2378_v13 }
  0x6d   : > { %1208 = vmatmul.mubr.bf16.vlgmr.msra.gmra.mxu1 %v2381_v14  ;;  %1229 = vmatpush1.bf16.msra.mxu0 %v2090_v15  ;;  %v2188_v15 = vld [vmem:[%s2298_s14 + $0x10c] ss:$16 sps:$4 sm:$0xff]  }
  0x6e   : > { %1282 = vmatpush1.bf16.msra.mxu1 %v2093_v16  ;;  %1230 = vmatprep.subr.bf16.mxu0 %v2098_v17  ;;  %v2191_v16 = vld [vmem:[%s2298_s14 + $0x30c] ss:$16 sps:$4 sm:$0xff]   ;;  %v2186_v17 = vld [vmem:[%s2298_s14 + $0x108] ss:$16 sps:$4 sm:$0xff]  }
  0x6f   : > { %1283 = vmatprep.subr.bf16.mxu1 %v2101_v18  ;;  %1164 = vmatprep.mubr.bf16.mxu0 %v2406_v35  ;;  %v2189_v18 = vld [vmem:[%s2298_s14 + $0x308] ss:$16 sps:$4 sm:$0xff]  }
  0x70   : > { %1217 = vmatprep.mubr.bf16.mxu1 %v2409_v36 }
  0x71   : > { %1231 = vmatpush1.bf16.msra.mxu0 %v2096_v19 }
  0x72   : > { %1284 = vmatpush1.bf16.msra.mxu1 %v2099_v20  ;;  %1232 = vmatprep.subr.bf16.mxu0 %v2104_v21  ;;  %v290_v20 = vld [vmem:[#allocation2 + $0x30] sm:$0xff] }
  0x73   : > { %1285 = vmatprep.subr.bf16.mxu1 %v2107_v22 }
  0x74   : > { %1165 = vmatmul.mubr.bf16.gmra.mxu0 %v2413_v37 }
  0x75   : > { %1233 = vmatpush1.bf16.msra.mxu0 %v2102_v23  ;;  %1218 = vmatmul.mubr.bf16.gmra.mxu1 %v2416_v38 }
  0x76   : > { %1286 = vmatpush1.bf16.msra.mxu1 %v2105_v24  ;;  %1234 = vmatprep.subr.bf16.mxu0 %v2110_v25  ;;  %v291_v24 = vld [vmem:[#allocation2] sm:$0xff] }
  0x77   : > { %1287 = vmatprep.subr.bf16.mxu1 %v2113_v26  ;;  %1260 = vmatprep.mubr.bf16.mxu0 %v2353_v58  ;;  %v2155_v58 = vld [vmem:[%s2298_s14 + $0x3ac] ss:$16 sps:$4 sm:$0xff]  }
  0x78   : > { %1313 = vmatprep.mubr.bf16.mxu1 %v2357_v60  ;;  %v2153_v60 = vld [vmem:[%s2298_s14 + $0x3a8] ss:$16 sps:$4 sm:$0xff]  }
  0x79   : > { %1235 = vmatpush1.bf16.msra.mxu0 %v2108_v27 }
  0x7a   : > { %1288 = vmatpush1.bf16.msra.mxu1 %v2111_v28  ;;  %1236 = vmatprep.subr.bf16.mxu0 %v2116_v29  ;;  %v294_v28 = vld [vmem:[#allocation2 + $0x50] sm:$0xff] }
  0x7b   : > { %1289 = vmatprep.subr.bf16.mxu1 %v2119_v30 }
  0x7d   : > { %1237 = vmatpush1.bf16.msra.mxu0 %v2114_v31 }
  0x7e   : > { %1290 = vmatpush1.bf16.msra.mxu1 %v2117_v32  ;;  %1238 = vmatprep.subr.bf16.mxu0 %v2122_v33  ;;  %v295_v32 = vld [vmem:[#allocation2 + $0x68] sm:$0xff] }
  0x7f   : > { %1291 = vmatprep.subr.bf16.mxu1 %v2125_v34 }
  0x81   : > { %1239 = vmatpush1.bf16.msra.mxu0 %v2120_v39 }
  0x82   : > { %1292 = vmatpush1.bf16.msra.mxu1 %v2123_v40  ;;  %1240 = vmatprep.subr.bf16.mxu0 %v2128_v41 }
  0x83   : > { %1293 = vmatprep.subr.bf16.mxu1 %v2131_v42  ;;  %v299_v42 = vld [vmem:[#allocation2 + $0x20] sm:$0xff] }
  0x85   : > { %1241 = vmatpush1.bf16.msra.mxu0 %v2126_v43 }
  0x86   : > { %1294 = vmatpush1.bf16.msra.mxu1 %v2129_v44  ;;  %1242 = vmatprep.subr.bf16.mxu0 %v2134_v45 }
  0x87   : > { %1295 = vmatprep.subr.bf16.mxu1 %v2137_v46 }
  0x89   : > { %1243 = vmatpush1.bf16.msra.mxu0 %v2132_v47  ;;  %v302_v47 = vld [vmem:[#allocation2 + $0x60] sm:$0xff] }
  0x8a   : > { %1296 = vmatpush1.bf16.msra.mxu1 %v2135_v48  ;;  %1244 = vmatprep.subr.bf16.mxu0 %v2140_v49 }
  0x8b   : > { %1297 = vmatprep.subr.bf16.mxu1 %v2143_v50 }
  0x8d   : > { %1245 = vmatpush2.bf16.msra.mxu0 %v2138_v51 }
  0x8e   : > { %1298 = vmatpush2.bf16.msra.mxu1 %v2141_v52  ;;  %1246 = vmatprep.subr.bf16.mxu0 %v2146_v53  ;;  %v303_v52 = vld [vmem:[#allocation2 + $0x70] sm:$0xff] }
  0x8f   : > { %1299 = vmatprep.subr.bf16.mxu1 %v2149_v54 }
  0x91   : > { %1247 = vmatpush2.bf16.msra.mxu0 %v2144_v55 }
  0x92   : > { %1300 = vmatpush2.bf16.msra.mxu1 %v2147_v56  ;;  %1248 = vmatprep.subr.bf16.mxu0 %v2152_v57 }
  0x93   : > { %1301 = vmatprep.subr.bf16.mxu1 %v2155_v58  ;;  %v292_v58 = vld [vmem:[#allocation2 + $0x58] sm:$0xff] }
  0x95   : > { %1249 = vmatpush2.bf16.msra.mxu0 %v2150_v59 }
  0x96   : > { %1302 = vmatpush2.bf16.msra.mxu1 %v2153_v60  ;;  %1250 = vmatprep.subr.bf16.mxu0 %v2158_v61 }
  0x97   : > { %1303 = vmatprep.subr.bf16.mxu1 %v2161_v62  ;;  %v293_v62 = vld [vmem:[#allocation2 + $0x18] sm:$0xff] }
  0x99   : > { %1251 = vmatpush2.bf16.msra.mxu0 %v2156_v63 }
  0x9a   : > { %1304 = vmatpush2.bf16.msra.mxu1 %v2159_v0  ;;  %1252 = vmatprep.subr.bf16.mxu0 %v2164_v1 }
  0x9b   : > { %1305 = vmatprep.subr.bf16.mxu1 %v2167_v2 }
  0x9d   : > { %1253 = vmatpush2.bf16.msra.mxu0 %v2162_v3  ;;  %v296_v3 = vld [vmem:[#allocation2 + $0x8] sm:$0xff] }
  0x9e   : > { %1306 = vmatpush2.bf16.msra.mxu1 %v2165_v4  ;;  %1254 = vmatprep.subr.bf16.mxu0 %v2176_v5 }
  0x9f   : > { %1307 = vmatprep.subr.bf16.mxu1 %v2179_v6 }
  0xa1   : > { %1255 = vmatpush2.bf16.msra.mxu0 %v2174_v7 }
  0xa2   : > { %1308 = vmatpush2.bf16.msra.mxu1 %v2177_v8  ;;  %1256 = vmatprep.subr.bf16.mxu0 %v2182_v9  ;;  %v297_v8 = vld [vmem:[#allocation2 + $0x48] sm:$0xff] }
  0xa3   : > { %1309 = vmatprep.subr.bf16.mxu1 %v2185_v10 }
  0xa5   : > { %1257 = vmatpush2.bf16.msra.mxu0 %v2180_v11 }
  0xa6   : > { %1310 = vmatpush2.bf16.msra.mxu1 %v2183_v12  ;;  %1258 = vmatprep.subr.bf16.mxu0 %v2188_v15  ;;  %v300_v15 = vld [vmem:[#allocation2 + $0x10] sm:$0xff] }
  0xa7   : > { %1311 = vmatprep.subr.bf16.mxu1 %v2191_v16 }
  0xa9   : > { %1259 = vmatpush2.bf16.msra.mxu0 %v2186_v17 }
  0xaa   : > { %1312 = vmatpush2.bf16.msra.mxu1 %v2189_v18 }
  0xac   : > { %1261 = vmatmul.mubr.bf16.vlgmr.msra.gmra.mxu0 %v2378_v13 }
  0xad   : > { %1314 = vmatmul.mubr.bf16.vlgmr.msra.gmra.mxu1 %v2381_v14  ;;  %1270 = vmatprep.mubr.bf16.mxu0 %v2406_v35 }
  0xae   : > { %1323 = vmatprep.mubr.bf16.mxu1 %v2409_v36 }
  0xb4   : > { %1271 = vmatmul.mubr.bf16.gmra.mxu0 %v2413_v37 }
  0xb5   : > { %1324 = vmatmul.mubr.bf16.gmra.mxu1 %v2416_v38  ;;  %v298_v38 = vld [vmem:[#allocation2 + $0x40] sm:$0xff] }
 0x12c   : > { %v1156_v19 = vpop.f32.mrf.mxu0 }
 0x12d   : > { %v1209_v21 = vpop.f32.mrf.mxu1 }
 0x12e   : > { %v1210_v22 = vadd.f32 %v1209_v21, %v1156_v19  ;;  %v1158_v23 = vpop.f32.mrf.mxu0 }
 0x12f   : > { %v1211_v25 = vpop.f32.mrf.mxu1 }
 0x130   : > { %v1334_v26 = vadd.f32 %v1210_v22, %v290_v20  ;;  %v1212_v27 = vadd.f32 %v1211_v25, %v1158_v23  ;;  %v1160_v13 = vpop.f32.mrf.mxu0  ;;  %v301_v20 = vld [vmem:[#allocation2 + $0x38] sm:$0xff] }
 0x131   : > { %v1213_v14 = vpop.f32.mrf.mxu1  ;;  %v304_v25 = vld [vmem:[#allocation2 + $0x78] sm:$0xff] }
 0x132   : > { %1350 = vst [vmem:[#allocation2 + $0x30] sm:$0xff] %v1334_v26  ;;  %v1335_v29 = vadd.f32 %v1212_v27, %v291_v24  ;;  %v1214_v30 = vadd.f32 %v1213_v14, %v1160_v13  ;;  %v1162_v31 = vpop.f32.mrf.mxu0  ;;  %v305_v14 = vld [vmem:[#allocation2 + $0x28] sm:$0xff] }
 0x133   : > { %v1215_v33 = vpop.f32.mrf.mxu1 }
 0x134   : > { %1351 = vst [vmem:[#allocation2] sm:$0xff] %v1335_v29  ;;  %v1338_v34 = vadd.f32 %v1214_v30, %v294_v28  ;;  %v1216_v35 = vadd.f32 %v1215_v33, %v1162_v31  ;;  %v1166_v37 = vpop.f32.mrf.mxu0 }
 0x135   : > { %v1219_v39 = vpop.f32.mrf.mxu1 }
 0x136   : > { %1354 = vst [vmem:[#allocation2 + $0x50] sm:$0xff] %v1338_v34  ;;  %v1339_v36 = vadd.f32 %v1216_v35, %v295_v32  ;;  %v1220_v40 = vadd.f32 %v1219_v39, %v1166_v37  ;;  %v1168_v41 = vpop.f32.mrf.mxu0 }
 0x137   : > { %v1221_v43 = vpop.f32.mrf.mxu1 }
 0x138   : > { %1355 = vst [vmem:[#allocation2 + $0x68] sm:$0xff] %v1339_v36  ;;  %v1342_v44 = vadd.f32 %v1220_v40, %v298_v38  ;;  %v1222_v45 = vadd.f32 %v1221_v43, %v1168_v41  ;;  %v1170_v46 = vpop.f32.mrf.mxu0 }
 0x139   : > { %v1223_v48 = vpop.f32.mrf.mxu1 }
 0x13a   : > { %1358 = vst [vmem:[#allocation2 + $0x40] sm:$0xff] %v1342_v44  ;;  %v1343_v49 = vadd.f32 %v1222_v45, %v299_v42  ;;  %v1224_v50 = vadd.f32 %v1223_v48, %v1170_v46  ;;  %v1172_v51 = vpop.f32.mrf.mxu0 }
 0x13b   : > { %v1225_v53 = vpop.f32.mrf.mxu1 }
 0x13c   : > { %1359 = vst [vmem:[#allocation2 + $0x20] sm:$0xff] %v1343_v49  ;;  %v1346_v54 = vadd.f32 %v1224_v50, %v302_v47  ;;  %v1226_v55 = vadd.f32 %v1225_v53, %v1172_v51 }
 0x13e   : > { %1362 = vst [vmem:[#allocation2 + $0x60] sm:$0xff] %v1346_v54  ;;  %v1347_v56 = vadd.f32 %v1226_v55, %v303_v52 }
 0x140   : > { %1363 = vst [vmem:[#allocation2 + $0x70] sm:$0xff] %v1347_v56 }
 0x16c   : > { %v1262_v57 = vpop.f32.mrf.mxu0 }
 0x16d   : > { %v1315_v59 = vpop.f32.mrf.mxu1 }
 0x16e   : > { %v1316_v60 = vadd.f32 %v1315_v59, %v1262_v57  ;;  %v1264_v61 = vpop.f32.mrf.mxu0 }
 0x16f   : > { %v1317_v63 = vpop.f32.mrf.mxu1 }
 0x170   : > { %v1336_v0 = vadd.f32 %v1316_v60, %v292_v58  ;;  %v1318_v1 = vadd.f32 %v1317_v63, %v1264_v61  ;;  %v1266_v2 = vpop.f32.mrf.mxu0 }
 0x171   : > { %v1319_v4 = vpop.f32.mrf.mxu1 }
 0x172   : > { %1352 = vst [vmem:[#allocation2 + $0x58] sm:$0xff] %v1336_v0  ;;  %v1337_v5 = vadd.f32 %v1318_v1, %v293_v62  ;;  %v1320_v6 = vadd.f32 %v1319_v4, %v1266_v2  ;;  %v1268_v7 = vpop.f32.mrf.mxu0 }
 0x173   : > { %v1321_v9 = vpop.f32.mrf.mxu1 }
 0x174   : > { %1353 = vst [vmem:[#allocation2 + $0x18] sm:$0xff] %v1337_v5  ;;  %v1340_v10 = vadd.f32 %v1320_v6, %v296_v3  ;;  %v1322_v11 = vadd.f32 %v1321_v9, %v1268_v7  ;;  %v1272_v12 = vpop.f32.mrf.mxu0 }
 0x175   : > { %v1325_v16 = vpop.f32.mrf.mxu1 }
 0x176   : > { %1356 = vst [vmem:[#allocation2 + $0x8] sm:$0xff] %v1340_v10  ;;  %v1341_v17 = vadd.f32 %v1322_v11, %v297_v8  ;;  %v1326_v18 = vadd.f32 %v1325_v16, %v1272_v12  ;;  %v1274_v19 = vpop.f32.mrf.mxu0 }
 0x177   : > { %v1327_v21 = vpop.f32.mrf.mxu1 }
 0x178   : > { %1357 = vst [vmem:[#allocation2 + $0x48] sm:$0xff] %v1341_v17  ;;  %v1344_v22 = vadd.f32 %v1326_v18, %v300_v15  ;;  %v1328_v23 = vadd.f32 %v1327_v21, %v1274_v19  ;;  %v1276_v24 = vpop.f32.mrf.mxu0 }
 0x179   : > { %v1329_v26 = vpop.f32.mrf.mxu1 }
 0x17a   : > { %1360 = vst [vmem:[#allocation2 + $0x10] sm:$0xff] %v1344_v22  ;;  %v1345_v27 = vadd.f32 %v1328_v23, %v301_v20  ;;  %v1330_v13 = vadd.f32 %v1329_v26, %v1276_v24  ;;  %v1278_v28 = vpop.f32.mrf.mxu0 }
 0x17b   : > { %v1331_v29 = vpop.f32.mrf.mxu1 }
 0x17c   : > { %1361 = vst [vmem:[#allocation2 + $0x38] sm:$0xff] %v1345_v27  ;;  %v1348_v30 = vadd.f32 %v1330_v13, %v304_v25  ;;  %v1332_v31 = vadd.f32 %v1331_v29, %v1278_v28  ;;  %1369 = sbr.rel (%p1942_p10) target bundleno = 469 (0x1d5), region = 71 }
 0x17e   : > { %1364 = vst [vmem:[#allocation2 + $0x78] sm:$0xff] %v1348_v30  ;;  %v1349_v32 = vadd.f32 %v1332_v31, %v305_v14 }
 0x180   : > { %1365 = vst [vmem:[#allocation2 + $0x28] sm:$0xff] %v1349_v32 }
 0x181   : > { %v1388_v33 = vlaneseq  ;;  %v1386_v35 = vld [vmem:[%s2696_s2] sm:$0xf]  ;;  %v1370_v36 = vld [vmem:[#allocation2 + $0x30] sm:$0xff]  ;;  %v1375_v42 = vld [vmem:[#allocation2 + $0x68] sm:$0xff] }
 0x182   : > { %v1371_v37 = vld [vmem:[#allocation2] sm:$0xff]  ;;  %v1374_v41 = vld [vmem:[#allocation2 + $0x50] sm:$0xff]  ;;  %v1372_v0 = vld [vmem:[#allocation2 + $0x58] sm:$0xff] }
 0x183   : > { %v1389_v34 = vshrl.u32 %v1388_v33, 7  ;;  %v1378_v43 = vld [vmem:[#allocation2 + $0x40] sm:$0xff]  ;;  %v1383_v47 = vld [vmem:[#allocation2 + $0x70] sm:$0xff]  ;;  %v1373_v1 = vld [vmem:[#allocation2 + $0x18] sm:$0xff] }
 0x184   : > { %v1379_v45 = vld [vmem:[#allocation2 + $0x20] sm:$0xff]  ;;  %v1376_v6 = vld [vmem:[#allocation2 + $0x8] sm:$0xff]  ;;  %v1380_v12 = vld [vmem:[#allocation2 + $0x10] sm:$0xff] }
 0x185   : > { %v2475_v38 = vsub.s32 0, %v1389_v34  ;;  %v2477_v39 = vsub.s32 1, %v1389_v34  ;;  %v2479_v40 = vsub.s32 2, %v1389_v34  ;;  %v2481_v44 = vsub.s32 3, %v1389_v34  ;;  %v1382_v46 = vld [vmem:[#allocation2 + $0x60] sm:$0xff]  ;;  %v1377_v7 = vld [vmem:[#allocation2 + $0x48] sm:$0xff] }
 0x186   : > { %v1381_v15 = vld [vmem:[#allocation2 + $0x38] sm:$0xff] }
 0x187   : > { %v1391_v48 = vrot.slane %v1386_v35, %v2475_v38  ;;  %v1395_v49 = vrot.slane %v1386_v35, %v2477_v39  ;;  %v1399_v50 = vrot.slane %v1386_v35, %v2479_v40  ;;  %v1403_v51 = vrot.slane %v1386_v35, %v2481_v44  ;;  %v1384_v18 = vld [vmem:[#allocation2 + $0x78] sm:$0xff]  ;;  %v1385_v19 = vld [vmem:[#allocation2 + $0x28] sm:$0xff] }
 0x189   : > { %v2487_v52 = vadd.f32 %v1391_v48, %v1370_v36  ;;  %v2489_v53 = vadd.f32 %v1395_v49, %v1371_v37  ;;  %v2491_v54 = vadd.f32 %v1391_v48, %v1374_v41  ;;  %v2493_v55 = vadd.f32 %v1395_v49, %v1375_v42 }
 0x18a   : > { %v2495_v56 = vadd.f32 %v1391_v48, %v1378_v43  ;;  %v2497_v57 = vadd.f32 %v1395_v49, %v1379_v45  ;;  %v2499_v58 = vadd.f32 %v1391_v48, %v1382_v46  ;;  %v2501_v59 = vadd.f32 %v1395_v49, %v1383_v47 }
 0x18b   : > { %v1424_v60 = vadd.f32 %v2491_v54, %v2487_v52  ;;  %v1433_v61 = vadd.f32 %v2493_v55, %v2489_v53  ;;  %v1460_v62 = vmul.f32 %v2487_v52, %v2487_v52  ;;  %v1461_v63 = vmul.f32 %v2489_v53, %v2489_v53 }
 0x18c   : > { %v1464_v2 = vmul.f32 %v2491_v54, %v2491_v54  ;;  %v1465_v3 = vmul.f32 %v2493_v55, %v2493_v55  ;;  %v1468_v4 = vmul.f32 %v2495_v56, %v2495_v56  ;;  %v1469_v5 = vmul.f32 %v2497_v57, %v2497_v57 }
 0x18d   : > { %v1425_v8 = vadd.f32 %v1424_v60, %v2495_v56  ;;  %v1434_v9 = vadd.f32 %v1433_v61, %v2497_v57  ;;  %v1472_v10 = vmul.f32 %v2499_v58, %v2499_v58  ;;  %v1473_v11 = vmul.f32 %v2501_v59, %v2501_v59 }
 0x18e   : > { %v1476_v16 = vadd.f32 %v1464_v2, %v1460_v62  ;;  %v1485_v17 = vadd.f32 %v1465_v3, %v1461_v63  ;;  %v2525_v20 = vadd.f32 %v1399_v50, %v1372_v0  ;;  %v2527_v21 = vadd.f32 %v1403_v51, %v1373_v1 }
 0x18f   : > { %v1426_v22 = vadd.f32 %v1425_v8, %v2499_v58  ;;  %v1435_v23 = vadd.f32 %v1434_v9, %v2501_v59  ;;  %v2531_v24 = vadd.f32 %v1399_v50, %v1376_v6  ;;  %v2533_v25 = vadd.f32 %v1403_v51, %v1377_v7 }
 0x190   : > { %v1477_v26 = vadd.f32 %v1476_v16, %v1468_v4  ;;  %v1486_v27 = vadd.f32 %v1485_v17, %v1469_v5  ;;  %v2535_v13 = vadd.f32 %v1399_v50, %v1380_v12  ;;  %v2537_v28 = vadd.f32 %v1403_v51, %v1381_v15 }
 0x191   : > { %v1427_v14 = vrot.slane %v1426_v22, 4  ;;  %v1436_v29 = vrot.slane %v1435_v23, 4  ;;  %v2539_v30 = vadd.f32 %v1399_v50, %v1384_v18  ;;  %v2541_v31 = vadd.f32 %v1403_v51, %v1385_v19 }
 0x192   : > { %v1478_v32 = vadd.f32 %v1477_v26, %v1472_v10  ;;  %v1487_v33 = vadd.f32 %v1486_v27, %v1473_v11  ;;  %v1442_v34 = vadd.f32 %v2531_v24, %v2525_v20  ;;  %v1451_v35 = vadd.f32 %v2533_v25, %v2527_v21 }
 0x193   : > { %v1428_v36 = vadd.f32 %v1427_v14, %v1426_v22  ;;  %v1437_v37 = vadd.f32 %v1436_v29, %v1435_v23  ;;  %v1462_v41 = vmul.f32 %v2525_v20, %v2525_v20  ;;  %v1463_v42 = vmul.f32 %v2527_v21, %v2527_v21 }
 0x194   : > { %v1479_v43 = vrot.slane %v1478_v32, 4  ;;  %v1488_v45 = vrot.slane %v1487_v33, 4  ;;  %v1443_v46 = vadd.f32 %v1442_v34, %v2535_v13  ;;  %v1452_v47 = vadd.f32 %v1451_v35, %v2537_v28 }
 0x195   : > { %v1429_v48 = vrot.slane %v1428_v36, 2  ;;  %v1438_v49 = vrot.slane %v1437_v37, 2  ;;  %v1466_v50 = vmul.f32 %v2531_v24, %v2531_v24  ;;  %v1467_v51 = vmul.f32 %v2533_v25, %v2533_v25 }
 0x196   : > { %v1480_v60 = vadd.f32 %v1479_v43, %v1478_v32  ;;  %v1489_v61 = vadd.f32 %v1488_v45, %v1487_v33  ;;  %v1444_v62 = vadd.f32 %v1443_v46, %v2539_v30  ;;  %v1453_v63 = vadd.f32 %v1452_v47, %v2541_v31 }
 0x197   : > { %v1430_v0 = vadd.f32 %v1429_v48, %v1428_v36  ;;  %v1439_v1 = vadd.f32 %v1438_v49, %v1437_v37  ;;  %v1470_v2 = vmul.f32 %v2535_v13, %v2535_v13  ;;  %v1471_v3 = vmul.f32 %v2537_v28, %v2537_v28 }
 0x198   : > { %v1481_v4 = vrot.slane %v1480_v60, 2  ;;  %v1490_v5 = vrot.slane %v1489_v61, 2  ;;  %v1445_v6 = vrot.slane %v1444_v62, 4  ;;  %v1454_v7 = vrot.slane %v1453_v63, 4 }
 0x199   : > { %v1431_v8 = vrot.slane %v1430_v0, 1  ;;  %v1440_v9 = vrot.slane %v1439_v1, 1  ;;  %v1474_v10 = vmul.f32 %v2539_v30, %v2539_v30  ;;  %v1475_v11 = vmul.f32 %v2541_v31, %v2541_v31 }
 0x19a   : > { %v1482_v12 = vadd.f32 %v1481_v4, %v1480_v60  ;;  %v1491_v15 = vadd.f32 %v1490_v5, %v1489_v61  ;;  %v1446_v16 = vadd.f32 %v1445_v6, %v1444_v62  ;;  %v1455_v17 = vadd.f32 %v1454_v7, %v1453_v63 }
 0x19b   : > { %v1432_v18 = vadd.f32 %v1431_v8, %v1430_v0  ;;  %v1441_v19 = vadd.f32 %v1440_v9, %v1439_v1  ;;  %v1494_v22 = vadd.f32 %v1466_v50, %v1462_v41  ;;  %v1503_v23 = vadd.f32 %v1467_v51, %v1463_v42 }
 0x19c   : > { %v1483_v26 = vrot.slane %v1482_v12, 1  ;;  %v1492_v27 = vrot.slane %v1491_v15, 1  ;;  %v1447_v14 = vrot.slane %v1446_v16, 2  ;;  %v1456_v29 = vrot.slane %v1455_v17, 2 }
 0x19d   : > { %v2567_v32 = vmul.f32 0.03125, %v1432_v18  ;;  %v2569_v33 = vmul.f32 0.03125, %v1441_v19  ;;  %v1495_v34 = vadd.f32 %v1494_v22, %v1470_v2  ;;  %v1504_v35 = vadd.f32 %v1503_v23, %v1471_v3 }
 0x19e   : > { %v1484_v36 = vadd.f32 %v1483_v26, %v1482_v12  ;;  %v1493_v37 = vadd.f32 %v1492_v27, %v1491_v15  ;;  %v1448_v43 = vadd.f32 %v1447_v14, %v1446_v16  ;;  %v1457_v45 = vadd.f32 %v1456_v29, %v1455_v17  ;;  %v2587_v17 = vld [vmem:[%s2698_s4] sm:$0xf] }
 0x19f   : > { %v1520_v46 = vmul.f32 %v2567_v32, %v2567_v32  ;;  %v1521_v41 = vmul.f32 %v2569_v33, %v2569_v33  ;;  %v1496_v50 = vadd.f32 %v1495_v34, %v1474_v10  ;;  %v1505_v51 = vadd.f32 %v1504_v35, %v1475_v11  ;;  %v2582_v11 = vld [vmem:[%s2697_s3] sm:$0xf] }
 0x1a0   : > { %v1516_v42 = vmul.f32 0.03125, %v1484_v36  ;;  %v1517_v47 = vmul.f32 0.03125, %v1493_v37  ;;  %v1449_v48 = vrot.slane %v1448_v43, 1  ;;  %v1458_v49 = vrot.slane %v1457_v45, 1 }
 0x1a1   : > { %v1497_v62 = vrot.slane %v1496_v50, 4  ;;  %v1506_v63 = vrot.slane %v1505_v51, 4  ;;  %v1573_v26 = vrot.slane %v2582_v11, %v2475_v38  ;;  %v1577_v27 = vrot.slane %v2582_v11, %v2477_v39 }
 0x1a2   : > { %v1524_v60 = vsub.f32 %v1516_v42, %v1520_v46  ;;  %v1525_v61 = vsub.f32 %v1517_v47, %v1521_v41  ;;  %v1450_v2 = vadd.f32 %v1449_v48, %v1448_v43  ;;  %v1459_v3 = vadd.f32 %v1458_v49, %v1457_v45 }
 0x1a3   : > { %v1498_v4 = vadd.f32 %v1497_v62, %v1496_v50  ;;  %v1507_v5 = vadd.f32 %v1506_v63, %v1505_v51  ;;  %v1528_v14 = vsub.f32 %v2487_v52, %v2567_v32  ;;  %v2601_v29 = vrot.slane %v2587_v17, %v2475_v38 }
 0x1a4   : > { %v1544_v0 = vadd.f32 1e-05, %v1524_v60  ;;  %v1545_v1 = vadd.f32 1e-05, %v1525_v61  ;;  %v2575_v12 = vmul.f32 0.03125, %v1450_v2  ;;  %v2577_v10 = vmul.f32 0.03125, %v1459_v3 }
 0x1a5   : > { %v1499_v6 = vrot.slane %v1498_v4, 2  ;;  %v1508_v7 = vrot.slane %v1507_v5, 2  ;;  %v1529_v36 = vsub.f32 %v2489_v53, %v2569_v33  ;;  %v1532_v37 = vsub.f32 %v2491_v54, %v2567_v32 }
 0x1a6   : > { %2192 = vrsqrt.f32 %v1544_v0  ;;  %v1522_v22 = vmul.f32 %v2575_v12, %v2575_v12  ;;  %v1523_v23 = vmul.f32 %v2577_v10, %v2577_v10  ;;  %v1536_v43 = vsub.f32 %v2495_v56, %v2567_v32 }
 0x1a7   : > { %2194 = vrsqrt.f32 %v1545_v1  ;;  %v1500_v8 = vadd.f32 %v1499_v6, %v1498_v4  ;;  %v1509_v9 = vadd.f32 %v1508_v7, %v1507_v5  ;;  %v1540_v45 = vsub.f32 %v2499_v58, %v2567_v32 }
 0x1a8   : > { %v1533_v38 = vsub.f32 %v2493_v55, %v2569_v33  ;;  %v1537_v41 = vsub.f32 %v2497_v57, %v2569_v33  ;;  %v1615_v53 = vrot.slane %v2587_v17, %v2477_v39  ;;  %v1530_v54 = vsub.f32 %v2525_v20, %v2575_v12 }
 0x1a9   : > { %v1501_v15 = vrot.slane %v1500_v8, 1  ;;  %v1510_v16 = vrot.slane %v1509_v9, 1  ;;  %v1531_v56 = vsub.f32 %v2527_v21, %v2577_v10  ;;  %v1534_v58 = vsub.f32 %v2531_v24, %v2575_v12 }
 0x1aa   : > { %v1535_v55 = vsub.f32 %v2533_v25, %v2577_v10  ;;  %v1541_v57 = vsub.f32 %v2501_v59, %v2569_v33 }
 0x1ab   : > { %v1502_v18 = vadd.f32 %v1501_v15, %v1500_v8  ;;  %v1511_v19 = vadd.f32 %v1510_v16, %v1509_v9 }
 0x1ad   : > { %v1518_v34 = vmul.f32 0.03125, %v1502_v18  ;;  %v1519_v35 = vmul.f32 0.03125, %v1511_v19 }
 0x1af   : > { %v1526_v46 = vsub.f32 %v1518_v34, %v1522_v22  ;;  %v1527_v52 = vsub.f32 %v1519_v35, %v1523_v23 }
 0x1b1   : > { %v1546_v42 = vadd.f32 1e-05, %v1526_v46  ;;  %v1547_v47 = vadd.f32 1e-05, %v1527_v52 }
 0x1b3   : > { %v2193_v32 = vpop.eup %2192  ;;  %2196 = vrsqrt.f32 %v1546_v42 }
 0x1b4   : > { %v2195_v48 = vpop.eup %2194  ;;  %v1552_v39 = vmul.f32 %v2193_v32, %v1528_v14  ;;  %v1556_v49 = vmul.f32 %v2193_v32, %v1532_v37  ;;  %v1560_v50 = vmul.f32 %v2193_v32, %v1536_v43  ;;  %v1564_v51 = vmul.f32 %v2193_v32, %v1540_v45 }
 0x1b5   : > { %v1553_v60 = vmul.f32 %v2195_v48, %v1529_v36  ;;  %v1557_v61 = vmul.f32 %v2195_v48, %v1533_v38  ;;  %v1561_v62 = vmul.f32 %v2195_v48, %v1537_v41  ;;  %2198 = vrsqrt.f32 %v1547_v47 }
 0x1b6   : > { %v1590_v63 = vmul.f32 %v1573_v26, %v1552_v39  ;;  %v1594_v0 = vmul.f32 %v1573_v26, %v1556_v49  ;;  %v1598_v1 = vmul.f32 %v1573_v26, %v1560_v50  ;;  %v1565_v5 = vmul.f32 %v2195_v48, %v1541_v57 }
 0x1b7   : > { %v1591_v2 = vmul.f32 %v1577_v27, %v1553_v60  ;;  %v1595_v3 = vmul.f32 %v1577_v27, %v1557_v61  ;;  %v1599_v4 = vmul.f32 %v1577_v27, %v1561_v62  ;;  %v1602_v7 = vmul.f32 %v1573_v26, %v1564_v51 }
 0x1b8   : > { %v1628_v6 = vadd.f32 %v2601_v29, %v1590_v63  ;;  %v1632_v59 = vadd.f32 %v2601_v29, %v1594_v0  ;;  %v1636_v33 = vadd.f32 %v2601_v29, %v1598_v1  ;;  %v1603_v16 = vmul.f32 %v1577_v27, %v1565_v5 }
 0x1b9   : > { %v1629_v8 = vadd.f32 %v1615_v53, %v1591_v2  ;;  %v1633_v9 = vadd.f32 %v1615_v53, %v1595_v3  ;;  %v1637_v15 = vadd.f32 %v1615_v53, %v1599_v4  ;;  %v1640_v27 = vadd.f32 %v2601_v29, %v1602_v7 }
 0x1ba   : > { %vm1644_vm0 = vcmp.gt.f32.partialorder %v1628_v6, 0.0  ;;  %v1660_v18 = vmul.f32 0.2, %v1628_v6  ;;  %vm1648_vm1 = vcmp.gt.f32.partialorder %v1632_v59, 0.0  ;;  %v1664_v19 = vmul.f32 0.2, %v1632_v59 }
 0x1bb   : > { %vm1645_vm2 = vcmp.gt.f32.partialorder %v1629_v8, 0.0  ;;  %v1661_v22 = vmul.f32 0.2, %v1629_v8  ;;  %vm1649_vm3 = vcmp.gt.f32.partialorder %v1633_v9, 0.0  ;;  %v1665_v23 = vmul.f32 0.2, %v1633_v9 }
 0x1bc   : > { %v1676_v14 = vsel %vm1644_vm0, %v1628_v6, %v1660_v18  ;;  %v1680_v34 = vsel %vm1648_vm1, %v1632_v59, %v1664_v19  ;;  %vm1652_vm4 = vcmp.gt.f32.partialorder %v1636_v33, 0.0  ;;  %vm1653_vm5 = vcmp.gt.f32.partialorder %v1637_v15, 0.0 }
 0x1bd   : > { %v1677_v35 = vsel %vm1645_vm2, %v1629_v8, %v1661_v22  ;;  %v1681_v36 = vsel %vm1649_vm3, %v1633_v9, %v1665_v23  ;;  %v1668_v37 = vmul.f32 0.2, %v1636_v33  ;;  %v1669_v26 = vmul.f32 0.2, %v1637_v15 }
 0x1be   : > { %v1955_v43 = vpack.c.bf16 %v1677_v35, %v1676_v14  ;;  %v1957_v45 = vpack.c.bf16 %v1681_v36, %v1680_v34  ;;  %v1641_v46 = vadd.f32 %v1615_v53, %v1603_v16  ;;  %v1538_v41 = vsub.f32 %v2535_v13, %v2575_v12 }
 0x1bf   : > { %v1684_v52 = vsel %vm1652_vm4, %v1636_v33, %v1668_v37  ;;  %v1685_v38 = vsel %vm1653_vm5, %v1637_v15, %v1669_v26  ;;  %v1539_v32 = vsub.f32 %v2537_v28, %v2577_v10  ;;  %vm1656_vm6 = vcmp.gt.f32.partialorder %v1640_v27, 0.0 }
 0x1c0   : > { %1740 = vst [vmem:[%s2699_s5] sm:$0xff] %v1955_v43  ;;  %1742 = vst [vmem:[%s2699_s5 + $0x10] sm:$0xff] %v1957_v45  ;;  %v1959_v42 = vpack.c.bf16 %v1685_v38, %v1684_v52  ;;  %vm1657_vm7 = vcmp.gt.f32.partialorder %v1641_v46, 0.0  ;;  %v1672_v29 = vmul.f32 0.2, %v1640_v27  ;;  %v1581_v53 = vrot.slane %v2582_v11, %v2479_v40  ;;  %v2197_v57 = vpop.eup %2196 }
 0x1c1   : > { %v1585_v13 = vrot.slane %v2582_v11, %v2481_v44  ;;  %v1673_v47 = vmul.f32 0.2, %v1641_v46  ;;  %v1542_v28 = vsub.f32 %v2539_v30, %v2575_v12  ;;  %v1619_v48 = vrot.slane %v2587_v17, %v2479_v40 }
 0x1c2   : > { %v1623_v39 = vrot.slane %v2587_v17, %v2481_v44  ;;  %1744 = vst [vmem:[%s2699_s5 + $0x20] sm:$0xff] %v1959_v42  ;;  %v1688_v49 = vsel %vm1656_vm6, %v1640_v27, %v1672_v29  ;;  %v1543_v50 = vsub.f32 %v2541_v31, %v2577_v10  ;;  %v2199_v11 = vpop.eup %2198  ;;  %v1554_v30 = vmul.f32 %v2197_v57, %v1530_v54 }
 0x1c3   : > { %v1558_v40 = vmul.f32 %v2197_v57, %v1534_v58  ;;  %v1562_v51 = vmul.f32 %v2197_v57, %v1538_v41  ;;  %v1689_v44 = vsel %vm1657_vm7, %v1641_v46, %v1673_v47  ;;  %v1555_v17 = vmul.f32 %v2199_v11, %v1531_v56 }
 0x1c4   : > { %v1559_v31 = vmul.f32 %v2199_v11, %v1535_v55  ;;  %v1563_v60 = vmul.f32 %v2199_v11, %v1539_v32  ;;  %v1961_v61 = vpack.c.bf16 %v1689_v44, %v1688_v49  ;;  %v1592_v62 = vmul.f32 %v1581_v53, %v1554_v30 }
 0x1c5   : > { %v1596_v20 = vmul.f32 %v1581_v53, %v1558_v40  ;;  %v1600_v54 = vmul.f32 %v1581_v53, %v1562_v51  ;;  %v1566_v63 = vmul.f32 %v2197_v57, %v1542_v28  ;;  %v1593_v0 = vmul.f32 %v1585_v13, %v1555_v17 }
 0x1c6   : > { %v1597_v24 = vmul.f32 %v1585_v13, %v1559_v31  ;;  %v1601_v12 = vmul.f32 %v1585_v13, %v1563_v60  ;;  %1746 = vst [vmem:[%s2699_s5 + $0x30] sm:$0xff] %v1961_v61  ;;  %v1567_v58 = vmul.f32 %v2199_v11, %v1543_v50  ;;  %v1630_v21 = vadd.f32 %v1619_v48, %v1592_v62 }
 0x1c7   : > { %v1634_v56 = vadd.f32 %v1619_v48, %v1596_v20  ;;  %v1638_v1 = vadd.f32 %v1619_v48, %v1600_v54  ;;  %v1604_v2 = vmul.f32 %v1581_v53, %v1566_v63  ;;  %v1631_v25 = vadd.f32 %v1623_v39, %v1593_v0 }
 0x1c8   : > { %v1635_v10 = vadd.f32 %v1623_v39, %v1597_v24  ;;  %v1639_v55 = vadd.f32 %v1623_v39, %v1601_v12  ;;  %v1605_v3 = vmul.f32 %v1585_v13, %v1567_v58  ;;  %vm1646_vm8 = vcmp.gt.f32.partialorder %v1630_v21, 0.0 }
 0x1c9   : > { %v1662_v4 = vmul.f32 0.2, %v1630_v21  ;;  %vm1650_vm9 = vcmp.gt.f32.partialorder %v1634_v56, 0.0  ;;  %v1666_v5 = vmul.f32 0.2, %v1634_v56  ;;  %vm1647_vm10 = vcmp.gt.f32.partialorder %v1631_v25, 0.0 }
 0x1ca   : > { %v1663_v6 = vmul.f32 0.2, %v1631_v25  ;;  %vm1651_vm11 = vcmp.gt.f32.partialorder %v1635_v10, 0.0  ;;  %v1667_v59 = vmul.f32 0.2, %v1635_v10  ;;  %vm1654_vm12 = vcmp.gt.f32.partialorder %v1638_v1, 0.0 }
 0x1cb   : > { %v1678_v33 = vsel %vm1646_vm8, %v1630_v21, %v1662_v4  ;;  %v1682_v7 = vsel %vm1650_vm9, %v1634_v56, %v1666_v5  ;;  %vm1655_vm13 = vcmp.gt.f32.partialorder %v1639_v55, 0.0  ;;  %v1670_v15 = vmul.f32 0.2, %v1638_v1 }
 0x1cc   : > { %v1679_v8 = vsel %vm1647_vm10, %v1631_v25, %v1663_v6  ;;  %v1683_v9 = vsel %vm1651_vm11, %v1635_v10, %v1667_v59  ;;  %v1671_v16 = vmul.f32 0.2, %v1639_v55  ;;  %v1642_v22 = vadd.f32 %v1619_v48, %v1604_v2 }
 0x1cd   : > { %v1956_v18 = vpack.c.bf16 %v1679_v8, %v1678_v33  ;;  %v1958_v19 = vpack.c.bf16 %v1683_v9, %v1682_v7  ;;  %v1643_v23 = vadd.f32 %v1623_v39, %v1605_v3  ;;  %v1686_v14 = vsel %vm1654_vm12, %v1638_v1, %v1670_v15 }
 0x1ce   : > { %v1687_v34 = vsel %vm1655_vm13, %v1639_v55, %v1671_v16  ;;  %vm1658_vm14 = vcmp.gt.f32.partialorder %v1642_v22, 0.0  ;;  %v1674_v36 = vmul.f32 0.2, %v1642_v22 }
 0x1cf   : > { %1741 = vst [vmem:[%s2699_s5 + $0x8] sm:$0xff] %v1956_v18  ;;  %1743 = vst [vmem:[%s2699_s5 + $0x18] sm:$0xff] %v1958_v19  ;;  %v1960_v35 = vpack.c.bf16 %v1687_v34, %v1686_v14  ;;  %vm1659_vm15 = vcmp.gt.f32.partialorder %v1643_v23, 0.0  ;;  %v1675_v37 = vmul.f32 0.2, %v1643_v23 }
 0x1d0   : > { %v1690_v26 = vsel %vm1658_vm14, %v1642_v22, %v1674_v36 }
 0x1d1   : > { %1745 = vst [vmem:[%s2699_s5 + $0x28] sm:$0xff] %v1960_v35  ;;  %v1691_v43 = vsel %vm1659_vm15, %v1643_v23, %v1675_v37 }
 0x1d2   : > { %v1962_v45 = vpack.c.bf16 %v1691_v43, %v1690_v26 }
 0x1d4   : > { %1747 = vst [vmem:[%s2699_s5 + $0x38] sm:$0xff] %v1962_v45 }
 0x1d5 PF: > { %p12_p11 = scmp.ge.s32.totalorder %s2274_s22, 10   ;;  %s2700_s18 = smov %s2218_s19 }
 0x1d6   : > { %s2701_s19 = smov %s2283_s25  ;;  %s2702_s20 = smov %s2274_s22 }
 0x1d7   :  { %14 = sbr.rel (!%p12_p11) target bundleno = 2 (0x2), region = 105 }

</bundles_post_ra>
